<compile_context>
chip_gen: v5e
topology: v5e:2x2
jax: 0.10.0
libtpu: 0.0.40
codegen_flags: <defaults>
</compile_context>

<pallas_src>
import functools

import numpy as np
import jax
import jax.numpy as jnp
from jax.experimental import pallas as pl
from jax.experimental.pallas import tpu as pltpu

ANCHOR_SIZE = [[1.19, 1.98], [2.79, 4.59], [4.53, 8.92], [8.06, 5.29], [10.32, 10.65]]

_LANE = 128


def _round_up(x, m):
    return (x + m - 1) // m * m


@functools.lru_cache(maxsize=None)
def _vmem_limit():
    """Generation-dependent scoped-VMEM budget: ~half of physical VMEM, clamped to
    [32 MiB, 96 MiB]; falls back to the always-safe 32 MiB if the query fails."""
    cap = 0
    try:
        cap = int(getattr(pltpu.get_tpu_info(), "vmem_capacity_bytes", 0) or 0)
    except Exception:
        cap = 0
    if cap <= 0:
        return 32 * 1024 * 1024
    return max(32 * 1024 * 1024, min(cap // 2, 96 * 1024 * 1024))


def _m_tiling(m):
    """Row (M) tiling for the 1x1-conv matmul: one big tile unless M is genuinely large
    (tiny matmuls must not be split — per-step overhead dominates)."""
    if m <= 1024:
        m_pad = _round_up(m, 16)          # bf16 sublane packing
        return m_pad, m_pad, 1
    m_pad = _round_up(m, 512)
    return m_pad, 512, m_pad // 512


# ----------------------------------------------------------------------------- kernels
def _matmul_bias_kernel(x_ref, w_ref, b_ref, o_ref, *, leaky):
    """y = leaky_relu(x @ w + bias); x:(TM,K) bf16, w:(K,Cout_pad) bf16 (BN folded),
    b:(1,Cout_pad) f32; bf16 store."""
    y = jnp.dot(x_ref[...], w_ref[...], preferred_element_type=jnp.float32) + b_ref[...]
    if leaky:
        y = jnp.maximum(y, 0.1 * y)
    o_ref[...] = y.astype(o_ref.dtype)


def _conv3x3_kernel(x_ref, w_ref, b_ref, o_ref, acc_ref, *, M, Wp, Cin, leaky):
    """3x3/pad=1 conv as 9 shifted matmuls over one image's padded bf16 raster.
    x:(Hp*Wp + tail, Cin) bf16 — rows are (y_padded * Wp + x_padded), zero padded;
    w:(9*Cin, Cout_pad) bf16 (K rows ordered (dy, dx, cin));  b:(1, Cout_pad) f32;
    output rows r = y*Wp + x for y in [0,H) (valid lines only; x >= W cols are junk and
    dropped by the wrapper).  The f32 accumulation lives in a VMEM scratch."""
    for t in range(9):
        dy, dx = divmod(t, 3)
        off = dy * Wp + dx                     # uniform, static row shift for tap (dy,dx)
        p = jnp.dot(x_ref[pl.ds(off, M), :], w_ref[pl.ds(t * Cin, Cin), :],
                    preferred_element_type=jnp.float32)
        if t == 0:
            acc_ref[...] = p
        else:
            acc_ref[...] += p
    y = acc_ref[...] + b_ref[...]
    if leaky:
        y = jnp.maximum(y, 0.1 * y)
    o_ref[...] = y.astype(o_ref.dtype)


def _pred_decode_kernel(x_ref, w_ref, b_ref, g_ref, out_ref, y_ref,
                        *, A, C, stride, inv_size, anchors):
    """Fused pred 1x1 conv + YOLOv2 decode (batch element 0).
    x:(M,128) bf16, w:(128,128) bf16, b:(1,128) f32, g:(M,2) f32 grid-cell (x,y).
    Output (M,128) f32: lanes [a*C,(a+1)*C) = scores of anchor a; lanes
    [A*C + 4a, A*C + 4a + 4) = (x1,y1,x2,y2) of anchor a; remaining lanes zero."""
    y_ref[...] = (jnp.dot(x_ref[...], w_ref[...], preferred_element_type=jnp.float32)
                  + b_ref[...])
    out_ref[...] = jnp.zeros_like(out_ref)
    g = g_ref[...]
    gx = g[:, 0:1]
    gy = g[:, 1:2]
    reg0 = A + A * C
    for a in range(A):
        # scores = sigmoid(conf) * softmax(cls)  (exact, numerically stable)
        conf = y_ref[:, a:a + 1]
        cls = y_ref[:, A + a * C:A + (a + 1) * C]
        conf_sig = 0.5 * (jnp.tanh(0.5 * conf) + 1.0)
        cls_max = jnp.max(cls, axis=-1, keepdims=True)
        e = jnp.exp(cls - cls_max)
        out_ref[:, a * C:(a + 1) * C] = conf_sig * (e / jnp.sum(e, axis=-1, keepdims=True))
        # box decode
        tx = y_ref[:, reg0 + 4 * a + 0:reg0 + 4 * a + 1]
        ty = y_ref[:, reg0 + 4 * a + 1:reg0 + 4 * a + 2]
        tw = y_ref[:, reg0 + 4 * a + 2:reg0 + 4 * a + 3]
        th = y_ref[:, reg0 + 4 * a + 3:reg0 + 4 * a + 4]
        cx = (0.5 * (jnp.tanh(0.5 * tx) + 1.0) + gx) * stride
        cy = (0.5 * (jnp.tanh(0.5 * ty) + 1.0) + gy) * stride
        bw = jnp.exp(tw) * (anchors[a][0] * stride)
        bh = jnp.exp(th) * (anchors[a][1] * stride)
        base = A * C + 4 * a
        out_ref[:, base + 0:base + 1] = jnp.clip((cx - 0.5 * bw) * inv_size, 0.0, 1.0)
        out_ref[:, base + 1:base + 2] = jnp.clip((cy - 0.5 * bh) * inv_size, 0.0, 1.0)
        out_ref[:, base + 2:base + 3] = jnp.clip((cx + 0.5 * bw) * inv_size, 0.0, 1.0)
        out_ref[:, base + 3:base + 4] = jnp.clip((cy + 0.5 * bh) * inv_size, 0.0, 1.0)


# ----------------------------------------------------------------------------- wrappers
def conv1x1_block(x, w, b, *, leaky):
    """Fused 1x1 conv + folded-BN bias + optional LeakyReLU.  Batch folded into M.
    Returns the full 128-padded channel width (no slice) as bf16."""
    B, H, W, Cin = x.shape
    M = B * H * W
    cout_pad = w.shape[1]
    xf = x.reshape(M, Cin).astype(jnp.bfloat16)
    m_pad, tm, n_tiles = _m_tiling(M)
    if m_pad != M:
        xf = jnp.pad(xf, ((0, m_pad - M), (0, 0)))
    out = pl.pallas_call(
        functools.partial(_matmul_bias_kernel, leaky=leaky),
        out_shape=jax.ShapeDtypeStruct((m_pad, cout_pad), jnp.bfloat16),
        grid=(n_tiles,),
        in_specs=[
            pl.BlockSpec((tm, Cin), lambda i: (i, 0)),
            pl.BlockSpec((Cin, cout_pad), lambda i: (0, 0)),
            pl.BlockSpec((1, cout_pad), lambda i: (0, 0)),
        ],
        out_specs=pl.BlockSpec((tm, cout_pad), lambda i: (i, 0)),
        compiler_params=pltpu.CompilerParams(
            dimension_semantics=("parallel",),
            vmem_limit_bytes=_vmem_limit()),
    )(xf, w, b)
    if m_pad != M:
        out = out[:M]
    return out.reshape(B, H, W, cout_pad)


def conv3x3_block(x, w, b, *, leaky):
    """Fused 3x3 (pad=1) conv + folded-BN bias + optional LeakyReLU, gridded over batch.
    The activation crosses HBM once as a bf16 padded raster (row stride padded to 8);
    only valid output lines are computed (output raster rows r = y*Wp + x)."""
    B, H, W, Cin = x.shape
    cout_pad = w.shape[1]
    assert w.shape[0] == 9 * Cin, (w.shape, Cin)
    Hp = H + 2
    Wp = _round_up(W + 2, 8)               # sublane-aligned raster row stride
    m_in = Hp * Wp + 8                     # +tail rows (>=2 needed) so shifted reads stay in bounds
    m_out = H * Wp                         # valid output lines only (no vertical pad rows)
    xp = jnp.pad(x.astype(jnp.bfloat16),
                 ((0, 0), (1, 1), (1, Wp - W - 1), (0, 0)))     # conv zero padding (+col pad)
    xf = jnp.pad(xp.reshape(B, Hp * Wp, Cin), ((0, 0), (0, m_in - Hp * Wp), (0, 0)))
    out = pl.pallas_call(
        functools.partial(_conv3x3_kernel, M=m_out, Wp=Wp, Cin=Cin, leaky=leaky),
        out_shape=jax.ShapeDtypeStruct((B, m_out, cout_pad), jnp.bfloat16),
        grid=(B,),
        in_specs=[
            pl.BlockSpec((None, m_in, Cin), lambda i: (i, 0, 0)),
            pl.BlockSpec((9 * Cin, cout_pad), lambda i: (0, 0)),
            pl.BlockSpec((1, cout_pad), lambda i: (0, 0)),
        ],
        out_specs=pl.BlockSpec((None, m_out, cout_pad), lambda i: (i, 0, 0)),
        scratch_shapes=[pltpu.VMEM((m_out, cout_pad), jnp.float32)],
        compiler_params=pltpu.CompilerParams(
            dimension_semantics=("parallel",),
            vmem_limit_bytes=_vmem_limit()),
    )(xf, w, b)
    # output raster row = y*Wp + x; columns x >= W are junk and dropped here.
    return out.reshape(B, H, Wp, cout_pad)[:, :, :W, :]


def pred_decode_call(x_b0, w, b, grid_xy, *, A, C, stride, input_size, anchors):
    """Fused pred conv + decode for batch element 0.  Returns (scores, boxes)."""
    H, W, Cin = x_b0.shape
    M = H * W
    m_pad = _round_up(M, 16)
    xf = x_b0.reshape(M, Cin).astype(jnp.bfloat16)
    gf = grid_xy
    if m_pad != M:
        xf = jnp.pad(xf, ((0, m_pad - M), (0, 0)))
        gf = jnp.pad(gf, ((0, m_pad - M), (0, 0)))
    out = pl.pallas_call(
        functools.partial(_pred_decode_kernel, A=A, C=C, stride=float(stride),
                          inv_size=1.0 / float(input_size), anchors=anchors),
        out_shape=jax.ShapeDtypeStruct((m_pad, _LANE), jnp.float32),
        scratch_shapes=[pltpu.VMEM((m_pad, _LANE), jnp.float32)],
        compiler_params=pltpu.CompilerParams(vmem_limit_bytes=_vmem_limit()),
    )(xf, w, b, gf)
    scores = out[:M, :A * C].reshape(M * A, C)              # (HW*A, C), anchor-major
    boxes = out[:M, A * C:A * C + 4 * A].reshape(M * A, 4)  # (HW*A, 4)
    return scores, boxes


def reorg_nhwc(x, s):
    """Space-to-depth matching the torch reorg_layer channel ordering (q*C + c)."""
    B, H, W, C = x.shape
    x = x.reshape(B, H // s, s, W // s, s, C)
    x = x.transpose(0, 1, 3, 2, 4, 5)
    return x.reshape(B, H // s, W // s, s * s * C)


# ----------------------------------------------------------------------------- model
class YOLOv2D19Pallas:
    def __init__(self, key, input_size=128, num_classes=20, anchor_size=None,
                 conf_thresh=0.001, nms_thresh=0.5,
                 c2=32, c3=64, c_route=8, c_head=64):
        anchor_size = anchor_size if anchor_size is not None else ANCHOR_SIZE
        self.input_size = input_size
        self.num_classes = num_classes
        self.conf_thresh = conf_thresh
        self.nms_thresh = nms_thresh
        self.anchor_list = tuple(tuple(float(v) for v in a) for a in anchor_size)
        self.num_anchors = len(anchor_size)
        self.stride = 32
        assert self.num_anchors * (self.num_classes + 4) <= _LANE  # packed decode output

        # grid cell (x, y) per cell index hw = y*ws + x  (create_grid equivalent)
        hs = ws = input_size // self.stride
        ys, xs = jnp.meshgrid(jnp.arange(hs), jnp.arange(ws), indexing="ij")
        self.grid_xy = jnp.stack([xs, ys], axis=-1).reshape(hs * ws, 2).astype(jnp.float32)

        # Conv2d(bias=False)+BN init, BN scale folded into the weights; weights are laid
        # out in the padded input-channel space and padded to a 128-multiple output width
        # so every activation stays 128-lane dense end-to-end.
        # NOTE: real PyTorch weights (Cout, Cin, kH, kW) would be transposed to
        # (kH, kW, Cin, Cout) before this packing.
        def init_conv(k, cin, cout, ksize, *, cin_pad=None, cin_map=None, with_bn=True):
            cin_pad = _round_up(cin, _LANE) if cin_pad is None else cin_pad
            k1, k2, k3, k4, k5 = jax.random.split(k, 5)
            fan_in = ksize * ksize * cin
            w = np.asarray(jax.random.normal(k1, (ksize, ksize, cin, cout), jnp.float32))
            w = w / np.sqrt(fan_in)
            if with_bn:
                gamma = 1.0 + 0.1 * np.asarray(jax.random.normal(k2, (cout,), jnp.float32))
                beta = 0.1 * np.asarray(jax.random.normal(k3, (cout,), jnp.float32))
                mean = 0.1 * np.asarray(jax.random.normal(k4, (cout,), jnp.float32))
                var = np.asarray(jax.random.uniform(k5, (cout,), jnp.float32, 0.5, 1.5))
                scale = gamma / np.sqrt(var + 1e-5)
                bias = beta - mean * scale
            else:
                scale = np.ones((cout,), np.float32)
                bias = 0.01 * np.asarray(jax.random.normal(k2, (cout,), jnp.float32))
            w = w * scale                                       # fold BN scale
            cout_pad = _round_up(cout, _LANE)
            idx = np.arange(cin) if cin_map is None else np.asarray(cin_map)
            w_full = np.zeros((ksize, ksize, cin_pad, cout_pad), np.float32)
            w_full[:, :, idx, :cout] = w
            b_full = np.zeros((1, cout_pad), np.float32)
            b_full[0, :cout] = bias
            w_jnp = jnp.asarray(w_full.reshape(ksize * ksize * cin_pad, cout_pad),
                                jnp.bfloat16)
            return w_jnp, jnp.asarray(b_full)

        keys = jax.random.split(key, 7)
        # TODO(synk): build_backbone (DarkNet-19) is an external import not present in the
        # module source; replaced by a deterministic space-to-depth + Pallas 1x1-conv
        # stand-in producing correctly strided/shaped layer2 (s=16) / layer3 (s=32) feats.
        self.bb_l2 = init_conv(keys[0], 3 * 16 * 16, c2, 1)
        self.bb_l3 = init_conv(keys[1], 3 * 32 * 32, c3, 1)
        self.convsets_1 = [init_conv(keys[2], c3, c3, 3),
                           init_conv(keys[3], c3, c3, 3)]
        self.route_layer = init_conv(keys[4], c2, c_route, 1)
        # convsets_2 input = concat(reorg(route_out, 2), p5) in padded channel layout:
        # logical channels live at [q*128 + c (q<4, c<c_route)] ++ [4*128 + c (c<c3)].
        cin_map2 = np.array([q * _LANE + c for q in range(4) for c in range(c_route)]
                            + [4 * _LANE + c for c in range(c3)])
        self.convsets_2 = init_conv(keys[5], 4 * c_route + c3, c_head, 3,
                                    cin_pad=4 * _LANE + _round_up(c3, _LANE),
                                    cin_map=cin_map2)
        abC = self.num_anchors * (1 + 4 + self.num_classes)
        self.pred = init_conv(keys[6], c_head, abC, 1, with_bn=False)

        self._device_forward = jax.jit(self._device_forward_impl)

    # ---------------- device forward (matches the torch inference path) ---------------
    def _device_forward_impl(self, x_nchw):
        x = jnp.transpose(x_nchw, (0, 2, 3, 1)).astype(jnp.bfloat16)   # NCHW -> NHWC, bf16

        # backbone stand-in: layer2 (stride 16) and layer3 (stride 32) features
        l2 = conv1x1_block(reorg_nhwc(x, 16), *self.bb_l2, leaky=True)
        l3 = conv1x1_block(reorg_nhwc(x, 32), *self.bb_l3, leaky=True)

        p5 = conv3x3_block(l3, *self.convsets_1[0], leaky=True)
        p5 = conv3x3_block(p5, *self.convsets_1[1], leaky=True)

        p4 = conv1x1_block(l2, *self.route_layer, leaky=True)
        p4 = reorg_nhwc(p4, 2)

        p5 = jnp.concatenate([p4, p5], axis=-1)            # cat([p4, p5], channel)
        p5 = conv3x3_block(p5, *self.convsets_2, leaky=True)

        # inference decodes batch element 0 only -> slice before the pred conv, then run
        # the fused pred-conv + decode kernel.
        return pred_decode_call(p5[0], *self.pred, self.grid_xy,
                                A=self.num_anchors, C=self.num_classes,
                                stride=self.stride, input_size=self.input_size,
                                anchors=self.anchor_list)

    def forward(self, x_nchw):
        scores_d, bboxes_d = self._device_forward(x_nchw)
        jax.block_until_ready((scores_d, bboxes_d))
        return self.postprocess(np.asarray(bboxes_d), np.asarray(scores_d))

    # ---------------- host-side numpy post-processing (verbatim semantics) ------------
    def nms(self, dets, scores):
        x1 = dets[:, 0]; y1 = dets[:, 1]; x2 = dets[:, 2]; y2 = dets[:, 3]
        areas = (x2 - x1) * (y2 - y1)
        order = scores.argsort()[::-1]
        keep = []
        while order.size > 0:
            i = order[0]
            keep.append(i)
            xx1 = np.maximum(x1[i], x1[order[1:]])
            yy1 = np.maximum(y1[i], y1[order[1:]])
            xx2 = np.minimum(x2[i], x2[order[1:]])
            yy2 = np.minimum(y2[i], y2[order[1:]])
            w = np.maximum(1e-10, xx2 - xx1)
            h = np.maximum(1e-10, yy2 - yy1)
            inter = w * h
            ovr = inter / (areas[i] + areas[order[1:]] - inter)
            inds = np.where(ovr <= self.nms_thresh)[0]
            order = order[inds + 1]
        return keep

    def postprocess(self, bboxes, scores):
        cls_inds = np.argmax(scores, axis=1)
        scores = scores[np.arange(scores.shape[0]), cls_inds]
        keep = np.where(scores >= self.conf_thresh)
        bboxes = bboxes[keep]
        scores = scores[keep]
        cls_inds = cls_inds[keep]
        keep = np.zeros(len(bboxes), dtype=np.int8)
        for i in range(self.num_classes):
            inds = np.where(cls_inds == i)[0]
            if len(inds) == 0:
                continue
            c_bboxes = bboxes[inds]
            c_scores = scores[inds]
            c_keep = self.nms(c_bboxes, c_scores)
            keep[inds[c_keep]] = 1
        keep = np.where(keep > 0)
        bboxes = bboxes[keep]
        scores = scores[keep]
        cls_inds = cls_inds[keep]
        return bboxes, scores, cls_inds


# ----------------------------------------------------------------------------- main
if __name__ == "__main__":
    key = jax.random.PRNGKey(0)
    k_param, k_input = jax.random.split(key)

    input_size = 128                       # must be divisible by stride=32
    B = 2
    x = jax.random.normal(k_input, (B, 3, input_size, input_size), jnp.float32)

    model = YOLOv2D19Pallas(k_param, input_size=input_size, num_classes=20,
                            anchor_size=ANCHOR_SIZE)
    bboxes, scores, cls_inds = model.forward(x)

    assert bboxes.ndim == 2 and bboxes.shape[1] == 4
    assert scores.shape[0] == bboxes.shape[0] == cls_inds.shape[0]
    assert np.all(np.isfinite(scores))
    print("KERNEL_OK")
</pallas_src>

<mosaic_0001>
module attributes {stable_mosaic.version = 11 : i64} {
  func.func @_matmul_bias_kernel(%arg0: i32, %arg1: memref<128x768xbf16, #tpu.memory_space<vmem>>, %arg2: memref<768x128xbf16, #tpu.memory_space<vmem>>, %arg3: memref<1x128xf32, #tpu.memory_space<vmem>>, %arg4: memref<128x128xbf16, #tpu.memory_space<vmem>>) attributes {dimension_semantics = [#tpu.dimension_semantics<parallel>], iteration_bounds = array<i64: 1>, scalar_prefetch = 0 : i64, scratch_operands = 0 : i64, tpu.core_type = #tpu.core_type<tc>, window_params = [{transform_indices = @transform_0, window_bounds = array<i64: 128, 768>}, {pipeline_mode = #tpu.pipeline_mode<synchronous>, transform_indices = @transform_1, window_bounds = array<i64: 768, 128>}, {pipeline_mode = #tpu.pipeline_mode<synchronous>, transform_indices = @transform_2, window_bounds = array<i64: 1, 128>}, {transform_indices = @transform_3, window_bounds = array<i64: 128, 128>}]} {
    %c0 = arith.constant 0 : index
    %c0_0 = arith.constant 0 : index
    %0 = vector.load %arg1[%c0, %c0_0] : memref<128x768xbf16, #tpu.memory_space<vmem>>, vector<128x768xbf16>
    %c0_1 = arith.constant 0 : index
    %c0_2 = arith.constant 0 : index
    %1 = vector.load %arg2[%c0_1, %c0_2] : memref<768x128xbf16, #tpu.memory_space<vmem>>, vector<768x128xbf16>
    %cst = arith.constant dense<0.000000e+00> : vector<128x128xf32>
    %2 = tpu.matmul %0, %1, %cst {dimension_numbers = #tpu.dot_dimension_numbers<[1], [0], [0], [1], [0, 0, 1, 1], [], []>} : vector<128x768xbf16>, vector<768x128xbf16>, vector<128x128xf32> -> vector<128x128xf32>
    %c0_3 = arith.constant 0 : index
    %c0_4 = arith.constant 0 : index
    %3 = vector.load %arg3[%c0_3, %c0_4] : memref<1x128xf32, #tpu.memory_space<vmem>>, vector<1x128xf32>
    %4 = vector.broadcast %3 : vector<1x128xf32> to vector<128x128xf32>
    %5 = arith.addf %2, %4 : vector<128x128xf32>
    %cst_5 = arith.constant 1.000000e-01 : f32
    %6 = vector.broadcast %cst_5 : f32 to vector<128x128xf32>
    %7 = arith.mulf %6, %5 : vector<128x128xf32>
    %8 = arith.maximumf %5, %7 : vector<128x128xf32>
    %9 = arith.truncf %8 : vector<128x128xf32> to vector<128x128xbf16>
    %c0_6 = arith.constant 0 : index
    %c0_7 = arith.constant 0 : index
    %10 = vector.load %arg4[%c0_6, %c0_7] : memref<128x128xbf16, #tpu.memory_space<vmem>>, vector<128x128xbf16>
    tpu.vector_store %arg4[%c0_6, %c0_7], %9 {strides = array<i32>} : memref<128x128xbf16, #tpu.memory_space<vmem>>, vector<128x128xbf16>,
    return
  }
  func.func @transform_0(%arg0: i32) -> (i32, i32) {
    %c0_i32 = arith.constant 0 : i32
    %c0_i32_0 = arith.constant 0 : i32
    return %arg0, %c0_i32 : i32, i32
  }
  func.func @transform_1(%arg0: i32) -> (i32, i32) {
    %c0_i32 = arith.constant 0 : i32
    %c0_i32_0 = arith.constant 0 : i32
    %c0_i32_1 = arith.constant 0 : i32
    return %c0_i32, %c0_i32_0 : i32, i32
  }
  func.func @transform_2(%arg0: i32) -> (i32, i32) {
    %c0_i32 = arith.constant 0 : i32
    %c0_i32_0 = arith.constant 0 : i32
    %c0_i32_1 = arith.constant 0 : i32
    return %c0_i32, %c0_i32_0 : i32, i32
  }
  func.func @transform_3(%arg0: i32) -> (i32, i32) {
    %c0_i32 = arith.constant 0 : i32
    %c0_i32_0 = arith.constant 0 : i32
    return %arg0, %c0_i32 : i32, i32
  }
}

module attributes {stable_mosaic.version = 11 : i64} {
  func.func @_matmul_bias_kernel(%arg0: i32, %arg1: memref<128x128xbf16, #tpu.memory_space<vmem>>, %arg2: memref<128x128xbf16, #tpu.memory_space<vmem>>, %arg3: memref<1x128xf32, #tpu.memory_space<vmem>>, %arg4: memref<128x128xbf16, #tpu.memory_space<vmem>>) attributes {dimension_semantics = [#tpu.dimension_semantics<parallel>], iteration_bounds = array<i64: 1>, scalar_prefetch = 0 : i64, scratch_operands = 0 : i64, tpu.core_type = #tpu.core_type<tc>, window_params = [{transform_indices = @transform_0, window_bounds = array<i64: 128, 128>}, {pipeline_mode = #tpu.pipeline_mode<synchronous>, transform_indices = @transform_1, window_bounds = array<i64: 128, 128>}, {pipeline_mode = #tpu.pipeline_mode<synchronous>, transform_indices = @transform_2, window_bounds = array<i64: 1, 128>}, {transform_indices = @transform_3, window_bounds = array<i64: 128, 128>}]} {
    %c0 = arith.constant 0 : index
    %c0_0 = arith.constant 0 : index
    %0 = vector.load %arg1[%c0, %c0_0] : memref<128x128xbf16, #tpu.memory_space<vmem>>, vector<128x128xbf16>
    %c0_1 = arith.constant 0 : index
    %c0_2 = arith.constant 0 : index
    %1 = vector.load %arg2[%c0_1, %c0_2] : memref<128x128xbf16, #tpu.memory_space<vmem>>, vector<128x128xbf16>
    %cst = arith.constant dense<0.000000e+00> : vector<128x128xf32>
    %2 = tpu.matmul %0, %1, %cst {dimension_numbers = #tpu.dot_dimension_numbers<[1], [0], [0], [1], [0, 0, 1, 1], [], []>} : vector<128x128xbf16>, vector<128x128xbf16>, vector<128x128xf32> -> vector<128x128xf32>
    %c0_3 = arith.constant 0 : index
    %c0_4 = arith.constant 0 : index
    %3 = vector.load %arg3[%c0_3, %c0_4] : memref<1x128xf32, #tpu.memory_space<vmem>>, vector<1x128xf32>
    %4 = vector.broadcast %3 : vector<1x128xf32> to vector<128x128xf32>
    %5 = arith.addf %2, %4 : vector<128x128xf32>
    %cst_5 = arith.constant 1.000000e-01 : f32
    %6 = vector.broadcast %cst_5 : f32 to vector<128x128xf32>
    %7 = arith.mulf %6, %5 : vector<128x128xf32>
    %8 = arith.maximumf %5, %7 : vector<128x128xf32>
    %9 = arith.truncf %8 : vector<128x128xf32> to vector<128x128xbf16>
    %c0_6 = arith.constant 0 : index
    %c0_7 = arith.constant 0 : index
    %10 = vector.load %arg4[%c0_6, %c0_7] : memref<128x128xbf16, #tpu.memory_space<vmem>>, vector<128x128xbf16>
    tpu.vector_store %arg4[%c0_6, %c0_7], %9 {strides = array<i32>} : memref<128x128xbf16, #tpu.memory_space<vmem>>, vector<128x128xbf16>,
    return
  }
  func.func @transform_0(%arg0: i32) -> (i32, i32) {
    %c0_i32 = arith.constant 0 : i32
    %c0_i32_0 = arith.constant 0 : i32
    return %arg0, %c0_i32 : i32, i32
  }
  func.func @transform_1(%arg0: i32) -> (i32, i32) {
    %c0_i32 = arith.constant 0 : i32
    %c0_i32_0 = arith.constant 0 : i32
    %c0_i32_1 = arith.constant 0 : i32
    return %c0_i32, %c0_i32_0 : i32, i32
  }
  func.func @transform_2(%arg0: i32) -> (i32, i32) {
    %c0_i32 = arith.constant 0 : i32
    %c0_i32_0 = arith.constant 0 : i32
    %c0_i32_1 = arith.constant 0 : i32
    return %c0_i32, %c0_i32_0 : i32, i32
  }
  func.func @transform_3(%arg0: i32) -> (i32, i32) {
    %c0_i32 = arith.constant 0 : i32
    %c0_i32_0 = arith.constant 0 : i32
    return %arg0, %c0_i32 : i32, i32
  }
}

module attributes {stable_mosaic.version = 11 : i64} {
  func.func @_matmul_bias_kernel(%arg0: i32, %arg1: memref<32x3072xbf16, #tpu.memory_space<vmem>>, %arg2: memref<3072x128xbf16, #tpu.memory_space<vmem>>, %arg3: memref<1x128xf32, #tpu.memory_space<vmem>>, %arg4: memref<32x128xbf16, #tpu.memory_space<vmem>>) attributes {dimension_semantics = [#tpu.dimension_semantics<parallel>], iteration_bounds = array<i64: 1>, scalar_prefetch = 0 : i64, scratch_operands = 0 : i64, tpu.core_type = #tpu.core_type<tc>, window_params = [{transform_indices = @transform_0, window_bounds = array<i64: 32, 3072>}, {pipeline_mode = #tpu.pipeline_mode<synchronous>, transform_indices = @transform_1, window_bounds = array<i64: 3072, 128>}, {pipeline_mode = #tpu.pipeline_mode<synchronous>, transform_indices = @transform_2, window_bounds = array<i64: 1, 128>}, {transform_indices = @transform_3, window_bounds = array<i64: 32, 128>}]} {
    %c0 = arith.constant 0 : index
    %c0_0 = arith.constant 0 : index
    %0 = vector.load %arg1[%c0, %c0_0] : memref<32x3072xbf16, #tpu.memory_space<vmem>>, vector<32x3072xbf16>
    %c0_1 = arith.constant 0 : index
    %c0_2 = arith.constant 0 : index
    %1 = vector.load %arg2[%c0_1, %c0_2] : memref<3072x128xbf16, #tpu.memory_space<vmem>>, vector<3072x128xbf16>
    %cst = arith.constant dense<0.000000e+00> : vector<32x128xf32>
    %2 = tpu.matmul %0, %1, %cst {dimension_numbers = #tpu.dot_dimension_numbers<[1], [0], [0], [1], [0, 0, 1, 1], [], []>} : vector<32x3072xbf16>, vector<3072x128xbf16>, vector<32x128xf32> -> vector<32x128xf32>
    %c0_3 = arith.constant 0 : index
    %c0_4 = arith.constant 0 : index
    %3 = vector.load %arg3[%c0_3, %c0_4] : memref<1x128xf32, #tpu.memory_space<vmem>>, vector<1x128xf32>
    %4 = vector.broadcast %3 : vector<1x128xf32> to vector<32x128xf32>
    %5 = arith.addf %2, %4 : vector<32x128xf32>
    %cst_5 = arith.constant 1.000000e-01 : f32
    %6 = vector.broadcast %cst_5 : f32 to vector<32x128xf32>
    %7 = arith.mulf %6, %5 : vector<32x128xf32>
    %8 = arith.maximumf %5, %7 : vector<32x128xf32>
    %9 = arith.truncf %8 : vector<32x128xf32> to vector<32x128xbf16>
    %c0_6 = arith.constant 0 : index
    %c0_7 = arith.constant 0 : index
    %10 = vector.load %arg4[%c0_6, %c0_7] : memref<32x128xbf16, #tpu.memory_space<vmem>>, vector<32x128xbf16>
    tpu.vector_store %arg4[%c0_6, %c0_7], %9 {strides = array<i32>} : memref<32x128xbf16, #tpu.memory_space<vmem>>, vector<32x128xbf16>,
    return
  }
  func.func @transform_0(%arg0: i32) -> (i32, i32) {
    %c0_i32 = arith.constant 0 : i32
    %c0_i32_0 = arith.constant 0 : i32
    return %arg0, %c0_i32 : i32, i32
  }
  func.func @transform_1(%arg0: i32) -> (i32, i32) {
    %c0_i32 = arith.constant 0 : i32
    %c0_i32_0 = arith.constant 0 : i32
    %c0_i32_1 = arith.constant 0 : i32
    return %c0_i32, %c0_i32_0 : i32, i32
  }
  func.func @transform_2(%arg0: i32) -> (i32, i32) {
    %c0_i32 = arith.constant 0 : i32
    %c0_i32_0 = arith.constant 0 : i32
    %c0_i32_1 = arith.constant 0 : i32
    return %c0_i32, %c0_i32_0 : i32, i32
  }
  func.func @transform_3(%arg0: i32) -> (i32, i32) {
    %c0_i32 = arith.constant 0 : i32
    %c0_i32_0 = arith.constant 0 : i32
    return %arg0, %c0_i32 : i32, i32
  }
}

module attributes {stable_mosaic.version = 11 : i64} {
  func.func @_conv3x3_kernel(%arg0: i32, %arg1: memref<1x56x128xbf16, #tpu.memory_space<vmem>>, %arg2: memref<1152x128xbf16, #tpu.memory_space<vmem>>, %arg3: memref<1x128xf32, #tpu.memory_space<vmem>>, %arg4: memref<1x32x128xbf16, #tpu.memory_space<vmem>>, %arg5: memref<32x128xf32, #tpu.memory_space<vmem>>) attributes {dimension_semantics = [#tpu.dimension_semantics<parallel>], iteration_bounds = array<i64: 2>, scalar_prefetch = 0 : i64, scratch_operands = 1 : i64, tpu.core_type = #tpu.core_type<tc>, window_params = [{transform_indices = @transform_0, window_bounds = array<i64: 1, 56, 128>}, {pipeline_mode = #tpu.pipeline_mode<synchronous>, transform_indices = @transform_1, window_bounds = array<i64: 1152, 128>}, {pipeline_mode = #tpu.pipeline_mode<synchronous>, transform_indices = @transform_2, window_bounds = array<i64: 1, 128>}, {transform_indices = @transform_3, window_bounds = array<i64: 1, 32, 128>}]} {
    %c0 = arith.constant 0 : index
    %c0_0 = arith.constant 0 : index
    %c0_1 = arith.constant 0 : index
    %0 = vector.load %arg1[%c0, %c0_0, %c0_1] : memref<1x56x128xbf16, #tpu.memory_space<vmem>>, vector<1x32x128xbf16>
    %1 = vector.shape_cast %0 : vector<1x32x128xbf16> to vector<32x128xbf16>
    %c0_2 = arith.constant 0 : index
    %c0_3 = arith.constant 0 : index
    %2 = vector.load %arg2[%c0_2, %c0_3] : memref<1152x128xbf16, #tpu.memory_space<vmem>>, vector<128x128xbf16>
    %cst = arith.constant dense<0.000000e+00> : vector<32x128xf32>
    %3 = tpu.matmul %1, %2, %cst {dimension_numbers = #tpu.dot_dimension_numbers<[1], [0], [0], [1], [0, 0, 1, 1], [], []>} : vector<32x128xbf16>, vector<128x128xbf16>, vector<32x128xf32> -> vector<32x128xf32>
    %c0_4 = arith.constant 0 : index
    %c0_5 = arith.constant 0 : index
    %4 = vector.load %arg5[%c0_4, %c0_5] : memref<32x128xf32, #tpu.memory_space<vmem>>, vector<32x128xf32>
    tpu.vector_store %arg5[%c0_4, %c0_5], %3 {strides = array<i32>} : memref<32x128xf32, #tpu.memory_space<vmem>>, vector<32x128xf32>,
    %c0_6 = arith.constant 0 : index
    %c1 = arith.constant 1 : index
    %c0_7 = arith.constant 0 : index
    %5 = vector.load %arg1[%c0_6, %c1, %c0_7] : memref<1x56x128xbf16, #tpu.memory_space<vmem>>, vector<1x32x128xbf16>
    %6 = vector.shape_cast %5 : vector<1x32x128xbf16> to vector<32x128xbf16>
    %c128 = arith.constant 128 : index
    %c0_8 = arith.constant 0 : index
    %7 = vector.load %arg2[%c128, %c0_8] : memref<1152x128xbf16, #tpu.memory_space<vmem>>, vector<128x128xbf16>
    %cst_9 = arith.constant dense<0.000000e+00> : vector<32x128xf32>
    %8 = tpu.matmul %6, %7, %cst_9 {dimension_numbers = #tpu.dot_dimension_numbers<[1], [0], [0], [1], [0, 0, 1, 1], [], []>} : vector<32x128xbf16>, vector<128x128xbf16>, vector<32x128xf32> -> vector<32x128xf32>
    %c0_10 = arith.constant 0 : index
    %c0_11 = arith.constant 0 : index
    %9 = vector.load %arg5[%c0_10, %c0_11] : memref<32x128xf32, #tpu.memory_space<vmem>>, vector<32x128xf32>
    %10 = arith.addf %9, %8 : vector<32x128xf32>
    %c0_12 = arith.constant 0 : index
    %c0_13 = arith.constant 0 : index
    %11 = vector.load %arg5[%c0_12, %c0_13] : memref<32x128xf32, #tpu.memory_space<vmem>>, vector<32x128xf32>
    tpu.vector_store %arg5[%c0_12, %c0_13], %10 {strides = array<i32>} : memref<32x128xf32, #tpu.memory_space<vmem>>, vector<32x128xf32>,
    %c0_14 = arith.constant 0 : index
    %c2 = arith.constant 2 : index
    %c0_15 = arith.constant 0 : index
    %12 = vector.load %arg1[%c0_14, %c2, %c0_15] : memref<1x56x128xbf16, #tpu.memory_space<vmem>>, vector<1x32x128xbf16>
    %13 = vector.shape_cast %12 : vector<1x32x128xbf16> to vector<32x128xbf16>
    %c256 = arith.constant 256 : index
    %c0_16 = arith.constant 0 : index
    %14 = vector.load %arg2[%c256, %c0_16] : memref<1152x128xbf16, #tpu.memory_space<vmem>>, vector<128x128xbf16>
    %cst_17 = arith.constant dense<0.000000e+00> : vector<32x128xf32>
    %15 = tpu.matmul %13, %14, %cst_17 {dimension_numbers = #tpu.dot_dimension_numbers<[1], [0], [0], [1], [0, 0, 1, 1], [], []>} : vector<32x128xbf16>, vector<128x128xbf16>, vector<32x128xf32> -> vector<32x128xf32>
    %c0_18 = arith.constant 0 : index
    %c0_19 = arith.constant 0 : index
    %16 = vector.load %arg5[%c0_18, %c0_19] : memref<32x128xf32, #tpu.memory_space<vmem>>, vector<32x128xf32>
    %17 = arith.addf %16, %15 : vector<32x128xf32>
    %c0_20 = arith.constant 0 : index
    %c0_21 = arith.constant 0 : index
    %18 = vector.load %arg5[%c0_20, %c0_21] : memref<32x128xf32, #tpu.memory_space<vmem>>, vector<32x128xf32>
    tpu.vector_store %arg5[%c0_20, %c0_21], %17 {strides = array<i32>} : memref<32x128xf32, #tpu.memory_space<vmem>>, vector<32x128xf32>,
    %c0_22 = arith.constant 0 : index
    %c8 = arith.constant 8 : index
    %c0_23 = arith.constant 0 : index
    %19 = vector.load %arg1[%c0_22, %c8, %c0_23] : memref<1x56x128xbf16, #tpu.memory_space<vmem>>, vector<1x32x128xbf16>
    %20 = vector.shape_cast %19 : vector<1x32x128xbf16> to vector<32x128xbf16>
    %c384 = arith.constant 384 : index
    %c0_24 = arith.constant 0 : index
    %21 = vector.load %arg2[%c384, %c0_24] : memref<1152x128xbf16, #tpu.memory_space<vmem>>, vector<128x128xbf16>
    %cst_25 = arith.constant dense<0.000000e+00> : vector<32x128xf32>
    %22 = tpu.matmul %20, %21, %cst_25 {dimension_numbers = #tpu.dot_dimension_numbers<[1], [0], [0], [1], [0, 0, 1, 1], [], []>} : vector<32x128xbf16>, vector<128x128xbf16>, vector<32x128xf32> -> vector<32x128xf32>
    %c0_26 = arith.constant 0 : index
    %c0_27 = arith.constant 0 : index
    %23 = vector.load %arg5[%c0_26, %c0_27] : memref<32x128xf32, #tpu.memory_space<vmem>>, vector<32x128xf32>
    %24 = arith.addf %23, %22 : vector<32x128xf32>
    %c0_28 = arith.constant 0 : index
    %c0_29 = arith.constant 0 : index
    %25 = vector.load %arg5[%c0_28, %c0_29] : memref<32x128xf32, #tpu.memory_space<vmem>>, vector<32x128xf32>
    tpu.vector_store %arg5[%c0_28, %c0_29], %24 {strides = array<i32>} : memref<32x128xf32, #tpu.memory_space<vmem>>, vector<32x128xf32>,
    %c0_30 = arith.constant 0 : index
    %c9 = arith.constant 9 : index
    %c0_31 = arith.constant 0 : index
    %26 = vector.load %arg1[%c0_30, %c9, %c0_31] : memref<1x56x128xbf16, #tpu.memory_space<vmem>>, vector<1x32x128xbf16>
    %27 = vector.shape_cast %26 : vector<1x32x128xbf16> to vector<32x128xbf16>
    %c512 = arith.constant 512 : index
    %c0_32 = arith.constant 0 : index
    %28 = vector.load %arg2[%c512, %c0_32] : memref<1152x128xbf16, #tpu.memory_space<vmem>>, vector<128x128xbf16>
    %cst_33 = arith.constant dense<0.000000e+00> : vector<32x128xf32>
    %29 = tpu.matmul %27, %28, %cst_33 {dimension_numbers = #tpu.dot_dimension_numbers<[1], [0], [0], [1], [0, 0, 1, 1], [], []>} : vector<32x128xbf16>, vector<128x128xbf16>, vector<32x128xf32> -> vector<32x128xf32>
    %c0_34 = arith.constant 0 : index
    %c0_35 = arith.constant 0 : index
    %30 = vector.load %arg5[%c0_34, %c0_35] : memref<32x128xf32, #tpu.memory_space<vmem>>, vector<32x128xf32>
    %31 = arith.addf %30, %29 : vector<32x128xf32>
    %c0_36 = arith.constant 0 : index
    %c0_37 = arith.constant 0 : index
    %32 = vector.load %arg5[%c0_36, %c0_37] : memref<32x128xf32, #tpu.memory_space<vmem>>, vector<32x128xf32>
    tpu.vector_store %arg5[%c0_36, %c0_37], %31 {strides = array<i32>} : memref<32x128xf32, #tpu.memory_space<vmem>>, vector<32x128xf32>,
    %c0_38 = arith.constant 0 : index
    %c10 = arith.constant 10 : index
    %c0_39 = arith.constant 0 : index
    %33 = vector.load %arg1[%c0_38, %c10, %c0_39] : memref<1x56x128xbf16, #tpu.memory_space<vmem>>, vector<1x32x128xbf16>
    %34 = vector.shape_cast %33 : vector<1x32x128xbf16> to vector<32x128xbf16>
    %c640 = arith.constant 640 : index
    %c0_40 = arith.constant 0 : index
    %35 = vector.load %arg2[%c640, %c0_40] : memref<1152x128xbf16, #tpu.memory_space<vmem>>, vector<128x128xbf16>
    %cst_41 = arith.constant dense<0.000000e+00> : vector<32x128xf32>
    %36 = tpu.matmul %34, %35, %cst_41 {dimension_numbers = #tpu.dot_dimension_numbers<[1], [0], [0], [1], [0, 0, 1, 1], [], []>} : vector<32x128xbf16>, vector<128x128xbf16>, vector<32x128xf32> -> vector<32x128xf32>
    %c0_42 = arith.constant 0 : index
    %c0_43 = arith.constant 0 : index
    %37 = vector.load %arg5[%c0_42, %c0_43] : memref<32x128xf32, #tpu.memory_space<vmem>>, vector<32x128xf32>
    %38 = arith.addf %37, %36 : vector<32x128xf32>
    %c0_44 = arith.constant 0 : index
    %c0_45 = arith.constant 0 : index
    %39 = vector.load %arg5[%c0_44, %c0_45] : memref<32x128xf32, #tpu.memory_space<vmem>>, vector<32x128xf32>
    tpu.vector_store %arg5[%c0_44, %c0_45], %38 {strides = array<i32>} : memref<32x128xf32, #tpu.memory_space<vmem>>, vector<32x128xf32>,
    %c0_46 = arith.constant 0 : index
    %c16 = arith.constant 16 : index
    %c0_47 = arith.constant 0 : index
    %40 = vector.load %arg1[%c0_46, %c16, %c0_47] : memref<1x56x128xbf16, #tpu.memory_space<vmem>>, vector<1x32x128xbf16>
    %41 = vector.shape_cast %40 : vector<1x32x128xbf16> to vector<32x128xbf16>
    %c768 = arith.constant 768 : index
    %c0_48 = arith.constant 0 : index
    %42 = vector.load %arg2[%c768, %c0_48] : memref<1152x128xbf16, #tpu.memory_space<vmem>>, vector<128x128xbf16>
    %cst_49 = arith.constant dense<0.000000e+00> : vector<32x128xf32>
    %43 = tpu.matmul %41, %42, %cst_49 {dimension_numbers = #tpu.dot_dimension_numbers<[1], [0], [0], [1], [0, 0, 1, 1], [], []>} : vector<32x128xbf16>, vector<128x128xbf16>, vector<32x128xf32> -> vector<32x128xf32>
    %c0_50 = arith.constant 0 : index
    %c0_51 = arith.constant 0 : index
    %44 = vector.load %arg5[%c0_50, %c0_51] : memref<32x128xf32, #tpu.memory_space<vmem>>, vector<32x128xf32>
    %45 = arith.addf %44, %43 : vector<32x128xf32>
    %c0_52 = arith.constant 0 : index
    %c0_53 = arith.constant 0 : index
    %46 = vector.load %arg5[%c0_52, %c0_53] : memref<32x128xf32, #tpu.memory_space<vmem>>, vector<32x128xf32>
    tpu.vector_store %arg5[%c0_52, %c0_53], %45 {strides = array<i32>} : memref<32x128xf32, #tpu.memory_space<vmem>>, vector<32x128xf32>,
    %c0_54 = arith.constant 0 : index
    %c17 = arith.constant 17 : index
    %c0_55 = arith.constant 0 : index
    %47 = vector.load %arg1[%c0_54, %c17, %c0_55] : memref<1x56x128xbf16, #tpu.memory_space<vmem>>, vector<1x32x128xbf16>
    %48 = vector.shape_cast %47 : vector<1x32x128xbf16> to vector<32x128xbf16>
    %c896 = arith.constant 896 : index
    %c0_56 = arith.constant 0 : index
    %49 = vector.load %arg2[%c896, %c0_56] : memref<1152x128xbf16, #tpu.memory_space<vmem>>, vector<128x128xbf16>
    %cst_57 = arith.constant dense<0.000000e+00> : vector<32x128xf32>
    %50 = tpu.matmul %48, %49, %cst_57 {dimension_numbers = #tpu.dot_dimension_numbers<[1], [0], [0], [1], [0, 0, 1, 1], [], []>} : vector<32x128xbf16>, vector<128x128xbf16>, vector<32x128xf32> -> vector<32x128xf32>
    %c0_58 = arith.constant 0 : index
    %c0_59 = arith.constant 0 : index
    %51 = vector.load %arg5[%c0_58, %c0_59] : memref<32x128xf32, #tpu.memory_space<vmem>>, vector<32x128xf32>
    %52 = arith.addf %51, %50 : vector<32x128xf32>
    %c0_60 = arith.constant 0 : index
    %c0_61 = arith.constant 0 : index
    %53 = vector.load %arg5[%c0_60, %c0_61] : memref<32x128xf32, #tpu.memory_space<vmem>>, vector<32x128xf32>
    tpu.vector_store %arg5[%c0_60, %c0_61], %52 {strides = array<i32>} : memref<32x128xf32, #tpu.memory_space<vmem>>, vector<32x128xf32>,
    %c0_62 = arith.constant 0 : index
    %c18 = arith.constant 18 : index
    %c0_63 = arith.constant 0 : index
    %54 = vector.load %arg1[%c0_62, %c18, %c0_63] : memref<1x56x128xbf16, #tpu.memory_space<vmem>>, vector<1x32x128xbf16>
    %55 = vector.shape_cast %54 : vector<1x32x128xbf16> to vector<32x128xbf16>
    %c1024 = arith.constant 1024 : index
    %c0_64 = arith.constant 0 : index
    %56 = vector.load %arg2[%c1024, %c0_64] : memref<1152x128xbf16, #tpu.memory_space<vmem>>, vector<128x128xbf16>
    %cst_65 = arith.constant dense<0.000000e+00> : vector<32x128xf32>
    %57 = tpu.matmul %55, %56, %cst_65 {dimension_numbers = #tpu.dot_dimension_numbers<[1], [0], [0], [1], [0, 0, 1, 1], [], []>} : vector<32x128xbf16>, vector<128x128xbf16>, vector<32x128xf32> -> vector<32x128xf32>
    %c0_66 = arith.constant 0 : index
    %c0_67 = arith.constant 0 : index
    %58 = vector.load %arg5[%c0_66, %c0_67] : memref<32x128xf32, #tpu.memory_space<vmem>>, vector<32x128xf32>
    %59 = arith.addf %58, %57 : vector<32x128xf32>
    %c0_68 = arith.constant 0 : index
    %c0_69 = arith.constant 0 : index
    %60 = vector.load %arg5[%c0_68, %c0_69] : memref<32x128xf32, #tpu.memory_space<vmem>>, vector<32x128xf32>
    tpu.vector_store %arg5[%c0_68, %c0_69], %59 {strides = array<i32>} : memref<32x128xf32, #tpu.memory_space<vmem>>, vector<32x128xf32>,
    %c0_70 = arith.constant 0 : index
    %c0_71 = arith.constant 0 : index
    %61 = vector.load %arg5[%c0_70, %c0_71] : memref<32x128xf32, #tpu.memory_space<vmem>>, vector<32x128xf32>
    %c0_72 = arith.constant 0 : index
    %c0_73 = arith.constant 0 : index
    %62 = vector.load %arg3[%c0_72, %c0_73] : memref<1x128xf32, #tpu.memory_space<vmem>>, vector<1x128xf32>
    %63 = vector.broadcast %62 : vector<1x128xf32> to vector<32x128xf32>
    %64 = arith.addf %61, %63 : vector<32x128xf32>
    %cst_74 = arith.constant 1.000000e-01 : f32
    %65 = vector.broadcast %cst_74 : f32 to vector<32x128xf32>
    %66 = arith.mulf %65, %64 : vector<32x128xf32>
    %67 = arith.maximumf %64, %66 : vector<32x128xf32>
    %68 = arith.truncf %67 : vector<32x128xf32> to vector<32x128xbf16>
    %c0_75 = arith.constant 0 : index
    %c0_76 = arith.constant 0 : index
    %c0_77 = arith.constant 0 : index
    %69 = vector.load %arg4[%c0_75, %c0_76, %c0_77] : memref<1x32x128xbf16, #tpu.memory_space<vmem>>, vector<1x32x128xbf16>
    %70 = vector.shape_cast %69 : vector<1x32x128xbf16> to vector<32x128xbf16>
    %71 = vector.shape_cast %68 : vector<32x128xbf16> to vector<1x32x128xbf16>
    tpu.vector_store %arg4[%c0_75, %c0_76, %c0_77], %71 {strides = array<i32>} : memref<1x32x128xbf16, #tpu.memory_space<vmem>>, vector<1x32x128xbf16>,
    return
  }
  func.func @transform_0(%arg0: i32) -> (i32, i32, i32) {
    %c0_i32 = arith.constant 0 : i32
    %c0_i32_0 = arith.constant 0 : i32
    %c0_i32_1 = arith.constant 0 : i32
    return %arg0, %c0_i32, %c0_i32_0 : i32, i32, i32
  }
  func.func @transform_1(%arg0: i32) -> (i32, i32) {
    %c0_i32 = arith.constant 0 : i32
    %c0_i32_0 = arith.constant 0 : i32
    %c0_i32_1 = arith.constant 0 : i32
    return %c0_i32, %c0_i32_0 : i32, i32
  }
  func.func @transform_2(%arg0: i32) -> (i32, i32) {
    %c0_i32 = arith.constant 0 : i32
    %c0_i32_0 = arith.constant 0 : i32
    %c0_i32_1 = arith.constant 0 : i32
    return %c0_i32, %c0_i32_0 : i32, i32
  }
  func.func @transform_3(%arg0: i32) -> (i32, i32, i32) {
    %c0_i32 = arith.constant 0 : i32
    %c0_i32_0 = arith.constant 0 : i32
    %c0_i32_1 = arith.constant 0 : i32
    return %arg0, %c0_i32, %c0_i32_0 : i32, i32, i32
  }
}

module attributes {stable_mosaic.version = 11 : i64} {
  func.func @_conv3x3_kernel(%arg0: i32, %arg1: memref<1x56x640xbf16, #tpu.memory_space<vmem>>, %arg2: memref<5760x128xbf16, #tpu.memory_space<vmem>>, %arg3: memref<1x128xf32, #tpu.memory_space<vmem>>, %arg4: memref<1x32x128xbf16, #tpu.memory_space<vmem>>, %arg5: memref<32x128xf32, #tpu.memory_space<vmem>>) attributes {dimension_semantics = [#tpu.dimension_semantics<parallel>], iteration_bounds = array<i64: 2>, scalar_prefetch = 0 : i64, scratch_operands = 1 : i64, tpu.core_type = #tpu.core_type<tc>, window_params = [{transform_indices = @transform_0, window_bounds = array<i64: 1, 56, 640>}, {pipeline_mode = #tpu.pipeline_mode<synchronous>, transform_indices = @transform_1, window_bounds = array<i64: 5760, 128>}, {pipeline_mode = #tpu.pipeline_mode<synchronous>, transform_indices = @transform_2, window_bounds = array<i64: 1, 128>}, {transform_indices = @transform_3, window_bounds = array<i64: 1, 32, 128>}]} {
    %c0 = arith.constant 0 : index
    %c0_0 = arith.constant 0 : index
    %c0_1 = arith.constant 0 : index
    %0 = vector.load %arg1[%c0, %c0_0, %c0_1] : memref<1x56x640xbf16, #tpu.memory_space<vmem>>, vector<1x32x640xbf16>
    %1 = vector.shape_cast %0 : vector<1x32x640xbf16> to vector<32x640xbf16>
    %c0_2 = arith.constant 0 : index
    %c0_3 = arith.constant 0 : index
    %2 = vector.load %arg2[%c0_2, %c0_3] : memref<5760x128xbf16, #tpu.memory_space<vmem>>, vector<640x128xbf16>
    %cst = arith.constant dense<0.000000e+00> : vector<32x128xf32>
    %3 = tpu.matmul %1, %2, %cst {dimension_numbers = #tpu.dot_dimension_numbers<[1], [0], [0], [1], [0, 0, 1, 1], [], []>} : vector<32x640xbf16>, vector<640x128xbf16>, vector<32x128xf32> -> vector<32x128xf32>
    %c0_4 = arith.constant 0 : index
    %c0_5 = arith.constant 0 : index
    %4 = vector.load %arg5[%c0_4, %c0_5] : memref<32x128xf32, #tpu.memory_space<vmem>>, vector<32x128xf32>
    tpu.vector_store %arg5[%c0_4, %c0_5], %3 {strides = array<i32>} : memref<32x128xf32, #tpu.memory_space<vmem>>, vector<32x128xf32>,
    %c0_6 = arith.constant 0 : index
    %c1 = arith.constant 1 : index
    %c0_7 = arith.constant 0 : index
    %5 = vector.load %arg1[%c0_6, %c1, %c0_7] : memref<1x56x640xbf16, #tpu.memory_space<vmem>>, vector<1x32x640xbf16>
    %6 = vector.shape_cast %5 : vector<1x32x640xbf16> to vector<32x640xbf16>
    %c640 = arith.constant 640 : index
    %c0_8 = arith.constant 0 : index
    %7 = vector.load %arg2[%c640, %c0_8] : memref<5760x128xbf16, #tpu.memory_space<vmem>>, vector<640x128xbf16>
    %cst_9 = arith.constant dense<0.000000e+00> : vector<32x128xf32>
    %8 = tpu.matmul %6, %7, %cst_9 {dimension_numbers = #tpu.dot_dimension_numbers<[1], [0], [0], [1], [0, 0, 1, 1], [], []>} : vector<32x640xbf16>, vector<640x128xbf16>, vector<32x128xf32> -> vector<32x128xf32>
    %c0_10 = arith.constant 0 : index
    %c0_11 = arith.constant 0 : index
    %9 = vector.load %arg5[%c0_10, %c0_11] : memref<32x128xf32, #tpu.memory_space<vmem>>, vector<32x128xf32>
    %10 = arith.addf %9, %8 : vector<32x128xf32>
    %c0_12 = arith.constant 0 : index
    %c0_13 = arith.constant 0 : index
    %11 = vector.load %arg5[%c0_12, %c0_13] : memref<32x128xf32, #tpu.memory_space<vmem>>, vector<32x128xf32>
    tpu.vector_store %arg5[%c0_12, %c0_13], %10 {strides = array<i32>} : memref<32x128xf32, #tpu.memory_space<vmem>>, vector<32x128xf32>,
    %c0_14 = arith.constant 0 : index
    %c2 = arith.constant 2 : index
    %c0_15 = arith.constant 0 : index
    %12 = vector.load %arg1[%c0_14, %c2, %c0_15] : memref<1x56x640xbf16, #tpu.memory_space<vmem>>, vector<1x32x640xbf16>
    %13 = vector.shape_cast %12 : vector<1x32x640xbf16> to vector<32x640xbf16>
    %c1280 = arith.constant 1280 : index
    %c0_16 = arith.constant 0 : index
    %14 = vector.load %arg2[%c1280, %c0_16] : memref<5760x128xbf16, #tpu.memory_space<vmem>>, vector<640x128xbf16>
    %cst_17 = arith.constant dense<0.000000e+00> : vector<32x128xf32>
    %15 = tpu.matmul %13, %14, %cst_17 {dimension_numbers = #tpu.dot_dimension_numbers<[1], [0], [0], [1], [0, 0, 1, 1], [], []>} : vector<32x640xbf16>, vector<640x128xbf16>, vector<32x128xf32> -> vector<32x128xf32>
    %c0_18 = arith.constant 0 : index
    %c0_19 = arith.constant 0 : index
    %16 = vector.load %arg5[%c0_18, %c0_19] : memref<32x128xf32, #tpu.memory_space<vmem>>, vector<32x128xf32>
    %17 = arith.addf %16, %15 : vector<32x128xf32>
    %c0_20 = arith.constant 0 : index
    %c0_21 = arith.constant 0 : index
    %18 = vector.load %arg5[%c0_20, %c0_21] : memref<32x128xf32, #tpu.memory_space<vmem>>, vector<32x128xf32>
    tpu.vector_store %arg5[%c0_20, %c0_21], %17 {strides = array<i32>} : memref<32x128xf32, #tpu.memory_space<vmem>>, vector<32x128xf32>,
    %c0_22 = arith.constant 0 : index
    %c8 = arith.constant 8 : index
    %c0_23 = arith.constant 0 : index
    %19 = vector.load %arg1[%c0_22, %c8, %c0_23] : memref<1x56x640xbf16, #tpu.memory_space<vmem>>, vector<1x32x640xbf16>
    %20 = vector.shape_cast %19 : vector<1x32x640xbf16> to vector<32x640xbf16>
    %c1920 = arith.constant 1920 : index
    %c0_24 = arith.constant 0 : index
    %21 = vector.load %arg2[%c1920, %c0_24] : memref<5760x128xbf16, #tpu.memory_space<vmem>>, vector<640x128xbf16>
    %cst_25 = arith.constant dense<0.000000e+00> : vector<32x128xf32>
    %22 = tpu.matmul %20, %21, %cst_25 {dimension_numbers = #tpu.dot_dimension_numbers<[1], [0], [0], [1], [0, 0, 1, 1], [], []>} : vector<32x640xbf16>, vector<640x128xbf16>, vector<32x128xf32> -> vector<32x128xf32>
    %c0_26 = arith.constant 0 : index
    %c0_27 = arith.constant 0 : index
    %23 = vector.load %arg5[%c0_26, %c0_27] : memref<32x128xf32, #tpu.memory_space<vmem>>, vector<32x128xf32>
    %24 = arith.addf %23, %22 : vector<32x128xf32>
    %c0_28 = arith.constant 0 : index
    %c0_29 = arith.constant 0 : index
    %25 = vector.load %arg5[%c0_28, %c0_29] : memref<32x128xf32, #tpu.memory_space<vmem>>, vector<32x128xf32>
    tpu.vector_store %arg5[%c0_28, %c0_29], %24 {strides = array<i32>} : memref<32x128xf32, #tpu.memory_space<vmem>>, vector<32x128xf32>,
    %c0_30 = arith.constant 0 : index
    %c9 = arith.constant 9 : index
    %c0_31 = arith.constant 0 : index
    %26 = vector.load %arg1[%c0_30, %c9, %c0_31] : memref<1x56x640xbf16, #tpu.memory_space<vmem>>, vector<1x32x640xbf16>
    %27 = vector.shape_cast %26 : vector<1x32x640xbf16> to vector<32x640xbf16>
    %c2560 = arith.constant 2560 : index
    %c0_32 = arith.constant 0 : index
    %28 = vector.load %arg2[%c2560, %c0_32] : memref<5760x128xbf16, #tpu.memory_space<vmem>>, vector<640x128xbf16>
    %cst_33 = arith.constant dense<0.000000e+00> : vector<32x128xf32>
    %29 = tpu.matmul %27, %28, %cst_33 {dimension_numbers = #tpu.dot_dimension_numbers<[1], [0], [0], [1], [0, 0, 1, 1], [], []>} : vector<32x640xbf16>, vector<640x128xbf16>, vector<32x128xf32> -> vector<32x128xf32>
    %c0_34 = arith.constant 0 : index
    %c0_35 = arith.constant 0 : index
    %30 = vector.load %arg5[%c0_34, %c0_35] : memref<32x128xf32, #tpu.memory_space<vmem>>, vector<32x128xf32>
    %31 = arith.addf %30, %29 : vector<32x128xf32>
    %c0_36 = arith.constant 0 : index
    %c0_37 = arith.constant 0 : index
    %32 = vector.load %arg5[%c0_36, %c0_37] : memref<32x128xf32, #tpu.memory_space<vmem>>, vector<32x128xf32>
    tpu.vector_store %arg5[%c0_36, %c0_37], %31 {strides = array<i32>} : memref<32x128xf32, #tpu.memory_space<vmem>>, vector<32x128xf32>,
    %c0_38 = arith.constant 0 : index
    %c10 = arith.constant 10 : index
    %c0_39 = arith.constant 0 : index
    %33 = vector.load %arg1[%c0_38, %c10, %c0_39] : memref<1x56x640xbf16, #tpu.memory_space<vmem>>, vector<1x32x640xbf16>
    %34 = vector.shape_cast %33 : vector<1x32x640xbf16> to vector<32x640xbf16>
    %c3200 = arith.constant 3200 : index
    %c0_40 = arith.constant 0 : index
    %35 = vector.load %arg2[%c3200, %c0_40] : memref<5760x128xbf16, #tpu.memory_space<vmem>>, vector<640x128xbf16>
    %cst_41 = arith.constant dense<0.000000e+00> : vector<32x128xf32>
    %36 = tpu.matmul %34, %35, %cst_41 {dimension_numbers = #tpu.dot_dimension_numbers<[1], [0], [0], [1], [0, 0, 1, 1], [], []>} : vector<32x640xbf16>, vector<640x128xbf16>, vector<32x128xf32> -> vector<32x128xf32>
    %c0_42 = arith.constant 0 : index
    %c0_43 = arith.constant 0 : index
    %37 = vector.load %arg5[%c0_42, %c0_43] : memref<32x128xf32, #tpu.memory_space<vmem>>, vector<32x128xf32>
    %38 = arith.addf %37, %36 : vector<32x128xf32>
    %c0_44 = arith.constant 0 : index
    %c0_45 = arith.constant 0 : index
    %39 = vector.load %arg5[%c0_44, %c0_45] : memref<32x128xf32, #tpu.memory_space<vmem>>, vector<32x128xf32>
    tpu.vector_store %arg5[%c0_44, %c0_45], %38 {strides = array<i32>} : memref<32x128xf32, #tpu.memory_space<vmem>>, vector<32x128xf32>,
    %c0_46 = arith.constant 0 : index
    %c16 = arith.constant 16 : index
    %c0_47 = arith.constant 0 : index
    %40 = vector.load %arg1[%c0_46, %c16, %c0_47] : memref<1x56x640xbf16, #tpu.memory_space<vmem>>, vector<1x32x640xbf16>
    %41 = vector.shape_cast %40 : vector<1x32x640xbf16> to vector<32x640xbf16>
    %c3840 = arith.constant 3840 : index
    %c0_48 = arith.constant 0 : index
    %42 = vector.load %arg2[%c3840, %c0_48] : memref<5760x128xbf16, #tpu.memory_space<vmem>>, vector<640x128xbf16>
    %cst_49 = arith.constant dense<0.000000e+00> : vector<32x128xf32>
    %43 = tpu.matmul %41, %42, %cst_49 {dimension_numbers = #tpu.dot_dimension_numbers<[1], [0], [0], [1], [0, 0, 1, 1], [], []>} : vector<32x640xbf16>, vector<640x128xbf16>, vector<32x128xf32> -> vector<32x128xf32>
    %c0_50 = arith.constant 0 : index
    %c0_51 = arith.constant 0 : index
    %44 = vector.load %arg5[%c0_50, %c0_51] : memref<32x128xf32, #tpu.memory_space<vmem>>, vector<32x128xf32>
    %45 = arith.addf %44, %43 : vector<32x128xf32>
    %c0_52 = arith.constant 0 : index
    %c0_53 = arith.constant 0 : index
    %46 = vector.load %arg5[%c0_52, %c0_53] : memref<32x128xf32, #tpu.memory_space<vmem>>, vector<32x128xf32>
    tpu.vector_store %arg5[%c0_52, %c0_53], %45 {strides = array<i32>} : memref<32x128xf32, #tpu.memory_space<vmem>>, vector<32x128xf32>,
    %c0_54 = arith.constant 0 : index
    %c17 = arith.constant 17 : index
    %c0_55 = arith.constant 0 : index
    %47 = vector.load %arg1[%c0_54, %c17, %c0_55] : memref<1x56x640xbf16, #tpu.memory_space<vmem>>, vector<1x32x640xbf16>
    %48 = vector.shape_cast %47 : vector<1x32x640xbf16> to vector<32x640xbf16>
    %c4480 = arith.constant 4480 : index
    %c0_56 = arith.constant 0 : index
    %49 = vector.load %arg2[%c4480, %c0_56] : memref<5760x128xbf16, #tpu.memory_space<vmem>>, vector<640x128xbf16>
    %cst_57 = arith.constant dense<0.000000e+00> : vector<32x128xf32>
    %50 = tpu.matmul %48, %49, %cst_57 {dimension_numbers = #tpu.dot_dimension_numbers<[1], [0], [0], [1], [0, 0, 1, 1], [], []>} : vector<32x640xbf16>, vector<640x128xbf16>, vector<32x128xf32> -> vector<32x128xf32>
    %c0_58 = arith.constant 0 : index
    %c0_59 = arith.constant 0 : index
    %51 = vector.load %arg5[%c0_58, %c0_59] : memref<32x128xf32, #tpu.memory_space<vmem>>, vector<32x128xf32>
    %52 = arith.addf %51, %50 : vector<32x128xf32>
    %c0_60 = arith.constant 0 : index
    %c0_61 = arith.constant 0 : index
    %53 = vector.load %arg5[%c0_60, %c0_61] : memref<32x128xf32, #tpu.memory_space<vmem>>, vector<32x128xf32>
    tpu.vector_store %arg5[%c0_60, %c0_61], %52 {strides = array<i32>} : memref<32x128xf32, #tpu.memory_space<vmem>>, vector<32x128xf32>,
    %c0_62 = arith.constant 0 : index
    %c18 = arith.constant 18 : index
    %c0_63 = arith.constant 0 : index
    %54 = vector.load %arg1[%c0_62, %c18, %c0_63] : memref<1x56x640xbf16, #tpu.memory_space<vmem>>, vector<1x32x640xbf16>
    %55 = vector.shape_cast %54 : vector<1x32x640xbf16> to vector<32x640xbf16>
    %c5120 = arith.constant 5120 : index
    %c0_64 = arith.constant 0 : index
    %56 = vector.load %arg2[%c5120, %c0_64] : memref<5760x128xbf16, #tpu.memory_space<vmem>>, vector<640x128xbf16>
    %cst_65 = arith.constant dense<0.000000e+00> : vector<32x128xf32>
    %57 = tpu.matmul %55, %56, %cst_65 {dimension_numbers = #tpu.dot_dimension_numbers<[1], [0], [0], [1], [0, 0, 1, 1], [], []>} : vector<32x640xbf16>, vector<640x128xbf16>, vector<32x128xf32> -> vector<32x128xf32>
    %c0_66 = arith.constant 0 : index
    %c0_67 = arith.constant 0 : index
    %58 = vector.load %arg5[%c0_66, %c0_67] : memref<32x128xf32, #tpu.memory_space<vmem>>, vector<32x128xf32>
    %59 = arith.addf %58, %57 : vector<32x128xf32>
    %c0_68 = arith.constant 0 : index
    %c0_69 = arith.constant 0 : index
    %60 = vector.load %arg5[%c0_68, %c0_69] : memref<32x128xf32, #tpu.memory_space<vmem>>, vector<32x128xf32>
    tpu.vector_store %arg5[%c0_68, %c0_69], %59 {strides = array<i32>} : memref<32x128xf32, #tpu.memory_space<vmem>>, vector<32x128xf32>,
    %c0_70 = arith.constant 0 : index
    %c0_71 = arith.constant 0 : index
    %61 = vector.load %arg5[%c0_70, %c0_71] : memref<32x128xf32, #tpu.memory_space<vmem>>, vector<32x128xf32>
    %c0_72 = arith.constant 0 : index
    %c0_73 = arith.constant 0 : index
    %62 = vector.load %arg3[%c0_72, %c0_73] : memref<1x128xf32, #tpu.memory_space<vmem>>, vector<1x128xf32>
    %63 = vector.broadcast %62 : vector<1x128xf32> to vector<32x128xf32>
    %64 = arith.addf %61, %63 : vector<32x128xf32>
    %cst_74 = arith.constant 1.000000e-01 : f32
    %65 = vector.broadcast %cst_74 : f32 to vector<32x128xf32>
    %66 = arith.mulf %65, %64 : vector<32x128xf32>
    %67 = arith.maximumf %64, %66 : vector<32x128xf32>
    %68 = arith.truncf %67 : vector<32x128xf32> to vector<32x128xbf16>
    %c0_75 = arith.constant 0 : index
    %c0_76 = arith.constant 0 : index
    %c0_77 = arith.constant 0 : index
    %69 = vector.load %arg4[%c0_75, %c0_76, %c0_77] : memref<1x32x128xbf16, #tpu.memory_space<vmem>>, vector<1x32x128xbf16>
    %70 = vector.shape_cast %69 : vector<1x32x128xbf16> to vector<32x128xbf16>
    %71 = vector.shape_cast %68 : vector<32x128xbf16> to vector<1x32x128xbf16>
    tpu.vector_store %arg4[%c0_75, %c0_76, %c0_77], %71 {strides = array<i32>} : memref<1x32x128xbf16, #tpu.memory_space<vmem>>, vector<1x32x128xbf16>,
    return
  }
  func.func @transform_0(%arg0: i32) -> (i32, i32, i32) {
    %c0_i32 = arith.constant 0 : i32
    %c0_i32_0 = arith.constant 0 : i32
    %c0_i32_1 = arith.constant 0 : i32
    return %arg0, %c0_i32, %c0_i32_0 : i32, i32, i32
  }
  func.func @transform_1(%arg0: i32) -> (i32, i32) {
    %c0_i32 = arith.constant 0 : i32
    %c0_i32_0 = arith.constant 0 : i32
    %c0_i32_1 = arith.constant 0 : i32
    return %c0_i32, %c0_i32_0 : i32, i32
  }
  func.func @transform_2(%arg0: i32) -> (i32, i32) {
    %c0_i32 = arith.constant 0 : i32
    %c0_i32_0 = arith.constant 0 : i32
    %c0_i32_1 = arith.constant 0 : i32
    return %c0_i32, %c0_i32_0 : i32, i32
  }
  func.func @transform_3(%arg0: i32) -> (i32, i32, i32) {
    %c0_i32 = arith.constant 0 : i32
    %c0_i32_0 = arith.constant 0 : i32
    %c0_i32_1 = arith.constant 0 : i32
    return %arg0, %c0_i32, %c0_i32_0 : i32, i32, i32
  }
}

module attributes {stable_mosaic.version = 11 : i64} {
  func.func @_pred_decode_kernel(%arg0: memref<16x128xbf16, #tpu.memory_space<vmem>>, %arg1: memref<128x128xbf16, #tpu.memory_space<vmem>>, %arg2: memref<1x128xf32, #tpu.memory_space<vmem>>, %arg3: memref<16x2xf32, #tpu.memory_space<vmem>>, %arg4: memref<16x128xf32, #tpu.memory_space<vmem>>, %arg5: memref<16x128xf32, #tpu.memory_space<vmem>>) attributes {dimension_semantics = [], scalar_prefetch = 0 : i64, scratch_operands = 1 : i64, tpu.core_type = #tpu.core_type<tc>} {
    %c0 = arith.constant 0 : index
    %c0_0 = arith.constant 0 : index
    %0 = vector.load %arg0[%c0, %c0_0] : memref<16x128xbf16, #tpu.memory_space<vmem>>, vector<16x128xbf16>
    %c0_1 = arith.constant 0 : index
    %c0_2 = arith.constant 0 : index
    %1 = vector.load %arg1[%c0_1, %c0_2] : memref<128x128xbf16, #tpu.memory_space<vmem>>, vector<128x128xbf16>
    %cst = arith.constant dense<0.000000e+00> : vector<16x128xf32>
    %2 = tpu.matmul %0, %1, %cst {dimension_numbers = #tpu.dot_dimension_numbers<[1], [0], [0], [1], [0, 0, 1, 1], [], []>} : vector<16x128xbf16>, vector<128x128xbf16>, vector<16x128xf32> -> vector<16x128xf32>
    %c0_3 = arith.constant 0 : index
    %c0_4 = arith.constant 0 : index
    %3 = vector.load %arg2[%c0_3, %c0_4] : memref<1x128xf32, #tpu.memory_space<vmem>>, vector<1x128xf32>
    %4 = vector.broadcast %3 : vector<1x128xf32> to vector<16x128xf32>
    %5 = arith.addf %2, %4 : vector<16x128xf32>
    %c0_5 = arith.constant 0 : index
    %c0_6 = arith.constant 0 : index
    %6 = vector.load %arg5[%c0_5, %c0_6] : memref<16x128xf32, #tpu.memory_space<vmem>>, vector<16x128xf32>
    tpu.vector_store %arg5[%c0_5, %c0_6], %5 {strides = array<i32>} : memref<16x128xf32, #tpu.memory_space<vmem>>, vector<16x128xf32>,
    %cst_7 = arith.constant 0.000000e+00 : f32
    %7 = vector.broadcast %cst_7 : f32 to vector<16x128xf32>
    %c0_8 = arith.constant 0 : index
    %c0_9 = arith.constant 0 : index
    %8 = vector.load %arg4[%c0_8, %c0_9] : memref<16x128xf32, #tpu.memory_space<vmem>>, vector<16x128xf32>
    tpu.vector_store %arg4[%c0_8, %c0_9], %7 {strides = array<i32>} : memref<16x128xf32, #tpu.memory_space<vmem>>, vector<16x128xf32>,
    %c0_10 = arith.constant 0 : index
    %c0_11 = arith.constant 0 : index
    %9 = vector.load %arg3[%c0_10, %c0_11] : memref<16x2xf32, #tpu.memory_space<vmem>>, vector<16x2xf32>
    %10 = vector.extract_strided_slice %9 {offsets = [0, 0], sizes = [16, 1], strides = [1, 1]} : vector<16x2xf32> to vector<16x1xf32>
    %11 = vector.extract_strided_slice %9 {offsets = [0, 1], sizes = [16, 1], strides = [1, 1]} : vector<16x2xf32> to vector<16x1xf32>
    %c0_12 = arith.constant 0 : index
    %c0_13 = arith.constant 0 : index
    %12 = vector.load %arg5[%c0_12, %c0_13] : memref<16x128xf32, #tpu.memory_space<vmem>>, vector<16x1xf32>
    %c0_14 = arith.constant 0 : index
    %c5 = arith.constant 5 : index
    %13 = vector.load %arg5[%c0_14, %c5] : memref<16x128xf32, #tpu.memory_space<vmem>>, vector<16x20xf32>
    %cst_15 = arith.constant 5.000000e-01 : f32
    %14 = vector.broadcast %cst_15 : f32 to vector<16x1xf32>
    %15 = arith.mulf %14, %12 : vector<16x1xf32>
    %16 = math.tanh %15 : vector<16x1xf32>
    %cst_16 = arith.constant 1.000000e+00 : f32
    %17 = vector.broadcast %cst_16 : f32 to vector<16x1xf32>
    %18 = arith.addf %16, %17 : vector<16x1xf32>
    %cst_17 = arith.constant 5.000000e-01 : f32
    %19 = vector.broadcast %cst_17 : f32 to vector<16x1xf32>
    %20 = arith.mulf %19, %18 : vector<16x1xf32>
    %cst_18 = arith.constant dense<0xFF800000> : vector<16xf32>
    %21 = vector.multi_reduction <maximumf>, %13, %cst_18 [1] : vector<16x20xf32> to vector<16xf32>
    %22 = vector.shape_cast %21 : vector<16xf32> to vector<16x1xf32>
    %23 = vector.broadcast %22 : vector<16x1xf32> to vector<16x20xf32>
    %24 = arith.subf %13, %23 : vector<16x20xf32>
    %25 = math.exp %24 : vector<16x20xf32>
    %cst_19 = arith.constant dense<0.000000e+00> : vector<16xf32>
    %26 = vector.multi_reduction <add>, %25, %cst_19 [1] : vector<16x20xf32> to vector<16xf32>
    %27 = vector.shape_cast %26 : vector<16xf32> to vector<16x1xf32>
    %28 = vector.broadcast %27 : vector<16x1xf32> to vector<16x20xf32>
    %29 = arith.divf %25, %28 : vector<16x20xf32>
    %30 = vector.broadcast %20 : vector<16x1xf32> to vector<16x20xf32>
    %31 = arith.mulf %30, %29 : vector<16x20xf32>
    %c0_20 = arith.constant 0 : index
    %c0_21 = arith.constant 0 : index
    %32 = vector.load %arg4[%c0_20, %c0_21] : memref<16x128xf32, #tpu.memory_space<vmem>>, vector<16x20xf32>
    tpu.vector_store %arg4[%c0_20, %c0_21], %31 {strides = array<i32>} : memref<16x128xf32, #tpu.memory_space<vmem>>, vector<16x20xf32>,
    %c0_22 = arith.constant 0 : index
    %c105 = arith.constant 105 : index
    %33 = vector.load %arg5[%c0_22, %c105] : memref<16x128xf32, #tpu.memory_space<vmem>>, vector<16x1xf32>
    %c0_23 = arith.constant 0 : index
    %c106 = arith.constant 106 : index
    %34 = vector.load %arg5[%c0_23, %c106] : memref<16x128xf32, #tpu.memory_space<vmem>>, vector<16x1xf32>
    %c0_24 = arith.constant 0 : index
    %c107 = arith.constant 107 : index
    %35 = vector.load %arg5[%c0_24, %c107] : memref<16x128xf32, #tpu.memory_space<vmem>>, vector<16x1xf32>
    %c0_25 = arith.constant 0 : index
    %c108 = arith.constant 108 : index
    %36 = vector.load %arg5[%c0_25, %c108] : memref<16x128xf32, #tpu.memory_space<vmem>>, vector<16x1xf32>
    %cst_26 = arith.constant 5.000000e-01 : f32
    %37 = vector.broadcast %cst_26 : f32 to vector<16x1xf32>
    %38 = arith.mulf %37, %33 : vector<16x1xf32>
    %39 = math.tanh %38 : vector<16x1xf32>
    %cst_27 = arith.constant 1.000000e+00 : f32
    %40 = vector.broadcast %cst_27 : f32 to vector<16x1xf32>
    %41 = arith.addf %39, %40 : vector<16x1xf32>
    %cst_28 = arith.constant 5.000000e-01 : f32
    %42 = vector.broadcast %cst_28 : f32 to vector<16x1xf32>
    %43 = arith.mulf %42, %41 : vector<16x1xf32>
    %44 = arith.addf %43, %10 : vector<16x1xf32>
    %cst_29 = arith.constant 3.200000e+01 : f32
    %45 = vector.broadcast %cst_29 : f32 to vector<16x1xf32>
    %46 = arith.mulf %44, %45 : vector<16x1xf32>
    %cst_30 = arith.constant 5.000000e-01 : f32
    %47 = vector.broadcast %cst_30 : f32 to vector<16x1xf32>
    %48 = arith.mulf %47, %34 : vector<16x1xf32>
    %49 = math.tanh %48 : vector<16x1xf32>
    %cst_31 = arith.constant 1.000000e+00 : f32
    %50 = vector.broadcast %cst_31 : f32 to vector<16x1xf32>
    %51 = arith.addf %49, %50 : vector<16x1xf32>
    %cst_32 = arith.constant 5.000000e-01 : f32
    %52 = vector.broadcast %cst_32 : f32 to vector<16x1xf32>
    %53 = arith.mulf %52, %51 : vector<16x1xf32>
    %54 = arith.addf %53, %11 : vector<16x1xf32>
    %cst_33 = arith.constant 3.200000e+01 : f32
    %55 = vector.broadcast %cst_33 : f32 to vector<16x1xf32>
    %56 = arith.mulf %54, %55 : vector<16x1xf32>
    %57 = math.exp %35 : vector<16x1xf32>
    %cst_34 = arith.constant 3.808000e+01 : f32
    %58 = vector.broadcast %cst_34 : f32 to vector<16x1xf32>
    %59 = arith.mulf %57, %58 : vector<16x1xf32>
    %60 = math.exp %36 : vector<16x1xf32>
    %cst_35 = arith.constant 6.336000e+01 : f32
    %61 = vector.broadcast %cst_35 : f32 to vector<16x1xf32>
    %62 = arith.mulf %60, %61 : vector<16x1xf32>
    %cst_36 = arith.constant 5.000000e-01 : f32
    %63 = vector.broadcast %cst_36 : f32 to vector<16x1xf32>
    %64 = arith.mulf %63, %59 : vector<16x1xf32>
    %65 = arith.subf %46, %64 : vector<16x1xf32>
    %cst_37 = arith.constant 7.812500e-03 : f32
    %66 = vector.broadcast %cst_37 : f32 to vector<16x1xf32>
    %67 = arith.mulf %65, %66 : vector<16x1xf32>
    %cst_38 = arith.constant 0.000000e+00 : f32
    %cst_39 = arith.constant 1.000000e+00 : f32
    %68 = vector.broadcast %cst_38 : f32 to vector<16x1xf32>
    %69 = arith.maximumf %68, %67 : vector<16x1xf32>
    %70 = vector.broadcast %cst_39 : f32 to vector<16x1xf32>
    %71 = arith.minimumf %70, %69 : vector<16x1xf32>
    %c0_40 = arith.constant 0 : index
    %c100 = arith.constant 100 : index
    %72 = vector.load %arg4[%c0_40, %c100] : memref<16x128xf32, #tpu.memory_space<vmem>>, vector<16x1xf32>
    tpu.vector_store %arg4[%c0_40, %c100], %71 {strides = array<i32>} : memref<16x128xf32, #tpu.memory_space<vmem>>, vector<16x1xf32>,
    %cst_41 = arith.constant 5.000000e-01 : f32
    %73 = vector.broadcast %cst_41 : f32 to vector<16x1xf32>
    %74 = arith.mulf %73, %62 : vector<16x1xf32>
    %75 = arith.subf %56, %74 : vector<16x1xf32>
    %cst_42 = arith.constant 7.812500e-03 : f32
    %76 = vector.broadcast %cst_42 : f32 to vector<16x1xf32>
    %77 = arith.mulf %75, %76 : vector<16x1xf32>
    %cst_43 = arith.constant 0.000000e+00 : f32
    %cst_44 = arith.constant 1.000000e+00 : f32
    %78 = vector.broadcast %cst_43 : f32 to vector<16x1xf32>
    %79 = arith.maximumf %78, %77 : vector<16x1xf32>
    %80 = vector.broadcast %cst_44 : f32 to vector<16x1xf32>
    %81 = arith.minimumf %80, %79 : vector<16x1xf32>
    %c0_45 = arith.constant 0 : index
    %c101 = arith.constant 101 : index
    %82 = vector.load %arg4[%c0_45, %c101] : memref<16x128xf32, #tpu.memory_space<vmem>>, vector<16x1xf32>
    tpu.vector_store %arg4[%c0_45, %c101], %81 {strides = array<i32>} : memref<16x128xf32, #tpu.memory_space<vmem>>, vector<16x1xf32>,
    %cst_46 = arith.constant 5.000000e-01 : f32
    %83 = vector.broadcast %cst_46 : f32 to vector<16x1xf32>
    %84 = arith.mulf %83, %59 : vector<16x1xf32>
    %85 = arith.addf %46, %84 : vector<16x1xf32>
    %cst_47 = arith.constant 7.812500e-03 : f32
    %86 = vector.broadcast %cst_47 : f32 to vector<16x1xf32>
    %87 = arith.mulf %85, %86 : vector<16x1xf32>
    %cst_48 = arith.constant 0.000000e+00 : f32
    %cst_49 = arith.constant 1.000000e+00 : f32
    %88 = vector.broadcast %cst_48 : f32 to vector<16x1xf32>
    %89 = arith.maximumf %88, %87 : vector<16x1xf32>
    %90 = vector.broadcast %cst_49 : f32 to vector<16x1xf32>
    %91 = arith.minimumf %90, %89 : vector<16x1xf32>
    %c0_50 = arith.constant 0 : index
    %c102 = arith.constant 102 : index
    %92 = vector.load %arg4[%c0_50, %c102] : memref<16x128xf32, #tpu.memory_space<vmem>>, vector<16x1xf32>
    tpu.vector_store %arg4[%c0_50, %c102], %91 {strides = array<i32>} : memref<16x128xf32, #tpu.memory_space<vmem>>, vector<16x1xf32>,
    %cst_51 = arith.constant 5.000000e-01 : f32
    %93 = vector.broadcast %cst_51 : f32 to vector<16x1xf32>
    %94 = arith.mulf %93, %62 : vector<16x1xf32>
    %95 = arith.addf %56, %94 : vector<16x1xf32>
    %cst_52 = arith.constant 7.812500e-03 : f32
    %96 = vector.broadcast %cst_52 : f32 to vector<16x1xf32>
    %97 = arith.mulf %95, %96 : vector<16x1xf32>
    %cst_53 = arith.constant 0.000000e+00 : f32
    %cst_54 = arith.constant 1.000000e+00 : f32
    %98 = vector.broadcast %cst_53 : f32 to vector<16x1xf32>
    %99 = arith.maximumf %98, %97 : vector<16x1xf32>
    %100 = vector.broadcast %cst_54 : f32 to vector<16x1xf32>
    %101 = arith.minimumf %100, %99 : vector<16x1xf32>
    %c0_55 = arith.constant 0 : index
    %c103 = arith.constant 103 : index
    %102 = vector.load %arg4[%c0_55, %c103] : memref<16x128xf32, #tpu.memory_space<vmem>>, vector<16x1xf32>
    tpu.vector_store %arg4[%c0_55, %c103], %101 {strides = array<i32>} : memref<16x128xf32, #tpu.memory_space<vmem>>, vector<16x1xf32>,
    %c0_56 = arith.constant 0 : index
    %c1 = arith.constant 1 : index
    %103 = vector.load %arg5[%c0_56, %c1] : memref<16x128xf32, #tpu.memory_space<vmem>>, vector<16x1xf32>
    %c0_57 = arith.constant 0 : index
    %c25 = arith.constant 25 : index
    %104 = vector.load %arg5[%c0_57, %c25] : memref<16x128xf32, #tpu.memory_space<vmem>>, vector<16x20xf32>
    %cst_58 = arith.constant 5.000000e-01 : f32
    %105 = vector.broadcast %cst_58 : f32 to vector<16x1xf32>
    %106 = arith.mulf %105, %103 : vector<16x1xf32>
    %107 = math.tanh %106 : vector<16x1xf32>
    %cst_59 = arith.constant 1.000000e+00 : f32
    %108 = vector.broadcast %cst_59 : f32 to vector<16x1xf32>
    %109 = arith.addf %107, %108 : vector<16x1xf32>
    %cst_60 = arith.constant 5.000000e-01 : f32
    %110 = vector.broadcast %cst_60 : f32 to vector<16x1xf32>
    %111 = arith.mulf %110, %109 : vector<16x1xf32>
    %cst_61 = arith.constant dense<0xFF800000> : vector<16xf32>
    %112 = vector.multi_reduction <maximumf>, %104, %cst_61 [1] : vector<16x20xf32> to vector<16xf32>
    %113 = vector.shape_cast %112 : vector<16xf32> to vector<16x1xf32>
    %114 = vector.broadcast %113 : vector<16x1xf32> to vector<16x20xf32>
    %115 = arith.subf %104, %114 : vector<16x20xf32>
    %116 = math.exp %115 : vector<16x20xf32>
    %cst_62 = arith.constant dense<0.000000e+00> : vector<16xf32>
    %117 = vector.multi_reduction <add>, %116, %cst_62 [1] : vector<16x20xf32> to vector<16xf32>
    %118 = vector.shape_cast %117 : vector<16xf32> to vector<16x1xf32>
    %119 = vector.broadcast %118 : vector<16x1xf32> to vector<16x20xf32>
    %120 = arith.divf %116, %119 : vector<16x20xf32>
    %121 = vector.broadcast %111 : vector<16x1xf32> to vector<16x20xf32>
    %122 = arith.mulf %121, %120 : vector<16x20xf32>
    %c0_63 = arith.constant 0 : index
    %c20 = arith.constant 20 : index
    %123 = vector.load %arg4[%c0_63, %c20] : memref<16x128xf32, #tpu.memory_space<vmem>>, vector<16x20xf32>
    tpu.vector_store %arg4[%c0_63, %c20], %122 {strides = array<i32>} : memref<16x128xf32, #tpu.memory_space<vmem>>, vector<16x20xf32>,
    %c0_64 = arith.constant 0 : index
    %c109 = arith.constant 109 : index
    %124 = vector.load %arg5[%c0_64, %c109] : memref<16x128xf32, #tpu.memory_space<vmem>>, vector<16x1xf32>
    %c0_65 = arith.constant 0 : index
    %c110 = arith.constant 110 : index
    %125 = vector.load %arg5[%c0_65, %c110] : memref<16x128xf32, #tpu.memory_space<vmem>>, vector<16x1xf32>
    %c0_66 = arith.constant 0 : index
    %c111 = arith.constant 111 : index
    %126 = vector.load %arg5[%c0_66, %c111] : memref<16x128xf32, #tpu.memory_space<vmem>>, vector<16x1xf32>
    %c0_67 = arith.constant 0 : index
    %c112 = arith.constant 112 : index
    %127 = vector.load %arg5[%c0_67, %c112] : memref<16x128xf32, #tpu.memory_space<vmem>>, vector<16x1xf32>
    %cst_68 = arith.constant 5.000000e-01 : f32
    %128 = vector.broadcast %cst_68 : f32 to vector<16x1xf32>
    %129 = arith.mulf %128, %124 : vector<16x1xf32>
    %130 = math.tanh %129 : vector<16x1xf32>
    %cst_69 = arith.constant 1.000000e+00 : f32
    %131 = vector.broadcast %cst_69 : f32 to vector<16x1xf32>
    %132 = arith.addf %130, %131 : vector<16x1xf32>
    %cst_70 = arith.constant 5.000000e-01 : f32
    %133 = vector.broadcast %cst_70 : f32 to vector<16x1xf32>
    %134 = arith.mulf %133, %132 : vector<16x1xf32>
    %135 = arith.addf %134, %10 : vector<16x1xf32>
    %cst_71 = arith.constant 3.200000e+01 : f32
    %136 = vector.broadcast %cst_71 : f32 to vector<16x1xf32>
    %137 = arith.mulf %135, %136 : vector<16x1xf32>
    %cst_72 = arith.constant 5.000000e-01 : f32
    %138 = vector.broadcast %cst_72 : f32 to vector<16x1xf32>
    %139 = arith.mulf %138, %125 : vector<16x1xf32>
    %140 = math.tanh %139 : vector<16x1xf32>
    %cst_73 = arith.constant 1.000000e+00 : f32
    %141 = vector.broadcast %cst_73 : f32 to vector<16x1xf32>
    %142 = arith.addf %140, %141 : vector<16x1xf32>
    %cst_74 = arith.constant 5.000000e-01 : f32
    %143 = vector.broadcast %cst_74 : f32 to vector<16x1xf32>
    %144 = arith.mulf %143, %142 : vector<16x1xf32>
    %145 = arith.addf %144, %11 : vector<16x1xf32>
    %cst_75 = arith.constant 3.200000e+01 : f32
    %146 = vector.broadcast %cst_75 : f32 to vector<16x1xf32>
    %147 = arith.mulf %145, %146 : vector<16x1xf32>
    %148 = math.exp %126 : vector<16x1xf32>
    %cst_76 = arith.constant 89.2799987 : f32
    %149 = vector.broadcast %cst_76 : f32 to vector<16x1xf32>
    %150 = arith.mulf %148, %149 : vector<16x1xf32>
    %151 = math.exp %127 : vector<16x1xf32>
    %cst_77 = arith.constant 1.468800e+02 : f32
    %152 = vector.broadcast %cst_77 : f32 to vector<16x1xf32>
    %153 = arith.mulf %151, %152 : vector<16x1xf32>
    %cst_78 = arith.constant 5.000000e-01 : f32
    %154 = vector.broadcast %cst_78 : f32 to vector<16x1xf32>
    %155 = arith.mulf %154, %150 : vector<16x1xf32>
    %156 = arith.subf %137, %155 : vector<16x1xf32>
    %cst_79 = arith.constant 7.812500e-03 : f32
    %157 = vector.broadcast %cst_79 : f32 to vector<16x1xf32>
    %158 = arith.mulf %156, %157 : vector<16x1xf32>
    %cst_80 = arith.constant 0.000000e+00 : f32
    %cst_81 = arith.constant 1.000000e+00 : f32
    %159 = vector.broadcast %cst_80 : f32 to vector<16x1xf32>
    %160 = arith.maximumf %159, %158 : vector<16x1xf32>
    %161 = vector.broadcast %cst_81 : f32 to vector<16x1xf32>
    %162 = arith.minimumf %161, %160 : vector<16x1xf32>
    %c0_82 = arith.constant 0 : index
    %c104 = arith.constant 104 : index
    %163 = vector.load %arg4[%c0_82, %c104] : memref<16x128xf32, #tpu.memory_space<vmem>>, vector<16x1xf32>
    tpu.vector_store %arg4[%c0_82, %c104], %162 {strides = array<i32>} : memref<16x128xf32, #tpu.memory_space<vmem>>, vector<16x1xf32>,
    %cst_83 = arith.constant 5.000000e-01 : f32
    %164 = vector.broadcast %cst_83 : f32 to vector<16x1xf32>
    %165 = arith.mulf %164, %153 : vector<16x1xf32>
    %166 = arith.subf %147, %165 : vector<16x1xf32>
    %cst_84 = arith.constant 7.812500e-03 : f32
    %167 = vector.broadcast %cst_84 : f32 to vector<16x1xf32>
    %168 = arith.mulf %166, %167 : vector<16x1xf32>
    %cst_85 = arith.constant 0.000000e+00 : f32
    %cst_86 = arith.constant 1.000000e+00 : f32
    %169 = vector.broadcast %cst_85 : f32 to vector<16x1xf32>
    %170 = arith.maximumf %169, %168 : vector<16x1xf32>
    %171 = vector.broadcast %cst_86 : f32 to vector<16x1xf32>
    %172 = arith.minimumf %171, %170 : vector<16x1xf32>
    %c0_87 = arith.constant 0 : index
    %c105_88 = arith.constant 105 : index
    %173 = vector.load %arg4[%c0_87, %c105_88] : memref<16x128xf32, #tpu.memory_space<vmem>>, vector<16x1xf32>
    tpu.vector_store %arg4[%c0_87, %c105_88], %172 {strides = array<i32>} : memref<16x128xf32, #tpu.memory_space<vmem>>, vector<16x1xf32>,
    %cst_89 = arith.constant 5.000000e-01 : f32
    %174 = vector.broadcast %cst_89 : f32 to vector<16x1xf32>
    %175 = arith.mulf %174, %150 : vector<16x1xf32>
    %176 = arith.addf %137, %175 : vector<16x1xf32>
    %cst_90 = arith.constant 7.812500e-03 : f32
    %177 = vector.broadcast %cst_90 : f32 to vector<16x1xf32>
    %178 = arith.mulf %176, %177 : vector<16x1xf32>
    %cst_91 = arith.constant 0.000000e+00 : f32
    %cst_92 = arith.constant 1.000000e+00 : f32
    %179 = vector.broadcast %cst_91 : f32 to vector<16x1xf32>
    %180 = arith.maximumf %179, %178 : vector<16x1xf32>
    %181 = vector.broadcast %cst_92 : f32 to vector<16x1xf32>
    %182 = arith.minimumf %181, %180 : vector<16x1xf32>
    %c0_93 = arith.constant 0 : index
    %c106_94 = arith.constant 106 : index
    %183 = vector.load %arg4[%c0_93, %c106_94] : memref<16x128xf32, #tpu.memory_space<vmem>>, vector<16x1xf32>
    tpu.vector_store %arg4[%c0_93, %c106_94], %182 {strides = array<i32>} : memref<16x128xf32, #tpu.memory_space<vmem>>, vector<16x1xf32>,
    %cst_95 = arith.constant 5.000000e-01 : f32
    %184 = vector.broadcast %cst_95 : f32 to vector<16x1xf32>
    %185 = arith.mulf %184, %153 : vector<16x1xf32>
    %186 = arith.addf %147, %185 : vector<16x1xf32>
    %cst_96 = arith.constant 7.812500e-03 : f32
    %187 = vector.broadcast %cst_96 : f32 to vector<16x1xf32>
    %188 = arith.mulf %186, %187 : vector<16x1xf32>
    %cst_97 = arith.constant 0.000000e+00 : f32
    %cst_98 = arith.constant 1.000000e+00 : f32
    %189 = vector.broadcast %cst_97 : f32 to vector<16x1xf32>
    %190 = arith.maximumf %189, %188 : vector<16x1xf32>
    %191 = vector.broadcast %cst_98 : f32 to vector<16x1xf32>
    %192 = arith.minimumf %191, %190 : vector<16x1xf32>
    %c0_99 = arith.constant 0 : index
    %c107_100 = arith.constant 107 : index
    %193 = vector.load %arg4[%c0_99, %c107_100] : memref<16x128xf32, #tpu.memory_space<vmem>>, vector<16x1xf32>
    tpu.vector_store %arg4[%c0_99, %c107_100], %192 {strides = array<i32>} : memref<16x128xf32, #tpu.memory_space<vmem>>, vector<16x1xf32>,
    %c0_101 = arith.constant 0 : index
    %c2 = arith.constant 2 : index
    %194 = vector.load %arg5[%c0_101, %c2] : memref<16x128xf32, #tpu.memory_space<vmem>>, vector<16x1xf32>
    %c0_102 = arith.constant 0 : index
    %c45 = arith.constant 45 : index
    %195 = vector.load %arg5[%c0_102, %c45] : memref<16x128xf32, #tpu.memory_space<vmem>>, vector<16x20xf32>
    %cst_103 = arith.constant 5.000000e-01 : f32
    %196 = vector.broadcast %cst_103 : f32 to vector<16x1xf32>
    %197 = arith.mulf %196, %194 : vector<16x1xf32>
    %198 = math.tanh %197 : vector<16x1xf32>
    %cst_104 = arith.constant 1.000000e+00 : f32
    %199 = vector.broadcast %cst_104 : f32 to vector<16x1xf32>
    %200 = arith.addf %198, %199 : vector<16x1xf32>
    %cst_105 = arith.constant 5.000000e-01 : f32
    %201 = vector.broadcast %cst_105 : f32 to vector<16x1xf32>
    %202 = arith.mulf %201, %200 : vector<16x1xf32>
    %cst_106 = arith.constant dense<0xFF800000> : vector<16xf32>
    %203 = vector.multi_reduction <maximumf>, %195, %cst_106 [1] : vector<16x20xf32> to vector<16xf32>
    %204 = vector.shape_cast %203 : vector<16xf32> to vector<16x1xf32>
    %205 = vector.broadcast %204 : vector<16x1xf32> to vector<16x20xf32>
    %206 = arith.subf %195, %205 : vector<16x20xf32>
    %207 = math.exp %206 : vector<16x20xf32>
    %cst_107 = arith.constant dense<0.000000e+00> : vector<16xf32>
    %208 = vector.multi_reduction <add>, %207, %cst_107 [1] : vector<16x20xf32> to vector<16xf32>
    %209 = vector.shape_cast %208 : vector<16xf32> to vector<16x1xf32>
    %210 = vector.broadcast %209 : vector<16x1xf32> to vector<16x20xf32>
    %211 = arith.divf %207, %210 : vector<16x20xf32>
    %212 = vector.broadcast %202 : vector<16x1xf32> to vector<16x20xf32>
    %213 = arith.mulf %212, %211 : vector<16x20xf32>
    %c0_108 = arith.constant 0 : index
    %c40 = arith.constant 40 : index
    %214 = vector.load %arg4[%c0_108, %c40] : memref<16x128xf32, #tpu.memory_space<vmem>>, vector<16x20xf32>
    tpu.vector_store %arg4[%c0_108, %c40], %213 {strides = array<i32>} : memref<16x128xf32, #tpu.memory_space<vmem>>, vector<16x20xf32>,
    %c0_109 = arith.constant 0 : index
    %c113 = arith.constant 113 : index
    %215 = vector.load %arg5[%c0_109, %c113] : memref<16x128xf32, #tpu.memory_space<vmem>>, vector<16x1xf32>
    %c0_110 = arith.constant 0 : index
    %c114 = arith.constant 114 : index
    %216 = vector.load %arg5[%c0_110, %c114] : memref<16x128xf32, #tpu.memory_space<vmem>>, vector<16x1xf32>
    %c0_111 = arith.constant 0 : index
    %c115 = arith.constant 115 : index
    %217 = vector.load %arg5[%c0_111, %c115] : memref<16x128xf32, #tpu.memory_space<vmem>>, vector<16x1xf32>
    %c0_112 = arith.constant 0 : index
    %c116 = arith.constant 116 : index
    %218 = vector.load %arg5[%c0_112, %c116] : memref<16x128xf32, #tpu.memory_space<vmem>>, vector<16x1xf32>
    %cst_113 = arith.constant 5.000000e-01 : f32
    %219 = vector.broadcast %cst_113 : f32 to vector<16x1xf32>
    %220 = arith.mulf %219, %215 : vector<16x1xf32>
    %221 = math.tanh %220 : vector<16x1xf32>
    %cst_114 = arith.constant 1.000000e+00 : f32
    %222 = vector.broadcast %cst_114 : f32 to vector<16x1xf32>
    %223 = arith.addf %221, %222 : vector<16x1xf32>
    %cst_115 = arith.constant 5.000000e-01 : f32
    %224 = vector.broadcast %cst_115 : f32 to vector<16x1xf32>
    %225 = arith.mulf %224, %223 : vector<16x1xf32>
    %226 = arith.addf %225, %10 : vector<16x1xf32>
    %cst_116 = arith.constant 3.200000e+01 : f32
    %227 = vector.broadcast %cst_116 : f32 to vector<16x1xf32>
    %228 = arith.mulf %226, %227 : vector<16x1xf32>
    %cst_117 = arith.constant 5.000000e-01 : f32
    %229 = vector.broadcast %cst_117 : f32 to vector<16x1xf32>
    %230 = arith.mulf %229, %216 : vector<16x1xf32>
    %231 = math.tanh %230 : vector<16x1xf32>
    %cst_118 = arith.constant 1.000000e+00 : f32
    %232 = vector.broadcast %cst_118 : f32 to vector<16x1xf32>
    %233 = arith.addf %231, %232 : vector<16x1xf32>
    %cst_119 = arith.constant 5.000000e-01 : f32
    %234 = vector.broadcast %cst_119 : f32 to vector<16x1xf32>
    %235 = arith.mulf %234, %233 : vector<16x1xf32>
    %236 = arith.addf %235, %11 : vector<16x1xf32>
    %cst_120 = arith.constant 3.200000e+01 : f32
    %237 = vector.broadcast %cst_120 : f32 to vector<16x1xf32>
    %238 = arith.mulf %236, %237 : vector<16x1xf32>
    %239 = math.exp %217 : vector<16x1xf32>
    %cst_121 = arith.constant 1.449600e+02 : f32
    %240 = vector.broadcast %cst_121 : f32 to vector<16x1xf32>
    %241 = arith.mulf %239, %240 : vector<16x1xf32>
    %242 = math.exp %218 : vector<16x1xf32>
    %cst_122 = arith.constant 2.854400e+02 : f32
    %243 = vector.broadcast %cst_122 : f32 to vector<16x1xf32>
    %244 = arith.mulf %242, %243 : vector<16x1xf32>
    %cst_123 = arith.constant 5.000000e-01 : f32
    %245 = vector.broadcast %cst_123 : f32 to vector<16x1xf32>
    %246 = arith.mulf %245, %241 : vector<16x1xf32>
    %247 = arith.subf %228, %246 : vector<16x1xf32>
    %cst_124 = arith.constant 7.812500e-03 : f32
    %248 = vector.broadcast %cst_124 : f32 to vector<16x1xf32>
    %249 = arith.mulf %247, %248 : vector<16x1xf32>
    %cst_125 = arith.constant 0.000000e+00 : f32
    %cst_126 = arith.constant 1.000000e+00 : f32
    %250 = vector.broadcast %cst_125 : f32 to vector<16x1xf32>
    %251 = arith.maximumf %250, %249 : vector<16x1xf32>
    %252 = vector.broadcast %cst_126 : f32 to vector<16x1xf32>
    %253 = arith.minimumf %252, %251 : vector<16x1xf32>
    %c0_127 = arith.constant 0 : index
    %c108_128 = arith.constant 108 : index
    %254 = vector.load %arg4[%c0_127, %c108_128] : memref<16x128xf32, #tpu.memory_space<vmem>>, vector<16x1xf32>
    tpu.vector_store %arg4[%c0_127, %c108_128], %253 {strides = array<i32>} : memref<16x128xf32, #tpu.memory_space<vmem>>, vector<16x1xf32>,
    %cst_129 = arith.constant 5.000000e-01 : f32
    %255 = vector.broadcast %cst_129 : f32 to vector<16x1xf32>
    %256 = arith.mulf %255, %244 : vector<16x1xf32>
    %257 = arith.subf %238, %256 : vector<16x1xf32>
    %cst_130 = arith.constant 7.812500e-03 : f32
    %258 = vector.broadcast %cst_130 : f32 to vector<16x1xf32>
    %259 = arith.mulf %257, %258 : vector<16x1xf32>
    %cst_131 = arith.constant 0.000000e+00 : f32
    %cst_132 = arith.constant 1.000000e+00 : f32
    %260 = vector.broadcast %cst_131 : f32 to vector<16x1xf32>
    %261 = arith.maximumf %260, %259 : vector<16x1xf32>
    %262 = vector.broadcast %cst_132 : f32 to vector<16x1xf32>
    %263 = arith.minimumf %262, %261 : vector<16x1xf32>
    %c0_133 = arith.constant 0 : index
    %c109_134 = arith.constant 109 : index
    %264 = vector.load %arg4[%c0_133, %c109_134] : memref<16x128xf32, #tpu.memory_space<vmem>>, vector<16x1xf32>
    tpu.vector_store %arg4[%c0_133, %c109_134], %263 {strides = array<i32>} : memref<16x128xf32, #tpu.memory_space<vmem>>, vector<16x1xf32>,
    %cst_135 = arith.constant 5.000000e-01 : f32
    %265 = vector.broadcast %cst_135 : f32 to vector<16x1xf32>
    %266 = arith.mulf %265, %241 : vector<16x1xf32>
    %267 = arith.addf %228, %266 : vector<16x1xf32>
    %cst_136 = arith.constant 7.812500e-03 : f32
    %268 = vector.broadcast %cst_136 : f32 to vector<16x1xf32>
    %269 = arith.mulf %267, %268 : vector<16x1xf32>
    %cst_137 = arith.constant 0.000000e+00 : f32
    %cst_138 = arith.constant 1.000000e+00 : f32
    %270 = vector.broadcast %cst_137 : f32 to vector<16x1xf32>
    %271 = arith.maximumf %270, %269 : vector<16x1xf32>
    %272 = vector.broadcast %cst_138 : f32 to vector<16x1xf32>
    %273 = arith.minimumf %272, %271 : vector<16x1xf32>
    %c0_139 = arith.constant 0 : index
    %c110_140 = arith.constant 110 : index
    %274 = vector.load %arg4[%c0_139, %c110_140] : memref<16x128xf32, #tpu.memory_space<vmem>>, vector<16x1xf32>
    tpu.vector_store %arg4[%c0_139, %c110_140], %273 {strides = array<i32>} : memref<16x128xf32, #tpu.memory_space<vmem>>, vector<16x1xf32>,
    %cst_141 = arith.constant 5.000000e-01 : f32
    %275 = vector.broadcast %cst_141 : f32 to vector<16x1xf32>
    %276 = arith.mulf %275, %244 : vector<16x1xf32>
    %277 = arith.addf %238, %276 : vector<16x1xf32>
    %cst_142 = arith.constant 7.812500e-03 : f32
    %278 = vector.broadcast %cst_142 : f32 to vector<16x1xf32>
    %279 = arith.mulf %277, %278 : vector<16x1xf32>
    %cst_143 = arith.constant 0.000000e+00 : f32
    %cst_144 = arith.constant 1.000000e+00 : f32
    %280 = vector.broadcast %cst_143 : f32 to vector<16x1xf32>
    %281 = arith.maximumf %280, %279 : vector<16x1xf32>
    %282 = vector.broadcast %cst_144 : f32 to vector<16x1xf32>
    %283 = arith.minimumf %282, %281 : vector<16x1xf32>
    %c0_145 = arith.constant 0 : index
    %c111_146 = arith.constant 111 : index
    %284 = vector.load %arg4[%c0_145, %c111_146] : memref<16x128xf32, #tpu.memory_space<vmem>>, vector<16x1xf32>
    tpu.vector_store %arg4[%c0_145, %c111_146], %283 {strides = array<i32>} : memref<16x128xf32, #tpu.memory_space<vmem>>, vector<16x1xf32>,
    %c0_147 = arith.constant 0 : index
    %c3 = arith.constant 3 : index
    %285 = vector.load %arg5[%c0_147, %c3] : memref<16x128xf32, #tpu.memory_space<vmem>>, vector<16x1xf32>
    %c0_148 = arith.constant 0 : index
    %c65 = arith.constant 65 : index
    %286 = vector.load %arg5[%c0_148, %c65] : memref<16x128xf32, #tpu.memory_space<vmem>>, vector<16x20xf32>
    %cst_149 = arith.constant 5.000000e-01 : f32
    %287 = vector.broadcast %cst_149 : f32 to vector<16x1xf32>
    %288 = arith.mulf %287, %285 : vector<16x1xf32>
    %289 = math.tanh %288 : vector<16x1xf32>
    %cst_150 = arith.constant 1.000000e+00 : f32
    %290 = vector.broadcast %cst_150 : f32 to vector<16x1xf32>
    %291 = arith.addf %289, %290 : vector<16x1xf32>
    %cst_151 = arith.constant 5.000000e-01 : f32
    %292 = vector.broadcast %cst_151 : f32 to vector<16x1xf32>
    %293 = arith.mulf %292, %291 : vector<16x1xf32>
    %cst_152 = arith.constant dense<0xFF800000> : vector<16xf32>
    %294 = vector.multi_reduction <maximumf>, %286, %cst_152 [1] : vector<16x20xf32> to vector<16xf32>
    %295 = vector.shape_cast %294 : vector<16xf32> to vector<16x1xf32>
    %296 = vector.broadcast %295 : vector<16x1xf32> to vector<16x20xf32>
    %297 = arith.subf %286, %296 : vector<16x20xf32>
    %298 = math.exp %297 : vector<16x20xf32>
    %cst_153 = arith.constant dense<0.000000e+00> : vector<16xf32>
    %299 = vector.multi_reduction <add>, %298, %cst_153 [1] : vector<16x20xf32> to vector<16xf32>
    %300 = vector.shape_cast %299 : vector<16xf32> to vector<16x1xf32>
    %301 = vector.broadcast %300 : vector<16x1xf32> to vector<16x20xf32>
    %302 = arith.divf %298, %301 : vector<16x20xf32>
    %303 = vector.broadcast %293 : vector<16x1xf32> to vector<16x20xf32>
    %304 = arith.mulf %303, %302 : vector<16x20xf32>
    %c0_154 = arith.constant 0 : index
    %c60 = arith.constant 60 : index
    %305 = vector.load %arg4[%c0_154, %c60] : memref<16x128xf32, #tpu.memory_space<vmem>>, vector<16x20xf32>
    tpu.vector_store %arg4[%c0_154, %c60], %304 {strides = array<i32>} : memref<16x128xf32, #tpu.memory_space<vmem>>, vector<16x20xf32>,
    %c0_155 = arith.constant 0 : index
    %c117 = arith.constant 117 : index
    %306 = vector.load %arg5[%c0_155, %c117] : memref<16x128xf32, #tpu.memory_space<vmem>>, vector<16x1xf32>
    %c0_156 = arith.constant 0 : index
    %c118 = arith.constant 118 : index
    %307 = vector.load %arg5[%c0_156, %c118] : memref<16x128xf32, #tpu.memory_space<vmem>>, vector<16x1xf32>
    %c0_157 = arith.constant 0 : index
    %c119 = arith.constant 119 : index
    %308 = vector.load %arg5[%c0_157, %c119] : memref<16x128xf32, #tpu.memory_space<vmem>>, vector<16x1xf32>
    %c0_158 = arith.constant 0 : index
    %c120 = arith.constant 120 : index
    %309 = vector.load %arg5[%c0_158, %c120] : memref<16x128xf32, #tpu.memory_space<vmem>>, vector<16x1xf32>
    %cst_159 = arith.constant 5.000000e-01 : f32
    %310 = vector.broadcast %cst_159 : f32 to vector<16x1xf32>
    %311 = arith.mulf %310, %306 : vector<16x1xf32>
    %312 = math.tanh %311 : vector<16x1xf32>
    %cst_160 = arith.constant 1.000000e+00 : f32
    %313 = vector.broadcast %cst_160 : f32 to vector<16x1xf32>
    %314 = arith.addf %312, %313 : vector<16x1xf32>
    %cst_161 = arith.constant 5.000000e-01 : f32
    %315 = vector.broadcast %cst_161 : f32 to vector<16x1xf32>
    %316 = arith.mulf %315, %314 : vector<16x1xf32>
    %317 = arith.addf %316, %10 : vector<16x1xf32>
    %cst_162 = arith.constant 3.200000e+01 : f32
    %318 = vector.broadcast %cst_162 : f32 to vector<16x1xf32>
    %319 = arith.mulf %317, %318 : vector<16x1xf32>
    %cst_163 = arith.constant 5.000000e-01 : f32
    %320 = vector.broadcast %cst_163 : f32 to vector<16x1xf32>
    %321 = arith.mulf %320, %307 : vector<16x1xf32>
    %322 = math.tanh %321 : vector<16x1xf32>
    %cst_164 = arith.constant 1.000000e+00 : f32
    %323 = vector.broadcast %cst_164 : f32 to vector<16x1xf32>
    %324 = arith.addf %322, %323 : vector<16x1xf32>
    %cst_165 = arith.constant 5.000000e-01 : f32
    %325 = vector.broadcast %cst_165 : f32 to vector<16x1xf32>
    %326 = arith.mulf %325, %324 : vector<16x1xf32>
    %327 = arith.addf %326, %11 : vector<16x1xf32>
    %cst_166 = arith.constant 3.200000e+01 : f32
    %328 = vector.broadcast %cst_166 : f32 to vector<16x1xf32>
    %329 = arith.mulf %327, %328 : vector<16x1xf32>
    %330 = math.exp %308 : vector<16x1xf32>
    %cst_167 = arith.constant 2.579200e+02 : f32
    %331 = vector.broadcast %cst_167 : f32 to vector<16x1xf32>
    %332 = arith.mulf %330, %331 : vector<16x1xf32>
    %333 = math.exp %309 : vector<16x1xf32>
    %cst_168 = arith.constant 1.692800e+02 : f32
    %334 = vector.broadcast %cst_168 : f32 to vector<16x1xf32>
    %335 = arith.mulf %333, %334 : vector<16x1xf32>
    %cst_169 = arith.constant 5.000000e-01 : f32
    %336 = vector.broadcast %cst_169 : f32 to vector<16x1xf32>
    %337 = arith.mulf %336, %332 : vector<16x1xf32>
    %338 = arith.subf %319, %337 : vector<16x1xf32>
    %cst_170 = arith.constant 7.812500e-03 : f32
    %339 = vector.broadcast %cst_170 : f32 to vector<16x1xf32>
    %340 = arith.mulf %338, %339 : vector<16x1xf32>
    %cst_171 = arith.constant 0.000000e+00 : f32
    %cst_172 = arith.constant 1.000000e+00 : f32
    %341 = vector.broadcast %cst_171 : f32 to vector<16x1xf32>
    %342 = arith.maximumf %341, %340 : vector<16x1xf32>
    %343 = vector.broadcast %cst_172 : f32 to vector<16x1xf32>
    %344 = arith.minimumf %343, %342 : vector<16x1xf32>
    %c0_173 = arith.constant 0 : index
    %c112_174 = arith.constant 112 : index
    %345 = vector.load %arg4[%c0_173, %c112_174] : memref<16x128xf32, #tpu.memory_space<vmem>>, vector<16x1xf32>
    tpu.vector_store %arg4[%c0_173, %c112_174], %344 {strides = array<i32>} : memref<16x128xf32, #tpu.memory_space<vmem>>, vector<16x1xf32>,
    %cst_175 = arith.constant 5.000000e-01 : f32
    %346 = vector.broadcast %cst_175 : f32 to vector<16x1xf32>
    %347 = arith.mulf %346, %335 : vector<16x1xf32>
    %348 = arith.subf %329, %347 : vector<16x1xf32>
    %cst_176 = arith.constant 7.812500e-03 : f32
    %349 = vector.broadcast %cst_176 : f32 to vector<16x1xf32>
    %350 = arith.mulf %348, %349 : vector<16x1xf32>
    %cst_177 = arith.constant 0.000000e+00 : f32
    %cst_178 = arith.constant 1.000000e+00 : f32
    %351 = vector.broadcast %cst_177 : f32 to vector<16x1xf32>
    %352 = arith.maximumf %351, %350 : vector<16x1xf32>
    %353 = vector.broadcast %cst_178 : f32 to vector<16x1xf32>
    %354 = arith.minimumf %353, %352 : vector<16x1xf32>
    %c0_179 = arith.constant 0 : index
    %c113_180 = arith.constant 113 : index
    %355 = vector.load %arg4[%c0_179, %c113_180] : memref<16x128xf32, #tpu.memory_space<vmem>>, vector<16x1xf32>
    tpu.vector_store %arg4[%c0_179, %c113_180], %354 {strides = array<i32>} : memref<16x128xf32, #tpu.memory_space<vmem>>, vector<16x1xf32>,
    %cst_181 = arith.constant 5.000000e-01 : f32
    %356 = vector.broadcast %cst_181 : f32 to vector<16x1xf32>
    %357 = arith.mulf %356, %332 : vector<16x1xf32>
    %358 = arith.addf %319, %357 : vector<16x1xf32>
    %cst_182 = arith.constant 7.812500e-03 : f32
    %359 = vector.broadcast %cst_182 : f32 to vector<16x1xf32>
    %360 = arith.mulf %358, %359 : vector<16x1xf32>
    %cst_183 = arith.constant 0.000000e+00 : f32
    %cst_184 = arith.constant 1.000000e+00 : f32
    %361 = vector.broadcast %cst_183 : f32 to vector<16x1xf32>
    %362 = arith.maximumf %361, %360 : vector<16x1xf32>
    %363 = vector.broadcast %cst_184 : f32 to vector<16x1xf32>
    %364 = arith.minimumf %363, %362 : vector<16x1xf32>
    %c0_185 = arith.constant 0 : index
    %c114_186 = arith.constant 114 : index
    %365 = vector.load %arg4[%c0_185, %c114_186] : memref<16x128xf32, #tpu.memory_space<vmem>>, vector<16x1xf32>
    tpu.vector_store %arg4[%c0_185, %c114_186], %364 {strides = array<i32>} : memref<16x128xf32, #tpu.memory_space<vmem>>, vector<16x1xf32>,
    %cst_187 = arith.constant 5.000000e-01 : f32
    %366 = vector.broadcast %cst_187 : f32 to vector<16x1xf32>
    %367 = arith.mulf %366, %335 : vector<16x1xf32>
    %368 = arith.addf %329, %367 : vector<16x1xf32>
    %cst_188 = arith.constant 7.812500e-03 : f32
    %369 = vector.broadcast %cst_188 : f32 to vector<16x1xf32>
    %370 = arith.mulf %368, %369 : vector<16x1xf32>
    %cst_189 = arith.constant 0.000000e+00 : f32
    %cst_190 = arith.constant 1.000000e+00 : f32
    %371 = vector.broadcast %cst_189 : f32 to vector<16x1xf32>
    %372 = arith.maximumf %371, %370 : vector<16x1xf32>
    %373 = vector.broadcast %cst_190 : f32 to vector<16x1xf32>
    %374 = arith.minimumf %373, %372 : vector<16x1xf32>
    %c0_191 = arith.constant 0 : index
    %c115_192 = arith.constant 115 : index
    %375 = vector.load %arg4[%c0_191, %c115_192] : memref<16x128xf32, #tpu.memory_space<vmem>>, vector<16x1xf32>
    tpu.vector_store %arg4[%c0_191, %c115_192], %374 {strides = array<i32>} : memref<16x128xf32, #tpu.memory_space<vmem>>, vector<16x1xf32>,
    %c0_193 = arith.constant 0 : index
    %c4 = arith.constant 4 : index
    %376 = vector.load %arg5[%c0_193, %c4] : memref<16x128xf32, #tpu.memory_space<vmem>>, vector<16x1xf32>
    %c0_194 = arith.constant 0 : index
    %c85 = arith.constant 85 : index
    %377 = vector.load %arg5[%c0_194, %c85] : memref<16x128xf32, #tpu.memory_space<vmem>>, vector<16x20xf32>
    %cst_195 = arith.constant 5.000000e-01 : f32
    %378 = vector.broadcast %cst_195 : f32 to vector<16x1xf32>
    %379 = arith.mulf %378, %376 : vector<16x1xf32>
    %380 = math.tanh %379 : vector<16x1xf32>
    %cst_196 = arith.constant 1.000000e+00 : f32
    %381 = vector.broadcast %cst_196 : f32 to vector<16x1xf32>
    %382 = arith.addf %380, %381 : vector<16x1xf32>
    %cst_197 = arith.constant 5.000000e-01 : f32
    %383 = vector.broadcast %cst_197 : f32 to vector<16x1xf32>
    %384 = arith.mulf %383, %382 : vector<16x1xf32>
    %cst_198 = arith.constant dense<0xFF800000> : vector<16xf32>
    %385 = vector.multi_reduction <maximumf>, %377, %cst_198 [1] : vector<16x20xf32> to vector<16xf32>
    %386 = vector.shape_cast %385 : vector<16xf32> to vector<16x1xf32>
    %387 = vector.broadcast %386 : vector<16x1xf32> to vector<16x20xf32>
    %388 = arith.subf %377, %387 : vector<16x20xf32>
    %389 = math.exp %388 : vector<16x20xf32>
    %cst_199 = arith.constant dense<0.000000e+00> : vector<16xf32>
    %390 = vector.multi_reduction <add>, %389, %cst_199 [1] : vector<16x20xf32> to vector<16xf32>
    %391 = vector.shape_cast %390 : vector<16xf32> to vector<16x1xf32>
    %392 = vector.broadcast %391 : vector<16x1xf32> to vector<16x20xf32>
    %393 = arith.divf %389, %392 : vector<16x20xf32>
    %394 = vector.broadcast %384 : vector<16x1xf32> to vector<16x20xf32>
    %395 = arith.mulf %394, %393 : vector<16x20xf32>
    %c0_200 = arith.constant 0 : index
    %c80 = arith.constant 80 : index
    %396 = vector.load %arg4[%c0_200, %c80] : memref<16x128xf32, #tpu.memory_space<vmem>>, vector<16x20xf32>
    tpu.vector_store %arg4[%c0_200, %c80], %395 {strides = array<i32>} : memref<16x128xf32, #tpu.memory_space<vmem>>, vector<16x20xf32>,
    %c0_201 = arith.constant 0 : index
    %c121 = arith.constant 121 : index
    %397 = vector.load %arg5[%c0_201, %c121] : memref<16x128xf32, #tpu.memory_space<vmem>>, vector<16x1xf32>
    %c0_202 = arith.constant 0 : index
    %c122 = arith.constant 122 : index
    %398 = vector.load %arg5[%c0_202, %c122] : memref<16x128xf32, #tpu.memory_space<vmem>>, vector<16x1xf32>
    %c0_203 = arith.constant 0 : index
    %c123 = arith.constant 123 : index
    %399 = vector.load %arg5[%c0_203, %c123] : memref<16x128xf32, #tpu.memory_space<vmem>>, vector<16x1xf32>
    %c0_204 = arith.constant 0 : index
    %c124 = arith.constant 124 : index
    %400 = vector.load %arg5[%c0_204, %c124] : memref<16x128xf32, #tpu.memory_space<vmem>>, vector<16x1xf32>
    %cst_205 = arith.constant 5.000000e-01 : f32
    %401 = vector.broadcast %cst_205 : f32 to vector<16x1xf32>
    %402 = arith.mulf %401, %397 : vector<16x1xf32>
    %403 = math.tanh %402 : vector<16x1xf32>
    %cst_206 = arith.constant 1.000000e+00 : f32
    %404 = vector.broadcast %cst_206 : f32 to vector<16x1xf32>
    %405 = arith.addf %403, %404 : vector<16x1xf32>
    %cst_207 = arith.constant 5.000000e-01 : f32
    %406 = vector.broadcast %cst_207 : f32 to vector<16x1xf32>
    %407 = arith.mulf %406, %405 : vector<16x1xf32>
    %408 = arith.addf %407, %10 : vector<16x1xf32>
    %cst_208 = arith.constant 3.200000e+01 : f32
    %409 = vector.broadcast %cst_208 : f32 to vector<16x1xf32>
    %410 = arith.mulf %408, %409 : vector<16x1xf32>
    %cst_209 = arith.constant 5.000000e-01 : f32
    %411 = vector.broadcast %cst_209 : f32 to vector<16x1xf32>
    %412 = arith.mulf %411, %398 : vector<16x1xf32>
    %413 = math.tanh %412 : vector<16x1xf32>
    %cst_210 = arith.constant 1.000000e+00 : f32
    %414 = vector.broadcast %cst_210 : f32 to vector<16x1xf32>
    %415 = arith.addf %413, %414 : vector<16x1xf32>
    %cst_211 = arith.constant 5.000000e-01 : f32
    %416 = vector.broadcast %cst_211 : f32 to vector<16x1xf32>
    %417 = arith.mulf %416, %415 : vector<16x1xf32>
    %418 = arith.addf %417, %11 : vector<16x1xf32>
    %cst_212 = arith.constant 3.200000e+01 : f32
    %419 = vector.broadcast %cst_212 : f32 to vector<16x1xf32>
    %420 = arith.mulf %418, %419 : vector<16x1xf32>
    %421 = math.exp %399 : vector<16x1xf32>
    %cst_213 = arith.constant 3.302400e+02 : f32
    %422 = vector.broadcast %cst_213 : f32 to vector<16x1xf32>
    %423 = arith.mulf %421, %422 : vector<16x1xf32>
    %424 = math.exp %400 : vector<16x1xf32>
    %cst_214 = arith.constant 3.408000e+02 : f32
    %425 = vector.broadcast %cst_214 : f32 to vector<16x1xf32>
    %426 = arith.mulf %424, %425 : vector<16x1xf32>
    %cst_215 = arith.constant 5.000000e-01 : f32
    %427 = vector.broadcast %cst_215 : f32 to vector<16x1xf32>
    %428 = arith.mulf %427, %423 : vector<16x1xf32>
    %429 = arith.subf %410, %428 : vector<16x1xf32>
    %cst_216 = arith.constant 7.812500e-03 : f32
    %430 = vector.broadcast %cst_216 : f32 to vector<16x1xf32>
    %431 = arith.mulf %429, %430 : vector<16x1xf32>
    %cst_217 = arith.constant 0.000000e+00 : f32
    %cst_218 = arith.constant 1.000000e+00 : f32
    %432 = vector.broadcast %cst_217 : f32 to vector<16x1xf32>
    %433 = arith.maximumf %432, %431 : vector<16x1xf32>
    %434 = vector.broadcast %cst_218 : f32 to vector<16x1xf32>
    %435 = arith.minimumf %434, %433 : vector<16x1xf32>
    %c0_219 = arith.constant 0 : index
    %c116_220 = arith.constant 116 : index
    %436 = vector.load %arg4[%c0_219, %c116_220] : memref<16x128xf32, #tpu.memory_space<vmem>>, vector<16x1xf32>
    tpu.vector_store %arg4[%c0_219, %c116_220], %435 {strides = array<i32>} : memref<16x128xf32, #tpu.memory_space<vmem>>, vector<16x1xf32>,
    %cst_221 = arith.constant 5.000000e-01 : f32
    %437 = vector.broadcast %cst_221 : f32 to vector<16x1xf32>
    %438 = arith.mulf %437, %426 : vector<16x1xf32>
    %439 = arith.subf %420, %438 : vector<16x1xf32>
    %cst_222 = arith.constant 7.812500e-03 : f32
    %440 = vector.broadcast %cst_222 : f32 to vector<16x1xf32>
    %441 = arith.mulf %439, %440 : vector<16x1xf32>
    %cst_223 = arith.constant 0.000000e+00 : f32
    %cst_224 = arith.constant 1.000000e+00 : f32
    %442 = vector.broadcast %cst_223 : f32 to vector<16x1xf32>
    %443 = arith.maximumf %442, %441 : vector<16x1xf32>
    %444 = vector.broadcast %cst_224 : f32 to vector<16x1xf32>
    %445 = arith.minimumf %444, %443 : vector<16x1xf32>
    %c0_225 = arith.constant 0 : index
    %c117_226 = arith.constant 117 : index
    %446 = vector.load %arg4[%c0_225, %c117_226] : memref<16x128xf32, #tpu.memory_space<vmem>>, vector<16x1xf32>
    tpu.vector_store %arg4[%c0_225, %c117_226], %445 {strides = array<i32>} : memref<16x128xf32, #tpu.memory_space<vmem>>, vector<16x1xf32>,
    %cst_227 = arith.constant 5.000000e-01 : f32
    %447 = vector.broadcast %cst_227 : f32 to vector<16x1xf32>
    %448 = arith.mulf %447, %423 : vector<16x1xf32>
    %449 = arith.addf %410, %448 : vector<16x1xf32>
    %cst_228 = arith.constant 7.812500e-03 : f32
    %450 = vector.broadcast %cst_228 : f32 to vector<16x1xf32>
    %451 = arith.mulf %449, %450 : vector<16x1xf32>
    %cst_229 = arith.constant 0.000000e+00 : f32
    %cst_230 = arith.constant 1.000000e+00 : f32
    %452 = vector.broadcast %cst_229 : f32 to vector<16x1xf32>
    %453 = arith.maximumf %452, %451 : vector<16x1xf32>
    %454 = vector.broadcast %cst_230 : f32 to vector<16x1xf32>
    %455 = arith.minimumf %454, %453 : vector<16x1xf32>
    %c0_231 = arith.constant 0 : index
    %c118_232 = arith.constant 118 : index
    %456 = vector.load %arg4[%c0_231, %c118_232] : memref<16x128xf32, #tpu.memory_space<vmem>>, vector<16x1xf32>
    tpu.vector_store %arg4[%c0_231, %c118_232], %455 {strides = array<i32>} : memref<16x128xf32, #tpu.memory_space<vmem>>, vector<16x1xf32>,
    %cst_233 = arith.constant 5.000000e-01 : f32
    %457 = vector.broadcast %cst_233 : f32 to vector<16x1xf32>
    %458 = arith.mulf %457, %426 : vector<16x1xf32>
    %459 = arith.addf %420, %458 : vector<16x1xf32>
    %cst_234 = arith.constant 7.812500e-03 : f32
    %460 = vector.broadcast %cst_234 : f32 to vector<16x1xf32>
    %461 = arith.mulf %459, %460 : vector<16x1xf32>
    %cst_235 = arith.constant 0.000000e+00 : f32
    %cst_236 = arith.constant 1.000000e+00 : f32
    %462 = vector.broadcast %cst_235 : f32 to vector<16x1xf32>
    %463 = arith.maximumf %462, %461 : vector<16x1xf32>
    %464 = vector.broadcast %cst_236 : f32 to vector<16x1xf32>
    %465 = arith.minimumf %464, %463 : vector<16x1xf32>
    %c0_237 = arith.constant 0 : index
    %c119_238 = arith.constant 119 : index
    %466 = vector.load %arg4[%c0_237, %c119_238] : memref<16x128xf32, #tpu.memory_space<vmem>>, vector<16x1xf32>
    tpu.vector_store %arg4[%c0_237, %c119_238], %465 {strides = array<i32>} : memref<16x128xf32, #tpu.memory_space<vmem>>, vector<16x1xf32>,
    return
  }
}

</mosaic_0001>

<bundles_post_ra>
// kernel: _device_forward_impl.7
= control target key start
LH: loop header
LB: loop body
LE: loop exit
PB: predicated region body
PF: predicated region fallthrough
CT: control target
= control target key end

     0   :  { %s2153_s1 = inlined_call_operand.vmem [shape: bf16[768,128], index: 1, kind: input, shape index: {}]   ;;  %s2154_s2 = inlined_call_operand.vmem [shape: f32[1,128], index: 2, kind: input, shape index: {}]   ;;  %s2155_s0 = inlined_call_operand.vmem [shape: bf16[128,768], index: 0, kind: input, shape index: {}]   ;;  %s2156_s3 = inlined_call_operand.vmem [shape: bf16[128,128], index: 3, kind: output, shape index: {}]  }
   0x1   :  { %v1491_v0 = vld [vmem:[%s2153_s1 + $0x38] sm:$0xff]  ;;  %v1490_v2 = vld [vmem:[%s2153_s1 + $0x30] sm:$0xff]  ;;  %v1489_v4 = vld [vmem:[%s2153_s1 + $0x28] sm:$0xff] }
   0x2   :  { %v1499_v1 = vld [vmem:[%s2153_s1 + $0x78] sm:$0xff]  ;;  %1579 = vmatpush.bf16.msra.mxu2 %v1491_v0  ;;  %v1498_v3 = vld [vmem:[%s2153_s1 + $0x70] sm:$0xff]  ;;  %690 = vmatpush.bf16.msra.mxu0 %v1491_v0  ;;  %v1497_v5 = vld [vmem:[%s2153_s1 + $0x68] sm:$0xff] }
   0x3   :  { %1587 = vmatpush.bf16.msra.mxu3 %v1499_v1  ;;  %739 = vmatpush.bf16.msra.mxu1 %v1499_v1  ;;  %v1488_v6 = vld [vmem:[%s2153_s1 + $0x20] sm:$0xff]  ;;  %v1487_v8 = vld [vmem:[%s2153_s1 + $0x18] sm:$0xff]  ;;  %v1486_v10 = vld [vmem:[%s2153_s1 + $0x10] sm:$0xff] }
   0x4   :  { %v1496_v7 = vld [vmem:[%s2153_s1 + $0x60] sm:$0xff]  ;;  %v1495_v9 = vld [vmem:[%s2153_s1 + $0x58] sm:$0xff]  ;;  %v1494_v11 = vld [vmem:[%s2153_s1 + $0x50] sm:$0xff] }
   0x5   :  { %v1485_v12 = vld [vmem:[%s2153_s1 + $0x8] sm:$0xff]  ;;  %v1484_v14 = vld [vmem:[%s2153_s1] sm:$0xff]  ;;  %v1463_v17 = vld [vmem:[%s2155_s0 + $0xd4] sm:$0xf0] }
   0x6   :  { %1580 = vmatpush.bf16.msra.mxu2 %v1490_v2  ;;  %691 = vmatpush.bf16.msra.mxu0 %v1490_v2  ;;  %v1493_v13 = vld [vmem:[%s2153_s1 + $0x48] sm:$0xff]  ;;  %v1492_v15 = vld [vmem:[%s2153_s1 + $0x40] sm:$0xff]  ;;  %v1152_v19 = vld [vmem:[%s2155_s0 + $0xd8] sm:$0xf0] }
   0x7   :  { %1588 = vmatpush.bf16.msra.mxu3 %v1498_v3  ;;  %740 = vmatpush.bf16.msra.mxu1 %v1498_v3  ;;  %v1150_v16 = vld [vmem:[%s2155_s0 + $0xc0] sm:$0xf]  ;;  %v1460_v18 = vld [vmem:[%s2155_s0 + $0xc4] sm:$0xf]  ;;  %v1507_v20 = vld [vmem:[%s2153_s1 + $0xb8] sm:$0xff] }
   0x8   :  { %v1054_v21 = vld [vmem:[%s2155_s0] sm:$0xf]  ;;  %v1439_v22 = vld [vmem:[%s2155_s0 + $0x14] sm:$0xf0]  ;;  %v1436_v24 = vld [vmem:[%s2155_s0 + $0x4] sm:$0xf]  ;;  %v1151_v26 = vor.u32 %v1463_v17, %v1150_v16  ;;  %v1155_v27 = vor.u32 %v1460_v18, %v1152_v19 }
   0x9   :  { %v1515_v23 = vld [vmem:[%s2153_s1 + $0xf8] sm:$0xff]  ;;  %v1055_v28 = vor.u32 %v1439_v22, %v1054_v21  ;;  %v1506_v31 = vld [vmem:[%s2153_s1 + $0xb0] sm:$0xff]  ;;  %v1505_v35 = vld [vmem:[%s2153_s1 + $0xa8] sm:$0xff] }
   0xa   :  { %1581 = vmatpush.bf16.msra.mxu2 %v1489_v4  ;;  %692 = vmatpush.bf16.msra.mxu0 %v1489_v4  ;;  %v1056_v25 = vld [vmem:[%s2155_s0 + $0x18] sm:$0xf0]  ;;  %v1514_v32 = vld [vmem:[%s2153_s1 + $0xf0] sm:$0xff]  ;;  %v1513_v36 = vld [vmem:[%s2153_s1 + $0xe8] sm:$0xff] }
   0xb   :  { %1589 = vmatpush.bf16.msra.mxu3 %v1497_v5  ;;  %741 = vmatpush.bf16.msra.mxu1 %v1497_v5  ;;  %v1531_v29 = vld [vmem:[%s2153_s1 + $0x178] sm:$0xff]  ;;  %v1059_v30 = vor.u32 %v1436_v24, %v1056_v25  ;;  %v1530_v34 = vld [vmem:[%s2153_s1 + $0x170] sm:$0xff]  ;;  %v1529_v38 = vld [vmem:[%s2153_s1 + $0x168] sm:$0xff] }
   0xc   :  { %v1523_v33 = vld [vmem:[%s2153_s1 + $0x138] sm:$0xff]  ;;  %v1522_v37 = vld [vmem:[%s2153_s1 + $0x130] sm:$0xff]  ;;  %v1504_v39 = vld [vmem:[%s2153_s1 + $0xa0] sm:$0xff] }
   0xd   :  { %v1512_v40 = vld [vmem:[%s2153_s1 + $0xe0] sm:$0xff]  ;;  %v1521_v41 = vld [vmem:[%s2153_s1 + $0x128] sm:$0xff]  ;;  %v1174_v42 = vld [vmem:[%s2155_s0 + $0xf0] sm:$0xf] }
   0xe   :  { %1582 = vmatpush.bf16.msra.mxu2 %v1488_v6  ;;  %693 = vmatpush.bf16.msra.mxu0 %v1488_v6  ;;  %v1469_v43 = vld [vmem:[%s2155_s0 + $0x104] sm:$0xf0]  ;;  %v1466_v44 = vld [vmem:[%s2155_s0 + $0xf4] sm:$0xf]  ;;  %v1176_v45 = vld [vmem:[%s2155_s0 + $0x108] sm:$0xf0] }
   0xf   :  { %1590 = vmatpush.bf16.msra.mxu3 %v1496_v7  ;;  %742 = vmatpush.bf16.msra.mxu1 %v1496_v7  ;;  %v1078_v46 = vld [vmem:[%s2155_s0 + $0x30] sm:$0xf]  ;;  %v1528_v47 = vld [vmem:[%s2153_s1 + $0x160] sm:$0xff]  ;;  %v1445_v48 = vld [vmem:[%s2155_s0 + $0x44] sm:$0xf0]  ;;  %v1175_v54 = vor.u32 %v1469_v43, %v1174_v42  ;;  %v1179_v55 = vor.u32 %v1466_v44, %v1176_v45 }
  0x10   :  { %v1442_v49 = vld [vmem:[%s2155_s0 + $0x34] sm:$0xf]  ;;  %v1503_v50 = vld [vmem:[%s2153_s1 + $0x98] sm:$0xff]  ;;  %v1080_v51 = vld [vmem:[%s2155_s0 + $0x48] sm:$0xf0]  ;;  %v1079_v56 = vor.u32 %v1445_v48, %v1078_v46 }
  0x11   :  { %v1511_v52 = vld [vmem:[%s2153_s1 + $0xd8] sm:$0xff]  ;;  %v1520_v53 = vld [vmem:[%s2153_s1 + $0x120] sm:$0xff]  ;;  %v1083_v58 = vor.u32 %v1442_v49, %v1080_v51  ;;  %v1502_v59 = vld [vmem:[%s2153_s1 + $0x90] sm:$0xff] }
  0x12   :  { %1583 = vmatpush.bf16.msra.mxu2 %v1487_v8  ;;  %694 = vmatpush.bf16.msra.mxu0 %v1487_v8  ;;  %v1527_v57 = vld [vmem:[%s2153_s1 + $0x158] sm:$0xff]  ;;  %v1510_v60 = vld [vmem:[%s2153_s1 + $0xd0] sm:$0xff]  ;;  %v1501_v62 = vld [vmem:[%s2153_s1 + $0x88] sm:$0xff] }
  0x13   :  { %1591 = vmatpush.bf16.msra.mxu3 %v1495_v9  ;;  %743 = vmatpush.bf16.msra.mxu1 %v1495_v9  ;;  %v1519_v61 = vld [vmem:[%s2153_s1 + $0x118] sm:$0xff]  ;;  %v1526_v63 = vld [vmem:[%s2153_s1 + $0x150] sm:$0xff]  ;;  %v1509_v0 = vld [vmem:[%s2153_s1 + $0xc8] sm:$0xff] }
  0x14   :  { %v1518_v1 = vld [vmem:[%s2153_s1 + $0x110] sm:$0xff]  ;;  %v1525_v2 = vld [vmem:[%s2153_s1 + $0x148] sm:$0xff]  ;;  %v1500_v3 = vld [vmem:[%s2153_s1 + $0x80] sm:$0xff] }
  0x15   :  { %v1508_v4 = vld [vmem:[%s2153_s1 + $0xc0] sm:$0xff]  ;;  %v1517_v5 = vld [vmem:[%s2153_s1 + $0x108] sm:$0xff]  ;;  %v1475_v7 = vld [vmem:[%s2155_s0 + $0x134] sm:$0xf0] }
  0x16   :  { %1584 = vmatpush.bf16.msra.mxu2 %v1486_v10  ;;  %695 = vmatpush.bf16.msra.mxu0 %v1486_v10  ;;  %v1198_v6 = vld [vmem:[%s2155_s0 + $0x120] sm:$0xf]  ;;  %v1472_v8 = vld [vmem:[%s2155_s0 + $0x124] sm:$0xf]  ;;  %v1200_v9 = vld [vmem:[%s2155_s0 + $0x138] sm:$0xf0] }
  0x17   :  { %1592 = vmatpush.bf16.msra.mxu3 %v1494_v11  ;;  %744 = vmatpush.bf16.msra.mxu1 %v1494_v11  ;;  %v1102_v10 = vld [vmem:[%s2155_s0 + $0x60] sm:$0xf]  ;;  %v1451_v11 = vld [vmem:[%s2155_s0 + $0x74] sm:$0xf0]  ;;  %v1203_v16 = vor.u32 %v1472_v8, %v1200_v9  ;;  %v1481_v21 = vld [vmem:[%s2155_s0 + $0x164] sm:$0xf0] }
  0x18   :  { %v1103_v17 = vor.u32 %v1451_v11, %v1102_v10  ;;  %v1524_v19 = vld [vmem:[%s2153_s1 + $0x140] sm:$0xff]  ;;  %v1478_v22 = vld [vmem:[%s2155_s0 + $0x154] sm:$0xf]  ;;  %v1126_v24 = vld [vmem:[%s2155_s0 + $0x90] sm:$0xf] }
  0x19   :  { %v1457_v25 = vld [vmem:[%s2155_s0 + $0xa4] sm:$0xf0]  ;;  %v1086_v44 = vld [vmem:[%s2155_s0 + $0x38] sm:$0xf]  ;;  %v1446_v45 = vld [vmem:[%s2155_s0 + $0x4c] sm:$0xf0] }
  0x1a   :  { %1585 = vmatpush.bf16.msra.mxu2 %v1485_v12  ;;  %696 = vmatpush.bf16.msra.mxu0 %v1485_v12  ;;  %v1448_v12 = vld [vmem:[%s2155_s0 + $0x64] sm:$0xf]  ;;  %v1443_v46 = vld [vmem:[%s2155_s0 + $0x3c] sm:$0xf]  ;;  %v1094_v48 = vld [vmem:[%s2155_s0 + $0x40] sm:$0xf] }
  0x1b   :  { %1593 = vmatpush.bf16.msra.mxu3 %v1493_v13  ;;  %745 = vmatpush.bf16.msra.mxu1 %v1493_v13  ;;  %v1104_v13 = vld [vmem:[%s2155_s0 + $0x78] sm:$0xf0]  ;;  %v1447_v49 = vld [vmem:[%s2155_s0 + $0x54] sm:$0xf0]  ;;  %v1142_v8 = vld [vmem:[%s2155_s0 + $0xa0] sm:$0xf] }
  0x1c   :  { %v1107_v18 = vor.u32 %v1448_v12, %v1104_v13  ;;  %v1096_v51 = vld [vmem:[%s2155_s0 + $0x58] sm:$0xf0]  ;;  %v1459_v9 = vld [vmem:[%s2155_s0 + $0xb4] sm:$0xf0]  ;;  %v1456_v10 = vld [vmem:[%s2155_s0 + $0xa4] sm:$0xf] }
  0x1d   :  { %v1144_v11 = vld [vmem:[%s2155_s0 + $0xb8] sm:$0xf0] }
  0x1e   :  { %1586 = vmatpush.bf16.msra.mxu2 %v1484_v14  ;;  %697 = vmatpush.bf16.msra.mxu0 %v1484_v14  ;;  %v1516_v14 = vld [vmem:[%s2153_s1 + $0x100] sm:$0xff] }
  0x1f   :  { %1594 = vmatpush.bf16.msra.mxu3 %v1492_v15  ;;  %746 = vmatpush.bf16.msra.mxu1 %v1492_v15  ;;  %v1199_v15 = vor.u32 %v1475_v7, %v1198_v6  ;;  %v1455_v6 = vld [vmem:[%s2155_s0 + $0x9c] sm:$0xf]  ;;  %v1136_v7 = vld [vmem:[%s2155_s0 + $0xb0] sm:$0xf0] }
  0x20   :  { %v1139_v13 = vor.u32 %v1455_v6, %v1136_v7  ;;  %v1477_v6 = vld [vmem:[%s2155_s0 + $0x144] sm:$0xf0] }
  0x21   :  { %718 = vmatmul.bf16.vlgmr.msra.gmra.mxu2 %v1151_v26  ;;  %698 = vmatmul.bf16.vlgmr.msra.gmra.mxu0 %v1055_v28  ;;  %v1454_v26 = vld [vmem:[%s2155_s0 + $0x94] sm:$0xf] }
  0x22   :  { %788 = vmatpush.bf16.msrb.mxu2 %v1507_v20  ;;  %767 = vmatmul.bf16.vlgmr.msra.gmra.mxu3 %v1155_v27  ;;  %v1222_v20 = vld [vmem:[%s2155_s0 + $0x150] sm:$0xf]  ;;  %v1128_v27 = vld [vmem:[%s2155_s0 + $0xa8] sm:$0xf0] }
  0x23   :  { %837 = vmatpush.bf16.msrb.mxu3 %v1515_v23  ;;  %935 = vmatpush.bf16.msrb.mxu1 %v1531_v29  ;;  %v1224_v23 = vld [vmem:[%s2155_s0 + $0x168] sm:$0xf0]  ;;  %v1223_v28 = vor.u32 %v1481_v21, %v1222_v20  ;;  %v1166_v20 = vld [vmem:[%s2155_s0 + $0xd0] sm:$0xf]  ;;  %v1465_v21 = vld [vmem:[%s2155_s0 + $0xe4] sm:$0xf0] }
  0x24   :  { %747 = vmatmul.bf16.vlgmr.msra.gmra.mxu1 %v1059_v30  ;;  %886 = vmatpush.bf16.msrb.mxu0 %v1523_v33  ;;  %v1227_v29 = vor.u32 %v1478_v22, %v1224_v23  ;;  %v1127_v30 = vor.u32 %v1457_v25, %v1126_v24  ;;  %v1440_v33 = vld [vmem:[%s2155_s0 + $0x1c] sm:$0xf0]  ;;  %v1462_v22 = vld [vmem:[%s2155_s0 + $0xd4] sm:$0xf]  ;;  %v1168_v23 = vld [vmem:[%s2155_s0 + $0xe8] sm:$0xf0] }
  0x26   :  { %789 = vmatpush.bf16.msrb.mxu2 %v1506_v31  ;;  %v1131_v31 = vor.u32 %v1454_v26, %v1128_v27  ;;  %v1979_v26 = vld [vmem:[%s2154_s2] ss:$0 sm:$0xff]  ;;  %v1167_v27 = vor.u32 %v1465_v21, %v1166_v20 }
  0x27   :  { %838 = vmatpush.bf16.msrb.mxu3 %v1514_v32  ;;  %936 = vmatpush.bf16.msrb.mxu1 %v1530_v34  ;;  %v1062_v32 = vld [vmem:[%s2155_s0 + $0x8] sm:$0xf]  ;;  %v1437_v34 = vld [vmem:[%s2155_s0 + $0xc] sm:$0xf] }
  0x28   :  { %887 = vmatpush.bf16.msrb.mxu0 %v1522_v37  ;;  %v1441_v37 = vld [vmem:[%s2155_s0 + $0x24] sm:$0xf0] }
  0x2a   :  { %790 = vmatpush.bf16.msrb.mxu2 %v1505_v35  ;;  %v1064_v35 = vld [vmem:[%s2155_s0 + $0x20] sm:$0xf0] }
  0x2b   :  { %839 = vmatpush.bf16.msrb.mxu3 %v1513_v36  ;;  %937 = vmatpush.bf16.msrb.mxu1 %v1529_v38  ;;  %v1070_v36 = vld [vmem:[%s2155_s0 + $0x10] sm:$0xf]  ;;  %v1438_v38 = vld [vmem:[%s2155_s0 + $0x14] sm:$0xf] }
  0x2c   :  { %888 = vmatpush.bf16.msrb.mxu0 %v1521_v41  ;;  %v1067_v41 = vor.u32 %v1437_v34, %v1064_v35  ;;  %v1071_v42 = vor.u32 %v1441_v37, %v1070_v36 }
  0x2e   :  { %791 = vmatpush.bf16.msrb.mxu2 %v1504_v39  ;;  %v1072_v39 = vld [vmem:[%s2155_s0 + $0x28] sm:$0xf0] }
  0x2f   :  { %840 = vmatpush.bf16.msrb.mxu3 %v1512_v40  ;;  %938 = vmatpush.bf16.msrb.mxu1 %v1528_v47  ;;  %v1063_v40 = vor.u32 %v1440_v33, %v1062_v32  ;;  %v1075_v43 = vor.u32 %v1438_v38, %v1072_v39  ;;  %v1088_v47 = vld [vmem:[%s2155_s0 + $0x50] sm:$0xf0]  ;;  %v1182_v39 = vld [vmem:[%s2155_s0 + $0xf8] sm:$0xf] }
  0x30   :  { %889 = vmatpush.bf16.msrb.mxu0 %v1520_v53  ;;  %v1091_v53 = vor.u32 %v1443_v46, %v1088_v47  ;;  %v1468_v47 = vld [vmem:[%s2155_s0 + $0x104] sm:$0xf] }
  0x31   :  { %723 = vmatmul.bf16.gmra.mxu2 %v1175_v54  ;;  %703 = vmatmul.bf16.gmra.mxu0 %v1079_v56  ;;  %v1095_v54 = vor.u32 %v1447_v49, %v1094_v48  ;;  %v1110_v56 = vld [vmem:[%s2155_s0 + $0x68] sm:$0xf]  ;;  %v1192_v48 = vld [vmem:[%s2155_s0 + $0x118] sm:$0xf0] }
  0x32   :  { %792 = vmatpush.bf16.msrb.mxu2 %v1503_v50  ;;  %772 = vmatmul.bf16.gmra.mxu3 %v1179_v55  ;;  %v1444_v50 = vld [vmem:[%s2155_s0 + $0x44] sm:$0xf] }
  0x33   :  { %841 = vmatpush.bf16.msrb.mxu3 %v1511_v52  ;;  %939 = vmatpush.bf16.msrb.mxu1 %v1527_v57  ;;  %v1087_v52 = vor.u32 %v1446_v45, %v1086_v44  ;;  %v1099_v55 = vor.u32 %v1444_v50, %v1096_v51  ;;  %v1452_v57 = vld [vmem:[%s2155_s0 + $0x7c] sm:$0xf0]  ;;  %v1471_v44 = vld [vmem:[%s2155_s0 + $0x114] sm:$0xf0] }
  0x34   :  { %752 = vmatmul.bf16.gmra.mxu1 %v1083_v58  ;;  %890 = vmatpush.bf16.msrb.mxu0 %v1519_v61  ;;  %v1449_v58 = vld [vmem:[%s2155_s0 + $0x6c] sm:$0xf]  ;;  %v1453_v61 = vld [vmem:[%s2155_s0 + $0x84] sm:$0xf0] }
  0x36   :  { %793 = vmatpush.bf16.msrb.mxu2 %v1502_v59  ;;  %v1112_v59 = vld [vmem:[%s2155_s0 + $0x80] sm:$0xf0] }
  0x37   :  { %842 = vmatpush.bf16.msrb.mxu3 %v1510_v60  ;;  %940 = vmatpush.bf16.msrb.mxu1 %v1526_v63  ;;  %v1118_v60 = vld [vmem:[%s2155_s0 + $0x70] sm:$0xf]  ;;  %v1120_v63 = vld [vmem:[%s2155_s0 + $0x88] sm:$0xf0] }
  0x38   :  { %891 = vmatpush.bf16.msrb.mxu0 %v1518_v1  ;;  %v1115_v1 = vor.u32 %v1449_v58, %v1112_v59 }
  0x3a   :  { %794 = vmatpush.bf16.msrb.mxu2 %v1501_v62  ;;  %v1450_v62 = vld [vmem:[%s2155_s0 + $0x74] sm:$0xf] }
  0x3b   :  { %843 = vmatpush.bf16.msrb.mxu3 %v1509_v0  ;;  %941 = vmatpush.bf16.msrb.mxu1 %v1525_v2  ;;  %v1111_v0 = vor.u32 %v1452_v57, %v1110_v56  ;;  %v1119_v2 = vor.u32 %v1453_v61, %v1118_v60 }
  0x3c   :  { %892 = vmatpush.bf16.msrb.mxu0 %v1517_v5  ;;  %v1458_v5 = vld [vmem:[%s2155_s0 + $0xac] sm:$0xf0] }
  0x3e   :  { %795 = vmatpush.bf16.msrb.mxu2 %v1500_v3  ;;  %v1123_v3 = vor.u32 %v1450_v62, %v1120_v63 }
  0x3f   :  { %844 = vmatpush.bf16.msrb.mxu3 %v1508_v4  ;;  %942 = vmatpush.bf16.msrb.mxu1 %v1524_v19  ;;  %v1134_v4 = vld [vmem:[%s2155_s0 + $0x98] sm:$0xf]  ;;  %v1160_v19 = vld [vmem:[%s2155_s0 + $0xe0] sm:$0xf0] }
  0x40   :  { %893 = vmatpush.bf16.msrb.mxu0 %v1516_v14  ;;  %v1135_v12 = vor.u32 %v1458_v5, %v1134_v4  ;;  %v1143_v14 = vor.u32 %v1459_v9, %v1142_v8  ;;  %v1208_v4 = vld [vmem:[%s2155_s0 + $0x140] sm:$0xf0]  ;;  %v1214_v5 = vld [vmem:[%s2155_s0 + $0x130] sm:$0xf]  ;;  %v1474_v9 = vld [vmem:[%s2155_s0 + $0x134] sm:$0xf] }
  0x41   :  { %728 = vmatmul.bf16.gmra.mxu2 %v1199_v15  ;;  %708 = vmatmul.bf16.gmra.mxu0 %v1103_v17  ;;  %v1147_v15 = vor.u32 %v1456_v10, %v1144_v11  ;;  %v1464_v17 = vld [vmem:[%s2155_s0 + $0xdc] sm:$0xf0]  ;;  %v1216_v10 = vld [vmem:[%s2155_s0 + $0x148] sm:$0xf0] }
  0x42   :  { %777 = vmatmul.bf16.gmra.mxu3 %v1203_v16  ;;  %v1158_v16 = vld [vmem:[%s2155_s0 + $0xc8] sm:$0xf] }
  0x43   :  { %v1159_v24 = vor.u32 %v1464_v17, %v1158_v16  ;;  %v1219_v17 = vor.u32 %v1474_v9, %v1216_v10 }
  0x44   :  { %757 = vmatmul.bf16.gmra.mxu1 %v1107_v18  ;;  %v1461_v18 = vld [vmem:[%s2155_s0 + $0xcc] sm:$0xf] }
  0x45   :  { %v1163_v25 = vor.u32 %v1461_v18, %v1160_v19 }
  0x51   :  { %733 = vmatmul.bf16.gmra.mxu2 %v1223_v28  ;;  %713 = vmatmul.bf16.gmra.mxu0 %v1127_v30 }
  0x52   :  { %782 = vmatmul.bf16.gmra.mxu3 %v1227_v29  ;;  %v1171_v29 = vor.u32 %v1462_v22, %v1168_v23 }
  0x54   :  { %762 = vmatmul.bf16.gmra.mxu1 %v1131_v31 }
  0x61   :  { %796 = vmatmul.bf16.vlgmr.msrb.gmra.mxu2 %v1063_v40  ;;  %894 = vmatmul.bf16.vlgmr.msrb.gmra.mxu0 %v1071_v42  ;;  %v1470_v40 = vld [vmem:[%s2155_s0 + $0x10c] sm:$0xf0]  ;;  %v1184_v42 = vld [vmem:[%s2155_s0 + $0x110] sm:$0xf0] }
  0x62   :  { %845 = vmatmul.bf16.vlgmr.msrb.gmra.mxu3 %v1067_v41  ;;  %v1467_v41 = vld [vmem:[%s2155_s0 + $0xfc] sm:$0xf]  ;;  %v1183_v50 = vor.u32 %v1470_v40, %v1182_v39  ;;  %v1480_v40 = vld [vmem:[%s2155_s0 + $0x164] sm:$0xf] }
  0x63   :  { %v1187_v51 = vor.u32 %v1467_v41, %v1184_v42  ;;  %v1240_v41 = vld [vmem:[%s2155_s0 + $0x178] sm:$0xf0] }
  0x64   :  { %943 = vmatmul.bf16.vlgmr.msrb.gmra.mxu1 %v1075_v43  ;;  %v1190_v43 = vld [vmem:[%s2155_s0 + $0x100] sm:$0xf] }
  0x71   :  { %801 = vmatmul.bf16.gmra.mxu2 %v1087_v52  ;;  %899 = vmatmul.bf16.gmra.mxu0 %v1095_v54  ;;  %v1191_v52 = vor.u32 %v1471_v44, %v1190_v43 }
  0x72   :  { %850 = vmatmul.bf16.gmra.mxu3 %v1091_v53 }
  0x74   :  { %948 = vmatmul.bf16.gmra.mxu1 %v1099_v55  ;;  %v1195_v55 = vor.u32 %v1468_v47, %v1192_v48  ;;  %v1243_v48 = vor.u32 %v1480_v40, %v1240_v41 }
  0x81   :  { %806 = vmatmul.bf16.gmra.mxu2 %v1111_v0  ;;  %904 = vmatmul.bf16.gmra.mxu0 %v1119_v2  ;;  %v1476_v2 = vld [vmem:[%s2155_s0 + $0x13c] sm:$0xf0] }
  0x82   :  { %855 = vmatmul.bf16.gmra.mxu3 %v1115_v1  ;;  %v1206_v1 = vld [vmem:[%s2155_s0 + $0x128] sm:$0xf] }
  0x84   :  { %953 = vmatmul.bf16.gmra.mxu1 %v1123_v3  ;;  %v1473_v3 = vld [vmem:[%s2155_s0 + $0x12c] sm:$0xf] }
  0x91   :  { %811 = vmatmul.bf16.gmra.mxu2 %v1135_v12  ;;  %909 = vmatmul.bf16.gmra.mxu0 %v1143_v14  ;;  %v1207_v12 = vor.u32 %v1476_v2, %v1206_v1  ;;  %v1215_v14 = vor.u32 %v1477_v6, %v1214_v5 }
  0x92   :  { %860 = vmatmul.bf16.gmra.mxu3 %v1139_v13  ;;  %v1211_v13 = vor.u32 %v1473_v3, %v1208_v4 }
  0x94   :  { %958 = vmatmul.bf16.gmra.mxu1 %v1147_v15 }
  0x9e   :  { %v699_v28 = vpop.f32.mrf.mxu0 }
  0x9f   :  { %v700_v30 = vadd.f32 %v1979_v26, %v699_v28  ;;  %v1230_v28 = vld [vmem:[%s2155_s0 + $0x158] sm:$0xf] }
  0xa1   :  { %v748_v31 = vpop.f32.mrf.mxu1  ;;  %816 = vmatmul.bf16.gmra.mxu2 %v1159_v24  ;;  %914 = vmatmul.bf16.gmra.mxu0 %v1167_v27 }
  0xa2   :  { %865 = vmatmul.bf16.gmra.mxu3 %v1163_v25  ;;  %v1982_v32 = vadd.f32 %v748_v31, %v700_v30  ;;  %v1479_v30 = vld [vmem:[%s2155_s0 + $0x15c] sm:$0xf]  ;;  %v1232_v31 = vld [vmem:[%s2155_s0 + $0x170] sm:$0xf0] }
  0xa3   :  { %v1235_v44 = vor.u32 %v1479_v30, %v1232_v31 }
  0xa4   :  { %963 = vmatmul.bf16.gmra.mxu1 %v1171_v29  ;;  %v719_v33 = vpop.f32.mrf.mxu2  ;;  %v1482_v29 = vld [vmem:[%s2155_s0 + $0x16c] sm:$0xf0] }
  0xa5   :  { %v768_v34 = vpop.f32.mrf.mxu3  ;;  %v720_v35 = vadd.f32 %v1979_v26, %v719_v33  ;;  %v1238_v33 = vld [vmem:[%s2155_s0 + $0x160] sm:$0xf]  ;;  %v1231_v43 = vor.u32 %v1482_v29, %v1230_v28 }
  0xa6   :  { %v1987_v37 = vpop.f32.mrf.mxu0 }
  0xa7   :  { %v1985_v36 = vadd.f32 %v768_v34, %v720_v35  ;;  %v1483_v34 = vld [vmem:[%s2155_s0 + $0x174] sm:$0xf0] }
  0xa9   :  { %v1989_v38 = vpop.f32.mrf.mxu1 }
  0xac   :  { %v721_v45 = vpop.f32.mrf.mxu2 }
  0xad   :  { %v770_v46 = vpop.f32.mrf.mxu3  ;;  %v722_v49 = vadd.f32 %v1979_v26, %v721_v45  ;;  %v1239_v45 = vor.u32 %v1483_v34, %v1238_v33 }
  0xae   :  { %v704_v54 = vpop.f32.mrf.mxu0 }
  0xaf   :  { %v2016_v53 = vadd.f32 %v770_v46, %v722_v49  ;;  %v705_v56 = vadd.f32 %v1979_v26, %v704_v54 }
  0xb1   :  { %v753_v57 = vpop.f32.mrf.mxu1  ;;  %821 = vmatmul.bf16.gmra.mxu2 %v1183_v50  ;;  %919 = vmatmul.bf16.gmra.mxu0 %v1191_v52 }
  0xb2   :  { %870 = vmatmul.bf16.gmra.mxu3 %v1187_v51  ;;  %v2019_v58 = vadd.f32 %v753_v57, %v705_v56 }
  0xb4   :  { %968 = vmatmul.bf16.gmra.mxu1 %v1195_v55  ;;  %v724_v59 = vpop.f32.mrf.mxu2 }
  0xb5   :  { %v773_v60 = vpop.f32.mrf.mxu3  ;;  %v725_v61 = vadd.f32 %v1979_v26, %v724_v59 }
  0xb6   :  { %v2024_v63 = vpop.f32.mrf.mxu0 }
  0xb7   :  { %v2022_v62 = vadd.f32 %v773_v60, %v725_v61  ;;  %v707_v33 = vadd.f32 %v1979_v26, %v2024_v63 }
  0xb9   :  { %v2026_v0 = vpop.f32.mrf.mxu1 }
  0xbc   :  { %v726_v7 = vpop.f32.mrf.mxu2 }
  0xbd   :  { %v775_v8 = vpop.f32.mrf.mxu3  ;;  %v727_v11 = vadd.f32 %v1979_v26, %v726_v7 }
  0xbe   :  { %v709_v16 = vpop.f32.mrf.mxu0 }
  0xbf   :  { %v2053_v15 = vadd.f32 %v775_v8, %v727_v11  ;;  %v710_v18 = vadd.f32 %v1979_v26, %v709_v16  ;;  %v702_v8 = vadd.f32 %v1979_v26, %v1987_v37 }
  0xc1   :  { %v758_v19 = vpop.f32.mrf.mxu1  ;;  %826 = vmatmul.bf16.gmra.mxu2 %v1207_v12  ;;  %924 = vmatmul.bf16.gmra.mxu0 %v1215_v14  ;;  %v751_v12 = vadd.f32 %v1989_v38, %v702_v8 }
  0xc2   :  { %875 = vmatmul.bf16.gmra.mxu3 %v1211_v13  ;;  %v2056_v20 = vadd.f32 %v758_v19, %v710_v18 }
  0xc4   :  { %973 = vmatmul.bf16.gmra.mxu1 %v1219_v17  ;;  %v729_v21 = vpop.f32.mrf.mxu2 }
  0xc5   :  { %v778_v22 = vpop.f32.mrf.mxu3  ;;  %v730_v23 = vadd.f32 %v1979_v26, %v729_v21 }
  0xc6   :  { %v2061_v25 = vpop.f32.mrf.mxu0 }
  0xc7   :  { %v2059_v24 = vadd.f32 %v778_v22, %v730_v23 }
  0xc9   :  { %v2063_v27 = vpop.f32.mrf.mxu1 }
  0xcc   :  { %v731_v35 = vpop.f32.mrf.mxu2 }
  0xcd   :  { %v780_v39 = vpop.f32.mrf.mxu3  ;;  %v732_v42 = vadd.f32 %v1979_v26, %v731_v35 }
  0xce   :  { %v714_v47 = vpop.f32.mrf.mxu0 }
  0xcf   :  { %v2090_v46 = vadd.f32 %v780_v39, %v732_v42  ;;  %v715_v49 = vadd.f32 %v1979_v26, %v714_v47  ;;  %v756_v42 = vadd.f32 %v2026_v0, %v707_v33 }
  0xd1   :  { %v763_v50 = vpop.f32.mrf.mxu1  ;;  %831 = vmatmul.bf16.gmra.mxu2 %v1231_v43  ;;  %929 = vmatmul.bf16.gmra.mxu0 %v1239_v45 }
  0xd2   :  { %880 = vmatmul.bf16.gmra.mxu3 %v1235_v44  ;;  %v2093_v51 = vadd.f32 %v763_v50, %v715_v49 }
  0xd4   :  { %978 = vmatmul.bf16.gmra.mxu1 %v1243_v48  ;;  %v734_v52 = vpop.f32.mrf.mxu2 }
  0xd5   :  { %v783_v54 = vpop.f32.mrf.mxu3  ;;  %v735_v55 = vadd.f32 %v1979_v26, %v734_v52 }
  0xd6   :  { %v2098_v57 = vpop.f32.mrf.mxu0 }
  0xd7   :  { %v2096_v56 = vadd.f32 %v783_v54, %v735_v55 }
  0xd9   :  { %v2100_v59 = vpop.f32.mrf.mxu1 }
  0xdc   :  { %v736_v60 = vpop.f32.mrf.mxu2 }
  0xdd   :  { %v785_v61 = vpop.f32.mrf.mxu3  ;;  %v737_v1 = vadd.f32 %v1979_v26, %v736_v60 }
  0xde   :  { %v895_v3 = vpop.f32.mrf.mxu0 }
  0xdf   :  { %v2103_v2 = vadd.f32 %v785_v61, %v737_v1  ;;  %v712_v1 = vadd.f32 %v1979_v26, %v2061_v25 }
  0xe1   :  { %v944_v4 = vpop.f32.mrf.mxu1 }
  0xe4   :  { %v797_v5 = vpop.f32.mrf.mxu2 }
  0xe5   :  { %v846_v6 = vpop.f32.mrf.mxu3  ;;  %v798_v7 = vadd.f32 %v797_v5, %v1982_v32 }
  0xe6   :  { %v897_v10 = vpop.f32.mrf.mxu0 }
  0xe7   :  { %v847_v9 = vadd.f32 %v846_v6, %v798_v7 }
  0xe9   :  { %v946_v11 = vpop.f32.mrf.mxu1  ;;  %v896_v13 = vadd.f32 %v895_v3, %v847_v9  ;;  %v761_v9 = vadd.f32 %v2063_v27, %v712_v1 }
  0xeb   :  { %v945_v18 = vadd.f32 %v944_v4, %v896_v13 }
  0xec   :  { %v799_v14 = vpop.f32.mrf.mxu2 }
  0xed   :  { %v848_v16 = vpop.f32.mrf.mxu3  ;;  %v800_v17 = vadd.f32 %v799_v14, %v751_v12  ;;  %v984_v28 = vmul.f32 0.1, %v945_v18 }
  0xee   :  { %v900_v21 = vpop.f32.mrf.mxu0 }
  0xef   :  { %v849_v19 = vadd.f32 %v848_v16, %v800_v17  ;;  %v1000_v38 = vmax.f32 %v945_v18, %v984_v28  ;;  %v717_v28 = vadd.f32 %v1979_v26, %v2098_v57 }
  0xf1   :  { %v949_v22 = vpop.f32.mrf.mxu1  ;;  %v898_v23 = vadd.f32 %v897_v10, %v849_v19 }
  0xf3   :  { %v947_v29 = vadd.f32 %v946_v11, %v898_v23 }
  0xf4   :  { %v802_v32 = vpop.f32.mrf.mxu2 }
  0xf5   :  { %v851_v30 = vpop.f32.mrf.mxu3  ;;  %v985_v31 = vmul.f32 0.1, %v947_v29  ;;  %v803_v37 = vadd.f32 %v802_v32, %v2019_v58 }
  0xf6   :  { %v902_v39 = vpop.f32.mrf.mxu0 }
  0xf7   :  { %v1001_v34 = vmax.f32 %v947_v29, %v985_v31  ;;  %v852_v35 = vadd.f32 %v851_v30, %v803_v37 }
  0xf9   :  { %v951_v40 = vpop.f32.mrf.mxu1  ;;  %v1535_v41 = vpack.c.bf16 %v1001_v34, %v1000_v38  ;;  %v901_v43 = vadd.f32 %v900_v21, %v852_v35  ;;  %v766_v38 = vadd.f32 %v2100_v59, %v717_v28 }
  0xfb   :  { %1536 = vst [vmem:[%s2156_s3] sm:$0xff] %v1535_v41   ;;  %v950_v58 = vadd.f32 %v949_v22, %v901_v43 }
  0xfc   :  { %v804_v44 = vpop.f32.mrf.mxu2 }
  0xfd   :  { %v853_v45 = vpop.f32.mrf.mxu3  ;;  %v805_v47 = vadd.f32 %v804_v44, %v756_v42  ;;  %v986_v52 = vmul.f32 0.1, %v950_v58 }
  0xfe   :  { %v905_v49 = vpop.f32.mrf.mxu0 }
  0xff   :  { %v854_v48 = vadd.f32 %v853_v45, %v805_v47  ;;  %v1002_v3 = vmax.f32 %v950_v58, %v986_v52 }
 0x101   :  { %v954_v63 = vpop.f32.mrf.mxu1  ;;  %v903_v50 = vadd.f32 %v902_v39, %v854_v48 }
 0x103   :  { %v952_v54 = vadd.f32 %v951_v40, %v903_v50 }
 0x104   :  { %v807_v55 = vpop.f32.mrf.mxu2 }
 0x105   :  { %v856_v60 = vpop.f32.mrf.mxu3  ;;  %v987_v61 = vmul.f32 0.1, %v952_v54  ;;  %v808_v0 = vadd.f32 %v807_v55, %v2056_v20 }
 0x106   :  { %v907_v6 = vpop.f32.mrf.mxu0 }
 0x107   :  { %v1003_v4 = vmax.f32 %v952_v54, %v987_v61  ;;  %v857_v5 = vadd.f32 %v856_v60, %v808_v0 }
 0x109   :  { %v956_v7 = vpop.f32.mrf.mxu1  ;;  %v1540_v8 = vpack.c.bf16 %v1003_v4, %v1002_v3  ;;  %v906_v10 = vadd.f32 %v905_v49, %v857_v5 }
 0x10b   :  { %1572 = vst [vmem:[%s2156_s3 + $0x8] sm:$0xff] %v1540_v8   ;;  %v955_v20 = vadd.f32 %v954_v63, %v906_v10 }
 0x10c   :  { %v809_v11 = vpop.f32.mrf.mxu2 }
 0x10d   :  { %v858_v12 = vpop.f32.mrf.mxu3  ;;  %v810_v13 = vadd.f32 %v809_v11, %v761_v9  ;;  %v988_v18 = vmul.f32 0.1, %v955_v20 }
 0x10e   :  { %v910_v16 = vpop.f32.mrf.mxu0 }
 0x10f   :  { %v859_v14 = vadd.f32 %v858_v12, %v810_v13  ;;  %v1004_v29 = vmax.f32 %v955_v20, %v988_v18 }
 0x111   :  { %v959_v25 = vpop.f32.mrf.mxu1  ;;  %v908_v17 = vadd.f32 %v907_v6, %v859_v14 }
 0x113   :  { %v957_v19 = vadd.f32 %v956_v7, %v908_v17 }
 0x114   :  { %v812_v21 = vpop.f32.mrf.mxu2 }
 0x115   :  { %v861_v22 = vpop.f32.mrf.mxu3  ;;  %v989_v23 = vmul.f32 0.1, %v957_v19  ;;  %v813_v27 = vadd.f32 %v812_v21, %v2093_v51 }
 0x116   :  { %v912_v31 = vpop.f32.mrf.mxu0 }
 0x117   :  { %v1005_v32 = vmax.f32 %v957_v19, %v989_v23  ;;  %v862_v30 = vadd.f32 %v861_v22, %v813_v27 }
 0x119   :  { %v961_v37 = vpop.f32.mrf.mxu1  ;;  %v1545_v33 = vpack.c.bf16 %v1005_v32, %v1004_v29  ;;  %v911_v34 = vadd.f32 %v910_v16, %v862_v30 }
 0x11b   :  { %1573 = vst [vmem:[%s2156_s3 + $0x10] sm:$0xff] %v1545_v33   ;;  %v960_v51 = vadd.f32 %v959_v25, %v911_v34 }
 0x11c   :  { %v814_v35 = vpop.f32.mrf.mxu2 }
 0x11d   :  { %v863_v39 = vpop.f32.mrf.mxu3  ;;  %v815_v40 = vadd.f32 %v814_v35, %v766_v38  ;;  %v990_v43 = vmul.f32 0.1, %v960_v51 }
 0x11e   :  { %v915_v42 = vpop.f32.mrf.mxu0 }
 0x11f   :  { %v864_v41 = vadd.f32 %v863_v39, %v815_v40  ;;  %v1006_v48 = vmax.f32 %v960_v51, %v990_v43 }
 0x121   :  { %v964_v26 = vpop.f32.mrf.mxu1  ;;  %v913_v57 = vadd.f32 %v912_v31, %v864_v41 }
 0x123   :  { %v962_v44 = vadd.f32 %v961_v37, %v913_v57 }
 0x124   :  { %v817_v45 = vpop.f32.mrf.mxu2 }
 0x125   :  { %v866_v47 = vpop.f32.mrf.mxu3  ;;  %v991_v58 = vmul.f32 0.1, %v962_v44  ;;  %v818_v59 = vadd.f32 %v817_v45, %v1985_v36 }
 0x126   :  { %v917_v50 = vpop.f32.mrf.mxu0 }
 0x127   :  { %v1007_v49 = vmax.f32 %v962_v44, %v991_v58  ;;  %v867_v63 = vadd.f32 %v866_v47, %v818_v59 }
 0x129   :  { %v966_v52 = vpop.f32.mrf.mxu1  ;;  %v1550_v54 = vpack.c.bf16 %v1007_v49, %v1006_v48  ;;  %v916_v55 = vadd.f32 %v915_v42, %v867_v63 }
 0x12b   :  { %1574 = vst [vmem:[%s2156_s3 + $0x18] sm:$0xff] %v1550_v54   ;;  %v965_v1 = vadd.f32 %v964_v26, %v916_v55 }
 0x12c   :  { %v819_v60 = vpop.f32.mrf.mxu2 }
 0x12d   :  { %v868_v61 = vpop.f32.mrf.mxu3  ;;  %v820_v0 = vadd.f32 %v819_v60, %v2016_v53  ;;  %v992_v6 = vmul.f32 0.1, %v965_v1 }
 0x12e   :  { %v920_v4 = vpop.f32.mrf.mxu0 }
 0x12f   :  { %v869_v3 = vadd.f32 %v868_v61, %v820_v0  ;;  %v1008_v12 = vmax.f32 %v965_v1, %v992_v6 }
 0x131   :  { %v969_v5 = vpop.f32.mrf.mxu1  ;;  %v918_v36 = vadd.f32 %v917_v50, %v869_v3 }
 0x133   :  { %v967_v7 = vadd.f32 %v966_v52, %v918_v36 }
 0x134   :  { %v822_v8 = vpop.f32.mrf.mxu2 }
 0x135   :  { %v871_v9 = vpop.f32.mrf.mxu3  ;;  %v993_v10 = vmul.f32 0.1, %v967_v7  ;;  %v823_v11 = vadd.f32 %v822_v8, %v2022_v62 }
 0x136   :  { %v922_v14 = vpop.f32.mrf.mxu0 }
 0x137   :  { %v1009_v13 = vmax.f32 %v967_v7, %v993_v10  ;;  %v872_v20 = vadd.f32 %v871_v9, %v823_v11 }
 0x139   :  { %v1555_v16 = vpack.c.bf16 %v1009_v13, %v1008_v12  ;;  %v971_v25 = vpop.f32.mrf.mxu1  ;;  %v921_v53 = vadd.f32 %v920_v4, %v872_v20 }
 0x13b   :  { %1575 = vst [vmem:[%s2156_s3 + $0x20] sm:$0xff] %v1555_v16   ;;  %v970_v21 = vadd.f32 %v969_v5, %v921_v53 }
 0x13c   :  { %v824_v17 = vpop.f32.mrf.mxu2 }
 0x13d   :  { %v873_v18 = vpop.f32.mrf.mxu3  ;;  %v825_v19 = vadd.f32 %v824_v17, %v2053_v15  ;;  %v994_v62 = vmul.f32 0.1, %v970_v21 }
 0x13e   :  { %v925_v27 = vpop.f32.mrf.mxu0 }
 0x13f   :  { %v874_v22 = vadd.f32 %v873_v18, %v825_v19  ;;  %v1010_v33 = vmax.f32 %v970_v21, %v994_v62 }
 0x141   :  { %v923_v23 = vadd.f32 %v922_v14, %v874_v22  ;;  %v974_v29 = vpop.f32.mrf.mxu1 }
 0x143   :  { %v972_v28 = vadd.f32 %v971_v25, %v923_v23 }
 0x144   :  { %v827_v32 = vpop.f32.mrf.mxu2 }
 0x145   :  { %v876_v30 = vpop.f32.mrf.mxu3  ;;  %v995_v31 = vmul.f32 0.1, %v972_v28  ;;  %v828_v37 = vadd.f32 %v827_v32, %v2059_v24 }
 0x146   :  { %v927_v39 = vpop.f32.mrf.mxu0 }
 0x147   :  { %v1011_v38 = vmax.f32 %v972_v28, %v995_v31  ;;  %v877_v34 = vadd.f32 %v876_v30, %v828_v37 }
 0x149   :  { %v1560_v35 = vpack.c.bf16 %v1011_v38, %v1010_v33  ;;  %v926_v15 = vadd.f32 %v925_v27, %v877_v34  ;;  %v976_v42 = vpop.f32.mrf.mxu1 }
 0x14b   :  { %1576 = vst [vmem:[%s2156_s3 + $0x28] sm:$0xff] %v1560_v35   ;;  %v975_v26 = vadd.f32 %v974_v29, %v926_v15 }
 0x14c   :  { %v829_v40 = vpop.f32.mrf.mxu2 }
 0x14d   :  { %v878_v51 = vpop.f32.mrf.mxu3  ;;  %v830_v41 = vadd.f32 %v829_v40, %v2090_v46  ;;  %v996_v44 = vmul.f32 0.1, %v975_v26 }
 0x14e   :  { %v930_v48 = vpop.f32.mrf.mxu0 }
 0x14f   :  { %v879_v57 = vadd.f32 %v878_v51, %v830_v41  ;;  %v1012_v49 = vmax.f32 %v975_v26, %v996_v44 }
 0x151   :  { %v928_v43 = vadd.f32 %v927_v39, %v879_v57  ;;  %v979_v52 = vpop.f32.mrf.mxu1 }
 0x153   :  { %v977_v24 = vadd.f32 %v976_v42, %v928_v43 }
 0x154   :  { %v832_v45 = vpop.f32.mrf.mxu2 }
 0x155   :  { %v881_v47 = vpop.f32.mrf.mxu3  ;;  %v997_v58 = vmul.f32 0.1, %v977_v24  ;;  %v833_v59 = vadd.f32 %v832_v45, %v2096_v56 }
 0x156   :  { %v932_v3 = vpop.f32.mrf.mxu0 }
 0x157   :  { %v1013_v63 = vmax.f32 %v977_v24, %v997_v58  ;;  %v882_v50 = vadd.f32 %v881_v47, %v833_v59 }
 0x159   :  { %v1565_v54 = vpack.c.bf16 %v1013_v63, %v1012_v49  ;;  %v931_v46 = vadd.f32 %v930_v48, %v882_v50  ;;  %v981_v56 = vpop.f32.mrf.mxu1 }
 0x15b   :  { %1577 = vst [vmem:[%s2156_s3 + $0x30] sm:$0xff] %v1565_v54   ;;  %v980_v0 = vadd.f32 %v979_v52, %v931_v46 }
 0x15c   :  { %v834_v55 = vpop.f32.mrf.mxu2 }
 0x15d   :  { %v835_v60 = vadd.f32 %v834_v55, %v2103_v2  ;;  %v883_v61 = vpop.f32.mrf.mxu3  ;;  %v998_v5 = vmul.f32 0.1, %v980_v0 }
 0x15f   :  { %v884_v1 = vadd.f32 %v883_v61, %v835_v60  ;;  %v1014_v7 = vmax.f32 %v980_v0, %v998_v5 }
 0x161   :  { %v933_v4 = vadd.f32 %v932_v3, %v884_v1 }
 0x163   :  { %v982_v36 = vadd.f32 %v981_v56, %v933_v4 }
 0x165   :  { %v999_v6 = vmul.f32 0.1, %v982_v36 }
 0x167   :  { %v1015_v8 = vmax.f32 %v982_v36, %v999_v6 }
 0x169   :  { %v1570_v9 = vpack.c.bf16 %v1015_v8, %v1014_v7 }
 0x16b   :  { %1578 = vst [vmem:[%s2156_s3 + $0x38] sm:$0xff] %v1570_v9  }

// kernel: _device_forward_impl.11
= control target key start
LH: loop header
LB: loop body
LE: loop exit
PB: predicated region body
PF: predicated region fallthrough
CT: control target
= control target key end

     0   :  { %s528_s1 = inlined_call_operand.vmem [shape: bf16[128,128], index: 1, kind: input, shape index: {}]   ;;  %s529_s2 = inlined_call_operand.vmem [shape: f32[1,128], index: 2, kind: input, shape index: {}]   ;;  %s530_s0 = inlined_call_operand.vmem [shape: bf16[128,128], index: 0, kind: input, shape index: {}]   ;;  %s531_s3 = inlined_call_operand.vmem [shape: bf16[128,128], index: 3, kind: output, shape index: {}]  }
   0x1   :  { %v342_v0 = vld [vmem:[%s528_s1 + $0x38] sm:$0xff]  ;;  %v341_v1 = vld [vmem:[%s528_s1 + $0x30] sm:$0xff]  ;;  %v340_v2 = vld [vmem:[%s528_s1 + $0x28] sm:$0xff] }
   0x2   :  { %146 = vmatpush.bf16.msra.mxu0 %v342_v0  ;;  %390 = vmatpush.bf16.msra.mxu1 %v342_v0  ;;  %v339_v3 = vld [vmem:[%s528_s1 + $0x20] sm:$0xff]  ;;  %v338_v4 = vld [vmem:[%s528_s1 + $0x18] sm:$0xff]  ;;  %v337_v5 = vld [vmem:[%s528_s1 + $0x10] sm:$0xff] }
   0x3   :  { %391 = vmatpush.bf16.msra.mxu2 %v342_v0  ;;  %392 = vmatpush.bf16.msra.mxu3 %v342_v0  ;;  %v336_v6 = vld [vmem:[%s528_s1 + $0x8] sm:$0xff]  ;;  %v335_v7 = vld [vmem:[%s528_s1] sm:$0xff]  ;;  %v329_v9 = vld [vmem:[%s530_s0 + $0x10] sm:$0xff] }
   0x4   :  { %v327_v8 = vld [vmem:[%s530_s0] sm:$0xff]  ;;  %v333_v11 = vld [vmem:[%s530_s0 + $0x30] sm:$0xff]  ;;  %v328_v12 = vld [vmem:[%s530_s0 + $0x8] sm:$0xff] }
   0x5   :  { %v331_v10 = vld [vmem:[%s530_s0 + $0x20] sm:$0xff]  ;;  %v330_v13 = vld [vmem:[%s530_s0 + $0x18] sm:$0xff]  ;;  %v332_v14 = vld [vmem:[%s530_s0 + $0x28] sm:$0xff] }
   0x6   :  { %147 = vmatpush.bf16.msra.mxu0 %v341_v1  ;;  %393 = vmatpush.bf16.msra.mxu1 %v341_v1  ;;  %v334_v15 = vld [vmem:[%s530_s0 + $0x38] sm:$0xff]  ;;  %v486_v18 = vld [vmem:[%s529_s2] ss:$0 sm:$0xff] }
   0x7   :  { %394 = vmatpush.bf16.msra.mxu2 %v341_v1  ;;  %395 = vmatpush.bf16.msra.mxu3 %v341_v1 }
   0xa   :  { %148 = vmatpush.bf16.msra.mxu0 %v340_v2  ;;  %396 = vmatpush.bf16.msra.mxu1 %v340_v2 }
   0xb   :  { %397 = vmatpush.bf16.msra.mxu2 %v340_v2  ;;  %398 = vmatpush.bf16.msra.mxu3 %v340_v2 }
   0xe   :  { %149 = vmatpush.bf16.msra.mxu0 %v339_v3  ;;  %399 = vmatpush.bf16.msra.mxu1 %v339_v3 }
   0xf   :  { %400 = vmatpush.bf16.msra.mxu2 %v339_v3  ;;  %401 = vmatpush.bf16.msra.mxu3 %v339_v3 }
  0x12   :  { %150 = vmatpush.bf16.msra.mxu0 %v338_v4  ;;  %402 = vmatpush.bf16.msra.mxu1 %v338_v4 }
  0x13   :  { %403 = vmatpush.bf16.msra.mxu2 %v338_v4  ;;  %404 = vmatpush.bf16.msra.mxu3 %v338_v4 }
  0x16   :  { %151 = vmatpush.bf16.msra.mxu0 %v337_v5  ;;  %405 = vmatpush.bf16.msra.mxu1 %v337_v5 }
  0x17   :  { %406 = vmatpush.bf16.msra.mxu2 %v337_v5  ;;  %407 = vmatpush.bf16.msra.mxu3 %v337_v5 }
  0x1a   :  { %152 = vmatpush.bf16.msra.mxu0 %v336_v6  ;;  %408 = vmatpush.bf16.msra.mxu1 %v336_v6 }
  0x1b   :  { %409 = vmatpush.bf16.msra.mxu2 %v336_v6  ;;  %410 = vmatpush.bf16.msra.mxu3 %v336_v6 }
  0x1e   :  { %153 = vmatpush.bf16.msra.mxu0 %v335_v7  ;;  %411 = vmatpush.bf16.msra.mxu1 %v335_v7 }
  0x1f   :  { %412 = vmatpush.bf16.msra.mxu2 %v335_v7  ;;  %413 = vmatpush.bf16.msra.mxu3 %v335_v7 }
  0x21   :  { %154 = vmatmul.bf16.vlgmr.msra.gmra.mxu0 %v327_v8  ;;  %164 = vmatmul.bf16.vlgmr.msra.gmra.mxu1 %v329_v9 }
  0x22   :  { %174 = vmatmul.bf16.vlgmr.msra.gmra.mxu2 %v331_v10  ;;  %184 = vmatmul.bf16.vlgmr.msra.gmra.mxu3 %v333_v11 }
  0x31   :  { %159 = vmatmul.bf16.gmra.mxu0 %v328_v12  ;;  %169 = vmatmul.bf16.gmra.mxu1 %v330_v13 }
  0x32   :  { %179 = vmatmul.bf16.gmra.mxu2 %v332_v14  ;;  %189 = vmatmul.bf16.gmra.mxu3 %v334_v15 }
  0x9e   :  { %v155_v16 = vpop.f32.mrf.mxu0  ;;  %v165_v17 = vpop.f32.mrf.mxu1 }
  0x9f   :  { %v156_v19 = vadd.f32 %v486_v18, %v155_v16  ;;  %v166_v20 = vadd.f32 %v486_v18, %v165_v17 }
  0xa1   :  { %v195_v25 = vmul.f32 0.1, %v156_v19  ;;  %v199_v26 = vmul.f32 0.1, %v166_v20 }
  0xa3   :  { %v211_v33 = vmax.f32 %v156_v19, %v195_v25  ;;  %v215_v34 = vmax.f32 %v166_v20, %v199_v26 }
  0xa5   :  { %v175_v21 = vpop.f32.mrf.mxu2  ;;  %v185_v22 = vpop.f32.mrf.mxu3 }
  0xa6   :  { %v157_v23 = vpop.f32.mrf.mxu0  ;;  %v167_v24 = vpop.f32.mrf.mxu1  ;;  %v176_v31 = vadd.f32 %v486_v18, %v175_v21  ;;  %v186_v32 = vadd.f32 %v486_v18, %v185_v22 }
  0xa7   :  { %v158_v27 = vadd.f32 %v486_v18, %v157_v23  ;;  %v168_v28 = vadd.f32 %v486_v18, %v167_v24 }
  0xa8   :  { %v203_v41 = vmul.f32 0.1, %v176_v31  ;;  %v207_v42 = vmul.f32 0.1, %v186_v32 }
  0xa9   :  { %v196_v29 = vmul.f32 0.1, %v158_v27  ;;  %v200_v30 = vmul.f32 0.1, %v168_v28 }
  0xaa   :  { %v219_v49 = vmax.f32 %v176_v31, %v203_v41  ;;  %v223_v50 = vmax.f32 %v186_v32, %v207_v42 }
  0xab   :  { %v212_v35 = vmax.f32 %v158_v27, %v196_v29  ;;  %v216_v36 = vmax.f32 %v168_v28, %v200_v30 }
  0xad   :  { %v346_v37 = vpack.c.bf16 %v212_v35, %v211_v33  ;;  %v356_v38 = vpack.c.bf16 %v216_v36, %v215_v34  ;;  %v177_v39 = vpop.f32.mrf.mxu2  ;;  %v187_v40 = vpop.f32.mrf.mxu3 }
  0xae   :  { %v178_v43 = vadd.f32 %v486_v18, %v177_v39  ;;  %v188_v44 = vadd.f32 %v486_v18, %v187_v40  ;;  %v160_v45 = vpop.f32.mrf.mxu0  ;;  %v170_v46 = vpop.f32.mrf.mxu1 }
  0xaf   :  { %347 = vst [vmem:[%s531_s3] sm:$0xff] %v346_v37   ;;  %v161_v53 = vadd.f32 %v486_v18, %v160_v45  ;;  %v171_v54 = vadd.f32 %v486_v18, %v170_v46 }
  0xb0   :  { %384 = vst [vmem:[%s531_s3 + $0x10] sm:$0xff] %v356_v38   ;;  %v204_v47 = vmul.f32 0.1, %v178_v43  ;;  %v208_v48 = vmul.f32 0.1, %v188_v44 }
  0xb1   :  { %v197_v61 = vmul.f32 0.1, %v161_v53  ;;  %v201_v62 = vmul.f32 0.1, %v171_v54 }
  0xb2   :  { %v220_v51 = vmax.f32 %v178_v43, %v204_v47  ;;  %v224_v52 = vmax.f32 %v188_v44, %v208_v48 }
  0xb3   :  { %v213_v5 = vmax.f32 %v161_v53, %v197_v61  ;;  %v217_v6 = vmax.f32 %v171_v54, %v201_v62 }
  0xb4   :  { %v366_v55 = vpack.c.bf16 %v220_v51, %v219_v49  ;;  %v376_v56 = vpack.c.bf16 %v224_v52, %v223_v50 }
  0xb5   :  { %v180_v57 = vpop.f32.mrf.mxu2  ;;  %v190_v58 = vpop.f32.mrf.mxu3 }
  0xb6   :  { %386 = vst [vmem:[%s531_s3 + $0x20] sm:$0xff] %v366_v55   ;;  %v162_v59 = vpop.f32.mrf.mxu0  ;;  %v172_v60 = vpop.f32.mrf.mxu1  ;;  %v181_v3 = vadd.f32 %v486_v18, %v180_v57  ;;  %v191_v4 = vadd.f32 %v486_v18, %v190_v58 }
  0xb7   :  { %388 = vst [vmem:[%s531_s3 + $0x30] sm:$0xff] %v376_v56   ;;  %v163_v63 = vadd.f32 %v486_v18, %v162_v59  ;;  %v173_v0 = vadd.f32 %v486_v18, %v172_v60 }
  0xb8   :  { %v205_v13 = vmul.f32 0.1, %v181_v3  ;;  %v209_v14 = vmul.f32 0.1, %v191_v4 }
  0xb9   :  { %v198_v1 = vmul.f32 0.1, %v163_v63  ;;  %v202_v2 = vmul.f32 0.1, %v173_v0 }
  0xba   :  { %v221_v20 = vmax.f32 %v181_v3, %v205_v13  ;;  %v225_v21 = vmax.f32 %v191_v4, %v209_v14 }
  0xbb   :  { %v214_v7 = vmax.f32 %v163_v63, %v198_v1  ;;  %v218_v8 = vmax.f32 %v173_v0, %v202_v2 }
  0xbd   :  { %v351_v9 = vpack.c.bf16 %v214_v7, %v213_v5  ;;  %v361_v10 = vpack.c.bf16 %v218_v8, %v217_v6  ;;  %v182_v11 = vpop.f32.mrf.mxu2  ;;  %v192_v12 = vpop.f32.mrf.mxu3 }
  0xbe   :  { %v183_v15 = vadd.f32 %v486_v18, %v182_v11  ;;  %v193_v16 = vadd.f32 %v486_v18, %v192_v12 }
  0xbf   :  { %383 = vst [vmem:[%s531_s3 + $0x8] sm:$0xff] %v351_v9  }
  0xc0   :  { %385 = vst [vmem:[%s531_s3 + $0x18] sm:$0xff] %v361_v10   ;;  %v206_v17 = vmul.f32 0.1, %v183_v15  ;;  %v210_v19 = vmul.f32 0.1, %v193_v16 }
  0xc2   :  { %v222_v22 = vmax.f32 %v183_v15, %v206_v17  ;;  %v226_v23 = vmax.f32 %v193_v16, %v210_v19 }
  0xc4   :  { %v371_v24 = vpack.c.bf16 %v222_v22, %v221_v20  ;;  %v381_v25 = vpack.c.bf16 %v226_v23, %v225_v21 }
  0xc6   :  { %387 = vst [vmem:[%s531_s3 + $0x28] sm:$0xff] %v371_v24  }
  0xc7   :  { %389 = vst [vmem:[%s531_s3 + $0x38] sm:$0xff] %v381_v25  }

// kernel: _device_forward_impl.8
= control target key start
LH: loop header
LB: loop body
LE: loop exit
PB: predicated region body
PF: predicated region fallthrough
CT: control target
= control target key end

     0   :  { %s4432_s1 = inlined_call_operand.vmem [shape: bf16[3072,128], index: 1, kind: input, shape index: {}]   ;;  %s4433_s0 = inlined_call_operand.vmem [shape: bf16[32,3072], index: 0, kind: input, shape index: {}]   ;;  %s4434_s2 = inlined_call_operand.vmem [shape: f32[1,128], index: 2, kind: input, shape index: {}]   ;;  %s4435_s3 = inlined_call_operand.vmem [shape: bf16[32,128], index: 3, kind: output, shape index: {}]  }
   0x1   :  { %v3333_v0 = vld [vmem:[%s4432_s1 + $0x38] sm:$0xff]  ;;  %v3332_v4 = vld [vmem:[%s4432_s1 + $0x30] sm:$0xff]  ;;  %v3331_v8 = vld [vmem:[%s4432_s1 + $0x28] sm:$0xff] }
   0x2   :  { %v3341_v1 = vld [vmem:[%s4432_s1 + $0x78] sm:$0xff]  ;;  %1842 = vmatpush.bf16.msra.mxu0 %v3333_v0  ;;  %v3340_v5 = vld [vmem:[%s4432_s1 + $0x70] sm:$0xff]  ;;  %v3339_v9 = vld [vmem:[%s4432_s1 + $0x68] sm:$0xff] }
   0x3   :  { %v3349_v2 = vld [vmem:[%s4432_s1 + $0xb8] sm:$0xff]  ;;  %1861 = vmatpush.bf16.msra.mxu1 %v3341_v1  ;;  %v3348_v6 = vld [vmem:[%s4432_s1 + $0xb0] sm:$0xff]  ;;  %v3347_v10 = vld [vmem:[%s4432_s1 + $0xa8] sm:$0xff] }
   0x4   :  { %v3357_v3 = vld [vmem:[%s4432_s1 + $0xf8] sm:$0xff]  ;;  %1880 = vmatpush.bf16.msra.mxu2 %v3349_v2  ;;  %v3356_v7 = vld [vmem:[%s4432_s1 + $0xf0] sm:$0xff]  ;;  %v3355_v11 = vld [vmem:[%s4432_s1 + $0xe8] sm:$0xff] }
   0x5   :  { %1899 = vmatpush.bf16.msra.mxu3 %v3357_v3  ;;  %v3330_v12 = vld [vmem:[%s4432_s1 + $0x20] sm:$0xff]  ;;  %v3329_v16 = vld [vmem:[%s4432_s1 + $0x18] sm:$0xff]  ;;  %v3328_v20 = vld [vmem:[%s4432_s1 + $0x10] sm:$0xff] }
   0x6   :  { %1843 = vmatpush.bf16.msra.mxu0 %v3332_v4  ;;  %v3338_v13 = vld [vmem:[%s4432_s1 + $0x60] sm:$0xff]  ;;  %v3337_v17 = vld [vmem:[%s4432_s1 + $0x58] sm:$0xff]  ;;  %v3336_v21 = vld [vmem:[%s4432_s1 + $0x50] sm:$0xff] }
   0x7   :  { %1862 = vmatpush.bf16.msra.mxu1 %v3340_v5  ;;  %v3346_v14 = vld [vmem:[%s4432_s1 + $0xa0] sm:$0xff]  ;;  %v3345_v18 = vld [vmem:[%s4432_s1 + $0x98] sm:$0xff]  ;;  %v3344_v22 = vld [vmem:[%s4432_s1 + $0x90] sm:$0xff] }
   0x8   :  { %1881 = vmatpush.bf16.msra.mxu2 %v3348_v6  ;;  %v3354_v15 = vld [vmem:[%s4432_s1 + $0xe0] sm:$0xff]  ;;  %v3353_v19 = vld [vmem:[%s4432_s1 + $0xd8] sm:$0xff]  ;;  %v3352_v23 = vld [vmem:[%s4432_s1 + $0xd0] sm:$0xff] }
   0x9   :  { %1900 = vmatpush.bf16.msra.mxu3 %v3356_v7  ;;  %v3327_v24 = vld [vmem:[%s4432_s1 + $0x8] sm:$0xff]  ;;  %v3326_v28 = vld [vmem:[%s4432_s1] sm:$0xff]  ;;  %v3381_v40 = vld [vmem:[%s4432_s1 + $0x1b8] sm:$0xff] }
   0xa   :  { %1844 = vmatpush.bf16.msra.mxu0 %v3331_v8  ;;  %v3335_v25 = vld [vmem:[%s4432_s1 + $0x48] sm:$0xff]  ;;  %v3334_v29 = vld [vmem:[%s4432_s1 + $0x40] sm:$0xff]  ;;  %v3365_v41 = vld [vmem:[%s4432_s1 + $0x138] sm:$0xff] }
   0xb   :  { %1863 = vmatpush.bf16.msra.mxu1 %v3339_v9  ;;  %v3343_v26 = vld [vmem:[%s4432_s1 + $0x88] sm:$0xff]  ;;  %v3342_v30 = vld [vmem:[%s4432_s1 + $0x80] sm:$0xff]  ;;  %v3373_v46 = vld [vmem:[%s4432_s1 + $0x178] sm:$0xff] }
   0xc   :  { %1882 = vmatpush.bf16.msra.mxu2 %v3347_v10  ;;  %v3351_v27 = vld [vmem:[%s4432_s1 + $0xc8] sm:$0xff]  ;;  %v3350_v31 = vld [vmem:[%s4432_s1 + $0xc0] sm:$0xff]  ;;  %v3389_v47 = vld [vmem:[%s4432_s1 + $0x1f8] sm:$0xff] }
   0xd   :  { %1901 = vmatpush.bf16.msra.mxu3 %v3355_v11  ;;  %v2320_v32 = vld [vmem:[%s4433_s0] sm:$0xf]  ;;  %v3278_v34 = vld [vmem:[%s4433_s0 + $0x4] sm:$0xf]  ;;  %v2328_v36 = vld [vmem:[%s4433_s0 + $0x8] sm:$0xf] }
   0xe   :  { %1845 = vmatpush.bf16.msra.mxu0 %v3330_v12  ;;  %v3290_v33 = vld [vmem:[%s4433_s0 + $0x5c] sm:$0xf0]  ;;  %v2322_v35 = vld [vmem:[%s4433_s0 + $0x60] sm:$0xf0]  ;;  %v3291_v37 = vld [vmem:[%s4433_s0 + $0x64] sm:$0xf0] }
   0xf   :  { %1864 = vmatpush.bf16.msra.mxu1 %v3338_v13  ;;  %v3279_v38 = vld [vmem:[%s4433_s0 + $0xc] sm:$0xf]  ;;  %v2321_v42 = vor.u32 %v3290_v33, %v2320_v32  ;;  %v2325_v43 = vor.u32 %v3278_v34, %v2322_v35  ;;  %v2329_v44 = vor.u32 %v3291_v37, %v2328_v36  ;;  %v3380_v48 = vld [vmem:[%s4432_s1 + $0x1b0] sm:$0xff]  ;;  %v3378_v56 = vld [vmem:[%s4432_s1 + $0x1a0] sm:$0xff] }
  0x10   :  { %1883 = vmatpush.bf16.msra.mxu2 %v3346_v14  ;;  %v2330_v39 = vld [vmem:[%s4433_s0 + $0x68] sm:$0xf0]  ;;  %v3364_v49 = vld [vmem:[%s4432_s1 + $0x130] sm:$0xff]  ;;  %v3362_v57 = vld [vmem:[%s4432_s1 + $0x120] sm:$0xff] }
  0x11   :  { %1902 = vmatpush.bf16.msra.mxu3 %v3354_v15  ;;  %v2333_v45 = vor.u32 %v3279_v38, %v2330_v39  ;;  %v3372_v50 = vld [vmem:[%s4432_s1 + $0x170] sm:$0xff]  ;;  %v3379_v52 = vld [vmem:[%s4432_s1 + $0x1a8] sm:$0xff]  ;;  %v3370_v58 = vld [vmem:[%s4432_s1 + $0x160] sm:$0xff] }
  0x12   :  { %1846 = vmatpush.bf16.msra.mxu0 %v3329_v16  ;;  %v3388_v51 = vld [vmem:[%s4432_s1 + $0x1f0] sm:$0xff]  ;;  %v3363_v53 = vld [vmem:[%s4432_s1 + $0x128] sm:$0xff]  ;;  %v3386_v59 = vld [vmem:[%s4432_s1 + $0x1e0] sm:$0xff] }
  0x13   :  { %1865 = vmatpush.bf16.msra.mxu1 %v3337_v17  ;;  %v3371_v54 = vld [vmem:[%s4432_s1 + $0x168] sm:$0xff]  ;;  %v2416_v60 = vld [vmem:[%s4433_s0 + $0xc0] sm:$0xf]  ;;  %v3302_v62 = vld [vmem:[%s4433_s0 + $0xc4] sm:$0xf] }
  0x14   :  { %1884 = vmatpush.bf16.msra.mxu2 %v3345_v18  ;;  %v3387_v55 = vld [vmem:[%s4432_s1 + $0x1e8] sm:$0xff]  ;;  %v3314_v61 = vld [vmem:[%s4433_s0 + $0x11c] sm:$0xf0]  ;;  %v2418_v63 = vld [vmem:[%s4433_s0 + $0x120] sm:$0xf0] }
  0x15   :  { %1903 = vmatpush.bf16.msra.mxu3 %v3353_v19  ;;  %v2424_v0 = vld [vmem:[%s4433_s0 + $0xc8] sm:$0xf]  ;;  %v3303_v2 = vld [vmem:[%s4433_s0 + $0xcc] sm:$0xf]  ;;  %v3377_v4 = vld [vmem:[%s4432_s1 + $0x198] sm:$0xff]  ;;  %v2417_v6 = vor.u32 %v3314_v61, %v2416_v60  ;;  %v2421_v7 = vor.u32 %v3302_v62, %v2418_v63 }
  0x16   :  { %1847 = vmatpush.bf16.msra.mxu0 %v3328_v20  ;;  %v3315_v1 = vld [vmem:[%s4433_s0 + $0x124] sm:$0xf0]  ;;  %v2426_v3 = vld [vmem:[%s4433_s0 + $0x128] sm:$0xf0]  ;;  %v3361_v5 = vld [vmem:[%s4432_s1 + $0x118] sm:$0xff] }
  0x17   :  { %1866 = vmatpush.bf16.msra.mxu1 %v3336_v21  ;;  %v2425_v8 = vor.u32 %v3315_v1, %v2424_v0  ;;  %v2429_v9 = vor.u32 %v3303_v2, %v2426_v3  ;;  %v3369_v10 = vld [vmem:[%s4432_s1 + $0x158] sm:$0xff]  ;;  %v3376_v12 = vld [vmem:[%s4432_s1 + $0x190] sm:$0xff]  ;;  %v3375_v16 = vld [vmem:[%s4432_s1 + $0x188] sm:$0xff] }
  0x18   :  { %1885 = vmatpush.bf16.msra.mxu2 %v3344_v22  ;;  %v3385_v11 = vld [vmem:[%s4432_s1 + $0x1d8] sm:$0xff]  ;;  %v3360_v13 = vld [vmem:[%s4432_s1 + $0x110] sm:$0xff]  ;;  %v3359_v17 = vld [vmem:[%s4432_s1 + $0x108] sm:$0xff] }
  0x19   :  { %1904 = vmatpush.bf16.msra.mxu3 %v3352_v23  ;;  %v3368_v14 = vld [vmem:[%s4432_s1 + $0x150] sm:$0xff]  ;;  %v3367_v18 = vld [vmem:[%s4432_s1 + $0x148] sm:$0xff]  ;;  %v3374_v20 = vld [vmem:[%s4432_s1 + $0x180] sm:$0xff] }
  0x1a   :  { %1848 = vmatpush.bf16.msra.mxu0 %v3327_v24  ;;  %v3384_v15 = vld [vmem:[%s4432_s1 + $0x1d0] sm:$0xff]  ;;  %v3383_v19 = vld [vmem:[%s4432_s1 + $0x1c8] sm:$0xff]  ;;  %v3358_v21 = vld [vmem:[%s4432_s1 + $0x100] sm:$0xff] }
  0x1b   :  { %1867 = vmatpush.bf16.msra.mxu1 %v3335_v25  ;;  %v3366_v22 = vld [vmem:[%s4432_s1 + $0x140] sm:$0xff]  ;;  %v2336_v24 = vld [vmem:[%s4433_s0 + $0x10] sm:$0xf]  ;;  %v3413_v25 = vld [vmem:[%s4432_s1 + $0x2b8] sm:$0xff] }
  0x1c   :  { %1886 = vmatpush.bf16.msra.mxu2 %v3343_v26  ;;  %v3382_v23 = vld [vmem:[%s4432_s1 + $0x1c0] sm:$0xff]  ;;  %v3397_v26 = vld [vmem:[%s4432_s1 + $0x238] sm:$0xff]  ;;  %v3412_v37 = vld [vmem:[%s4432_s1 + $0x2b0] sm:$0xff] }
  0x1d   :  { %1905 = vmatpush.bf16.msra.mxu3 %v3351_v27  ;;  %v3292_v27 = vld [vmem:[%s4433_s0 + $0x6c] sm:$0xf0]  ;;  %v3281_v32 = vld [vmem:[%s4433_s0 + $0x1c] sm:$0xf] }
  0x1e   :  { %1849 = vmatpush.bf16.msra.mxu0 %v3326_v28  ;;  %v3280_v28 = vld [vmem:[%s4433_s0 + $0x14] sm:$0xf]  ;;  %v2346_v33 = vld [vmem:[%s4433_s0 + $0x78] sm:$0xf0]  ;;  %v2337_v36 = vor.u32 %v3292_v27, %v2336_v24  ;;  %v2354_v24 = vld [vmem:[%s4433_s0 + $0x80] sm:$0xf0] }
  0x1f   :  { %1868 = vmatpush.bf16.msra.mxu1 %v3334_v29  ;;  %v2338_v29 = vld [vmem:[%s4433_s0 + $0x70] sm:$0xf0]  ;;  %v3405_v34 = vld [vmem:[%s4432_s1 + $0x278] sm:$0xff]  ;;  %v3283_v27 = vld [vmem:[%s4433_s0 + $0x2c] sm:$0xf] }
  0x20   :  { %1887 = vmatpush.bf16.msra.mxu2 %v3342_v30  ;;  %v2344_v30 = vld [vmem:[%s4433_s0 + $0x18] sm:$0xf]  ;;  %v2341_v38 = vor.u32 %v3280_v28, %v2338_v29  ;;  %v2442_v61 = vld [vmem:[%s4433_s0 + $0x138] sm:$0xf0]  ;;  %v3408_v1 = vld [vmem:[%s4432_s1 + $0x290] sm:$0xff] }
  0x21   :  { %1906 = vmatpush.bf16.msra.mxu3 %v3350_v31  ;;  %1850 = vmatmul.bf16.vlgmr.msra.gmra.mxu0 %v2321_v42  ;;  %v3293_v31 = vld [vmem:[%s4433_s0 + $0x74] sm:$0xf0]  ;;  %v3404_v42 = vld [vmem:[%s4432_s1 + $0x270] sm:$0xff]  ;;  %v2362_v28 = vld [vmem:[%s4433_s0 + $0x88] sm:$0xf0] }
  0x22   :  { %1918 = vmatpush.bf16.msrb.mxu0 %v3365_v41  ;;  %1869 = vmatmul.bf16.vlgmr.msra.gmra.mxu1 %v2325_v43  ;;  %v3421_v35 = vld [vmem:[%s4432_s1 + $0x2f8] sm:$0xff]  ;;  %v2345_v39 = vor.u32 %v3293_v31, %v2344_v30  ;;  %v3396_v41 = vld [vmem:[%s4432_s1 + $0x230] sm:$0xff] }
  0x23   :  { %1888 = vmatmul.bf16.vlgmr.msra.gmra.mxu2 %v2329_v44  ;;  %1937 = vmatpush.bf16.msrb.mxu1 %v3373_v46  ;;  %v3420_v43 = vld [vmem:[%s4432_s1 + $0x2f0] sm:$0xff]  ;;  %v3411_v44 = vld [vmem:[%s4432_s1 + $0x2a8] sm:$0xff]  ;;  %v3393_v60 = vld [vmem:[%s4432_s1 + $0x218] sm:$0xff] }
  0x24   :  { %1956 = vmatpush.bf16.msrb.mxu2 %v3381_v40  ;;  %1907 = vmatmul.bf16.vlgmr.msra.gmra.mxu3 %v2333_v45  ;;  %v2349_v40 = vor.u32 %v3281_v32, %v2346_v33  ;;  %v3395_v45 = vld [vmem:[%s4432_s1 + $0x228] sm:$0xff]  ;;  %v3401_v62 = vld [vmem:[%s4432_s1 + $0x258] sm:$0xff]  ;;  %v3436_v30 = vld [vmem:[%s4432_s1 + $0x370] sm:$0xff]  ;;  %v2365_v33 = vor.u32 %v3283_v27, %v2362_v28 }
  0x25   :  { %1975 = vmatpush.bf16.msrb.mxu3 %v3389_v47  ;;  %v3403_v46 = vld [vmem:[%s4432_s1 + $0x268] sm:$0xff]  ;;  %v3417_v63 = vld [vmem:[%s4432_s1 + $0x2d8] sm:$0xff] }
  0x26   :  { %1919 = vmatpush.bf16.msrb.mxu0 %v3364_v49  ;;  %v3419_v47 = vld [vmem:[%s4432_s1 + $0x2e8] sm:$0xff]  ;;  %v3394_v49 = vld [vmem:[%s4432_s1 + $0x220] sm:$0xff] }
  0x27   :  { %1938 = vmatpush.bf16.msrb.mxu1 %v3372_v50  ;;  %v3402_v50 = vld [vmem:[%s4432_s1 + $0x260] sm:$0xff]  ;;  %v3475_v28 = vld [vmem:[%s4432_s1 + $0x4a8] sm:$0xff] }
  0x28   :  { %1957 = vmatpush.bf16.msrb.mxu2 %v3380_v48  ;;  %v3410_v48 = vld [vmem:[%s4432_s1 + $0x2a0] sm:$0xff] }
  0x29   :  { %1976 = vmatpush.bf16.msrb.mxu3 %v3388_v51  ;;  %v3418_v51 = vld [vmem:[%s4432_s1 + $0x2e0] sm:$0xff] }
  0x2a   :  { %1920 = vmatpush.bf16.msrb.mxu0 %v3363_v53  ;;  %v3316_v53 = vld [vmem:[%s4433_s0 + $0x12c] sm:$0xf0] }
  0x2b   :  { %1939 = vmatpush.bf16.msrb.mxu1 %v3371_v54  ;;  %v3409_v54 = vld [vmem:[%s4432_s1 + $0x298] sm:$0xff] }
  0x2c   :  { %1958 = vmatpush.bf16.msrb.mxu2 %v3379_v52  ;;  %v2432_v52 = vld [vmem:[%s4433_s0 + $0xd0] sm:$0xf] }
  0x2d   :  { %1977 = vmatpush.bf16.msrb.mxu3 %v3387_v55  ;;  %v3304_v55 = vld [vmem:[%s4433_s0 + $0xd4] sm:$0xf]  ;;  %v2433_v0 = vor.u32 %v3316_v53, %v2432_v52  ;;  %v3307_v52 = vld [vmem:[%s4433_s0 + $0xec] sm:$0xf]  ;;  %v3425_v53 = vld [vmem:[%s4432_s1 + $0x318] sm:$0xff] }
  0x2e   :  { %1921 = vmatpush.bf16.msrb.mxu0 %v3362_v57  ;;  %v2440_v57 = vld [vmem:[%s4433_s0 + $0xd8] sm:$0xf] }
  0x2f   :  { %1940 = vmatpush.bf16.msrb.mxu1 %v3370_v58  ;;  %v3317_v58 = vld [vmem:[%s4433_s0 + $0x134] sm:$0xf0] }
  0x30   :  { %1959 = vmatpush.bf16.msrb.mxu2 %v3378_v56  ;;  %v2434_v56 = vld [vmem:[%s4433_s0 + $0x130] sm:$0xf0]  ;;  %v2441_v3 = vor.u32 %v3317_v58, %v2440_v57 }
  0x31   :  { %1978 = vmatpush.bf16.msrb.mxu3 %v3386_v59  ;;  %1855 = vmatmul.bf16.gmra.mxu0 %v2417_v6  ;;  %v3305_v59 = vld [vmem:[%s4433_s0 + $0xdc] sm:$0xf]  ;;  %v2437_v2 = vor.u32 %v3304_v55, %v2434_v56  ;;  %v3400_v6 = vld [vmem:[%s4432_s1 + $0x250] sm:$0xff] }
  0x32   :  { %1922 = vmatpush.bf16.msrb.mxu0 %v3361_v5  ;;  %1874 = vmatmul.bf16.gmra.mxu1 %v2421_v7  ;;  %v3392_v5 = vld [vmem:[%s4432_s1 + $0x210] sm:$0xff]  ;;  %v3449_v55 = vld [vmem:[%s4432_s1 + $0x3d8] sm:$0xff] }
  0x33   :  { %1893 = vmatmul.bf16.gmra.mxu2 %v2425_v8  ;;  %1941 = vmatpush.bf16.msrb.mxu1 %v3369_v10  ;;  %v3416_v7 = vld [vmem:[%s4432_s1 + $0x2d0] sm:$0xff]  ;;  %v3407_v8 = vld [vmem:[%s4432_s1 + $0x288] sm:$0xff] }
  0x34   :  { %1960 = vmatpush.bf16.msrb.mxu2 %v3377_v4  ;;  %1912 = vmatmul.bf16.gmra.mxu3 %v2429_v9  ;;  %v2445_v4 = vor.u32 %v3305_v59, %v2442_v61  ;;  %v3391_v9 = vld [vmem:[%s4432_s1 + $0x208] sm:$0xff]  ;;  %v3440_v56 = vld [vmem:[%s4432_s1 + $0x390] sm:$0xff] }
  0x35   :  { %1979 = vmatpush.bf16.msrb.mxu3 %v3385_v11  ;;  %v3399_v10 = vld [vmem:[%s4432_s1 + $0x248] sm:$0xff]  ;;  %v3432_v58 = vld [vmem:[%s4432_s1 + $0x350] sm:$0xff] }
  0x36   :  { %1923 = vmatpush.bf16.msrb.mxu0 %v3360_v13  ;;  %v3415_v11 = vld [vmem:[%s4432_s1 + $0x2c8] sm:$0xff]  ;;  %v3445_v13 = vld [vmem:[%s4432_s1 + $0x3b8] sm:$0xff] }
  0x37   :  { %1942 = vmatpush.bf16.msrb.mxu1 %v3368_v14  ;;  %v3390_v14 = vld [vmem:[%s4432_s1 + $0x200] sm:$0xff] }
  0x38   :  { %1961 = vmatpush.bf16.msrb.mxu2 %v3376_v12  ;;  %v3406_v12 = vld [vmem:[%s4432_s1 + $0x280] sm:$0xff] }
  0x39   :  { %1980 = vmatpush.bf16.msrb.mxu3 %v3384_v15  ;;  %v3398_v15 = vld [vmem:[%s4432_s1 + $0x240] sm:$0xff] }
  0x3a   :  { %1924 = vmatpush.bf16.msrb.mxu0 %v3359_v17  ;;  %v2352_v17 = vld [vmem:[%s4433_s0 + $0x20] sm:$0xf] }
  0x3b   :  { %1943 = vmatpush.bf16.msrb.mxu1 %v3367_v18  ;;  %v3294_v18 = vld [vmem:[%s4433_s0 + $0x7c] sm:$0xf0] }
  0x3c   :  { %1962 = vmatpush.bf16.msrb.mxu2 %v3375_v16  ;;  %v3414_v16 = vld [vmem:[%s4432_s1 + $0x2c0] sm:$0xff]  ;;  %v2353_v29 = vor.u32 %v3294_v18, %v2352_v17  ;;  %v2370_v17 = vld [vmem:[%s4433_s0 + $0x90] sm:$0xf0]  ;;  %v2376_v18 = vld [vmem:[%s4433_s0 + $0x38] sm:$0xf] }
  0x3d   :  { %1981 = vmatpush.bf16.msrb.mxu3 %v3383_v19  ;;  %v3429_v19 = vld [vmem:[%s4432_s1 + $0x338] sm:$0xff] }
  0x3e   :  { %1925 = vmatpush.bf16.msrb.mxu0 %v3358_v21  ;;  %v3282_v21 = vld [vmem:[%s4433_s0 + $0x24] sm:$0xf] }
  0x3f   :  { %1944 = vmatpush.bf16.msrb.mxu1 %v3366_v22  ;;  %v3453_v22 = vld [vmem:[%s4432_s1 + $0x3f8] sm:$0xff]  ;;  %v2357_v31 = vor.u32 %v3282_v21, %v2354_v24  ;;  %v3484_v24 = vld [vmem:[%s4432_s1 + $0x4f0] sm:$0xff] }
  0x40   :  { %1963 = vmatpush.bf16.msrb.mxu2 %v3374_v20  ;;  %v3437_v20 = vld [vmem:[%s4432_s1 + $0x378] sm:$0xff] }
  0x41   :  { %1982 = vmatpush.bf16.msrb.mxu3 %v3382_v23  ;;  %1926 = vmatmul.bf16.vlgmr.msrb.gmra.mxu0 %v2337_v36  ;;  %v3444_v23 = vld [vmem:[%s4432_s1 + $0x3b0] sm:$0xff]  ;;  %v3443_v36 = vld [vmem:[%s4432_s1 + $0x3a8] sm:$0xff]  ;;  %v2378_v21 = vld [vmem:[%s4433_s0 + $0x98] sm:$0xf0] }
  0x42   :  { %1994 = vmatpush.bf16.msra.mxu0 %v3397_v26  ;;  %1945 = vmatmul.bf16.vlgmr.msrb.gmra.mxu1 %v2341_v38  ;;  %v3295_v26 = vld [vmem:[%s4433_s0 + $0x84] sm:$0xf0] }
  0x43   :  { %2013 = vmatpush.bf16.msra.mxu1 %v3405_v34  ;;  %1964 = vmatmul.bf16.vlgmr.msrb.gmra.mxu2 %v2345_v39  ;;  %v3428_v34 = vld [vmem:[%s4432_s1 + $0x330] sm:$0xff]  ;;  %v3427_v38 = vld [vmem:[%s4432_s1 + $0x328] sm:$0xff] }
  0x44   :  { %2032 = vmatpush.bf16.msra.mxu2 %v3413_v25  ;;  %1983 = vmatmul.bf16.vlgmr.msrb.gmra.mxu3 %v2349_v40  ;;  %v2360_v25 = vld [vmem:[%s4433_s0 + $0x28] sm:$0xf]  ;;  %v3442_v40 = vld [vmem:[%s4432_s1 + $0x3a0] sm:$0xff] }
  0x45   :  { %2051 = vmatpush.bf16.msra.mxu3 %v3421_v35  ;;  %v2361_v32 = vor.u32 %v3295_v26, %v2360_v25  ;;  %v3452_v35 = vld [vmem:[%s4432_s1 + $0x3f0] sm:$0xff]  ;;  %v3451_v39 = vld [vmem:[%s4432_s1 + $0x3e8] sm:$0xff] }
  0x46   :  { %1995 = vmatpush.bf16.msra.mxu0 %v3396_v41  ;;  %v3434_v41 = vld [vmem:[%s4432_s1 + $0x360] sm:$0xff] }
  0x47   :  { %2014 = vmatpush.bf16.msra.mxu1 %v3404_v42  ;;  %v3426_v42 = vld [vmem:[%s4432_s1 + $0x320] sm:$0xff] }
  0x48   :  { %2033 = vmatpush.bf16.msra.mxu2 %v3412_v37  ;;  %v3435_v37 = vld [vmem:[%s4432_s1 + $0x368] sm:$0xff] }
  0x49   :  { %2052 = vmatpush.bf16.msra.mxu3 %v3420_v43  ;;  %v3450_v43 = vld [vmem:[%s4432_s1 + $0x3e0] sm:$0xff] }
  0x4a   :  { %1996 = vmatpush.bf16.msra.mxu0 %v3395_v45  ;;  %v2448_v45 = vld [vmem:[%s4433_s0 + $0xe0] sm:$0xf] }
  0x4b   :  { %2015 = vmatpush.bf16.msra.mxu1 %v3403_v46  ;;  %v3318_v46 = vld [vmem:[%s4433_s0 + $0x13c] sm:$0xf0] }
  0x4c   :  { %2034 = vmatpush.bf16.msra.mxu2 %v3411_v44  ;;  %v3441_v44 = vld [vmem:[%s4432_s1 + $0x398] sm:$0xff]  ;;  %v2449_v57 = vor.u32 %v3318_v46, %v2448_v45 }
  0x4d   :  { %2053 = vmatpush.bf16.msra.mxu3 %v3419_v47  ;;  %v3433_v47 = vld [vmem:[%s4432_s1 + $0x358] sm:$0xff] }
  0x4e   :  { %1997 = vmatpush.bf16.msra.mxu0 %v3394_v49  ;;  %v2450_v49 = vld [vmem:[%s4433_s0 + $0x140] sm:$0xf0]  ;;  %v3321_v45 = vld [vmem:[%s4433_s0 + $0x154] sm:$0xf0]  ;;  %v3309_v46 = vld [vmem:[%s4433_s0 + $0xfc] sm:$0xf] }
  0x4f   :  { %2016 = vmatpush.bf16.msra.mxu1 %v3402_v50  ;;  %v2456_v50 = vld [vmem:[%s4433_s0 + $0xe8] sm:$0xf] }
  0x50   :  { %2035 = vmatpush.bf16.msra.mxu2 %v3410_v48  ;;  %v3306_v48 = vld [vmem:[%s4433_s0 + $0xe4] sm:$0xf] }
  0x51   :  { %2054 = vmatpush.bf16.msra.mxu3 %v3418_v51  ;;  %1931 = vmatmul.bf16.gmra.mxu0 %v2433_v0  ;;  %v3319_v51 = vld [vmem:[%s4433_s0 + $0x144] sm:$0xf0]  ;;  %v2453_v59 = vor.u32 %v3306_v48, %v2450_v49  ;;  %v2474_v48 = vld [vmem:[%s4433_s0 + $0x158] sm:$0xf0]  ;;  %v3456_v49 = vld [vmem:[%s4432_s1 + $0x410] sm:$0xff] }
  0x52   :  { %1998 = vmatpush.bf16.msra.mxu0 %v3393_v60  ;;  %1950 = vmatmul.bf16.gmra.mxu1 %v2437_v2  ;;  %v2457_v60 = vor.u32 %v3319_v51, %v2456_v50  ;;  %v3439_v0 = vld [vmem:[%s4432_s1 + $0x388] sm:$0xff]  ;;  %v3464_v50 = vld [vmem:[%s4432_s1 + $0x450] sm:$0xff] }
  0x53   :  { %2017 = vmatpush.bf16.msra.mxu1 %v3401_v62  ;;  %1969 = vmatmul.bf16.gmra.mxu2 %v2441_v3  ;;  %v3424_v62 = vld [vmem:[%s4432_s1 + $0x310] sm:$0xff]  ;;  %v3423_v2 = vld [vmem:[%s4432_s1 + $0x308] sm:$0xff] }
  0x54   :  { %2036 = vmatpush.bf16.msra.mxu2 %v3409_v54  ;;  %1988 = vmatmul.bf16.gmra.mxu3 %v2445_v4  ;;  %v2458_v54 = vld [vmem:[%s4433_s0 + $0x148] sm:$0xf0]  ;;  %v3438_v4 = vld [vmem:[%s4432_s1 + $0x380] sm:$0xff] }
  0x55   :  { %2055 = vmatpush.bf16.msra.mxu3 %v3417_v63  ;;  %v2461_v61 = vor.u32 %v3307_v52, %v2458_v54  ;;  %v3448_v63 = vld [vmem:[%s4432_s1 + $0x3d0] sm:$0xff]  ;;  %v3447_v3 = vld [vmem:[%s4432_s1 + $0x3c8] sm:$0xff] }
  0x56   :  { %1999 = vmatpush.bf16.msra.mxu0 %v3392_v5  ;;  %v3430_v5 = vld [vmem:[%s4432_s1 + $0x340] sm:$0xff]  ;;  %v3480_v52 = vld [vmem:[%s4432_s1 + $0x4d0] sm:$0xff] }
  0x57   :  { %2018 = vmatpush.bf16.msra.mxu1 %v3400_v6  ;;  %v3477_v6 = vld [vmem:[%s4432_s1 + $0x4b8] sm:$0xff] }
  0x58   :  { %2037 = vmatpush.bf16.msra.mxu2 %v3408_v1  ;;  %v3431_v1 = vld [vmem:[%s4432_s1 + $0x348] sm:$0xff] }
  0x59   :  { %2056 = vmatpush.bf16.msra.mxu3 %v3416_v7  ;;  %v3469_v7 = vld [vmem:[%s4432_s1 + $0x478] sm:$0xff] }
  0x5a   :  { %2000 = vmatpush.bf16.msra.mxu0 %v3391_v9  ;;  %v3446_v9 = vld [vmem:[%s4432_s1 + $0x3c0] sm:$0xff] }
  0x5b   :  { %2019 = vmatpush.bf16.msra.mxu1 %v3399_v10  ;;  %v3461_v10 = vld [vmem:[%s4432_s1 + $0x438] sm:$0xff] }
  0x5c   :  { %2038 = vmatpush.bf16.msra.mxu2 %v3407_v8  ;;  %v3422_v8 = vld [vmem:[%s4432_s1 + $0x300] sm:$0xff] }
  0x5d   :  { %2057 = vmatpush.bf16.msra.mxu3 %v3415_v11  ;;  %v2368_v11 = vld [vmem:[%s4433_s0 + $0x30] sm:$0xf] }
  0x5e   :  { %2001 = vmatpush.bf16.msra.mxu0 %v3390_v14  ;;  %v3296_v14 = vld [vmem:[%s4433_s0 + $0x8c] sm:$0xf0] }
  0x5f   :  { %2020 = vmatpush.bf16.msra.mxu1 %v3398_v15  ;;  %v3284_v15 = vld [vmem:[%s4433_s0 + $0x34] sm:$0xf] }
  0x60   :  { %2039 = vmatpush.bf16.msra.mxu2 %v3406_v12  ;;  %v3485_v12 = vld [vmem:[%s4432_s1 + $0x4f8] sm:$0xff]  ;;  %v2373_v25 = vor.u32 %v3284_v15, %v2370_v17  ;;  %v3287_v15 = vld [vmem:[%s4433_s0 + $0x4c] sm:$0xf] }
  0x61   :  { %2058 = vmatpush.bf16.msra.mxu3 %v3414_v16  ;;  %2002 = vmatmul.bf16.vlgmr.msra.gmra.mxu0 %v2353_v29  ;;  %v3468_v16 = vld [vmem:[%s4432_s1 + $0x470] sm:$0xff]  ;;  %v3459_v29 = vld [vmem:[%s4432_s1 + $0x428] sm:$0xff] }
  0x62   :  { %2070 = vmatpush.bf16.msrb.mxu0 %v3429_v19  ;;  %2021 = vmatmul.bf16.vlgmr.msra.gmra.mxu1 %v2357_v31  ;;  %v3297_v19 = vld [vmem:[%s4433_s0 + $0x94] sm:$0xf0]  ;;  %v3483_v31 = vld [vmem:[%s4432_s1 + $0x4e8] sm:$0xff] }
  0x63   :  { %2089 = vmatpush.bf16.msrb.mxu1 %v3437_v20  ;;  %2040 = vmatmul.bf16.vlgmr.msra.gmra.mxu2 %v2361_v32  ;;  %v3285_v20 = vld [vmem:[%s4433_s0 + $0x3c] sm:$0xf]  ;;  %v2377_v26 = vor.u32 %v3297_v19, %v2376_v18  ;;  %v3474_v32 = vld [vmem:[%s4432_s1 + $0x4a0] sm:$0xff]  ;;  %v3507_v18 = vld [vmem:[%s4432_s1 + $0x5a8] sm:$0xff] }
  0x64   :  { %2108 = vmatpush.bf16.msrb.mxu2 %v3445_v13  ;;  %2059 = vmatmul.bf16.vlgmr.msra.gmra.mxu3 %v2365_v33  ;;  %v3476_v13 = vld [vmem:[%s4432_s1 + $0x4b0] sm:$0xff]  ;;  %v2381_v27 = vor.u32 %v3285_v20, %v2378_v21  ;;  %v3458_v33 = vld [vmem:[%s4432_s1 + $0x420] sm:$0xff] }
  0x65   :  { %2127 = vmatpush.bf16.msrb.mxu3 %v3453_v22  ;;  %v3460_v22 = vld [vmem:[%s4432_s1 + $0x430] sm:$0xff] }
  0x66   :  { %2071 = vmatpush.bf16.msrb.mxu0 %v3428_v34  ;;  %v3466_v34 = vld [vmem:[%s4432_s1 + $0x460] sm:$0xff] }
  0x67   :  { %2090 = vmatpush.bf16.msrb.mxu1 %v3436_v30  ;;  %v3467_v30 = vld [vmem:[%s4432_s1 + $0x468] sm:$0xff] }
  0x68   :  { %2109 = vmatpush.bf16.msrb.mxu2 %v3444_v23  ;;  %v2369_v23 = vor.u32 %v3296_v14, %v2368_v11  ;;  %v3500_v11 = vld [vmem:[%s4432_s1 + $0x570] sm:$0xff] }
  0x69   :  { %2128 = vmatpush.bf16.msrb.mxu3 %v3452_v35  ;;  %v3482_v35 = vld [vmem:[%s4432_s1 + $0x4e0] sm:$0xff]  ;;  %v3516_v14 = vld [vmem:[%s4432_s1 + $0x5f0] sm:$0xff] }
  0x6a   :  { %2072 = vmatpush.bf16.msrb.mxu0 %v3427_v38  ;;  %v3465_v38 = vld [vmem:[%s4432_s1 + $0x458] sm:$0xff] }
  0x6b   :  { %2091 = vmatpush.bf16.msrb.mxu1 %v3435_v37  ;;  %v3457_v37 = vld [vmem:[%s4432_s1 + $0x418] sm:$0xff] }
  0x6c   :  { %2110 = vmatpush.bf16.msrb.mxu2 %v3443_v36  ;;  %v3473_v36 = vld [vmem:[%s4432_s1 + $0x498] sm:$0xff] }
  0x6d   :  { %2129 = vmatpush.bf16.msrb.mxu3 %v3451_v39  ;;  %v2464_v39 = vld [vmem:[%s4433_s0 + $0xf0] sm:$0xf] }
  0x6e   :  { %2073 = vmatpush.bf16.msrb.mxu0 %v3426_v42  ;;  %v3308_v42 = vld [vmem:[%s4433_s0 + $0xf4] sm:$0xf] }
  0x6f   :  { %2092 = vmatpush.bf16.msrb.mxu1 %v3434_v41  ;;  %v3481_v41 = vld [vmem:[%s4432_s1 + $0x4d8] sm:$0xff] }
  0x70   :  { %2111 = vmatpush.bf16.msrb.mxu2 %v3442_v40  ;;  %v3320_v40 = vld [vmem:[%s4433_s0 + $0x14c] sm:$0xf0] }
  0x71   :  { %2130 = vmatpush.bf16.msrb.mxu3 %v3450_v43  ;;  %2007 = vmatmul.bf16.gmra.mxu0 %v2449_v57  ;;  %v2466_v43 = vld [vmem:[%s4433_s0 + $0x150] sm:$0xf0]  ;;  %v2465_v51 = vor.u32 %v3320_v40, %v2464_v39  ;;  %v3455_v57 = vld [vmem:[%s4432_s1 + $0x408] sm:$0xff]  ;;  %v3489_v40 = vld [vmem:[%s4432_s1 + $0x518] sm:$0xff] }
  0x72   :  { %2074 = vmatpush.bf16.msrb.mxu0 %v3425_v53  ;;  %2026 = vmatmul.bf16.gmra.mxu1 %v2453_v59  ;;  %v2469_v53 = vor.u32 %v3308_v42, %v2466_v43  ;;  %v3479_v59 = vld [vmem:[%s4432_s1 + $0x4c8] sm:$0xff]  ;;  %v3497_v42 = vld [vmem:[%s4432_s1 + $0x558] sm:$0xff] }
  0x73   :  { %2093 = vmatpush.bf16.msrb.mxu1 %v3433_v47  ;;  %2045 = vmatmul.bf16.gmra.mxu2 %v2457_v60  ;;  %v3472_v47 = vld [vmem:[%s4432_s1 + $0x490] sm:$0xff]  ;;  %v3470_v60 = vld [vmem:[%s4432_s1 + $0x480] sm:$0xff]  ;;  %v3513_v43 = vld [vmem:[%s4432_s1 + $0x5d8] sm:$0xff] }
  0x74   :  { %2112 = vmatpush.bf16.msrb.mxu2 %v3441_v44  ;;  %2064 = vmatmul.bf16.gmra.mxu3 %v2461_v61  ;;  %v2472_v44 = vld [vmem:[%s4433_s0 + $0xf8] sm:$0xf]  ;;  %v3454_v61 = vld [vmem:[%s4432_s1 + $0x400] sm:$0xff] }
  0x75   :  { %2131 = vmatpush.bf16.msrb.mxu3 %v3449_v55  ;;  %v2473_v54 = vor.u32 %v3321_v45, %v2472_v44  ;;  %v2477_v55 = vor.u32 %v3309_v46, %v2474_v48  ;;  %v2480_v45 = vld [vmem:[%s4433_s0 + $0x100] sm:$0xf]  ;;  %v3310_v48 = vld [vmem:[%s4433_s0 + $0x104] sm:$0xf] }
  0x76   :  { %2075 = vmatpush.bf16.msrb.mxu0 %v3424_v62  ;;  %v3462_v62 = vld [vmem:[%s4432_s1 + $0x440] sm:$0xff] }
  0x77   :  { %2094 = vmatpush.bf16.msrb.mxu1 %v3432_v58  ;;  %v3463_v58 = vld [vmem:[%s4432_s1 + $0x448] sm:$0xff]  ;;  %v3322_v46 = vld [vmem:[%s4433_s0 + $0x15c] sm:$0xf0] }
  0x78   :  { %2113 = vmatpush.bf16.msrb.mxu2 %v3440_v56  ;;  %v3471_v56 = vld [vmem:[%s4432_s1 + $0x488] sm:$0xff] }
  0x79   :  { %2132 = vmatpush.bf16.msrb.mxu3 %v3448_v63  ;;  %v3478_v63 = vld [vmem:[%s4432_s1 + $0x4c0] sm:$0xff] }
  0x7a   :  { %2076 = vmatpush.bf16.msrb.mxu0 %v3423_v2  ;;  %v3501_v2 = vld [vmem:[%s4432_s1 + $0x578] sm:$0xff] }
  0x7b   :  { %2095 = vmatpush.bf16.msrb.mxu1 %v3431_v1  ;;  %v3493_v1 = vld [vmem:[%s4432_s1 + $0x538] sm:$0xff] }
  0x7c   :  { %2114 = vmatpush.bf16.msrb.mxu2 %v3439_v0  ;;  %v3509_v0 = vld [vmem:[%s4432_s1 + $0x5b8] sm:$0xff] }
  0x7d   :  { %2133 = vmatpush.bf16.msrb.mxu3 %v3447_v3  ;;  %v3517_v3 = vld [vmem:[%s4432_s1 + $0x5f8] sm:$0xff] }
  0x7e   :  { %2077 = vmatpush.bf16.msrb.mxu0 %v3422_v8  ;;  %v3508_v8 = vld [vmem:[%s4432_s1 + $0x5b0] sm:$0xff] }
  0x7f   :  { %2096 = vmatpush.bf16.msrb.mxu1 %v3430_v5  ;;  %v4240_v5 = vld [vmem:[%s4434_s2] ss:$0 sm:$0xff] }
  0x80   :  { %2115 = vmatpush.bf16.msrb.mxu2 %v3438_v4  ;;  %v2384_v4 = vld [vmem:[%s4433_s0 + $0x40] sm:$0xf] }
  0x81   :  { %2134 = vmatpush.bf16.msrb.mxu3 %v3446_v9  ;;  %2078 = vmatmul.bf16.vlgmr.msrb.gmra.mxu0 %v2369_v23  ;;  %v2386_v9 = vld [vmem:[%s4433_s0 + $0xa0] sm:$0xf0] }
  0x82   :  { %2146 = vmatpush.bf16.msra.mxu0 %v3461_v10  ;;  %2097 = vmatmul.bf16.vlgmr.msrb.gmra.mxu1 %v2373_v25  ;;  %v3492_v10 = vld [vmem:[%s4432_s1 + $0x530] sm:$0xff]  ;;  %v3491_v25 = vld [vmem:[%s4432_s1 + $0x528] sm:$0xff] }
  0x83   :  { %2165 = vmatpush.bf16.msra.mxu1 %v3469_v7  ;;  %2116 = vmatmul.bf16.vlgmr.msrb.gmra.mxu2 %v2377_v26  ;;  %v3286_v7 = vld [vmem:[%s4433_s0 + $0x44] sm:$0xf]  ;;  %v3499_v26 = vld [vmem:[%s4432_s1 + $0x568] sm:$0xff] }
  0x84   :  { %2184 = vmatpush.bf16.msra.mxu2 %v3477_v6  ;;  %2135 = vmatmul.bf16.vlgmr.msrb.gmra.mxu3 %v2381_v27  ;;  %v3298_v6 = vld [vmem:[%s4433_s0 + $0x9c] sm:$0xf0]  ;;  %v2389_v21 = vor.u32 %v3286_v7, %v2386_v9  ;;  %v3515_v27 = vld [vmem:[%s4432_s1 + $0x5e8] sm:$0xff] }
  0x85   :  { %2203 = vmatpush.bf16.msra.mxu3 %v3485_v12  ;;  %v2392_v12 = vld [vmem:[%s4433_s0 + $0x48] sm:$0xf]  ;;  %v2385_v17 = vor.u32 %v3298_v6, %v2384_v4 }
  0x86   :  { %2147 = vmatpush.bf16.msra.mxu0 %v3460_v22  ;;  %v3487_v4 = vld [vmem:[%s4432_s1 + $0x508] sm:$0xff] }
  0x87   :  { %2166 = vmatpush.bf16.msra.mxu1 %v3468_v16  ;;  %v2394_v16 = vld [vmem:[%s4433_s0 + $0xa8] sm:$0xf0] }
  0x88   :  { %2185 = vmatpush.bf16.msra.mxu2 %v3476_v13  ;;  %v3299_v13 = vld [vmem:[%s4433_s0 + $0xa4] sm:$0xf0] }
  0x89   :  { %2204 = vmatpush.bf16.msra.mxu3 %v3484_v24  ;;  %v2393_v22 = vor.u32 %v3299_v13, %v2392_v12  ;;  %v2397_v24 = vor.u32 %v3287_v15, %v2394_v16  ;;  %v3495_v7 = vld [vmem:[%s4432_s1 + $0x548] sm:$0xff]  ;;  %v3494_v12 = vld [vmem:[%s4432_s1 + $0x540] sm:$0xff] }
  0x8a   :  { %2148 = vmatpush.bf16.msra.mxu0 %v3459_v29  ;;  %v3506_v29 = vld [vmem:[%s4432_s1 + $0x5a0] sm:$0xff] }
  0x8b   :  { %2167 = vmatpush.bf16.msra.mxu1 %v3467_v30  ;;  %v3490_v30 = vld [vmem:[%s4432_s1 + $0x520] sm:$0xff] }
  0x8c   :  { %2186 = vmatpush.bf16.msra.mxu2 %v3475_v28  ;;  %v3510_v13 = vld [vmem:[%s4432_s1 + $0x5c0] sm:$0xff] }
  0x8d   :  { %2205 = vmatpush.bf16.msra.mxu3 %v3483_v31  ;;  %v3498_v31 = vld [vmem:[%s4432_s1 + $0x560] sm:$0xff] }
  0x8e   :  { %2149 = vmatpush.bf16.msra.mxu0 %v3458_v33 }
  0x8f   :  { %2168 = vmatpush.bf16.msra.mxu1 %v3466_v34 }
  0x90   :  { %2187 = vmatpush.bf16.msra.mxu2 %v3474_v32  ;;  %v3514_v32 = vld [vmem:[%s4432_s1 + $0x5e0] sm:$0xff] }
  0x91   :  { %2206 = vmatpush.bf16.msra.mxu3 %v3482_v35  ;;  %2083 = vmatmul.bf16.gmra.mxu0 %v2465_v51  ;;  %v3505_v35 = vld [vmem:[%s4432_s1 + $0x598] sm:$0xff]  ;;  %v3323_v51 = vld [vmem:[%s4433_s0 + $0x164] sm:$0xf0] }
  0x92   :  { %2150 = vmatpush.bf16.msra.mxu0 %v3457_v37  ;;  %2102 = vmatmul.bf16.gmra.mxu1 %v2469_v53  ;;  %v3488_v53 = vld [vmem:[%s4432_s1 + $0x510] sm:$0xff] }
  0x93   :  { %2169 = vmatpush.bf16.msra.mxu1 %v3465_v38  ;;  %2121 = vmatmul.bf16.gmra.mxu2 %v2473_v54  ;;  %v2490_v54 = vld [vmem:[%s4433_s0 + $0x168] sm:$0xf0] }
  0x94   :  { %2188 = vmatpush.bf16.msra.mxu2 %v3473_v36  ;;  %2140 = vmatmul.bf16.gmra.mxu3 %v2477_v55  ;;  %v3496_v55 = vld [vmem:[%s4432_s1 + $0x550] sm:$0xff] }
  0x95   :  { %2207 = vmatpush.bf16.msra.mxu3 %v3481_v41 }
  0x96   :  { %2151 = vmatpush.bf16.msra.mxu0 %v3456_v49  ;;  %v2482_v49 = vld [vmem:[%s4433_s0 + $0x160] sm:$0xf0] }
  0x97   :  { %2170 = vmatpush.bf16.msra.mxu1 %v3464_v50  ;;  %v2488_v50 = vld [vmem:[%s4433_s0 + $0x108] sm:$0xf] }
  0x98   :  { %2189 = vmatpush.bf16.msra.mxu2 %v3472_v47  ;;  %v3504_v47 = vld [vmem:[%s4432_s1 + $0x590] sm:$0xff] }
  0x99   :  { %2208 = vmatpush.bf16.msra.mxu3 %v3480_v52  ;;  %v3311_v52 = vld [vmem:[%s4433_s0 + $0x10c] sm:$0xf] }
  0x9a   :  { %2152 = vmatpush.bf16.msra.mxu0 %v3455_v57 }
  0x9b   :  { %2171 = vmatpush.bf16.msra.mxu1 %v3463_v58 }
  0x9c   :  { %2190 = vmatpush.bf16.msra.mxu2 %v3471_v56  ;;  %v3512_v56 = vld [vmem:[%s4432_s1 + $0x5d0] sm:$0xff] }
  0x9d   :  { %2209 = vmatpush.bf16.msra.mxu3 %v3479_v59  ;;  %v2481_v59 = vor.u32 %v3322_v46, %v2480_v45 }
  0x9e   :  { %2153 = vmatpush.bf16.msra.mxu0 %v3454_v61  ;;  %v1851_v19 = vpop.f32.mrf.mxu0 }
  0x9f   :  { %2172 = vmatpush.bf16.msra.mxu1 %v3462_v62  ;;  %v1870_v20 = vpop.f32.mrf.mxu1  ;;  %v1852_v23 = vadd.f32 %v4240_v5, %v1851_v19 }
  0xa0   :  { %2191 = vmatpush.bf16.msra.mxu2 %v3470_v60  ;;  %v3503_v60 = vld [vmem:[%s4432_s1 + $0x588] sm:$0xff] }
  0xa1   :  { %2210 = vmatpush.bf16.msra.mxu3 %v3478_v63  ;;  %v1871_v28 = vadd.f32 %v1870_v20, %v1852_v23  ;;  %2154 = vmatmul.bf16.vlgmr.msra.gmra.mxu0 %v2385_v17  ;;  %v3300_v23 = vld [vmem:[%s4433_s0 + $0xac] sm:$0xf0] }
  0xa2   :  { %2222 = vmatpush.bf16.msrb.mxu0 %v3493_v1  ;;  %2173 = vmatmul.bf16.vlgmr.msra.gmra.mxu1 %v2389_v21  ;;  %v2489_v1 = vor.u32 %v3323_v51, %v2488_v50  ;;  %v3324_v50 = vld [vmem:[%s4433_s0 + $0x16c] sm:$0xf0]  ;;  %v3312_v51 = vld [vmem:[%s4433_s0 + $0x114] sm:$0xf] }
  0xa3   :  { %2241 = vmatpush.bf16.msrb.mxu1 %v3501_v2  ;;  %2192 = vmatmul.bf16.vlgmr.msra.gmra.mxu2 %v2393_v22  ;;  %v2400_v22 = vld [vmem:[%s4433_s0 + $0x50] sm:$0xf] }
  0xa4   :  { %2260 = vmatpush.bf16.msrb.mxu2 %v3509_v0  ;;  %2211 = vmatmul.bf16.vlgmr.msra.gmra.mxu3 %v2397_v24  ;;  %v2485_v0 = vor.u32 %v3310_v48, %v2482_v49  ;;  %v3288_v24 = vld [vmem:[%s4433_s0 + $0x54] sm:$0xf] }
  0xa5   :  { %2279 = vmatpush.bf16.msrb.mxu3 %v3517_v3  ;;  %v2493_v3 = vor.u32 %v3311_v52, %v2490_v54  ;;  %v2498_v52 = vld [vmem:[%s4433_s0 + $0x170] sm:$0xf0]  ;;  %v3325_v54 = vld [vmem:[%s4433_s0 + $0x174] sm:$0xf0] }
  0xa6   :  { %2223 = vmatpush.bf16.msrb.mxu0 %v3492_v10  ;;  %v1889_v33 = vpop.f32.mrf.mxu2  ;;  %v1853_v37 = vpop.f32.mrf.mxu0  ;;  %v3502_v10 = vld [vmem:[%s4432_s1 + $0x580] sm:$0xff] }
  0xa7   :  { %2242 = vmatpush.bf16.msrb.mxu1 %v3500_v11  ;;  %v1908_v34 = vpop.f32.mrf.mxu3  ;;  %v1890_v36 = vadd.f32 %v1889_v33, %v1871_v28  ;;  %v1872_v38 = vpop.f32.mrf.mxu1  ;;  %v1854_v39 = vadd.f32 %v4240_v5, %v1853_v37  ;;  %v3486_v11 = vld [vmem:[%s4432_s1 + $0x500] sm:$0xff]  ;;  %v2410_v28 = vld [vmem:[%s4433_s0 + $0xb8] sm:$0xf0] }
  0xa8   :  { %2261 = vmatpush.bf16.msrb.mxu2 %v3508_v8  ;;  %v3511_v8 = vld [vmem:[%s4432_s1 + $0x5c8] sm:$0xff] }
  0xa9   :  { %2280 = vmatpush.bf16.msrb.mxu3 %v3516_v14  ;;  %v4307_v41 = vadd.f32 %v1908_v34, %v1890_v36  ;;  %v1873_v44 = vadd.f32 %v1872_v38, %v1854_v39 }
  0xaa   :  { %2224 = vmatpush.bf16.msrb.mxu0 %v3491_v25  ;;  %v2408_v25 = vld [vmem:[%s4433_s0 + $0x58] sm:$0xf] }
  0xab   :  { %2243 = vmatpush.bf16.msrb.mxu1 %v3499_v26  ;;  %v3301_v26 = vld [vmem:[%s4433_s0 + $0xb4] sm:$0xf0] }
  0xac   :  { %2262 = vmatpush.bf16.msrb.mxu2 %v3507_v18 }
  0xad   :  { %2281 = vmatpush.bf16.msrb.mxu3 %v3515_v27  ;;  %v3289_v27 = vld [vmem:[%s4433_s0 + $0x5c] sm:$0xf] }
  0xae   :  { %2225 = vmatpush.bf16.msrb.mxu0 %v3490_v30  ;;  %v1891_v57 = vpop.f32.mrf.mxu2  ;;  %v1856_v62 = vpop.f32.mrf.mxu0  ;;  %v2413_v38 = vor.u32 %v3289_v27, %v2410_v28 }
  0xaf   :  { %2244 = vmatpush.bf16.msrb.mxu1 %v3498_v31  ;;  %v1910_v58 = vpop.f32.mrf.mxu3  ;;  %v1892_v61 = vadd.f32 %v1891_v57, %v1873_v44  ;;  %v1875_v63 = vpop.f32.mrf.mxu1  ;;  %v1857_v2 = vadd.f32 %v4240_v5, %v1856_v62  ;;  %v2401_v31 = vor.u32 %v3300_v23, %v2400_v22  ;;  %v2501_v62 = vor.u32 %v3312_v51, %v2498_v52 }
  0xb0   :  { %2263 = vmatpush.bf16.msrb.mxu2 %v3506_v29 }
  0xb1   :  { %2282 = vmatpush.bf16.msrb.mxu3 %v3514_v32  ;;  %v1911_v6 = vadd.f32 %v1910_v58, %v1892_v61  ;;  %v1876_v9 = vadd.f32 %v1875_v63, %v1857_v2  ;;  %2159 = vmatmul.bf16.gmra.mxu0 %v2481_v59 }
  0xb2   :  { %2226 = vmatpush.bf16.msrb.mxu0 %v3489_v40  ;;  %2178 = vmatmul.bf16.gmra.mxu1 %v2485_v0 }
  0xb3   :  { %2245 = vmatpush.bf16.msrb.mxu1 %v3497_v42  ;;  %2197 = vmatmul.bf16.gmra.mxu2 %v2489_v1 }
  0xb4   :  { %2264 = vmatpush.bf16.msrb.mxu2 %v3505_v35  ;;  %2216 = vmatmul.bf16.gmra.mxu3 %v2493_v3  ;;  %v2409_v35 = vor.u32 %v3301_v26, %v2408_v25 }
  0xb5   :  { %2283 = vmatpush.bf16.msrb.mxu3 %v3513_v43 }
  0xb6   :  { %2227 = vmatpush.bf16.msrb.mxu0 %v3488_v53  ;;  %v1894_v14 = vpop.f32.mrf.mxu2  ;;  %v1858_v17 = vpop.f32.mrf.mxu0  ;;  %v2504_v53 = vld [vmem:[%s4433_s0 + $0x118] sm:$0xf] }
  0xb7   :  { %2246 = vmatpush.bf16.msrb.mxu1 %v3496_v55  ;;  %v1913_v15 = vpop.f32.mrf.mxu3  ;;  %v1895_v16 = vadd.f32 %v1894_v14, %v1876_v9  ;;  %v1877_v18 = vpop.f32.mrf.mxu1  ;;  %v1859_v19 = vadd.f32 %v4240_v5, %v1858_v17  ;;  %v2402_v5 = vld [vmem:[%s4433_s0 + $0xb0] sm:$0xf0]  ;;  %v3313_v55 = vld [vmem:[%s4433_s0 + $0x11c] sm:$0xf]  ;;  %v2505_v63 = vor.u32 %v3325_v54, %v2504_v53 }
  0xb8   :  { %2265 = vmatpush.bf16.msrb.mxu2 %v3504_v47  ;;  %v2405_v34 = vor.u32 %v3288_v24, %v2402_v5 }
  0xb9   :  { %2284 = vmatpush.bf16.msrb.mxu3 %v3512_v56  ;;  %v1914_v20 = vadd.f32 %v1913_v15, %v1895_v16  ;;  %v1878_v21 = vadd.f32 %v1877_v18, %v1859_v19  ;;  %v2506_v56 = vld [vmem:[%s4433_s0 + $0x178] sm:$0xf0] }
  0xba   :  { %2228 = vmatpush.bf16.msrb.mxu0 %v3487_v4  ;;  %v2509_v2 = vor.u32 %v3313_v55, %v2506_v56 }
  0xbb   :  { %2247 = vmatpush.bf16.msrb.mxu1 %v3495_v7 }
  0xbc   :  { %2266 = vmatpush.bf16.msrb.mxu2 %v3503_v60 }
  0xbd   :  { %2285 = vmatpush.bf16.msrb.mxu3 %v3511_v8 }
  0xbe   :  { %2229 = vmatpush.bf16.msrb.mxu0 %v3486_v11  ;;  %v1896_v29 = vpop.f32.mrf.mxu2  ;;  %v1927_v33 = vpop.f32.mrf.mxu0 }
  0xbf   :  { %2248 = vmatpush.bf16.msrb.mxu1 %v3494_v12  ;;  %v1915_v30 = vpop.f32.mrf.mxu3  ;;  %v1897_v32 = vadd.f32 %v1896_v29, %v1878_v21  ;;  %v1928_v36 = vadd.f32 %v1927_v33, %v4307_v41  ;;  %v1946_v37 = vpop.f32.mrf.mxu1  ;;  %v2496_v41 = vld [vmem:[%s4433_s0 + $0x110] sm:$0xf] }
  0xc0   :  { %2267 = vmatpush.bf16.msrb.mxu2 %v3502_v10  ;;  %v2497_v58 = vor.u32 %v3324_v50, %v2496_v41 }
  0xc1   :  { %2286 = vmatpush.bf16.msrb.mxu3 %v3510_v13  ;;  %v1916_v39 = vadd.f32 %v1915_v30, %v1897_v32  ;;  %v1947_v40 = vadd.f32 %v1946_v37, %v1928_v36  ;;  %2230 = vmatmul.bf16.vlgmr.msrb.gmra.mxu0 %v2401_v31 }
  0xc2   :  { %2249 = vmatmul.bf16.vlgmr.msrb.gmra.mxu1 %v2405_v34 }
  0xc3   :  { %2268 = vmatmul.bf16.vlgmr.msrb.gmra.mxu2 %v2409_v35 }
  0xc4   :  { %2287 = vmatmul.bf16.vlgmr.msrb.gmra.mxu3 %v2413_v38 }
  0xc6   :  { %v1965_v42 = vpop.f32.mrf.mxu2  ;;  %v1929_v45 = vpop.f32.mrf.mxu0 }
  0xc7   :  { %v1966_v43 = vadd.f32 %v1965_v42, %v1947_v40  ;;  %v1984_v44 = vpop.f32.mrf.mxu3  ;;  %v1930_v46 = vadd.f32 %v1929_v45, %v1911_v6  ;;  %v1948_v47 = vpop.f32.mrf.mxu1 }
  0xc9   :  { %v1985_v48 = vadd.f32 %v1984_v44, %v1966_v43  ;;  %v1949_v49 = vadd.f32 %v1948_v47, %v1930_v46 }
  0xce   :  { %v1967_v57 = vpop.f32.mrf.mxu2  ;;  %v1932_v61 = vpop.f32.mrf.mxu0 }
  0xcf   :  { %v1968_v59 = vadd.f32 %v1967_v57, %v1949_v49  ;;  %v1986_v60 = vpop.f32.mrf.mxu3  ;;  %v1933_v0 = vadd.f32 %v1932_v61, %v1914_v20  ;;  %v1951_v1 = vpop.f32.mrf.mxu1 }
  0xd1   :  { %v1987_v3 = vadd.f32 %v1986_v60, %v1968_v59  ;;  %v1952_v4 = vadd.f32 %v1951_v1, %v1933_v0  ;;  %2235 = vmatmul.bf16.gmra.mxu0 %v2497_v58 }
  0xd2   :  { %2254 = vmatmul.bf16.gmra.mxu1 %v2501_v62 }
  0xd3   :  { %2273 = vmatmul.bf16.gmra.mxu2 %v2505_v63 }
  0xd4   :  { %2292 = vmatmul.bf16.gmra.mxu3 %v2509_v2 }
  0xd6   :  { %v1970_v6 = vpop.f32.mrf.mxu2  ;;  %v1934_v9 = vpop.f32.mrf.mxu0 }
  0xd7   :  { %v1971_v7 = vadd.f32 %v1970_v6, %v1952_v4  ;;  %v1989_v8 = vpop.f32.mrf.mxu3  ;;  %v1935_v10 = vadd.f32 %v1934_v9, %v1916_v39  ;;  %v1953_v11 = vpop.f32.mrf.mxu1 }
  0xd9   :  { %v1990_v12 = vadd.f32 %v1989_v8, %v1971_v7  ;;  %v1954_v13 = vadd.f32 %v1953_v11, %v1935_v10 }
  0xde   :  { %v1972_v14 = vpop.f32.mrf.mxu2  ;;  %v2003_v17 = vpop.f32.mrf.mxu0 }
  0xdf   :  { %v1973_v15 = vadd.f32 %v1972_v14, %v1954_v13  ;;  %v1991_v16 = vpop.f32.mrf.mxu3  ;;  %v2004_v18 = vadd.f32 %v2003_v17, %v1985_v48  ;;  %v2022_v19 = vpop.f32.mrf.mxu1 }
  0xe1   :  { %v1992_v20 = vadd.f32 %v1991_v16, %v1973_v15  ;;  %v2023_v21 = vadd.f32 %v2022_v19, %v2004_v18 }
  0xe6   :  { %v2041_v22 = vpop.f32.mrf.mxu2  ;;  %v2005_v5 = vpop.f32.mrf.mxu0 }
  0xe7   :  { %v2042_v23 = vadd.f32 %v2041_v22, %v2023_v21  ;;  %v2060_v24 = vpop.f32.mrf.mxu3  ;;  %v2006_v25 = vadd.f32 %v2005_v5, %v1987_v3  ;;  %v2024_v26 = vpop.f32.mrf.mxu1 }
  0xe9   :  { %v2061_v27 = vadd.f32 %v2060_v24, %v2042_v23  ;;  %v2025_v28 = vadd.f32 %v2024_v26, %v2006_v25 }
  0xee   :  { %v2043_v29 = vpop.f32.mrf.mxu2  ;;  %v2008_v32 = vpop.f32.mrf.mxu0 }
  0xef   :  { %v2044_v30 = vadd.f32 %v2043_v29, %v2025_v28  ;;  %v2062_v31 = vpop.f32.mrf.mxu3  ;;  %v2009_v33 = vadd.f32 %v2008_v32, %v1990_v12  ;;  %v2027_v34 = vpop.f32.mrf.mxu1 }
  0xf1   :  { %v2063_v35 = vadd.f32 %v2062_v31, %v2044_v30  ;;  %v2028_v36 = vadd.f32 %v2027_v34, %v2009_v33 }
  0xf6   :  { %v2046_v37 = vpop.f32.mrf.mxu2  ;;  %v2010_v40 = vpop.f32.mrf.mxu0 }
  0xf7   :  { %v2047_v38 = vadd.f32 %v2046_v37, %v2028_v36  ;;  %v2065_v39 = vpop.f32.mrf.mxu3  ;;  %v2011_v42 = vadd.f32 %v2010_v40, %v1992_v20  ;;  %v2029_v43 = vpop.f32.mrf.mxu1 }
  0xf9   :  { %v2066_v44 = vadd.f32 %v2065_v39, %v2047_v38  ;;  %v2030_v45 = vadd.f32 %v2029_v43, %v2011_v42 }
  0xfe   :  { %v2048_v46 = vpop.f32.mrf.mxu2  ;;  %v2079_v49 = vpop.f32.mrf.mxu0 }
  0xff   :  { %v2049_v47 = vadd.f32 %v2048_v46, %v2030_v45  ;;  %v2067_v48 = vpop.f32.mrf.mxu3  ;;  %v2098_v41 = vpop.f32.mrf.mxu1  ;;  %v2080_v8 = vadd.f32 %v2079_v49, %v2061_v27 }
 0x101   :  { %v2068_v50 = vadd.f32 %v2067_v48, %v2049_v47  ;;  %v2099_v10 = vadd.f32 %v2098_v41, %v2080_v8 }
 0x106   :  { %v2117_v51 = vpop.f32.mrf.mxu2  ;;  %v2081_v53 = vpop.f32.mrf.mxu0 }
 0x107   :  { %v2136_v52 = vpop.f32.mrf.mxu3  ;;  %v2100_v54 = vpop.f32.mrf.mxu1  ;;  %v2118_v14 = vadd.f32 %v2117_v51, %v2099_v10  ;;  %v2082_v15 = vadd.f32 %v2081_v53, %v2063_v35 }
 0x109   :  { %v2137_v16 = vadd.f32 %v2136_v52, %v2118_v14  ;;  %v2101_v17 = vadd.f32 %v2100_v54, %v2082_v15 }
 0x10e   :  { %v2119_v55 = vpop.f32.mrf.mxu2  ;;  %v2084_v57 = vpop.f32.mrf.mxu0 }
 0x10f   :  { %v2138_v56 = vpop.f32.mrf.mxu3  ;;  %v2103_v58 = vpop.f32.mrf.mxu1  ;;  %v2120_v19 = vadd.f32 %v2119_v55, %v2101_v17  ;;  %v2085_v5 = vadd.f32 %v2084_v57, %v2066_v44 }
 0x111   :  { %v2139_v24 = vadd.f32 %v2138_v56, %v2120_v19  ;;  %v2104_v29 = vadd.f32 %v2103_v58, %v2085_v5 }
 0x116   :  { %v2122_v59 = vpop.f32.mrf.mxu2  ;;  %v2086_v61 = vpop.f32.mrf.mxu0 }
 0x117   :  { %v2141_v60 = vpop.f32.mrf.mxu3  ;;  %v2105_v62 = vpop.f32.mrf.mxu1  ;;  %v2123_v33 = vadd.f32 %v2122_v59, %v2104_v29  ;;  %v2087_v34 = vadd.f32 %v2086_v61, %v2068_v50 }
 0x119   :  { %v2142_v39 = vadd.f32 %v2141_v60, %v2123_v33  ;;  %v2106_v40 = vadd.f32 %v2105_v62, %v2087_v34 }
 0x11e   :  { %v2124_v63 = vpop.f32.mrf.mxu2  ;;  %v2155_v1 = vpop.f32.mrf.mxu0 }
 0x11f   :  { %v2143_v0 = vpop.f32.mrf.mxu3  ;;  %v2174_v2 = vpop.f32.mrf.mxu1  ;;  %v2156_v20 = vadd.f32 %v2155_v1, %v2137_v16  ;;  %v2125_v43 = vadd.f32 %v2124_v63, %v2106_v40 }
 0x121   :  { %v2175_v25 = vadd.f32 %v2174_v2, %v2156_v20  ;;  %v2144_v52 = vadd.f32 %v2143_v0, %v2125_v43 }
 0x126   :  { %v2193_v3 = vpop.f32.mrf.mxu2  ;;  %v2157_v6 = vpop.f32.mrf.mxu0 }
 0x127   :  { %v2212_v4 = vpop.f32.mrf.mxu3  ;;  %v2176_v7 = vpop.f32.mrf.mxu1  ;;  %v2194_v26 = vadd.f32 %v2193_v3, %v2175_v25  ;;  %v2158_v27 = vadd.f32 %v2157_v6, %v2139_v24 }
 0x129   :  { %v2213_v35 = vadd.f32 %v2212_v4, %v2194_v26  ;;  %v2177_v36 = vadd.f32 %v2176_v7, %v2158_v27 }
 0x12e   :  { %v2195_v9 = vpop.f32.mrf.mxu2  ;;  %v2160_v12 = vpop.f32.mrf.mxu0 }
 0x12f   :  { %v2214_v11 = vpop.f32.mrf.mxu3  ;;  %v2179_v13 = vpop.f32.mrf.mxu1  ;;  %v2196_v37 = vadd.f32 %v2195_v9, %v2177_v36  ;;  %v2161_v44 = vadd.f32 %v2160_v12, %v2142_v39 }
 0x131   :  { %v2215_v45 = vadd.f32 %v2214_v11, %v2196_v37  ;;  %v2180_v53 = vadd.f32 %v2179_v13, %v2161_v44 }
 0x136   :  { %v2198_v18 = vpop.f32.mrf.mxu2  ;;  %v2162_v22 = vpop.f32.mrf.mxu0 }
 0x137   :  { %v2217_v21 = vpop.f32.mrf.mxu3  ;;  %v2181_v23 = vpop.f32.mrf.mxu1  ;;  %v2199_v54 = vadd.f32 %v2198_v18, %v2180_v53  ;;  %v2163_v50 = vadd.f32 %v2162_v22, %v2144_v52 }
 0x139   :  { %v2218_v61 = vadd.f32 %v2217_v21, %v2199_v54  ;;  %v2182_v62 = vadd.f32 %v2181_v23, %v2163_v50 }
 0x13e   :  { %v2200_v28 = vpop.f32.mrf.mxu2  ;;  %v2231_v31 = vpop.f32.mrf.mxu0 }
 0x13f   :  { %v2219_v30 = vpop.f32.mrf.mxu3  ;;  %v2250_v32 = vpop.f32.mrf.mxu1  ;;  %v2232_v38 = vadd.f32 %v2231_v31, %v2213_v35  ;;  %v2201_v3 = vadd.f32 %v2200_v28, %v2182_v62 }
 0x141   :  { %v2251_v46 = vadd.f32 %v2250_v32, %v2232_v38  ;;  %v2220_v9 = vadd.f32 %v2219_v30, %v2201_v3 }
 0x146   :  { %v2269_v42 = vpop.f32.mrf.mxu2  ;;  %v2233_v48 = vpop.f32.mrf.mxu0 }
 0x147   :  { %v2288_v47 = vpop.f32.mrf.mxu3  ;;  %v2252_v49 = vpop.f32.mrf.mxu1  ;;  %v2270_v41 = vadd.f32 %v2269_v42, %v2251_v46  ;;  %v2234_v51 = vadd.f32 %v2233_v48, %v2215_v45 }
 0x149   :  { %v2289_v55 = vadd.f32 %v2288_v47, %v2270_v41  ;;  %v2253_v56 = vadd.f32 %v2252_v49, %v2234_v51 }
 0x14b   :  { %v2298_v63 = vmul.f32 0.1, %v2289_v55 }
 0x14d   :  { %v2302_v7 = vmax.f32 %v2289_v55, %v2298_v63 }
 0x14e   :  { %v2271_v57 = vpop.f32.mrf.mxu2  ;;  %v2236_v60 = vpop.f32.mrf.mxu0 }
 0x14f   :  { %v2272_v58 = vadd.f32 %v2271_v57, %v2253_v56  ;;  %v2290_v59 = vpop.f32.mrf.mxu3  ;;  %v2255_v2 = vpop.f32.mrf.mxu1  ;;  %v2237_v6 = vadd.f32 %v2236_v60, %v2218_v61 }
 0x151   :  { %v2291_v1 = vadd.f32 %v2290_v59, %v2272_v58  ;;  %v2256_v11 = vadd.f32 %v2255_v2, %v2237_v6 }
 0x153   :  { %v2299_v4 = vmul.f32 0.1, %v2291_v1 }
 0x155   :  { %v2303_v8 = vmax.f32 %v2291_v1, %v2299_v4 }
 0x156   :  { %v2274_v0 = vpop.f32.mrf.mxu2  ;;  %v2238_v13 = vpop.f32.mrf.mxu0 }
 0x157   :  { %v3521_v10 = vpack.c.bf16 %v2303_v8, %v2302_v7  ;;  %v2293_v12 = vpop.f32.mrf.mxu3  ;;  %v2275_v14 = vadd.f32 %v2274_v0, %v2256_v11  ;;  %v2239_v15 = vadd.f32 %v2238_v13, %v2220_v9  ;;  %v2257_v16 = vpop.f32.mrf.mxu1 }
 0x159   :  { %3522 = vst [vmem:[%s4435_s3] sm:$0xff] %v3521_v10   ;;  %v2294_v17 = vadd.f32 %v2293_v12, %v2275_v14  ;;  %v2258_v18 = vadd.f32 %v2257_v16, %v2239_v15 }
 0x15b   :  { %v2300_v22 = vmul.f32 0.1, %v2294_v17 }
 0x15d   :  { %v2304_v5 = vmax.f32 %v2294_v17, %v2300_v22 }
 0x15e   :  { %v2276_v19 = vpop.f32.mrf.mxu2 }
 0x15f   :  { %v2277_v20 = vadd.f32 %v2276_v19, %v2258_v18  ;;  %v2295_v21 = vpop.f32.mrf.mxu3 }
 0x161   :  { %v2296_v23 = vadd.f32 %v2295_v21, %v2277_v20 }
 0x163   :  { %v2301_v24 = vmul.f32 0.1, %v2296_v23 }
 0x165   :  { %v2305_v25 = vmax.f32 %v2296_v23, %v2301_v24 }
 0x167   :  { %v3526_v26 = vpack.c.bf16 %v2305_v25, %v2304_v5 }
 0x169   :  { %3528 = vst [vmem:[%s4435_s3 + $0x8] sm:$0xff] %v3526_v26  }

// kernel: _device_forward_impl.9
= control target key start
LH: loop header
LB: loop body
LE: loop exit
PB: predicated region body
PF: predicated region fallthrough
CT: control target
= control target key end

     0   :  { %s1864_s12 = smov 0   ;;  %s2167_s0 = inlined_call_operand.vmem [shape: bf16[2,56,128], index: 0, kind: input, shape index: {}]   ;;  %s2168_s1 = inlined_call_operand.vmem [shape: bf16[1152,128], index: 1, kind: input, shape index: {}]   ;;  %s2169_s2 = inlined_call_operand.vmem [shape: f32[1,128], index: 2, kind: input, shape index: {}]   ;;  %s2170_s3 = inlined_call_operand.vmem [shape: bf16[2,32,128], index: 3, kind: output, shape index: {}]  }
   0x1 LB: > { %s1346_s13 = sadd.s32 4294967295, %s1842_s12   ;;  %p1350_p0 = scmp.ge.s32.totalorder %s1842_s12, 1  ;;  %s1842_s12 = sphi %s1864_s12, %s13_s12  }
   0x2   : > { %p137_p1 = scmp.lt.s32.totalorder %s1842_s12, 3 }
   0x4   : > { %p138_p2 = pnand %p1350_p0, %p137_p1 }
   0x5   : > { %p161_p3 = scmp.lt.s32.totalorder (!%p138_p2), %s1346_s13, 1 }
   0x6   : > { %141 = sbr.rel (%p138_p2) target bundleno = 253 (0xfd), region = 32 }
   0xb   : > { %v1726_v0 = vld [vmem:[%s2168_s1 + $0x38] sm:$0xff]  ;;  %v1725_v4 = vld [vmem:[%s2168_s1 + $0x30] sm:$0xff]  ;;  %s2172_s13 = smov (!%p161_p3, %s1346_s13), 1  ;;  %v1724_v8 = vld [vmem:[%s2168_s1 + $0x28] sm:$0xff]  ;;  %vm308_vm0 = vsmask.f32 7424 }
   0xc   : > { %v1736_v1 = vld [vmem:[%s2168_s1 + $0x78] sm:$0xff]  ;;  %251 = vmatpush.bf16.msra.mxu0 %v1726_v0  ;;  %v1735_v5 = vld [vmem:[%s2168_s1 + $0x70] sm:$0xff]  ;;  %v1734_v9 = vld [vmem:[%s2168_s1 + $0x68] sm:$0xff]  ;;  %s1826_s11 = smul.u32 28, %s2172_s13  ;;  %vm444_vm1 = vcmask 1046528   ;;  %s1716_s17 = sshll.u32 %s2172_s13, 4 }
   0xd   : > { %v1746_v2 = vld [vmem:[%s2168_s1 + $0xb8] sm:$0xff]  ;;  %379 = vmatpush.bf16.msra.mxu1 %v1736_v1  ;;  %v1745_v6 = vld [vmem:[%s2168_s1 + $0xb0] sm:$0xff]  ;;  %v1744_v10 = vld [vmem:[%s2168_s1 + $0xa8] sm:$0xff]  ;;  %s170_s20 = scalar_lea.vmem %s2170_s3, %s1716_s17 }
   0xe   : > { %v1756_v3 = vld [vmem:[%s2168_s1 + $0xf8] sm:$0xff]  ;;  %500 = vmatpush.bf16.msra.mxu2 %v1746_v2  ;;  %v1755_v7 = vld [vmem:[%s2168_s1 + $0xf0] sm:$0xff]  ;;  %v1754_v11 = vld [vmem:[%s2168_s1 + $0xe8] sm:$0xff]  ;;  %s1926_s24 = scalar_lea.vmem %s2167_s0, %s1826_s11 }
   0xf   : > { %611 = vmatpush.bf16.msra.mxu3 %v1756_v3  ;;  %v1723_v12 = vld [vmem:[%s2168_s1 + $0x20] sm:$0xff]  ;;  %v1722_v16 = vld [vmem:[%s2168_s1 + $0x18] sm:$0xff]  ;;  %v1721_v21 = vld [vmem:[%s2168_s1 + $0x10] sm:$0xff] }
  0x10   : > { %252 = vmatpush.bf16.msra.mxu0 %v1725_v4  ;;  %v1733_v13 = vld [vmem:[%s2168_s1 + $0x60] sm:$0xff]  ;;  %v1732_v17 = vld [vmem:[%s2168_s1 + $0x58] sm:$0xff]  ;;  %v1731_v22 = vld [vmem:[%s2168_s1 + $0x50] sm:$0xff] }
  0x11   : > { %380 = vmatpush.bf16.msra.mxu1 %v1735_v5  ;;  %v1743_v14 = vld [vmem:[%s2168_s1 + $0xa0] sm:$0xff]  ;;  %v1742_v19 = vld [vmem:[%s2168_s1 + $0x98] sm:$0xff]  ;;  %v1948_v23 = vld [vmem:[%s1926_s24 + $0x8] sm:$0xff] }
  0x12   : > { %501 = vmatpush.bf16.msra.mxu2 %v1745_v6  ;;  %v1753_v15 = vld [vmem:[%s2168_s1 + $0xe0] sm:$0xff]  ;;  %v1752_v20 = vld [vmem:[%s2168_s1 + $0xd8] sm:$0xff]  ;;  %v1741_v25 = vld [vmem:[%s2168_s1 + $0x90] sm:$0xff]  ;;  %v317_v33 = vshll.u32 %v1948_v23, 16  ;;  %v321_v1 = vshrl.u32 %v1948_v23, 16 }
  0x13   : > { %612 = vmatpush.bf16.msra.mxu3 %v1755_v7  ;;  %v1727_v18 = vld [vmem:[%s1926_s24] sm:$0xff]  ;;  %v1751_v26 = vld [vmem:[%s2168_s1 + $0xd0] sm:$0xff]  ;;  %v1720_v29 = vld [vmem:[%s2168_s1 + $0x8] sm:$0xff] }
  0x14   : > { %253 = vmatpush.bf16.msra.mxu0 %v1724_v8  ;;  %v312_v24 = vshll.u32 %v1727_v18, 16  ;;  %v1436_v27 = vld [vmem:[%s1926_s24] sm:$0xe]  ;;  %v1737_v28 = vld [vmem:[%s1926_s24] sm:$0xf0]  ;;  %v1730_v30 = vld [vmem:[%s2168_s1 + $0x48] sm:$0xff] }
  0x15   : > { %381 = vmatpush.bf16.msra.mxu1 %v1734_v9  ;;  %v310_v31 = vshrl.u32 %v1727_v18, 16  ;;  %v1740_v34 = vld [vmem:[%s2168_s1 + $0x88] sm:$0xff]  ;;  %v1437_v37 = vor.u32 %v1737_v28, %v1436_v27  ;;  %v1719_v38 = vld [vmem:[%s2168_s1] sm:$0xff]  ;;  %v319_v41 = vrot.slane %v317_v33, 1  ;;  %v278_v46 = vld [vmem:[%s1926_s24 + $0x10] sm:$0x1] }
  0x16   : > { %502 = vmatpush.bf16.msra.mxu2 %v1744_v10  ;;  %v314_v32 = vrot.slane %v312_v24, 1  ;;  %v1750_v35 = vld [vmem:[%s2168_s1 + $0xc8] sm:$0xff]  ;;  %v1729_v39 = vld [vmem:[%s2168_s1 + $0x40] sm:$0xff]  ;;  %v1766_v47 = vld [vmem:[%s2168_s1 + $0x138] sm:$0xff]  ;;  %v304_v52 = vunpack.c.l.b16 %v278_v46 }
  0x17   : > { %613 = vmatpush.bf16.msra.mxu3 %v1754_v11  ;;  %v1972_v36 = vld [vmem:[%s1926_s24 + $0x8] sm:$0xff]  ;;  %v1739_v42 = vld [vmem:[%s2168_s1 + $0x80] sm:$0xff]  ;;  %v445_v44 = vrot.slane %v1437_v37, 1  ;;  %v1776_v48 = vld [vmem:[%s2168_s1 + $0x178] sm:$0xff]  ;;  %v323_v8 = vor.u32 %v321_v1, %v319_v41 }
  0x18   : > { %254 = vmatpush.bf16.msra.mxu0 %v1723_v12  ;;  %v315_v40 = vor.u32 %v314_v32, %v310_v31  ;;  %v1749_v43 = vld [vmem:[%s2168_s1 + $0xc0] sm:$0xff]  ;;  %v446_v45 = vrot.slane %v1972_v36, 1  ;;  %v1786_v54 = vld [vmem:[%s2168_s1 + $0x1b8] sm:$0xff]  ;;  %v1765_v56 = vld [vmem:[%s2168_s1 + $0x130] sm:$0xff]  ;;  %v307_v59 = vpack.c.b16 %v304_v52, %v304_v52 }
  0x19   : > { %382 = vmatpush.bf16.msra.mxu1 %v1733_v13  ;;  %v1717_v49 = vld [vmem:[%s1926_s24] sm:$0xff]  ;;  %v1796_v55 = vld [vmem:[%s2168_s1 + $0x1f8] sm:$0xff]  ;;  %v1775_v57 = vld [vmem:[%s2168_s1 + $0x170] sm:$0xff] }
  0x1a   : > { %503 = vmatpush.bf16.msra.mxu2 %v1743_v14  ;;  %v320_v50 = vsel %vm308_vm0, %v315_v40, %v319_v41  ;;  %v1747_v51 = vld [vmem:[%s1926_s24 + $0x4] sm:$0xff]  ;;  %v447_v53 = vsel %vm444_vm1, %v445_v44, %v446_v45  ;;  %v414_v58 = vld [vmem:[%s1926_s24 + $0x10] sm:$0x1]  ;;  %v325_v2 = vshll.u32 %v307_v59, 16  ;;  %v1762_v13 = vld [vmem:[%s2168_s1 + $0x118] sm:$0xff] }
  0x1b   : > { %614 = vmatpush.bf16.msra.mxu3 %v1753_v15  ;;  %v1785_v60 = vld [vmem:[%s2168_s1 + $0x1b0] sm:$0xff]  ;;  %v440_v62 = vunpack.c.l.b16 %v414_v58  ;;  %v1764_v63 = vld [vmem:[%s2168_s1 + $0x128] sm:$0xff]  ;;  %v1763_v6 = vld [vmem:[%s2168_s1 + $0x120] sm:$0xff] }
  0x1c   : > { %255 = vmatpush.bf16.msra.mxu0 %v1722_v16  ;;  %v1795_v61 = vld [vmem:[%s2168_s1 + $0x1f0] sm:$0xff]  ;;  %v1774_v0 = vld [vmem:[%s2168_s1 + $0x168] sm:$0xff]  ;;  %v1773_v7 = vld [vmem:[%s2168_s1 + $0x160] sm:$0xff]  ;;  %v327_v9 = vrot.slane %v325_v2, 1 }
  0x1d   : > { %383 = vmatpush.bf16.msra.mxu1 %v1732_v17  ;;  %v1784_v3 = vld [vmem:[%s2168_s1 + $0x1a8] sm:$0xff]  ;;  %v443_v5 = vpack.c.b16 %v440_v62, %v440_v62  ;;  %v1783_v10 = vld [vmem:[%s2168_s1 + $0x1a0] sm:$0xff]  ;;  %v1772_v14 = vld [vmem:[%s2168_s1 + $0x158] sm:$0xff] }
  0x1e   : > { %504 = vmatpush.bf16.msra.mxu2 %v1742_v19  ;;  %v1794_v4 = vld [vmem:[%s2168_s1 + $0x1e8] sm:$0xff]  ;;  %v1793_v11 = vld [vmem:[%s2168_s1 + $0x1e0] sm:$0xff]  ;;  %v328_v16 = vsel %vm308_vm0, %v323_v8, %v327_v9  ;;  %v1761_v23 = vld [vmem:[%s2168_s1 + $0x110] sm:$0xff] }
  0x1f   : > { %615 = vmatpush.bf16.msra.mxu3 %v1752_v20  ;;  %v448_v12 = vrot.slane %v443_v5, 1  ;;  %v1718_v15 = vld [vmem:[%s1926_s24 + $0x8] sm:$0xff]  ;;  %v1782_v20 = vld [vmem:[%s2168_s1 + $0x198] sm:$0xff]  ;;  %v1771_v24 = vld [vmem:[%s2168_s1 + $0x150] sm:$0xff] }
  0x20   : > { %256 = vmatpush.bf16.msra.mxu0 %v1721_v21  ;;  %v1748_v17 = vld [vmem:[%s1926_s24 + $0xc] sm:$0xff]  ;;  %v1757_v18 = vld [vmem:[%s1926_s24 + $0x4] sm:$0xff]  ;;  %v1792_v21 = vld [vmem:[%s2168_s1 + $0x1d8] sm:$0xff] }
  0x21   : > { %384 = vmatpush.bf16.msra.mxu1 %v1731_v22  ;;  %v449_v19 = vsel %vm444_vm1, %v446_v45, %v448_v12  ;;  %v1787_v22 = vld [vmem:[%s1926_s24 + $0x8] sm:$0xff]  ;;  %v679_v28 = vshll.u32 %v1757_v18, 16  ;;  %v2082_v31 = vld [vmem:[%s1926_s24 + $0x10] sm:$0xff]  ;;  %v1759_v45 = vld [vmem:[%s2168_s1 + $0x100] sm:$0xff] }
  0x22   : > { %505 = vmatpush.bf16.msra.mxu2 %v1741_v25  ;;  %v1781_v25 = vld [vmem:[%s2168_s1 + $0x190] sm:$0xff]  ;;  %v1045_v32 = vshll.u32 %v1787_v22, 16  ;;  %v1760_v33 = vld [vmem:[%s2168_s1 + $0x108] sm:$0xff]  ;;  %v1050_v44 = vshll.u32 %v2082_v31, 16  ;;  %v1769_v46 = vld [vmem:[%s2168_s1 + $0x140] sm:$0xff] }
  0x23   : > { %616 = vmatpush.bf16.msra.mxu3 %v1751_v26  ;;  %v1791_v26 = vld [vmem:[%s2168_s1 + $0x1d0] sm:$0xff]  ;;  %v681_v36 = vrot.slane %v679_v28, 1  ;;  %v1780_v40 = vld [vmem:[%s2168_s1 + $0x188] sm:$0xff]  ;;  %v1779_v52 = vld [vmem:[%s2168_s1 + $0x180] sm:$0xff] }
  0x24   : > { %257 = vmatpush.bf16.msra.mxu0 %v1720_v29  ;;  %v2077_v27 = vld [vmem:[%s1926_s24 + $0xc] sm:$0xff]  ;;  %v1556_v29 = vld [vmem:[%s1926_s24 + $0x4] sm:$0xe] }
  0x25   : > { %385 = vmatpush.bf16.msra.mxu1 %v1730_v30  ;;  %v1767_v30 = vld [vmem:[%s1926_s24 + $0x4] sm:$0xf0]  ;;  %v684_v37 = vshll.u32 %v2077_v27, 16  ;;  %v1803_v9 = vld [vmem:[%s2168_s1 + $0x220] sm:$0xff]  ;;  %v1798_v28 = vld [vmem:[%s1926_s24 + $0x10] sm:$0xff] }
  0x26   : > { %506 = vmatpush.bf16.msra.mxu2 %v1740_v34  ;;  %v1770_v34 = vld [vmem:[%s2168_s1 + $0x148] sm:$0xff] }
  0x27   : > { %617 = vmatpush.bf16.msra.mxu3 %v1750_v35  ;;  %v677_v35 = vshrl.u32 %v1757_v18, 16  ;;  %v1790_v41 = vld [vmem:[%s2168_s1 + $0x1c8] sm:$0xff] }
  0x28   : > { %258 = vmatpush.bf16.msra.mxu0 %v1719_v38  ;;  %v2092_v38 = vld [vmem:[%s1926_s24 + $0xc] sm:$0xff] }
  0x29   : > { %386 = vmatpush.bf16.msra.mxu1 %v1729_v39  ;;  %v1557_v39 = vor.u32 %v1767_v30, %v1556_v29 }
  0x2a   : > { %507 = vmatpush.bf16.msra.mxu2 %v1739_v42  ;;  %v1043_v42 = vshrl.u32 %v1787_v22, 16  ;;  %v1801_v22 = vld [vmem:[%s2168_s1 + $0x210] sm:$0xff] }
  0x2b   : > { %618 = vmatpush.bf16.msra.mxu3 %v1749_v43  ;;  %259 = vmatmul.bf16.vlgmr.msra.gmra.mxu0 %v1717_v49  ;;  %v1047_v43 = vrot.slane %v1045_v32, 1  ;;  %v686_v49 = vrot.slane %v684_v37, 1 }
  0x2c   : > { %746 = vmatpush.bf16.msrb.mxu0 %v1766_v47  ;;  %387 = vmatmul.bf16.vlgmr.msra.gmra.mxu1 %v320_v50  ;;  %v1806_v47 = vld [vmem:[%s2168_s1 + $0x238] sm:$0xff]  ;;  %v811_v50 = vrot.slane %v1557_v39, 1 }
  0x2d   : > { %866 = vmatpush.bf16.msrb.mxu1 %v1776_v48  ;;  %508 = vmatmul.bf16.vlgmr.msra.gmra.mxu2 %v447_v53  ;;  %v682_v48 = vor.u32 %v681_v36, %v677_v35  ;;  %v1789_v53 = vld [vmem:[%s2168_s1 + $0x1c0] sm:$0xff] }
  0x2e   : > { %619 = vmatmul.bf16.vlgmr.msra.gmra.mxu3 %v1747_v51  ;;  %977 = vmatpush.bf16.msrb.mxu2 %v1786_v54  ;;  %v812_v51 = vrot.slane %v2092_v38, 1  ;;  %v1048_v54 = vor.u32 %v1047_v43, %v1043_v42 }
  0x2f   : > { %1112 = vmatpush.bf16.msrb.mxu3 %v1796_v55  ;;  %v1052_v55 = vrot.slane %v1050_v44, 1  ;;  %v687_v58 = vsel %vm308_vm0, %v682_v48, %v686_v49 }
  0x30   : > { %747 = vmatpush.bf16.msrb.mxu0 %v1765_v56  ;;  %v646_v56 = vld [vmem:[%s1926_s24 + $0x14] sm:$0x1]  ;;  %v813_v59 = vsel %vm444_vm1, %v811_v50, %v812_v51 }
  0x31   : > { %867 = vmatpush.bf16.msrb.mxu1 %v1775_v57  ;;  %v1012_v57 = vld [vmem:[%s1926_s24 + $0x18] sm:$0x1]  ;;  %v1053_v62 = vsel %vm308_vm0, %v1048_v54, %v1052_v55 }
  0x32   : > { %978 = vmatpush.bf16.msrb.mxu2 %v1785_v60  ;;  %v1777_v60 = vld [vmem:[%s1926_s24 + $0x8] sm:$0xff]  ;;  %v1038_v1 = vunpack.c.l.b16 %v1012_v57 }
  0x33   : > { %1113 = vmatpush.bf16.msrb.mxu3 %v1795_v61  ;;  %v672_v61 = vunpack.c.l.b16 %v646_v56 }
  0x34   : > { %748 = vmatpush.bf16.msrb.mxu0 %v1764_v63  ;;  %v1805_v63 = vld [vmem:[%s2168_s1 + $0x230] sm:$0xff]  ;;  %v1041_v5 = vpack.c.b16 %v1038_v1, %v1038_v1 }
  0x35   : > { %868 = vmatpush.bf16.msrb.mxu1 %v1774_v0  ;;  %v781_v0 = vld [vmem:[%s1926_s24 + $0x14] sm:$0x1]  ;;  %v675_v2 = vpack.c.b16 %v672_v61, %v672_v61 }
  0x36   : > { %979 = vmatpush.bf16.msrb.mxu2 %v1784_v3  ;;  %v807_v3 = vunpack.c.l.b16 %v781_v0 }
  0x37   : > { %1114 = vmatpush.bf16.msrb.mxu3 %v1794_v4  ;;  %v1804_v4 = vld [vmem:[%s2168_s1 + $0x228] sm:$0xff] }
  0x38   : > { %749 = vmatpush.bf16.msrb.mxu0 %v1763_v6  ;;  %v688_v6 = vshrl.u32 %v2077_v27, 16  ;;  %v810_v8 = vpack.c.b16 %v807_v3, %v807_v3  ;;  %v1797_v27 = vld [vmem:[%s1926_s24 + $0x8] sm:$0xf0] }
  0x39   : > { %869 = vmatpush.bf16.msrb.mxu1 %v1773_v7  ;;  %v692_v7 = vshll.u32 %v675_v2, 16 }
  0x3a   : > { %980 = vmatpush.bf16.msrb.mxu2 %v1783_v10  ;;  %v1054_v10 = vshrl.u32 %v2082_v31, 16  ;;  %v690_v12 = vor.u32 %v688_v6, %v686_v49  ;;  %v1799_v31 = vld [vmem:[%s2168_s1 + $0x200] sm:$0xff] }
  0x3b   : > { %1115 = vmatpush.bf16.msrb.mxu3 %v1793_v11  ;;  %264 = vmatmul.bf16.gmra.mxu0 %v1718_v15  ;;  %v1058_v11 = vshll.u32 %v1041_v5, 16 }
  0x3c   : > { %750 = vmatpush.bf16.msrb.mxu0 %v1762_v13  ;;  %392 = vmatmul.bf16.gmra.mxu1 %v328_v16  ;;  %v694_v13 = vrot.slane %v692_v7, 1  ;;  %v1056_v15 = vor.u32 %v1054_v10, %v1052_v55 }
  0x3d   : > { %870 = vmatpush.bf16.msrb.mxu1 %v1772_v14  ;;  %513 = vmatmul.bf16.gmra.mxu2 %v449_v19  ;;  %v814_v14 = vrot.slane %v810_v8, 1  ;;  %v1060_v16 = vrot.slane %v1058_v11, 1 }
  0x3e   : > { %624 = vmatmul.bf16.gmra.mxu3 %v1748_v17  ;;  %981 = vmatpush.bf16.msrb.mxu2 %v1782_v20  ;;  %v1802_v17 = vld [vmem:[%s2168_s1 + $0x218] sm:$0xff]  ;;  %v695_v18 = vsel %vm308_vm0, %v690_v12, %v694_v13  ;;  %v1778_v20 = vld [vmem:[%s1926_s24 + $0x10] sm:$0xff] }
  0x3f   : > { %1116 = vmatpush.bf16.msrb.mxu3 %v1792_v21  ;;  %v815_v19 = vsel %vm444_vm1, %v812_v51, %v814_v14  ;;  %v1061_v21 = vsel %vm308_vm0, %v1056_v15, %v1060_v16 }
  0x40   : > { %751 = vmatpush.bf16.msrb.mxu0 %v1761_v23  ;;  %v1147_v23 = vld [vmem:[%s1926_s24 + $0x18] sm:$0x1] }
  0x41   : > { %871 = vmatpush.bf16.msrb.mxu1 %v1771_v24  ;;  %v1173_v24 = vunpack.c.l.b16 %v1147_v23 }
  0x42   : > { %982 = vmatpush.bf16.msrb.mxu2 %v1781_v25  ;;  %v1800_v25 = vld [vmem:[%s2168_s1 + $0x208] sm:$0xff] }
  0x43   : > { %1117 = vmatpush.bf16.msrb.mxu3 %v1791_v26  ;;  %v1676_v26 = vld [vmem:[%s1926_s24 + $0x8] sm:$0xe]  ;;  %v1176_v30 = vpack.c.b16 %v1173_v24, %v1173_v24 }
  0x44   : > { %752 = vmatpush.bf16.msrb.mxu0 %v1760_v33  ;;  %v1677_v29 = vor.u32 %v1797_v27, %v1676_v26  ;;  %v1178_v33 = vrot.slane %v1798_v28, 1 }
  0x45   : > { %872 = vmatpush.bf16.msrb.mxu1 %v1770_v34  ;;  %v1180_v34 = vrot.slane %v1176_v30, 1 }
  0x46   : > { %983 = vmatpush.bf16.msrb.mxu2 %v1780_v40  ;;  %v1177_v32 = vrot.slane %v1677_v29, 1 }
  0x47   : > { %1118 = vmatpush.bf16.msrb.mxu3 %v1790_v41  ;;  %v1181_v36 = vsel %vm444_vm1, %v1178_v33, %v1180_v34 }
  0x48   : > { %753 = vmatpush.bf16.msrb.mxu0 %v1759_v45  ;;  %v1179_v35 = vsel %vm444_vm1, %v1177_v32, %v1178_v33  ;;  %v1835_v33 = vld [vmem:[%s2169_s2] ss:$0 sm:$0xff] }
  0x49   : > { %873 = vmatpush.bf16.msrb.mxu1 %v1769_v46 }
  0x4a   : > { %984 = vmatpush.bf16.msrb.mxu2 %v1779_v52 }
  0x4b   : > { %1119 = vmatpush.bf16.msrb.mxu3 %v1789_v53  ;;  %754 = vmatmul.bf16.vlgmr.msrb.gmra.mxu0 %v687_v58 }
  0x4c   : > { %1232 = vmatpush.bf16.msra.mxu0 %v1806_v47  ;;  %874 = vmatmul.bf16.vlgmr.msrb.gmra.mxu1 %v813_v59 }
  0x4d   : > { %1818 = vmatpush.bf16.msra.mxu1 %v1806_v47  ;;  %985 = vmatmul.bf16.vlgmr.msrb.gmra.mxu2 %v1777_v60 }
  0x4e   : > { %1120 = vmatmul.bf16.vlgmr.msrb.gmra.mxu3 %v1053_v62 }
  0x50   : > { %1233 = vmatpush.bf16.msra.mxu0 %v1805_v63 }
  0x51   : > { %1819 = vmatpush.bf16.msra.mxu1 %v1805_v63 }
  0x54   : > { %1234 = vmatpush.bf16.msra.mxu0 %v1804_v4 }
  0x55   : > { %1820 = vmatpush.bf16.msra.mxu1 %v1804_v4 }
  0x58   : > { %1235 = vmatpush.bf16.msra.mxu0 %v1803_v9 }
  0x59   : > { %1821 = vmatpush.bf16.msra.mxu1 %v1803_v9 }
  0x5b   : > { %759 = vmatmul.bf16.gmra.mxu0 %v695_v18 }
  0x5c   : > { %1236 = vmatpush.bf16.msra.mxu0 %v1802_v17  ;;  %879 = vmatmul.bf16.gmra.mxu1 %v815_v19 }
  0x5d   : > { %1822 = vmatpush.bf16.msra.mxu1 %v1802_v17  ;;  %990 = vmatmul.bf16.gmra.mxu2 %v1778_v20 }
  0x5e   : > { %1125 = vmatmul.bf16.gmra.mxu3 %v1061_v21 }
  0x60   : > { %1237 = vmatpush.bf16.msra.mxu0 %v1801_v22 }
  0x61   : > { %1823 = vmatpush.bf16.msra.mxu1 %v1801_v22 }
  0x64   : > { %1238 = vmatpush.bf16.msra.mxu0 %v1800_v25 }
  0x65   : > { %1824 = vmatpush.bf16.msra.mxu1 %v1800_v25 }
  0x68   : > { %1239 = vmatpush.bf16.msra.mxu0 %v1799_v31 }
  0x69   : > { %1825 = vmatpush.bf16.msra.mxu1 %v1799_v31 }
  0x6b   : > { %1240 = vmatmul.bf16.vlgmr.msra.gmra.mxu0 %v1179_v35 }
  0x6c   : > { %1245 = vmatmul.bf16.vlgmr.msra.gmra.mxu1 %v1181_v36 }
  0xa8   : > { %v260_v37 = vpop.f32.mrf.mxu0 }
  0xa9   : > { %v388_v38 = vpop.f32.mrf.mxu1 }
  0xaa   : > { %v402_v59 = vadd.f32 %v388_v38, %v260_v37 }
  0xb0   : > { %v509_v39 = vpop.f32.mrf.mxu2  ;;  %v262_v41 = vpop.f32.mrf.mxu0 }
  0xb1   : > { %v620_v40 = vpop.f32.mrf.mxu3  ;;  %v390_v42 = vpop.f32.mrf.mxu1  ;;  %v523_v0 = vadd.f32 %v509_v39, %v402_v59 }
  0xb2   : > { %v403_v4 = vadd.f32 %v390_v42, %v262_v41 }
  0xb3   : > { %v634_v3 = vadd.f32 %v620_v40, %v523_v0 }
  0xb8   : > { %v511_v43 = vpop.f32.mrf.mxu2  ;;  %v265_v45 = vpop.f32.mrf.mxu0 }
  0xb9   : > { %v622_v44 = vpop.f32.mrf.mxu3  ;;  %v393_v46 = vpop.f32.mrf.mxu1  ;;  %v524_v7 = vadd.f32 %v511_v43, %v403_v4 }
  0xba   : > { %v404_v60 = vadd.f32 %v393_v46, %v265_v45 }
  0xbb   : > { %v635_v14 = vadd.f32 %v622_v44, %v524_v7 }
  0xc0   : > { %v514_v47 = vpop.f32.mrf.mxu2  ;;  %v267_v49 = vpop.f32.mrf.mxu0 }
  0xc1   : > { %v625_v48 = vpop.f32.mrf.mxu3  ;;  %v395_v50 = vpop.f32.mrf.mxu1  ;;  %v525_v1 = vadd.f32 %v514_v47, %v404_v60 }
  0xc2   : > { %v405_v6 = vadd.f32 %v395_v50, %v267_v49 }
  0xc3   : > { %v636_v5 = vadd.f32 %v625_v48, %v525_v1 }
  0xc8   : > { %v516_v51 = vpop.f32.mrf.mxu2  ;;  %v755_v53 = vpop.f32.mrf.mxu0 }
  0xc9   : > { %v627_v52 = vpop.f32.mrf.mxu3  ;;  %v875_v54 = vpop.f32.mrf.mxu1  ;;  %v526_v8 = vadd.f32 %v516_v51, %v405_v6  ;;  %v769_v9 = vadd.f32 %v755_v53, %v634_v3 }
  0xcb   : > { %v637_v15 = vadd.f32 %v627_v52, %v526_v8  ;;  %v889_v16 = vadd.f32 %v875_v54, %v769_v9 }
  0xd0   : > { %v986_v55 = vpop.f32.mrf.mxu2  ;;  %v757_v57 = vpop.f32.mrf.mxu0 }
  0xd1   : > { %v1121_v56 = vpop.f32.mrf.mxu3  ;;  %v877_v58 = vpop.f32.mrf.mxu1  ;;  %v1000_v19 = vadd.f32 %v986_v55, %v889_v16  ;;  %v770_v20 = vadd.f32 %v757_v57, %v635_v14 }
  0xd3   : > { %v1135_v26 = vadd.f32 %v1121_v56, %v1000_v19  ;;  %v890_v27 = vadd.f32 %v877_v58, %v770_v20 }
  0xd8   : > { %v988_v61 = vpop.f32.mrf.mxu2  ;;  %v760_v62 = vpop.f32.mrf.mxu0 }
  0xd9   : > { %v880_v63 = vpop.f32.mrf.mxu1  ;;  %v1123_v2 = vpop.f32.mrf.mxu3  ;;  %v771_v10 = vadd.f32 %v760_v62, %v636_v5  ;;  %v1001_v30 = vadd.f32 %v988_v61, %v890_v27 }
  0xdb   : > { %v891_v17 = vadd.f32 %v880_v63, %v771_v10  ;;  %v1136_v36 = vadd.f32 %v1123_v2, %v1001_v30 }
  0xe0   : > { %v991_v11 = vpop.f32.mrf.mxu2  ;;  %v762_v12 = vpop.f32.mrf.mxu0 }
  0xe1   : > { %v882_v13 = vpop.f32.mrf.mxu1  ;;  %v1126_v18 = vpop.f32.mrf.mxu3  ;;  %v1002_v21 = vadd.f32 %v991_v11, %v891_v17  ;;  %v772_v22 = vadd.f32 %v762_v12, %v637_v15 }
  0xe3   : > { %v1137_v28 = vadd.f32 %v1126_v18, %v1002_v21  ;;  %v892_v29 = vadd.f32 %v882_v13, %v772_v22 }
  0xe8   : > { %v993_v23 = vpop.f32.mrf.mxu2  ;;  %v1241_v24 = vpop.f32.mrf.mxu0 }
  0xe9   : > { %v1246_v25 = vpop.f32.mrf.mxu1  ;;  %v1003_v31 = vadd.f32 %v993_v23, %v892_v29  ;;  %v1255_v32 = vadd.f32 %v1241_v24, %v1135_v26  ;;  %v1128_v35 = vpop.f32.mrf.mxu3 }
  0xea   : > { %v1257_v34 = vadd.f32 %v1246_v25, %v1137_v28 }
  0xeb   : > { %v1138_v37 = vadd.f32 %v1128_v35, %v1003_v31  ;;  %v1271_v38 = vadd.f32 %v1835_v33, %v1255_v32 }
  0xec   : > { %v1273_v39 = vadd.f32 %v1835_v33, %v1257_v34 }
  0xed   : > { %v1275_v44 = vmul.f32 0.1, %v1271_v38 }
  0xee   : > { %v1277_v45 = vmul.f32 0.1, %v1273_v39 }
  0xef   : > { %v1279_v50 = vmax.f32 %v1271_v38, %v1275_v44 }
  0xf0   : > { %v1243_v40 = vpop.f32.mrf.mxu0  ;;  %v1281_v51 = vmax.f32 %v1273_v39, %v1277_v45 }
  0xf1   : > { %v1248_v41 = vpop.f32.mrf.mxu1  ;;  %v1256_v42 = vadd.f32 %v1243_v40, %v1136_v36 }
  0xf2   : > { %v1258_v43 = vadd.f32 %v1248_v41, %v1138_v37 }
  0xf3   : > { %v1272_v46 = vadd.f32 %v1835_v33, %v1256_v42 }
  0xf4   : > { %v1274_v47 = vadd.f32 %v1835_v33, %v1258_v43 }
  0xf5   : > { %v1276_v48 = vmul.f32 0.1, %v1272_v46 }
  0xf6   : > { %v1278_v49 = vmul.f32 0.1, %v1274_v47 }
  0xf7   : > { %v1280_v52 = vmax.f32 %v1272_v46, %v1276_v48 }
  0xf8   : > { %v1282_v53 = vmax.f32 %v1274_v47, %v1278_v49 }
  0xf9   : > { %v1810_v54 = vpack.c.bf16 %v1280_v52, %v1279_v50 }
  0xfa   : > { %v1815_v55 = vpack.c.bf16 %v1282_v53, %v1281_v51 }
  0xfb   : > { %1811 = vst [vmem:[%s170_s20] sm:$0xff] %v1810_v54  }
  0xfc   : > { %1817 = vst [vmem:[%s170_s20 + $0x8] sm:$0xff] %v1815_v55  }
  0xfd PF: > { %s13_s12 = sadd.s32 1, %s1842_s12  }
  0xfe   : > { %p10_p4 = scmp.ge.s32.totalorder %s13_s12, 4  }
 0x100   :  { %12 = sbr.rel (!%p10_p4) target bundleno = 1 (0x1), region = 62 }

// kernel: _device_forward_impl.13
= control target key start
LH: loop header
LB: loop body
LE: loop exit
PB: predicated region body
PF: predicated region fallthrough
CT: control target
= control target key end

     0   :  { %s1311_s23 = smov 105   ;;  %s1312_s24 = smov 109   ;;  %vm553_vm0 = vcmask 531816   ;;  %vm123_vm1 = vcmask 203816   ;;  %v1313_v16 = vmov 0   ;;  %vm339_vm2 = vcmask 367816   ;;  %s2190_s1 = inlined_call_operand.vmem [shape: bf16[128,128], index: 1, kind: input, shape index: {}]   ;;  %s2191_s3 = inlined_call_operand.vmem [shape: f32[16,2], index: 3, kind: input, shape index: {}]   ;;  %s2192_s2 = inlined_call_operand.vmem [shape: f32[1,128], index: 2, kind: input, shape index: {}]   ;;  %s2193_s0 = inlined_call_operand.vmem [shape: bf16[16,128], index: 0, kind: input, shape index: {}]   ;;  %s2194_s4 = inlined_call_operand.vmem [shape: f32[16,128], index: 4, kind: output, shape index: {}]  }
   0x1   :  { %v1233_v0 = vld [vmem:[%s2190_s1 + $0x38] sm:$0xff]  ;;  %v1232_v1 = vld [vmem:[%s2190_s1 + $0x30] sm:$0xff]  ;;  %v1363_v2 = vld [vmem:[%s2191_s3] sm:$0xff]  ;;  %1252 = vset.pattern.permute.xlu0 %v1313_v16  ;;  %v1314_v19 = vmov 1   ;;  %v1315_v24 = vmov 2   ;;  %s1319_s14 = smov 123  }
   0x2   :  { %93 = vmatpush.bf16.msra.mxu0 %v1233_v0  ;;  %v1368_v3 = vld [vmem:[%s2191_s3 + $0x8] sm:$0xff]  ;;  %215 = vrot.lane.b32.xlu1 %v1363_v2, %s1311_s23  ;;  %v1230_v5 = vld [vmem:[%s2190_s1 + $0x20] sm:$0xff]  ;;  %v1229_v6 = vld [vmem:[%s2190_s1 + $0x18] sm:$0xff]  ;;  %s1320_s15 = smov 103   ;;  %s1321_s16 = smov 125   ;;  %vm767_vm3 = vcmask 695816  }
   0x3   :  { %431 = vrot.lane.b32.xlu2 %v1368_v3, %s1312_s24  ;;  %v1231_v4 = vld [vmem:[%s2190_s1 + $0x28] sm:$0xff]  ;;  %v1228_v7 = vld [vmem:[%s2190_s1 + $0x10] sm:$0xff]  ;;  %v1226_v9 = vld [vmem:[%s2190_s1] sm:$0xff]  ;;  %1253 = vset.pattern.permute.xlu1 %v1314_v19  ;;  %vm981_vm4 = vcmask 859816   ;;  %s1323_s17 = smov 117   ;;  %s1324_s18 = smov 63  }
   0x4   :  { %v1227_v8 = vld [vmem:[%s2190_s1 + $0x8] sm:$0xff]  ;;  %v1225_v10 = vld [vmem:[%s2193_s0] sm:$0xff]  ;;  %1254 = vset.pattern.permute.xlu2 %v1315_v24  ;;  %s1316_s0 = smov 126   ;;  %s1317_s1 = smov 113   ;;  %vm144_vm5 = vcmask 162816  }
   0x5   :  { %v1262_v11 = vld [vmem:[%s2192_s2] ss:$0 sm:$0xff]  ;;  %s1318_s2 = smov 83   ;;  %s1325_s19 = smov 43  }
   0x6   :  { %94 = vmatpush.bf16.msra.mxu0 %v1232_v1  ;;  %s1327_s20 = smov 121  }
   0xa   :  { %95 = vmatpush.bf16.msra.mxu0 %v1231_v4  ;;  %217 = vrot.lane.b32.xlu1 %v1368_v3, %s1311_s23 }
   0xe   :  { %96 = vmatpush.bf16.msra.mxu0 %v1230_v5 }
  0x12   :  { %97 = vmatpush.bf16.msra.mxu0 %v1229_v6  ;;  %429 = vrot.lane.b32.xlu1 %v1363_v2, %s1312_s24 }
  0x16   :  { %98 = vmatpush.bf16.msra.mxu0 %v1228_v7 }
  0x1a   :  { %99 = vmatpush.bf16.msra.mxu0 %v1227_v8 }
  0x1e   :  { %100 = vmatpush.bf16.msra.mxu0 %v1226_v9 }
  0x21   :  { %101 = vmatmul.bf16.vlgmr.msra.gmra.mxu0 %v1225_v10 }
  0x5d   :  { %v1456_v0 = vpop.permute.xlu2 %431 }
  0x74   :  { %v216_v60 = vpop.permute.xlu1 %215 }
  0x7c   :  { %v1454_v62 = vpop.permute.xlu1 %217 }
  0x84   :  { %v430_v63 = vpop.permute.xlu1 %429 }
  0x9e   :  { %v102_v12 = vpop.f32.mrf.mxu0 }
  0x9f   :  { %v1398_v13 = vadd.f32 %v1262_v11, %v102_v12 }
  0xa1   :  { %v554_v14 = vsel %vm553_vm0, %v1398_v13, -inf  ;;  %v124_v15 = vsel %vm123_vm1, %v1398_v13, -inf  ;;  %v340_v22 = vsel %vm339_vm2, %v1398_v13, -inf  ;;  %v225_v23 = vmul.f32 1.442695, %v1398_v13 }
  0xa2   :  { %555 = vmax.xlane.f32.xlu1 %v554_v14  ;;  %125 = vmax.xlane.f32.xlu0 %v124_v15  ;;  %v115_v26 = vmul.f32 0.5, %v1398_v13 }
  0xa3   :  { %1263 = vpow2.f32 %v225_v23 }
  0xa4   :  { %1265 = vtanh.f32 %v115_v26 }
  0xa6   :  { %v104_v17 = vpop.f32.mrf.mxu0 }
  0xa7   :  { %v1403_v18 = vadd.f32 %v1262_v11, %v104_v17 }
  0xa9   :  { %v557_v20 = vsel %vm553_vm0, %v1403_v18, -inf  ;;  %v343_v21 = vsel %vm339_vm2, %v1403_v18, -inf  ;;  %v127_v25 = vsel %vm123_vm1, %v1403_v18, -inf  ;;  %v1412_v27 = vpop.eup %1263  ;;  %v116_v29 = vmul.f32 0.5, %v1403_v18 }
  0xaa   :  { %558 = vmax.xlane.f32.xlu2 %v557_v20  ;;  %344 = vmax.xlane.f32.xlu1 %v343_v21  ;;  %v229_v28 = vmul.f32 38.08, %v1412_v27  ;;  %v231_v30 = vmul.f32 63.36, %v1412_v27  ;;  %v1266_v31 = vpop.eup %1265  ;;  %v445_v35 = vmul.f32 146.88, %v1412_v27 }
  0xab   :  { %341 = vmax.xlane.f32.xlu0 %v340_v22  ;;  %v119_v33 = vadd.f32 1.0, %v1266_v31  ;;  %1267 = vtanh.f32 %v116_v29  ;;  %v227_v36 = vmul.f32 1.442695, %v1403_v18  ;;  %v443_v41 = vmul.f32 89.28, %v1412_v27 }
  0xac   :  { %v233_v32 = vmul.f32 0.5, %v229_v28  ;;  %v262_v34 = vmul.f32 0.5, %v231_v30  ;;  %v476_v39 = vmul.f32 0.5, %v445_v35  ;;  %v659_v49 = vmul.f32 285.44, %v1412_v27 }
  0xad   :  { %v1421_v37 = vmul.f32 0.5, %v119_v33  ;;  %1269 = vpow2.f32 %v227_v36  ;;  %v447_v44 = vmul.f32 0.5, %v443_v41  ;;  %v657_v59 = vmul.f32 144.96, %v1412_v27 }
  0xae   :  { %v690_v52 = vmul.f32 0.5, %v659_v49 }
  0xaf   :  { %v661_v61 = vmul.f32 0.5, %v657_v59  ;;  %v221_v14 = vadd.f32 %v216_v60, %v1421_v37 }
  0xb1   :  { %v1268_v38 = vpop.eup %1267  ;;  %v223_v17 = vmul.f32 32.0, %v221_v14 }
  0xb2   :  { %v120_v40 = vadd.f32 1.0, %v1268_v38 }
  0xb3   :  { %128 = vmax.xlane.f32.xlu0 %v127_v25  ;;  %v1429_v43 = vpop.eup %1269 }
  0xb4   :  { %v1427_v42 = vmul.f32 0.5, %v120_v40  ;;  %v446_v45 = vmul.f32 146.88, %v1429_v43  ;;  %v232_v46 = vmul.f32 63.36, %v1429_v43 }
  0xb5   :  { %v444_v50 = vmul.f32 89.28, %v1429_v43  ;;  %v230_v51 = vmul.f32 38.08, %v1429_v43  ;;  %v658_v55 = vmul.f32 144.96, %v1429_v43 }
  0xb6   :  { %v477_v47 = vmul.f32 0.5, %v446_v45  ;;  %v263_v48 = vmul.f32 0.5, %v232_v46  ;;  %v660_v57 = vmul.f32 285.44, %v1429_v43 }
  0xb7   :  { %v448_v53 = vmul.f32 0.5, %v444_v50  ;;  %v234_v54 = vmul.f32 0.5, %v230_v51  ;;  %v662_v56 = vmul.f32 0.5, %v658_v55 }
  0xb8   :  { %v691_v58 = vmul.f32 0.5, %v660_v57 }
  0xc2   :  { %237 = vrot.lane.b32.xlu2 %v233_v32, %s1316_s0 }
  0xc3   :  { %266 = vrot.lane.b32.xlu1 %v262_v34, %s1316_s0  ;;  %v435_v34 = vadd.f32 %v430_v63, %v1421_v37 }
  0xc5   :  { %v437_v40 = vmul.f32 32.0, %v435_v34 }
  0xc7   :  { %183 = vperm.xlu0 %1252, %v1421_v37  }
  0xca   :  { %480 = vrot.lane.b32.xlu2 %v476_v39, %s1316_s0 }
  0xcb   :  { %398 = vperm.xlu1 %1253, %v1421_v37  }
  0xcf   :  { %1256 = vset.pattern.permute.xlu0 %v1314_v19 }
  0xd0   :  { %403 = vperm.xlu0 %1256, %v1427_v42  }
  0xd2   :  { %612 = vperm.xlu2 %1254, %v1421_v37  }
  0xd3   :  { %451 = vrot.lane.b32.xlu1 %v447_v44, %s1316_s0 }
  0xd4   :  { %1255 = vset.pattern.permute.xlu1 %v1313_v16 }
  0xd8   :  { %482 = vrot.lane.b32.xlu0 %v477_v47, %s1316_s0 }
  0xda   :  { %268 = vrot.lane.b32.xlu2 %v263_v48, %s1316_s0 }
  0xdb   :  { %188 = vperm.xlu1 %1255, %v1427_v42  }
  0xe0   :  { %694 = vrot.lane.b32.xlu0 %v690_v52, %s1316_s0 }
  0xe2   :  { %453 = vrot.lane.b32.xlu2 %v448_v53, %s1316_s0 }
  0xe3   :  { %239 = vrot.lane.b32.xlu1 %v234_v54, %s1316_s0 }
  0xe4   :  { %1257 = vset.pattern.permute.xlu1 %v1315_v24 }
  0xe8   :  { %667 = vrot.lane.b32.xlu0 %v662_v56, %s1316_s0 }
  0xea   :  { %645 = vrot.lane.b32.xlu2 %v1368_v3, %s1317_s1 }
  0xeb   :  { %617 = vperm.xlu1 %1257, %v1427_v42  }
  0xf2   :  { %696 = vrot.lane.b32.xlu2 %v691_v58, %s1316_s0 }
  0xf3   :  { %643 = vrot.lane.b32.xlu1 %v1363_v2, %s1317_s1 }
  0xfb   :  { %665 = vrot.lane.b32.xlu1 %v661_v61, %s1316_s0 }
 0x115   :  { %v556_v1 = vpop.xlane.xlu1 %555  ;;  %v126_v4 = vpop.xlane.xlu0 %125 }
 0x116   :  { %v560_v5 = vsub.f32 %v1398_v13, %v556_v1  ;;  %v130_v6 = vsub.f32 %v1398_v13, %v126_v4 }
 0x118   :  { %v562_v7 = vmul.f32 1.442695, %v560_v5  ;;  %v132_v8 = vmul.f32 1.442695, %v130_v6 }
 0x11a   :  { %1271 = vpow2.f32 %v562_v7 }
 0x11b   :  { %1273 = vpow2.f32 %v132_v8 }
 0x11d   :  { %v1460_v9 = vpop.xlane.xlu2 %558  ;;  %v345_v26 = vpop.xlane.xlu1 %344 }
 0x11e   :  { %v342_v10 = vpop.xlane.xlu0 %341  ;;  %v347_v35 = vsub.f32 %v1403_v18, %v345_v26 }
 0x11f   :  { %v346_v11 = vsub.f32 %v1398_v13, %v342_v10 }
 0x120   :  { %v1463_v12 = vpop.eup %1271  ;;  %v350_v45 = vmul.f32 1.442695, %v347_v35  ;;  %v222_v35 = vadd.f32 %v1454_v62, %v1427_v42 }
 0x121   :  { %v1466_v15 = vpop.eup %1273  ;;  %v348_v16 = vmul.f32 1.442695, %v346_v11  ;;  %568 = vrot.lane.b32.xlu0 %v1463_v12, %s1318_s2 }
 0x122   :  { %138 = vrot.lane.b32.xlu1 %v1466_v15, %s1319_s14 }
 0x123   :  { %1275 = vpow2.f32 %v348_v16 }
 0x125   :  { %v238_v19 = vpop.permute.xlu2 %237 }
 0x126   :  { %v243_v20 = vsub.f32 %v223_v17, %v238_v19  ;;  %v129_v21 = vpop.xlane.xlu0 %128  ;;  %v291_v29 = vadd.f32 %v238_v19, %v223_v17 }
 0x127   :  { %v131_v22 = vsub.f32 %v1403_v18, %v129_v21 }
 0x128   :  { %v245_v23 = vmul.f32 0.0078125, %v243_v20  ;;  %v293_v33 = vmul.f32 0.0078125, %v291_v29  ;;  %v561_v20 = vsub.f32 %v1403_v18, %v1460_v9 }
 0x129   :  { %v134_v24 = vmul.f32 1.442695, %v131_v22  ;;  %v1473_v25 = vpop.eup %1275 }
 0x12a   :  { %354 = vrot.lane.b32.xlu2 %v1473_v25, %s1320_s15  ;;  %v247_v28 = vmax.f32 %v245_v23, 0.0  ;;  %v295_v36 = vmax.f32 %v293_v33, 0.0  ;;  %v564_v23 = vmul.f32 1.442695, %v561_v20 }
 0x12b   :  { %1277 = vpow2.f32 %v134_v24 }
 0x12c   :  { %v249_v32 = vmin.f32 %v247_v28, 1.0  ;;  %v297_v49 = vmin.f32 %v295_v36, 1.0  ;;  %1279 = vpow2.f32 %v350_v45 }
 0x12d   :  { %v481_v30 = vpop.permute.xlu2 %480  ;;  %1281 = vpow2.f32 %v564_v23 }
 0x12e   :  { %v486_v46 = vsub.f32 %v437_v40, %v481_v30  ;;  %v524_v55 = vadd.f32 %v481_v30, %v437_v40 }
 0x130   :  { %v488_v52 = vmul.f32 0.0078125, %v486_v46  ;;  %v526_v59 = vmul.f32 0.0078125, %v524_v55 }
 0x131   :  { %v1477_v31 = vpop.eup %1277 }
 0x132   :  { %140 = vrot.lane.b32.xlu1 %v1477_v31, %s1319_s14  ;;  %253 = vrot.lane.b32.xlu2 %v249_v32, %s1319_s14  ;;  %v490_v58 = vmax.f32 %v488_v52, 0.0  ;;  %v1493_v60 = vpop.eup %1279  ;;  %v528_v63 = vmax.f32 %v526_v59, 0.0 }
 0x133   :  { %v1520_v9 = vpop.eup %1281 }
 0x134   :  { %v492_v61 = vmin.f32 %v490_v58, 1.0  ;;  %v530_v8 = vmin.f32 %v528_v63, 1.0 }
 0x135   :  { %v267_v38 = vpop.permute.xlu1 %266  ;;  %v1484_v39 = vpop.permute.xlu2 %612 }
 0x136   :  { %v272_v41 = vsub.f32 %v223_v17, %v267_v38  ;;  %v310_v44 = vadd.f32 %v267_v38, %v223_v17 }
 0x138   :  { %v274_v47 = vmul.f32 0.0078125, %v272_v41  ;;  %v312_v48 = vmul.f32 0.0078125, %v310_v44  ;;  %v224_v41 = vmul.f32 32.0, %v222_v35 }
 0x139   :  { %v1500_v10 = vpop.permute.xlu0 %183 }
 0x13a   :  { %v276_v50 = vmax.f32 %v274_v47, 0.0  ;;  %v314_v51 = vmax.f32 %v312_v48, 0.0  ;;  %301 = vrot.lane.b32.xlu2 %v297_v49, %s1321_s16 }
 0x13c   :  { %v278_v53 = vmin.f32 %v276_v50, 1.0  ;;  %v316_v54 = vmin.f32 %v314_v51, 1.0  ;;  %v436_v51 = vadd.f32 %v1456_v0, %v1427_v42 }
 0x13d   :  { %v1487_v56 = vpop.permute.xlu2 %268  ;;  %v1489_v57 = vpop.permute.xlu1 %398 }
 0x13e   :  { %320 = vrot.lane.b32.xlu1 %v316_v54, %s1321_s16  ;;  %282 = vrot.lane.b32.xlu0 %v278_v53, %s1319_s14  ;;  %v273_v47 = vsub.f32 %v224_v41, %v1487_v56  ;;  %v311_v20 = vadd.f32 %v1487_v56, %v224_v41 }
 0x140   :  { %v275_v55 = vmul.f32 0.0078125, %v273_v47  ;;  %v313_v35 = vmul.f32 0.0078125, %v311_v20 }
 0x142   :  { %356 = vrot.lane.b32.xlu2 %v1493_v60, %s1320_s15  ;;  %v1509_v24 = vpop.permute.xlu0 %403 }
 0x145   :  { %v1497_v1 = vpop.permute.xlu2 %453  ;;  %v452_v4 = vpop.permute.xlu1 %451 }
 0x146   :  { %v457_v5 = vsub.f32 %v437_v40, %v452_v4  ;;  %496 = vrot.lane.b32.xlu1 %v492_v61, %s1319_s14  ;;  %v505_v7 = vadd.f32 %v452_v4, %v437_v40 }
 0x148   :  { %v459_v6 = vmul.f32 0.0078125, %v457_v5  ;;  %v507_v16 = vmul.f32 0.0078125, %v505_v7  ;;  %v438_v5 = vmul.f32 32.0, %v436_v51  ;;  %v277_v7 = vmax.f32 %v275_v55, 0.0 }
 0x14a   :  { %v461_v11 = vmax.f32 %v459_v6, 0.0  ;;  %534 = vrot.lane.b32.xlu2 %v530_v8, %s1321_s16  ;;  %v509_v21 = vmax.f32 %v507_v16, 0.0  ;;  %v483_v34 = vpop.permute.xlu0 %482  ;;  %v458_v8 = vsub.f32 %v438_v5, %v1497_v1 }
 0x14c   :  { %v463_v14 = vmin.f32 %v461_v11, 1.0  ;;  %v511_v26 = vmin.f32 %v509_v21, 1.0  ;;  %v460_v21 = vmul.f32 0.0078125, %v458_v8 }
 0x14d   :  { %v646_v17 = vpop.permute.xlu2 %645  ;;  %v1503_v19 = vpop.permute.xlu1 %188 }
 0x14e   :  { %467 = vrot.lane.b32.xlu0 %v463_v14, %s1319_s14  ;;  %v650_v22 = vadd.f32 %v646_v17, %v1427_v42  ;;  %v279_v17 = vmin.f32 %v277_v7, 1.0 }
 0x150   :  { %v1511_v28 = vmul.f32 32.0, %v650_v22 }
 0x152   :  { %v695_v44 = vpop.permute.xlu0 %694 }
 0x155   :  { %v1513_v29 = vpop.permute.xlu2 %696  ;;  %v240_v30 = vpop.permute.xlu1 %239 }
 0x156   :  { %v1517_v32 = vadd.f32 %v1513_v29, %v1511_v28  ;;  %515 = vrot.lane.b32.xlu0 %v511_v26, %s1321_s16  ;;  %v244_v48 = vsub.f32 %v224_v41, %v240_v30  ;;  %v292_v11 = vadd.f32 %v240_v30, %v224_v41  ;;  %v525_v30 = vadd.f32 %v483_v34, %v438_v5 }
 0x157   :  { %v487_v41 = vsub.f32 %v438_v5, %v483_v34 }
 0x158   :  { %v246_v58 = vmul.f32 0.0078125, %v244_v48  ;;  %v294_v23 = vmul.f32 0.0078125, %v292_v11  ;;  %v527_v47 = vmul.f32 0.0078125, %v525_v30  ;;  %v1322_v11 = vmov 3  }
 0x159   :  { %1258 = vset.pattern.permute.xlu0 %v1322_v11  ;;  %1259 = vset.pattern.permute.xlu1 %v1322_v11 }
 0x15a   :  { %v248_v0 = vmax.f32 %v246_v58, 0.0 }
 0x15c   :  { %v250_v22 = vmin.f32 %v248_v0, 1.0 }
 0x15d   :  { %v1522_v33 = vpop.permute.xlu1 %617 }
 0x15e   :  { %570 = vrot.lane.b32.xlu0 %v1520_v9, %s1318_s2 }
 0x165   :  { %v644_v36 = vpop.permute.xlu1 %643 }
 0x166   :  { %v649_v38 = vadd.f32 %v644_v36, %v1421_v37  ;;  %v506_v36 = vadd.f32 %v1497_v1, %v438_v5  ;;  %v489_v1 = vmul.f32 0.0078125, %v487_v41 }
 0x168   :  { %v651_v40 = vmul.f32 32.0, %v649_v38  ;;  %v462_v38 = vmax.f32 %v460_v21, 0.0  ;;  %v491_v34 = vmax.f32 %v489_v1, 0.0 }
 0x16a   :  { %v700_v45 = vsub.f32 %v651_v40, %v695_v44  ;;  %v738_v46 = vadd.f32 %v695_v44, %v651_v40  ;;  %v464_v56 = vmin.f32 %v462_v38, 1.0 }
 0x16c   :  { %v702_v49 = vmul.f32 0.0078125, %v700_v45  ;;  %v740_v50 = vmul.f32 0.0078125, %v738_v46  ;;  %v315_v45 = vmax.f32 %v313_v35, 0.0  ;;  %v508_v46 = vmul.f32 0.0078125, %v506_v36 }
 0x16d   :  { %v666_v52 = vpop.permute.xlu1 %665  ;;  %v871_v36 = vmul.f32 257.92, %v1412_v27 }
 0x16e   :  { %v671_v53 = vsub.f32 %v651_v40, %v666_v52  ;;  %v704_v54 = vmax.f32 %v702_v49, 0.0  ;;  %v742_v62 = vmax.f32 %v740_v50, 0.0  ;;  %v719_v61 = vadd.f32 %v666_v52, %v651_v40  ;;  %v668_v49 = vpop.permute.xlu0 %667 }
 0x16f   :  { %v296_v40 = vmax.f32 %v294_v23, 0.0  ;;  %v317_v50 = vmin.f32 %v315_v45, 1.0  ;;  %v510_v51 = vmax.f32 %v508_v46, 0.0  ;;  %v529_v52 = vmax.f32 %v527_v47, 0.0 }
 0x170   :  { %v673_v59 = vmul.f32 0.0078125, %v671_v53  ;;  %v706_v63 = vmin.f32 %v704_v54, 1.0  ;;  %v744_v4 = vmin.f32 %v742_v62, 1.0  ;;  %v721_v16 = vmul.f32 0.0078125, %v719_v61 }
 0x171   :  { %v298_v48 = vmin.f32 %v296_v40, 1.0  ;;  %v701_v53 = vsub.f32 %v1511_v28, %v1513_v29  ;;  %v672_v54 = vsub.f32 %v1511_v28, %v668_v49  ;;  %v512_v62 = vmin.f32 %v510_v51, 1.0 }
 0x172   :  { %v675_v6 = vmax.f32 %v673_v59, 0.0  ;;  %710 = vrot.lane.b32.xlu1 %v706_v63, %s1319_s14  ;;  %748 = vrot.lane.b32.xlu0 %v744_v4, %s1321_s16  ;;  %v723_v26 = vmax.f32 %v721_v16, 0.0  ;;  %v531_v55 = vmin.f32 %v529_v52, 1.0  ;;  %v493_v61 = vmin.f32 %v491_v34, 1.0 }
 0x173   :  { %v703_v58 = vmul.f32 0.0078125, %v701_v53  ;;  %v674_v59 = vmul.f32 0.0078125, %v672_v54  ;;  %v720_v5 = vadd.f32 %v668_v49, %v1511_v28  ;;  %v768_v28 = vsel %vm767_vm3, %v1398_v13, -inf }
 0x174   :  { %v677_v14 = vmin.f32 %v675_v6, 1.0  ;;  %v725_v44 = vmin.f32 %v723_v26, 1.0  ;;  %v985_v16 = vsel %vm981_vm4, %v1403_v18, -inf  ;;  %v875_v38 = vmul.f32 0.5, %v871_v36 }
 0x175   :  { %v705_v63 = vmax.f32 %v703_v58, 0.0  ;;  %v676_v4 = vmax.f32 %v674_v59, 0.0  ;;  %v722_v7 = vmul.f32 0.0078125, %v720_v5 }
 0x176   :  { %681 = vrot.lane.b32.xlu2 %v677_v14, %s1319_s14  ;;  %v771_v14 = vsel %vm767_vm3, %v1403_v18, -inf }
 0x177   :  { %v707_v29 = vmin.f32 %v705_v63, 1.0  ;;  %v678_v6 = vmin.f32 %v676_v4, 1.0  ;;  %v724_v8 = vmax.f32 %v722_v7, 0.0 }
 0x179   :  { %v726_v0 = vmin.f32 %v724_v8, 1.0  ;;  %v872_v8 = vmul.f32 257.92, %v1429_v43 }
 0x17a   :  { %284 = vrot.lane.b32.xlu1 %v279_v17, %s1319_s14  ;;  %255 = vrot.lane.b32.xlu0 %v250_v22, %s1319_s14  ;;  %v982_v17 = vsel %vm981_vm4, %v1398_v13, -inf }
 0x17e   :  { %729 = vrot.lane.b32.xlu2 %v725_v44, %s1321_s16 }
 0x182   :  { %469 = vrot.lane.b32.xlu1 %v464_v56, %s1319_s14  ;;  %303 = vrot.lane.b32.xlu0 %v298_v48, %s1321_s16 }
 0x184   :  { %v1610_v5 = vpop.permute.xlu2 %354 }
 0x186   :  { %322 = vrot.lane.b32.xlu2 %v317_v50, %s1321_s16 }
 0x18a   :  { %517 = vrot.lane.b32.xlu1 %v512_v62, %s1321_s16  ;;  %536 = vrot.lane.b32.xlu0 %v531_v55, %s1321_s16 }
 0x18c   :  { %v1620_v11 = vpop.permute.xlu2 %253 }
 0x18e   :  { %498 = vrot.lane.b32.xlu2 %v493_v61, %s1319_s14 }
 0x192   :  { %683 = vrot.lane.b32.xlu1 %v678_v6, %s1319_s14  ;;  %712 = vrot.lane.b32.xlu0 %v707_v29, %s1319_s14 }
 0x193   :  { %v1561_v21 = vpop.permute.xlu0 %568 }
 0x194   :  { %v1559_v20 = vpop.permute.xlu1 %138  ;;  %v1628_v36 = vpop.permute.xlu2 %301 }
 0x19a   :  { %731 = vrot.lane.b32.xlu1 %v726_v0, %s1321_s16 }
 0x1a4   :  { %v1563_v22 = vpop.permute.xlu1 %140 }
 0x1b0   :  { %v1565_v23 = vpop.permute.xlu0 %282  ;;  %v1568_v26 = vpop.permute.xlu1 %320 }
 0x1b8   :  { %v1575_v30 = vpop.permute.xlu1 %496 }
 0x1bc   :  { %772 = vmax.xlane.f32.xlu0 %v771_v14  ;;  %v876_v14 = vmul.f32 0.5, %v872_v8 }
 0x1c0   :  { %v1570_v35 = vpop.permute.xlu0 %467 }
 0x1c4   :  { %769 = vmax.xlane.f32.xlu1 %v768_v28  ;;  %986 = vmax.xlane.f32.xlu0 %v985_v16  ;;  %v873_v28 = vmul.f32 169.28, %v1412_v27 }
 0x1c6   :  { %v904_v16 = vmul.f32 0.5, %v873_v28 }
 0x1c8   :  { %v1578_v40 = vpop.permute.xlu0 %515 }
 0x1c9   :  { %2195 = vst [vmem:[#allocation3_spill] sm:$0xff] %v1578_v40 }
 0x1cc   :  { %983 = vmax.xlane.f32.xlu1 %v982_v17 }
 0x1d0   :  { %v1582_v45 = vpop.permute.xlu0 %570 }
 0x1d8   :  { %826 = vperm.xlu0 %1258, %v1421_v37  }
 0x1e4   :  { %v1580_v44 = vpop.permute.xlu1 %710  ;;  %v1586_v56 = vpop.permute.xlu0 %748 }
 0x1e5   :  { %831 = vperm.xlu1 %1259, %v1427_v42   ;;  %2196 = vst [vmem:[#allocation4_spill] sm:$0xff] %v1580_v44 }
 0x1e6   :  { %2198 = vst [vmem:[#allocation6_spill] sm:$0xff] %v1586_v56 }
 0x1ec   :  { %v1584_v46 = vpop.permute.xlu1 %284  ;;  %v1590_v47 = vpop.permute.xlu0 %255 }
 0x1ed   :  { %859 = vrot.lane.b32.xlu1 %v1368_v3, %s1323_s17  ;;  %2197 = vst [vmem:[#allocation5_spill] sm:$0xff] %v1584_v46 }
 0x1ee   :  { %2200 = vst [vmem:[#allocation8_spill] sm:$0xff] %v1590_v47 }
 0x1f4   :  { %v1588_v41 = vpop.permute.xlu1 %469  ;;  %v1594_v49 = vpop.permute.xlu0 %303 }
 0x1f5   :  { %879 = vrot.lane.b32.xlu1 %v875_v38, %s1316_s0  ;;  %2199 = vst [vmem:[#allocation7_spill] sm:$0xff] %v1588_v41 }
 0x1f6   :  { %2202 = vst [vmem:[#allocation10_spill] sm:$0xff] %v1594_v49 }
 0x1fc   :  { %v1592_v48 = vpop.permute.xlu1 %517  ;;  %v1598_v51 = vpop.permute.xlu0 %536 }
 0x1fd   :  { %2201 = vst [vmem:[#allocation9_spill] sm:$0xff] %v1592_v48 }
 0x1fe   :  { %2204 = vst [vmem:[#allocation12_spill] sm:$0xff] %v1598_v51 }
 0x204   :  { %v1596_v50 = vpop.permute.xlu1 %683  ;;  %v1602_v52 = vpop.permute.xlu0 %712 }
 0x205   :  { %2203 = vst [vmem:[#allocation11_spill] sm:$0xff] %v1596_v50 }
 0x206   :  { %2206 = vst [vmem:[#allocation14_spill] sm:$0xff] %v1602_v52 }
 0x20c   :  { %v1600_v1 = vpop.permute.xlu1 %731 }
 0x20d   :  { %2205 = vst [vmem:[#allocation13_spill] sm:$0xff] %v1600_v1  ;;  %v741_v1 = vmul.f32 0.0078125, %v1517_v32 }
 0x20f   :  { %v743_v50 = vmax.f32 %v741_v1, 0.0 }
 0x22f   :  { %v773_v54 = vpop.xlane.xlu0 %772 }
 0x230   :  { %v775_v55 = vsub.f32 %v1403_v18, %v773_v54 }
 0x232   :  { %v778_v58 = vmul.f32 1.442695, %v775_v55 }
 0x237   :  { %v770_v53 = vpop.xlane.xlu1 %769  ;;  %v987_v6 = vpop.xlane.xlu0 %986 }
 0x238   :  { %v774_v62 = vsub.f32 %v1398_v13, %v770_v53 }
 0x23a   :  { %v776_v34 = vmul.f32 1.442695, %v774_v62 }
 0x23c   :  { %1283 = vpow2.f32 %v776_v34 }
 0x23d   :  { %1285 = vpow2.f32 %v778_v58 }
 0x23f   :  { %v984_v59 = vpop.xlane.xlu1 %983 }
 0x240   :  { %v988_v61 = vsub.f32 %v1398_v13, %v984_v59  ;;  %v989_v13 = vsub.f32 %v1403_v18, %v987_v6  ;;  %v1632_v18 = vpop.permute.xlu2 %356 }
 0x242   :  { %v1607_v63 = vpop.eup %1283  ;;  %v990_v4 = vmul.f32 1.442695, %v988_v61  ;;  %v992_v0 = vmul.f32 1.442695, %v989_v13 }
 0x243   :  { %782 = vrot.lane.b32.xlu2 %v1607_v63, %s1324_s18  ;;  %v1612_v29 = vpop.eup %1285 }
 0x244   :  { %1287 = vpow2.f32 %v990_v4 }
 0x245   :  { %1289 = vpow2.f32 %v992_v0 }
 0x248   :  { %v1634_v38 = vpop.permute.xlu2 %534 }
 0x249   :  { %2207 = vst [vmem:[#allocation15_spill] sm:$0xff] %v1634_v38 }
 0x24a   :  { %v1614_v7 = vpop.eup %1287  ;;  %v1650_v28 = vpop.permute.xlu0 %826 }
 0x24b   :  { %996 = vrot.lane.b32.xlu0 %v1614_v7, %s1325_s19  ;;  %784 = vrot.lane.b32.xlu2 %v1612_v29, %s1324_s18  ;;  %v1626_v17 = vpop.eup %1289 }
 0x250   :  { %v1636_v53 = vpop.permute.xlu2 %681 }
 0x251   :  { %2208 = vst [vmem:[#allocation16_spill] sm:$0xff] %v1636_v53 }
 0x253   :  { %881 = vrot.lane.b32.xlu0 %v876_v14, %s1316_s0  ;;  %857 = vrot.lane.b32.xlu2 %v1363_v2, %s1323_s17 }
 0x257   :  { %v1644_v55 = vpop.permute.xlu1 %831 }
 0x258   :  { %v1638_v54 = vpop.permute.xlu2 %729 }
 0x259   :  { %2209 = vst [vmem:[#allocation17_spill] sm:$0xff] %v1638_v54  ;;  %v745_v54 = vmin.f32 %v743_v50, 1.0 }
 0x25b   :  { %908 = vrot.lane.b32.xlu0 %v904_v16, %s1316_s0  ;;  %998 = vrot.lane.b32.xlu2 %v1626_v17, %s1325_s19 }
 0x25f   :  { %v860_v61 = vpop.permute.xlu1 %859 }
 0x260   :  { %v1640_v62 = vpop.permute.xlu2 %322  ;;  %v864_v44 = vadd.f32 %v860_v61, %v1427_v42 }
 0x261   :  { %2210 = vst [vmem:[#allocation18_spill] sm:$0xff] %v1640_v62 }
 0x267   :  { %v880_v8 = vpop.permute.xlu1 %879 }
 0x268   :  { %v1642_v34 = vpop.permute.xlu2 %498 }
 0x269   :  { %2211 = vst [vmem:[#allocation19_spill] sm:$0xff] %v1642_v34 }
 0x29d   :  { %v783_v58 = vpop.permute.xlu2 %782 }
 0x2a5   :  { %v785_v59 = vpop.permute.xlu2 %784 }
 0x2ad   :  { %v858_v4 = vpop.permute.xlu2 %857 }
 0x2ae   :  { %v863_v6 = vadd.f32 %v858_v4, %v1421_v37  ;;  %v1656_v4 = vmul.f32 32.0, %v864_v44 }
 0x2b0   :  { %v1647_v13 = vmul.f32 32.0, %v863_v6  ;;  %v874_v6 = vmul.f32 169.28, %v1429_v43 }
 0x2b2   :  { %v885_v0 = vsub.f32 %v1647_v13, %v880_v8 }
 0x2b4   :  { %v887_v14 = vmul.f32 0.0078125, %v885_v0  ;;  %v933_v0 = vadd.f32 %v880_v8, %v1647_v13 }
 0x2b6   :  { %v889_v16 = vmax.f32 %v887_v14, 0.0  ;;  %v935_v51 = vmul.f32 0.0078125, %v933_v0 }
 0x2b8   :  { %v891_v52 = vmin.f32 %v889_v16, 1.0  ;;  %v905_v16 = vmul.f32 0.5, %v874_v6  ;;  %v937_v1 = vmax.f32 %v935_v51, 0.0  ;;  %v145_v51 = vsel %vm144_vm5, %v1559_v20, 0.0 }
 0x2ba   :  { %895 = vrot.lane.b32.xlu2 %v891_v52, %s1319_s14  ;;  %v939_v8 = vmin.f32 %v937_v1, 1.0 }
 0x2bd   :  { %v997_v56 = vpop.permute.xlu0 %996 }
 0x2be   :  { %v1002_v20 = vsel %vm144_vm5, %v997_v56, 0.0 }
 0x2c2   :  { %750 = vrot.lane.b32.xlu2 %v745_v54, %s1321_s16 }
 0x2c5   :  { %v882_v53 = vpop.permute.xlu0 %881 }
 0x2c6   :  { %v886_v14 = vsub.f32 %v1656_v4, %v882_v53  ;;  %v934_v44 = vadd.f32 %v882_v53, %v1656_v4  ;;  %v360_v53 = vsel %vm144_vm5, %v1610_v5, 0.0 }
 0x2c8   :  { %v888_v32 = vmul.f32 0.0078125, %v886_v14  ;;  %v936_v14 = vmul.f32 0.0078125, %v934_v44 }
 0x2ca   :  { %v890_v52 = vmax.f32 %v888_v32, 0.0  ;;  %910 = vrot.lane.b32.xlu2 %v905_v16, %s1316_s0  ;;  %v938_v0 = vmax.f32 %v936_v14, 0.0  ;;  %v999_v16 = vpop.permute.xlu2 %998 }
 0x2cb   :  { %v1005_v5 = vsel %vm144_vm5, %v999_v16, 0.0 }
 0x2cc   :  { %v892_v50 = vmin.f32 %v890_v52, 1.0  ;;  %v940_v32 = vmin.f32 %v938_v0, 1.0  ;;  %v1326_v52 = vmov 4   ;;  %v1088_v0 = vmul.f32 340.8, %v1429_v43 }
 0x2cd   :  { %v909_v61 = vpop.permute.xlu0 %908  ;;  %1261 = vset.pattern.permute.xlu1 %v1326_v52  ;;  %1260 = vset.pattern.permute.xlu0 %v1326_v52 }
 0x2ce   :  { %v914_v54 = vsub.f32 %v1647_v13, %v909_v61  ;;  %897 = vrot.lane.b32.xlu1 %v892_v50, %s1319_s14  ;;  %v791_v50 = vsel %vm144_vm5, %v785_v59, 0.0  ;;  %v952_v59 = vadd.f32 %v909_v61, %v1647_v13  ;;  %v574_v13 = vsel %vm144_vm5, %v1561_v21, 0.0 }
 0x2cf   :  { %v363_v61 = vsel %vm144_vm5, %v1632_v18, 0.0  ;;  %v1087_v21 = vmul.f32 340.8, %v1412_v27 }
 0x2d0   :  { %v916_v48 = vmul.f32 0.0078125, %v914_v54  ;;  %v954_v56 = vmul.f32 0.0078125, %v952_v59 }
 0x2d1   :  { %v1118_v52 = vmul.f32 0.5, %v1087_v21 }
 0x2d2   :  { %v918_v34 = vmax.f32 %v916_v48, 0.0  ;;  %943 = vrot.lane.b32.xlu2 %v939_v8, %s1321_s16  ;;  %v577_v48 = vsel %vm144_vm5, %v1582_v45, 0.0  ;;  %v148_v45 = vsel %vm144_vm5, %v1563_v22, 0.0  ;;  %v1119_v22 = vmul.f32 0.5, %v1088_v0 }
 0x2d4   :  { %v920_v6 = vmin.f32 %v918_v34, 1.0  ;;  %v788_v34 = vsel %vm144_vm5, %v783_v58, 0.0 }
 0x2d6   :  { %924 = vrot.lane.b32.xlu1 %v920_v6, %s1319_s14 }
 0x2de   :  { %945 = vrot.lane.b32.xlu1 %v940_v32, %s1321_s16  ;;  %v956_v32 = vmax.f32 %v954_v56, 0.0 }
 0x2fb   :  { %146 = vadd.xlane.f32.xlu2 %v145_v51  ;;  %v958_v51 = vmin.f32 %v956_v32, 1.0 }
 0x303   :  { %361 = vadd.xlane.f32.xlu2 %v360_v53  ;;  %v1085_v53 = vmul.f32 330.24, %v1412_v27 }
 0x308   :  { %578 = vadd.xlane.f32.xlu1 %v577_v48  ;;  %v1089_v48 = vmul.f32 0.5, %v1085_v53 }
 0x30b   :  { %789 = vadd.xlane.f32.xlu2 %v788_v34  ;;  %v1086_v34 = vmul.f32 330.24, %v1429_v43 }
 0x30d   :  { %v1090_v16 = vmul.f32 0.5, %v1086_v34 }
 0x310   :  { %792 = vadd.xlane.f32.xlu1 %v791_v50 }
 0x313   :  { %1003 = vadd.xlane.f32.xlu2 %v1002_v20 }
 0x314   :  { %v1677_v1 = vpop.permute.xlu2 %895 }
 0x315   :  { %2212 = vst [vmem:[#allocation20_spill] sm:$0xff] %v1677_v1 }
 0x318   :  { %1006 = vadd.xlane.f32.xlu1 %v1005_v5 }
 0x31b   :  { %149 = vadd.xlane.f32.xlu2 %v148_v45 }
 0x31c   :  { %v1682_v58 = vpop.permute.xlu2 %750 }
 0x31d   :  { %2213 = vst [vmem:[#allocation21_spill] sm:$0xff] %v1682_v58 }
 0x324   :  { %v911_v54 = vpop.permute.xlu2 %910 }
 0x325   :  { %v915_v44 = vsub.f32 %v1656_v4, %v911_v54  ;;  %v953_v18 = vadd.f32 %v911_v54, %v1656_v4 }
 0x327   :  { %v917_v8 = vmul.f32 0.0078125, %v915_v44 }
 0x329   :  { %v919_v14 = vmax.f32 %v917_v8, 0.0 }
 0x32b   :  { %v921_v6 = vmin.f32 %v919_v14, 1.0 }
 0x32c   :  { %v1706_v20 = vpop.permute.xlu2 %943 }
 0x32d   :  { %926 = vrot.lane.b32.xlu0 %v921_v6, %s1319_s14  ;;  %2214 = vst [vmem:[#allocation22_spill] sm:$0xff] %v1706_v20 }
 0x331   :  { %1045 = vperm.xlu1 %1261, %v1427_v42  }
 0x333   :  { %1124 = vrot.lane.b32.xlu2 %v1119_v22, %s1316_s0 }
 0x335   :  { %962 = vrot.lane.b32.xlu0 %v958_v51, %s1321_s16 }
 0x340   :  { %v1714_v27 = vpop.permute.xlu1 %897 }
 0x341   :  { %2216 = vst [vmem:[#allocation24_spill] sm:$0xff] %v1714_v27 }
 0x348   :  { %v1720_v54 = vpop.permute.xlu1 %924 }
 0x349   :  { %2218 = vst [vmem:[#allocation26_spill] sm:$0xff] %v1720_v54 }
 0x350   :  { %v1726_v14 = vpop.permute.xlu1 %945 }
 0x351   :  { %2219 = vst [vmem:[#allocation27_spill] sm:$0xff] %v1726_v14 }
 0x35f   :  { %575 = vadd.xlane.f32.xlu0 %v574_v13 }
 0x367   :  { %364 = vadd.xlane.f32.xlu0 %v363_v61 }
 0x36e   :  { %v1708_v43 = vpop.xlane.xlu2 %146 }
 0x36f   :  { %v160_v1 = vand.u32 2147483647, %v1708_v43  ;;  %v162_v58 = vand.u32 2147483648, %v1708_v43  ;;  %vm156_vm10 = vweird.f32 %v1708_v43 }
 0x371   :  { %vm1795_vm13 = vcmp.eq.f32.partialorder %v160_v1, 8.507059e+37 }
 0x376   :  { %v1710_v5 = vpop.xlane.xlu2 %361 }
 0x377   :  { %vm371_vm15 = vweird.f32 %v1710_v5 }
 0x37b   :  { %1071 = vrot.lane.b32.xlu0 %v1363_v2, %s1327_s20  ;;  %v955_v2 = vmul.f32 0.0078125, %v953_v18  ;;  %v1731_v0 = vpop.xlane.xlu1 %578 }
 0x37e   :  { %v1716_v44 = vpop.xlane.xlu2 %789 }
 0x383   :  { %1073 = vrot.lane.b32.xlu0 %v1368_v3, %s1327_s20  ;;  %v957_v3 = vmax.f32 %v955_v2, 0.0 }
 0x385   :  { %v959_v50 = vmin.f32 %v957_v3, 1.0 }
 0x386   :  { %v1724_v8 = vpop.xlane.xlu2 %1003 }
 0x38b   :  { %1093 = vrot.lane.b32.xlu0 %v1089_v48, %s1316_s0  ;;  %v1739_v48 = vpop.xlane.xlu1 %792 }
 0x38e   :  { %v150_v6 = vpop.xlane.xlu2 %149 }
 0x38f   :  { %1291 = vrcp.f32 %v150_v6  ;;  %v177_v14 = vand.u32 2147483648, %v150_v6  ;;  %vm171_vm7 = vweird.f32 %v150_v6 }
 0x390   :  { %1293 = vrcp.f32 %v1708_v43 }
 0x393   :  { %1095 = vrot.lane.b32.xlu0 %v1090_v16, %s1316_s0 }
 0x395   :  { %v1292_v22 = vpop.eup %1291 }
 0x396   :  { %v1733_v51 = vpop.eup %1293  ;;  %v167_v13 = vmul.f32 %v1292_v22, %v150_v6  ;;  %vm172_vm6 = vweird.f32 %v1292_v22 }
 0x397   :  { %v152_v61 = vmul.f32 %v1733_v51, %v1708_v43  ;;  %vm157_vm8 = vweird.f32 %v1733_v51  ;;  %vm1772_vm9 = vmor %vm171_vm7, %vm172_vm6 }
 0x398   :  { %v168_v34 = vsub.f32 1.0, %v167_v13  ;;  %vm1791_vm12 = vmor %vm156_vm10, %vm157_vm8  ;;  %vm814_vm10 = vweird.f32 %v1739_v48 }
 0x39a   :  { %v169_v18 = vmul.f32 %v1292_v22, %v168_v34 }
 0x39b   :  { %1122 = vrot.lane.b32.xlu0 %v1118_v52, %s1316_s0  ;;  %v153_v52 = vsub.f32 1.0, %v152_v61 }
 0x39f   :  { %v1712_v45 = vpop.permute.xlu0 %926 }
 0x3a0   :  { %2215 = vst [vmem:[#allocation23_spill] sm:$0xff] %v1712_v45  ;;  %v1764_v45 = vpop.xlane.xlu1 %1006 }
 0x3a3   :  { %1040 = vperm.xlu0 %1260, %v1421_v37  }
 0x3a7   :  { %v1718_v4 = vpop.permute.xlu0 %962 }
 0x3a8   :  { %2217 = vst [vmem:[#allocation25_spill] sm:$0xff] %v1718_v4  ;;  %v154_v4 = vmul.f32 %v1733_v51, %v153_v52  ;;  %v175_v52 = vand.u32 2147483647, %v150_v6 }
 0x3aa   :  { %vm176_vm11 = vcmp.eq.f32.partialorder %v175_v52, 8.507059e+37 }
 0x3ab   :  { %964 = vrot.lane.b32.xlu0 %v959_v50, %s1321_s16 }
 0x3d2   :  { %v1722_v59 = vpop.xlane.xlu0 %575 }
 0x3da   :  { %v1728_v56 = vpop.xlane.xlu0 %364 }
 0x3db   :  { %1295 = vrcp.f32 %v1728_v56  ;;  %vm386_vm0 = vweird.f32 %v1728_v56 }
 0x3dc   :  { %1297 = vrcp.f32 %v1710_v5 }
 0x3dd   :  { %1299 = vrcp.f32 %v1722_v59 }
 0x3de   :  { %1301 = vrcp.f32 %v1739_v48 }
 0x3df   :  { %1303 = vrcp.f32 %v1716_v44 }
 0x3e0   :  { %1305 = vrcp.f32 %v1764_v45 }
 0x3e1   :  { %v1741_v16 = vpop.eup %1295  ;;  %1307 = vrcp.f32 %v1724_v8 }
 0x3e2   :  { %v1746_v2 = vpop.eup %1297  ;;  %v382_v3 = vmul.f32 %v1741_v16, %v1728_v56  ;;  %vm387_vm14 = vweird.f32 %v1741_v16  ;;  %1309 = vrcp.f32 %v1731_v0 }
 0x3e3   :  { %v1759_v34 = vpop.eup %1299  ;;  %vm372_vm1 = vweird.f32 %v1746_v2  ;;  %vm1827_vm3 = vmor %vm386_vm0, %vm387_vm14  ;;  %vm799_vm0 = vweird.f32 %v1716_v44 }
 0x3e4   :  { %v383_v20 = vsub.f32 1.0, %v382_v3  ;;  %v581_v6 = vmul.f32 %v1759_v34, %v1722_v59  ;;  %vm1850_vm6 = vmor %vm371_vm15, %vm372_vm1  ;;  %vm586_vm7 = vweird.f32 %v1759_v34 }
 0x3ed   :  { %v1072_v32 = vpop.permute.xlu0 %1071 }
 0x3ee   :  { %v1077_v21 = vadd.f32 %v1072_v32, %v1421_v37  ;;  %v367_v37 = vmul.f32 %v1746_v2, %v1710_v5  ;;  %v170_v32 = vadd.f32 %v1292_v22, %v169_v18  ;;  %v155_v18 = vadd.f32 %v1733_v51, %v154_v4 }
 0x3f0   :  { %v1750_v50 = vmul.f32 32.0, %v1077_v21  ;;  %v1762_v21 = vpop.eup %1301  ;;  %v368_v41 = vsub.f32 1.0, %v367_v37  ;;  %v159_v1 = vsel %vm1791_vm12, %v1733_v51, %v155_v18  ;;  %v803_v18 = vand.u32 2147483647, %v1716_v44 }
 0x3f1   :  { %v810_v4 = vmul.f32 %v1762_v21, %v1739_v48  ;;  %v1787_v46 = vpop.eup %1303  ;;  %vm815_vm8 = vweird.f32 %v1762_v21 }
 0x3f2   :  { %v369_v3 = vmul.f32 %v1746_v2, %v368_v41  ;;  %v1815_v38 = vpop.eup %1305  ;;  %v795_v51 = vmul.f32 %v1787_v46, %v1716_v44  ;;  %v390_v41 = vand.u32 2147483647, %v1728_v56  ;;  %vm1881_vm12 = vmor %vm814_vm10, %vm815_vm8  ;;  %vm800_vm15 = vweird.f32 %v1787_v46 }
 0x3f3   :  { %vm1029_vm1 = vweird.f32 %v1815_v38 }
 0x3f4   :  { %v796_v40 = vsub.f32 1.0, %v795_v51  ;;  %vm391_vm4 = vcmp.eq.f32.partialorder %v390_v41, 8.507059e+37  ;;  %v1868_v41 = vpop.eup %1307 }
 0x3f5   :  { %v1074_v53 = vpop.permute.xlu0 %1073  ;;  %vm1014_vm8 = vweird.f32 %v1868_v41 }
 0x3f6   :  { %v1078_v54 = vadd.f32 %v1074_v53, %v1427_v42  ;;  %v174_v42 = vsel %vm1772_vm9, %v1292_v22, %v170_v32  ;;  %v178_v53 = vor.u32 1.1754944e-38, %v177_v14  ;;  %v163_v14 = vor.u32 1.1754944e-38, %v162_v58 }
 0x3f7   :  { %v582_v32 = vsub.f32 1.0, %v581_v6  ;;  %v811_v58 = vsub.f32 1.0, %v810_v4  ;;  %v392_v6 = vand.u32 2147483648, %v1728_v56  ;;  %v820_v22 = vand.u32 2147483648, %v1739_v48 }
 0x3f8   :  { %v1785_v49 = vmul.f32 32.0, %v1078_v54  ;;  %v179_v54 = vsel %vm176_vm11, %v178_v53, %v174_v42  ;;  %vm585_vm9 = vweird.f32 %v1722_v59 }
 0x3f9   :  { %v180_v53 = vmul.f32 %v1477_v31, %v179_v54  ;;  %v583_v4 = vmul.f32 %v1759_v34, %v582_v32  ;;  %v812_v56 = vmul.f32 %v1762_v21, %v811_v58  ;;  %v393_v32 = vor.u32 1.1754944e-38, %v392_v6  ;;  %vm1875_vm11 = vmor %vm585_vm9, %vm586_vm7 }
 0x3fa   :  { %vm1013_vm9 = vweird.f32 %v1724_v8 }
 0x3fb   :  { %vm1015_vm10 = vmor %vm1013_vm9, %vm1014_vm8  ;;  %vm521_vm8 = vcmask 876368   ;;  %vm540_vm9 = vcmask 884568  }
 0x3fd   :  { %v1753_v13 = vpop.permute.xlu0 %1093 }
 0x3fe   :  { %v1099_v61 = vsub.f32 %v1750_v50, %v1753_v13 }
 0x400   :  { %v1101_v27 = vmul.f32 0.0078125, %v1099_v61  ;;  %v384_v61 = vmul.f32 %v1741_v16, %v383_v20  ;;  %v377_v20 = vand.u32 2147483648, %v1710_v5 }
 0x402   :  { %v1103_v62 = vmax.f32 %v1101_v27, 0.0  ;;  %v385_v47 = vadd.f32 %v1741_v16, %v384_v61  ;;  %v164_v27 = vsel %vm1795_vm13, %v163_v14, %v159_v1 }
 0x403   :  { %v165_v1 = vmul.f32 %v1466_v15, %v164_v27 }
 0x404   :  { %v1105_v37 = vmin.f32 %v1103_v62, 1.0  ;;  %v375_v62 = vand.u32 2147483647, %v1710_v5  ;;  %v389_v54 = vsel %vm1827_vm3, %v1741_v16, %v385_v47  ;;  %v584_v16 = vadd.f32 %v1759_v34, %v583_v4  ;;  %v1909_v47 = vpop.permute.xlu2 %1124 }
 0x405   :  { %v1800_v43 = vpop.permute.xlu0 %1095  ;;  %v394_v15 = vsel %vm391_vm4, %v393_v32, %v389_v54  ;;  %v591_v5 = vand.u32 2147483648, %v1722_v59  ;;  %v818_v4 = vand.u32 2147483647, %v1739_v48  ;;  %vm1028_vm3 = vweird.f32 %v1764_v45 }
 0x406   :  { %v1100_v52 = vsub.f32 %v1785_v49, %v1800_v43  ;;  %1109 = vrot.lane.b32.xlu1 %v1105_v37, %s1319_s14  ;;  %v378_v37 = vor.u32 1.1754944e-38, %v377_v20  ;;  %vm1822_vm2 = vcmp.eq.f32.partialorder %v375_v62, 8.507059e+37  ;;  %v370_v20 = vadd.f32 %v1746_v2, %v369_v3 }
 0x407   :  { %v1024_v62 = vmul.f32 %v1815_v38, %v1764_v45  ;;  %v813_v3 = vadd.f32 %v1762_v21, %v812_v56  ;;  %v588_v48 = vsel %vm1875_vm11, %v1759_v34, %v584_v16  ;;  %v821_v56 = vor.u32 1.1754944e-38, %v820_v22 }
 0x408   :  { %v1102_v42 = vmul.f32 0.0078125, %v1100_v52  ;;  %v374_v58 = vsel %vm1850_vm6, %v1746_v2, %v370_v20  ;;  %v395_v2 = vmul.f32 %v1493_v60, %v394_v15  ;;  %v191_v20 = vmul.f32 %v1500_v10, %v165_v1  ;;  %vm1030_vm6 = vmor %vm1028_vm3, %vm1029_vm1 }
 0x409   :  { %v1025_v6 = vsub.f32 1.0, %v1024_v62  ;;  %v592_v54 = vor.u32 1.1754944e-38, %v591_v5  ;;  %v379_v62 = vsel %vm1822_vm2, %v378_v37, %v374_v58  ;;  %v817_v60 = vsel %vm1881_vm12, %v1762_v21, %v813_v3  ;;  %v1902_v37 = vpop.eup %1309  ;;  %vm1916_vm2 = vmor %vm799_vm0, %vm800_vm15 }
 0x40a   :  { %v1104_v61 = vmax.f32 %v1102_v42, 0.0  ;;  %v192_v42 = vmul.f32 %v1503_v19, %v180_v53  ;;  %v589_v53 = vand.u32 2147483647, %v1722_v59  ;;  %vm819_vm14 = vcmp.eq.f32.partialorder %v818_v4, 8.507059e+37 }
 0x40b   :  { %v1026_v32 = vmul.f32 %v1815_v38, %v1025_v6  ;;  %v822_v21 = vsel %vm819_vm14, %v821_v56, %v817_v60  ;;  %v805_v22 = vand.u32 2147483648, %v1716_v44  ;;  %v1034_v44 = vand.u32 2147483648, %v1764_v45 }
 0x40c   :  { %v1106_v52 = vmin.f32 %v1104_v61, 1.0  ;;  %v797_v61 = vmul.f32 %v1787_v46, %v796_v40  ;;  %v1009_v40 = vmul.f32 %v1868_v41, %v1724_v8  ;;  %vm590_vm13 = vcmp.eq.f32.partialorder %v589_v53, 8.507059e+37 }
 0x40d   :  { %v1843_v14 = vpop.permute.xlu0 %1122  ;;  %v593_v34 = vsel %vm590_vm13, %v592_v54, %v588_v48  ;;  %v1027_v16 = vadd.f32 %v1815_v38, %v1026_v32  ;;  %v823_v3 = vmul.f32 %v1612_v29, %v822_v21  ;;  %v596_v5 = vmul.f32 %v1902_v37, %v1731_v0 }
 0x40e   :  { %v1128_v19 = vsub.f32 %v1750_v50, %v1843_v14  ;;  %1111 = vrot.lane.b32.xlu2 %v1106_v52, %s1319_s14  ;;  %197 = vrot.lane.b32.xlu1 %v192_v42, %s1319_s14  ;;  %v407_v52 = vmul.f32 %v1509_v24, %v395_v2  ;;  %v798_v42 = vadd.f32 %v1787_v46, %v797_v61  ;;  %v1010_v1 = vsub.f32 1.0, %v1009_v40 }
 0x40f   :  { %v380_v24 = vmul.f32 %v1473_v25, %v379_v62  ;;  %v1129_v25 = vsub.f32 %v1785_v49, %v1909_v47  ;;  %vm804_vm4 = vcmp.eq.f32.partialorder %v803_v18, 8.507059e+37  ;;  %v806_v6 = vor.u32 1.1754944e-38, %v805_v22 }
 0x410   :  { %v1130_v51 = vmul.f32 0.0078125, %v1128_v19  ;;  %v594_v19 = vmul.f32 %v1463_v12, %v593_v34  ;;  %v1032_v12 = vand.u32 2147483647, %v1764_v45  ;;  %v802_v58 = vsel %vm1916_vm2, %v1787_v46, %v798_v42 }
 0x411   :  { %v1011_v53 = vmul.f32 %v1868_v41, %v1010_v1  ;;  %v1031_v29 = vsel %vm1030_vm6, %v1815_v38, %v1027_v16  ;;  %v406_v4 = vmul.f32 %v1489_v57, %v380_v24  ;;  %v1035_v31 = vor.u32 1.1754944e-38, %v1034_v44 }
 0x412   :  { %v1132_v27 = vmax.f32 %v1130_v51, 0.0  ;;  %v620_v51 = vmul.f32 %v1484_v39, %v594_v19  ;;  %v835_v2 = vmul.f32 %v1644_v55, %v823_v3  ;;  %v807_v61 = vsel %vm804_vm4, %v806_v6, %v802_v58  ;;  %v1046_v55 = vpop.permute.xlu1 %1045  ;;  %v2242_v6 = vld [vmem:[#allocation10_spill] sm:$0xff] }
 0x413   :  { %v1131_v45 = vmul.f32 0.0078125, %v1129_v25  ;;  %v597_v59 = vsub.f32 1.0, %v596_v5  ;;  %vm1033_vm7 = vcmp.eq.f32.partialorder %v1032_v12, 8.507059e+37  ;;  %v1148_v38 = vadd.f32 %v1800_v43, %v1785_v49 }
 0x414   :  { %v1134_v10 = vmin.f32 %v1132_v27, 1.0  ;;  %v1036_v46 = vsel %vm1033_vm7, %v1035_v31, %v1031_v29  ;;  %v1012_v39 = vadd.f32 %v1868_v41, %v1011_v53  ;;  %v808_v57 = vmul.f32 %v1607_v63, %v807_v61  ;;  %v2243_v53 = vld [vmem:[#allocation18_spill] sm:$0xff]  ;;  %v2244_v31 = vld [vmem:[#allocation7_spill] sm:$0xff]  ;;  %v2246_v61 = vld [vmem:[#allocation9_spill] sm:$0xff] }
 0x415   :  { %v1166_v27 = vadd.f32 %v1843_v14, %v1750_v50  ;;  %v1133_v48 = vmax.f32 %v1131_v45, 0.0  ;;  %v598_v56 = vmul.f32 %v1902_v37, %v597_v59  ;;  %v1037_v54 = vmul.f32 %v1626_v17, %v1036_v46  ;;  %v1041_v42 = vpop.permute.xlu0 %1040  ;;  %v2247_v45 = vld [vmem:[#allocation12_spill] sm:$0xff] }
 0x416   :  { %1138 = vrot.lane.b32.xlu0 %v1134_v10, %s1319_s14  ;;  %195 = vrot.lane.b32.xlu2 %v191_v20, %s1319_s14  ;;  %v1019_v20 = vand.u32 2147483648, %v1724_v8  ;;  %v1017_v43 = vand.u32 2147483647, %v1724_v8  ;;  %v1150_v60 = vmul.f32 0.0078125, %v1148_v38  ;;  %v1016_v63 = vsel %vm1015_vm10, %v1868_v41, %v1012_v39  ;;  %v2248_v46 = vld [vmem:[#allocation16_spill] sm:$0xff]  ;;  %v2250_v39 = vld [vmem:[#allocation17_spill] sm:$0xff] }
 0x417   :  { %412 = vrot.lane.b32.xlu1 %v407_v52, %s1319_s14  ;;  %v1049_v62 = vmul.f32 %v1046_v55, %v1037_v54  ;;  %v834_v40 = vmul.f32 %v1650_v28, %v808_v57  ;;  %v1168_v32 = vmul.f32 0.0078125, %v1166_v27  ;;  %v1135_v10 = vmin.f32 %v1133_v48, 1.0  ;;  %v2249_v38 = vld [vmem:[#allocation4_spill] sm:$0xff]  ;;  %v2251_v55 = vld [vmem:[#allocation6_spill] sm:$0xff]  ;;  %v2255_v54 = vld [vmem:[#allocation21_spill] sm:$0xff] }
 0x418   :  { %v1020_v14 = vor.u32 1.1754944e-38, %v1019_v20  ;;  %v599_v52 = vadd.f32 %v1902_v37, %v598_v56  ;;  %vm601_vm11 = vweird.f32 %v1902_v37  ;;  %vm1018_vm12 = vcmp.eq.f32.partialorder %v1017_v43, 8.507059e+37  ;;  %v2252_v20 = vld [vmem:[#allocation11_spill] sm:$0xff]  ;;  %v2253_v48 = vld [vmem:[#allocation14_spill] sm:$0xff]  ;;  %v2254_v56 = vld [vmem:[#allocation13_spill] sm:$0xff] }
 0x419   :  { %v606_v17 = vand.u32 2147483648, %v1731_v0  ;;  %vm600_vm13 = vweird.f32 %v1731_v0  ;;  %v604_v28 = vand.u32 2147483647, %v1731_v0  ;;  %v1152_v41 = vmax.f32 %v1150_v60, 0.0  ;;  %v2256_v43 = vld [vmem:[#allocation20_spill] sm:$0xff] }
 0x41a   :  { %v1021_v8 = vsel %vm1018_vm12, %v1020_v14, %v1016_v63  ;;  %vm602_vm14 = vmor %vm600_vm13, %vm601_vm11  ;;  %v1170_v34 = vmax.f32 %v1168_v32, 0.0  ;;  %v1147_v0 = vadd.f32 %v1753_v13, %v1750_v50  ;;  %v1167_v3 = vadd.f32 %v1909_v47, %v1785_v49  ;;  %v2241_v47 = vld [vmem:[#allocation5_spill] sm:$0xff]  ;;  %v2258_v63 = vld [vmem:[#allocation26_spill] sm:$0xff] }
 0x41b   :  { %v1022_v21 = vmul.f32 %v1614_v7, %v1021_v8  ;;  %v603_v18 = vsel %vm602_vm14, %v1902_v37, %v599_v52  ;;  %v607_v22 = vor.u32 1.1754944e-38, %v606_v17  ;;  %vm605_vm15 = vcmp.eq.f32.partialorder %v604_v28, 8.507059e+37  ;;  %v2260_v14 = vld [vmem:[#allocation22_spill] sm:$0xff]  ;;  %v2261_v52 = vld [vmem:[#allocation27_spill] sm:$0xff]  ;;  %v2262_v17 = vld [vmem:[#allocation25_spill] sm:$0xff] }
 0x41c   :  { %v1154_v24 = vmin.f32 %v1152_v41, 1.0  ;;  %v1172_v16 = vmin.f32 %v1170_v34, 1.0  ;;  %v1149_v7 = vmul.f32 0.0078125, %v1147_v0  ;;  %v1169_v5 = vmul.f32 0.0078125, %v1167_v3 }
 0x41d   :  { %v1048_v1 = vmul.f32 %v1041_v42, %v1022_v21  ;;  %v608_v19 = vsel %vm605_vm15, %v607_v22, %v603_v18  ;;  %v1328_v50 = vmov 0.0   ;;  %vm259_vm0 = vcmask 827168  }
 0x41e   :  { %624 = vrot.lane.b32.xlu0 %v620_v51, %s1319_s14  ;;  %410 = vrot.lane.b32.xlu2 %v406_v4, %s1319_s14  ;;  %v609_v15 = vmul.f32 %v1520_v9, %v608_v19  ;;  %v1151_v44 = vmax.f32 %v1149_v7, 0.0  ;;  %v1171_v12 = vmax.f32 %v1169_v5, 0.0  ;;  %109 = vst [vmem:[%s2194_s4] sm:$0xff] %v1328_v50  ;;  %vm288_vm1 = vcmask 835368  }
 0x41f   :  { %840 = vrot.lane.b32.xlu1 %v835_v2, %s1319_s14  ;;  %110 = vst [vmem:[%s2194_s4 + $0x8] sm:$0xff] %v1328_v50  ;;  %vm307_vm2 = vcmask 843568   ;;  %vm326_vm3 = vcmask 851768   ;;  %vm416_vm4 = vcmask 326816   ;;  %vm473_vm6 = vcmask 859968   ;;  %v2245_v2 = vld [vmem:[#allocation19_spill] sm:$0xff] }
 0x420   :  { %v621_v37 = vmul.f32 %v1522_v33, %v609_v15  ;;  %v1153_v25 = vmin.f32 %v1151_v44, 1.0  ;;  %v1173_v58 = vmin.f32 %v1171_v12, 1.0  ;;  %vm502_vm7 = vcmask 868168  }
 0x421   :  { %vm687_vm10 = vcmask 892768   ;;  %vm716_vm11 = vcmask 900968   ;;  %vm735_vm12 = vcmask 909168   ;;  %vm754_vm13 = vcmask 917368  }
 0x422   :  { %vm844_vm14 = vcmask 654816   ;;  %vm901_vm15 = vcmask 925568  }
 0x426   :  { %1054 = vrot.lane.b32.xlu0 %v1049_v62, %s1319_s14  ;;  %838 = vrot.lane.b32.xlu2 %v834_v40, %s1319_s14  ;;  %v2257_v62 = vld [vmem:[#allocation24_spill] sm:$0xff]  ;;  %v2259_v40 = vld [vmem:[#allocation23_spill] sm:$0xff] }
 0x427   :  { %1140 = vrot.lane.b32.xlu1 %v1135_v10, %s1319_s14 }
 0x42e   :  { %1159 = vrot.lane.b32.xlu0 %v1154_v24, %s1321_s16  ;;  %1052 = vrot.lane.b32.xlu2 %v1048_v1, %s1319_s14 }
 0x42f   :  { %1176 = vrot.lane.b32.xlu1 %v1172_v16, %s1321_s16 }
 0x436   :  { %626 = vrot.lane.b32.xlu2 %v621_v37, %s1319_s14 }
 0x43e   :  { %1157 = vrot.lane.b32.xlu2 %v1153_v25, %s1321_s16 }
 0x446   :  { %1178 = vrot.lane.b32.xlu2 %v1173_v58, %s1321_s16 }
 0x468   :  { %v1981_v9 = vpop.permute.xlu2 %1111 }
 0x470   :  { %v196_v33 = vpop.permute.xlu2 %195 }
 0x471   :  { %201 = vst.msk [vmem:[%s2194_s4] sm:$0xff] %vm144_vm5, %v196_v33 }
 0x472   :  { %260 = vst.msk [vmem:[%s2194_s4] sm:$0xff] %vm259_vm0, %v1620_v11 }
 0x473   :  { %289 = vst.msk [vmem:[%s2194_s4] sm:$0xff] %vm288_vm1, %v1565_v23  ;;  %v2238_v23 = vld [vmem:[#allocation3_spill] sm:$0xff] }
 0x474   :  { %308 = vst.msk [vmem:[%s2194_s4] sm:$0xff] %vm307_vm2, %v1628_v36 }
 0x475   :  { %327 = vst.msk [vmem:[%s2194_s4] sm:$0xff] %vm326_vm3, %v1568_v26  ;;  %v2239_v26 = vld [vmem:[#allocation15_spill] sm:$0xff] }
 0x478   :  { %v2007_v49 = vpop.permute.xlu1 %1109  ;;  %v411_v11 = vpop.permute.xlu2 %410 }
 0x479   :  { %417 = vst.msk [vmem:[%s2194_s4] sm:$0xff] %vm416_vm4, %v411_v11 }
 0x47a   :  { %474 = vst.msk [vmem:[%s2194_s4] sm:$0xff] %vm473_vm6, %v1570_v35  ;;  %v965_v35 = vpop.permute.xlu0 %964 }
 0x47b   :  { %503 = vst.msk [vmem:[%s2194_s4] sm:$0xff] %vm502_vm7, %v1575_v30  ;;  %v2240_v30 = vld [vmem:[#allocation8_spill] sm:$0xff] }
 0x47c   :  { %522 = vst.msk [vmem:[%s2194_s4] sm:$0xff] %vm521_vm8, %v2238_v23 }
 0x47d   :  { %541 = vst.msk [vmem:[%s2194_s4] sm:$0xff] %vm540_vm9, %v2239_v26 }
 0x480   :  { %v198_v36 = vpop.permute.xlu1 %197  ;;  %v839_v13 = vpop.permute.xlu2 %838 }
 0x481   :  { %202 = vst.msk [vmem:[%s2194_s4 + $0x8] sm:$0xff] %vm144_vm5, %v198_v36  ;;  %vm630_vm5 = vcmask 490816  }
 0x482   :  { %261 = vst.msk [vmem:[%s2194_s4 + $0x8] sm:$0xff] %vm259_vm0, %v2240_v30  ;;  %vm930_vm0 = vcmask 933768  }
 0x483   :  { %290 = vst.msk [vmem:[%s2194_s4 + $0x8] sm:$0xff] %vm288_vm1, %v2241_v47  ;;  %vm949_vm1 = vcmask 941968  }
 0x484   :  { %309 = vst.msk [vmem:[%s2194_s4 + $0x8] sm:$0xff] %vm307_vm2, %v2242_v6  ;;  %vm968_vm2 = vcmask 950168  }
 0x485   :  { %328 = vst.msk [vmem:[%s2194_s4 + $0x8] sm:$0xff] %vm326_vm3, %v2243_v53  ;;  %vm1058_vm3 = vcmask 818816  }
 0x488   :  { %v1139_v29 = vpop.permute.xlu0 %1138  ;;  %v1053_v4 = vpop.permute.xlu2 %1052 }
 0x489   :  { %v413_v51 = vpop.permute.xlu1 %412 }
 0x48a   :  { %418 = vst.msk [vmem:[%s2194_s4 + $0x8] sm:$0xff] %vm416_vm4, %v413_v51  ;;  %vm1115_vm4 = vcmask 958368  }
 0x48b   :  { %475 = vst.msk [vmem:[%s2194_s4 + $0x8] sm:$0xff] %vm473_vm6, %v2244_v31  ;;  %vm1144_vm6 = vcmask 966568  }
 0x48c   :  { %504 = vst.msk [vmem:[%s2194_s4 + $0x8] sm:$0xff] %vm502_vm7, %v2245_v2  ;;  %vm1163_vm7 = vcmask 974768  }
 0x48d   :  { %523 = vst.msk [vmem:[%s2194_s4 + $0x8] sm:$0xff] %vm521_vm8, %v2246_v61  ;;  %vm1182_vm8 = vcmask 982968  }
 0x48e   :  { %542 = vst.msk [vmem:[%s2194_s4 + $0x8] sm:$0xff] %vm540_vm9, %v2247_v45 }
 0x490   :  { %v625_v59 = vpop.permute.xlu0 %624  ;;  %v627_v57 = vpop.permute.xlu2 %626 }
 0x491   :  { %631 = vst.msk [vmem:[%s2194_s4] sm:$0xff] %vm630_vm5, %v625_v59  ;;  %v841_v27 = vpop.permute.xlu1 %840 }
 0x492   :  { %688 = vst.msk [vmem:[%s2194_s4] sm:$0xff] %vm687_vm10, %v2248_v46 }
 0x493   :  { %717 = vst.msk [vmem:[%s2194_s4] sm:$0xff] %vm716_vm11, %v2249_v38 }
 0x494   :  { %736 = vst.msk [vmem:[%s2194_s4] sm:$0xff] %vm735_vm12, %v2250_v39 }
 0x495   :  { %755 = vst.msk [vmem:[%s2194_s4] sm:$0xff] %vm754_vm13, %v2251_v55 }
 0x496   :  { %845 = vst.msk [vmem:[%s2194_s4] sm:$0xff] %vm844_vm14, %v839_v13 }
 0x497   :  { %632 = vst.msk [vmem:[%s2194_s4 + $0x8] sm:$0xff] %vm630_vm5, %v627_v57 }
 0x498   :  { %689 = vst.msk [vmem:[%s2194_s4 + $0x8] sm:$0xff] %vm687_vm10, %v2252_v20  ;;  %v1055_v60 = vpop.permute.xlu0 %1054  ;;  %v1158_v10 = vpop.permute.xlu2 %1157 }
 0x499   :  { %718 = vst.msk [vmem:[%s2194_s4 + $0x8] sm:$0xff] %vm716_vm11, %v2253_v48  ;;  %v1141_v32 = vpop.permute.xlu1 %1140 }
 0x49a   :  { %737 = vst.msk [vmem:[%s2194_s4 + $0x8] sm:$0xff] %vm735_vm12, %v2254_v56 }
 0x49b   :  { %756 = vst.msk [vmem:[%s2194_s4 + $0x8] sm:$0xff] %vm754_vm13, %v2255_v54 }
 0x49c   :  { %846 = vst.msk [vmem:[%s2194_s4 + $0x8] sm:$0xff] %vm844_vm14, %v841_v27 }
 0x49d   :  { %902 = vst.msk [vmem:[%s2194_s4] sm:$0xff] %vm901_vm15, %v2256_v43 }
 0x49e   :  { %903 = vst.msk [vmem:[%s2194_s4 + $0x8] sm:$0xff] %vm901_vm15, %v2257_v62 }
 0x49f   :  { %931 = vst.msk [vmem:[%s2194_s4] sm:$0xff] %vm930_vm0, %v2258_v63 }
 0x4a0   :  { %932 = vst.msk [vmem:[%s2194_s4 + $0x8] sm:$0xff] %vm930_vm0, %v2259_v40  ;;  %v1160_v8 = vpop.permute.xlu0 %1159  ;;  %v1179_v41 = vpop.permute.xlu2 %1178 }
 0x4a1   :  { %950 = vst.msk [vmem:[%s2194_s4] sm:$0xff] %vm949_vm1, %v2260_v14  ;;  %v1177_v28 = vpop.permute.xlu1 %1176 }
 0x4a2   :  { %951 = vst.msk [vmem:[%s2194_s4 + $0x8] sm:$0xff] %vm949_vm1, %v2261_v52 }
 0x4a3   :  { %969 = vst.msk [vmem:[%s2194_s4] sm:$0xff] %vm968_vm2, %v2262_v17 }
 0x4a4   :  { %970 = vst.msk [vmem:[%s2194_s4 + $0x8] sm:$0xff] %vm968_vm2, %v965_v35 }
 0x4a5   :  { %1059 = vst.msk [vmem:[%s2194_s4] sm:$0xff] %vm1058_vm3, %v1053_v4 }
 0x4a6   :  { %1060 = vst.msk [vmem:[%s2194_s4 + $0x8] sm:$0xff] %vm1058_vm3, %v1055_v60 }
 0x4a7   :  { %1117 = vst.msk [vmem:[%s2194_s4 + $0x8] sm:$0xff] %vm1115_vm4, %v1981_v9 }
 0x4a8   :  { %1146 = vst.msk [vmem:[%s2194_s4 + $0x8] sm:$0xff] %vm1144_vm6, %v1141_v32 }
 0x4a9   :  { %1116 = vst.msk [vmem:[%s2194_s4] sm:$0xff] %vm1115_vm4, %v2007_v49 }
 0x4aa   :  { %1145 = vst.msk [vmem:[%s2194_s4] sm:$0xff] %vm1144_vm6, %v1139_v29 }
 0x4ab   :  { %1164 = vst.msk [vmem:[%s2194_s4] sm:$0xff] %vm1163_vm7, %v1158_v10 }
 0x4ac   :  { %1165 = vst.msk [vmem:[%s2194_s4 + $0x8] sm:$0xff] %vm1163_vm7, %v1160_v8 }
 0x4ad   :  { %1183 = vst.msk [vmem:[%s2194_s4] sm:$0xff] %vm1182_vm8, %v1177_v28 }
 0x4ae   :  { %1184 = vst.msk [vmem:[%s2194_s4 + $0x8] sm:$0xff] %vm1182_vm8, %v1179_v41 }

// kernel: _device_forward_impl.12
= control target key start
LH: loop header
LB: loop body
LE: loop exit
PB: predicated region body
PF: predicated region fallthrough
CT: control target
= control target key end

     0   :  { %s7456_s12 = smov 0   ;;  %s9156_s0 = inlined_call_operand.vmem [shape: bf16[2,56,640], index: 0, kind: input, shape index: {}]   ;;  %s9157_s1 = inlined_call_operand.vmem [shape: bf16[5760,128], index: 1, kind: input, shape index: {}]   ;;  %s9158_s2 = inlined_call_operand.vmem [shape: f32[1,128], index: 2, kind: input, shape index: {}]   ;;  %s9159_s3 = inlined_call_operand.vmem [shape: bf16[2,32,128], index: 3, kind: output, shape index: {}]  }
   0x1 LB: > { %s5138_s13 = sadd.s32 4294967295, %s7434_s12   ;;  %p5142_p0 = scmp.ge.s32.totalorder %s7434_s12, 1  ;;  %s7434_s12 = sphi %s7456_s12, %s13_s12  }
   0x2   : > { %p137_p1 = scmp.lt.s32.totalorder %s7434_s12, 3 }
   0x4   : > { %p138_p2 = pnand %p5142_p0, %p137_p1 }
   0x5   : > { %p161_p3 = scmp.lt.s32.totalorder (!%p138_p2), %s5138_s13, 1 }
   0x6   : > { %141 = sbr.rel (%p138_p2) target bundleno = 543 (0x21f), region = 32 }
   0xb   : > { %v6966_v0 = vld [vmem:[%s9157_s1 + $0x38] sm:$0xff]  ;;  %v6965_v4 = vld [vmem:[%s9157_s1 + $0x30] sm:$0xff]  ;;  %v6964_v8 = vld [vmem:[%s9157_s1 + $0x28] sm:$0xff]  ;;  %s9161_s13 = smov (!%p161_p3, %s5138_s13), 1  ;;  %vm804_vm0 = vsmask.f32 7424 }
   0xc   : > { %v6974_v1 = vld [vmem:[%s9157_s1 + $0x78] sm:$0xff]  ;;  %555 = vmatpush.bf16.msra.mxu0 %v6966_v0  ;;  %v6973_v5 = vld [vmem:[%s9157_s1 + $0x70] sm:$0xff]  ;;  %v6972_v9 = vld [vmem:[%s9157_s1 + $0x68] sm:$0xff]  ;;  %s7418_s6 = smul.u32 140, %s9161_s13  ;;  %vm1412_vm1 = vcmask 1046528   ;;  %s6948_s16 = sshll.u32 %s9161_s13, 4 }
   0xd   : > { %v6982_v2 = vld [vmem:[%s9157_s1 + $0xb8] sm:$0xff]  ;;  %574 = vmatpush.bf16.msra.mxu1 %v6974_v1  ;;  %v6981_v6 = vld [vmem:[%s9157_s1 + $0xb0] sm:$0xff]  ;;  %v6980_v10 = vld [vmem:[%s9157_s1 + $0xa8] sm:$0xff]  ;;  %s170_s20 = scalar_lea.vmem %s9159_s3, %s6948_s16 }
   0xe   : > { %v6990_v3 = vld [vmem:[%s9157_s1 + $0xf8] sm:$0xff]  ;;  %593 = vmatpush.bf16.msra.mxu2 %v6982_v2  ;;  %v6989_v7 = vld [vmem:[%s9157_s1 + $0xf0] sm:$0xff]  ;;  %v6988_v11 = vld [vmem:[%s9157_s1 + $0xe8] sm:$0xff]  ;;  %s7552_s19 = scalar_lea.vmem %s9156_s0, %s7418_s6 }
   0xf   : > { %612 = vmatpush.bf16.msra.mxu3 %v6990_v3  ;;  %v6963_v12 = vld [vmem:[%s9157_s1 + $0x20] sm:$0xff]  ;;  %v6962_v16 = vld [vmem:[%s9157_s1 + $0x18] sm:$0xff]  ;;  %v6961_v20 = vld [vmem:[%s9157_s1 + $0x10] sm:$0xff] }
  0x10   : > { %556 = vmatpush.bf16.msra.mxu0 %v6965_v4  ;;  %v6971_v13 = vld [vmem:[%s9157_s1 + $0x60] sm:$0xff]  ;;  %v6970_v17 = vld [vmem:[%s9157_s1 + $0x58] sm:$0xff]  ;;  %v6969_v21 = vld [vmem:[%s9157_s1 + $0x50] sm:$0xff] }
  0x11   : > { %575 = vmatpush.bf16.msra.mxu1 %v6973_v5  ;;  %v6979_v14 = vld [vmem:[%s9157_s1 + $0xa0] sm:$0xff]  ;;  %v6978_v18 = vld [vmem:[%s9157_s1 + $0x98] sm:$0xff]  ;;  %v6977_v22 = vld [vmem:[%s9157_s1 + $0x90] sm:$0xff] }
  0x12   : > { %594 = vmatpush.bf16.msra.mxu2 %v6981_v6  ;;  %v6987_v15 = vld [vmem:[%s9157_s1 + $0xe0] sm:$0xff]  ;;  %v6986_v19 = vld [vmem:[%s9157_s1 + $0xd8] sm:$0xff]  ;;  %v6985_v23 = vld [vmem:[%s9157_s1 + $0xd0] sm:$0xff] }
  0x13   : > { %613 = vmatpush.bf16.msra.mxu3 %v6989_v7  ;;  %v6960_v24 = vld [vmem:[%s9157_s1 + $0x8] sm:$0xff]  ;;  %v6959_v28 = vld [vmem:[%s9157_s1] sm:$0xff]  ;;  %v6951_v33 = vld [vmem:[%s7552_s19 + $0x10] sm:$0xf0] }
  0x14   : > { %557 = vmatpush.bf16.msra.mxu0 %v6964_v8  ;;  %v6968_v25 = vld [vmem:[%s9157_s1 + $0x48] sm:$0xff]  ;;  %v6967_v29 = vld [vmem:[%s9157_s1 + $0x40] sm:$0xff]  ;;  %v5150_v35 = vld [vmem:[%s7552_s19 + $0x14] sm:$0xf0] }
  0x15   : > { %576 = vmatpush.bf16.msra.mxu1 %v6972_v9  ;;  %v6976_v26 = vld [vmem:[%s9157_s1 + $0x88] sm:$0xff]  ;;  %v6975_v30 = vld [vmem:[%s9157_s1 + $0x80] sm:$0xff]  ;;  %v6952_v37 = vld [vmem:[%s7552_s19 + $0x18] sm:$0xf0] }
  0x16   : > { %595 = vmatpush.bf16.msra.mxu2 %v6980_v10  ;;  %v6984_v27 = vld [vmem:[%s9157_s1 + $0xc8] sm:$0xff]  ;;  %v6983_v31 = vld [vmem:[%s9157_s1 + $0xc0] sm:$0xff]  ;;  %v6998_v40 = vld [vmem:[%s9157_s1 + $0x138] sm:$0xff] }
  0x17   : > { %614 = vmatpush.bf16.msra.mxu3 %v6988_v11  ;;  %v5148_v32 = vld [vmem:[%s7552_s19] sm:$0xf]  ;;  %v6949_v34 = vld [vmem:[%s7552_s19 + $0x4] sm:$0xf]  ;;  %v5156_v36 = vld [vmem:[%s7552_s19 + $0x8] sm:$0xf] }
  0x18   : > { %558 = vmatpush.bf16.msra.mxu0 %v6963_v12  ;;  %v6950_v38 = vld [vmem:[%s7552_s19 + $0xc] sm:$0xf]  ;;  %v5158_v39 = vld [vmem:[%s7552_s19 + $0x1c] sm:$0xf0]  ;;  %v7016_v41 = vld [vmem:[%s9157_s1 + $0x178] sm:$0xff]  ;;  %v5149_v42 = vor.u32 %v6951_v33, %v5148_v32  ;;  %v5153_v43 = vor.u32 %v6949_v34, %v5150_v35  ;;  %v5157_v44 = vor.u32 %v6952_v37, %v5156_v36 }
  0x19   : > { %577 = vmatpush.bf16.msra.mxu1 %v6971_v13  ;;  %v5161_v45 = vor.u32 %v6950_v38, %v5158_v39  ;;  %v7024_v46 = vld [vmem:[%s9157_s1 + $0x1b8] sm:$0xff]  ;;  %v6997_v48 = vld [vmem:[%s9157_s1 + $0x130] sm:$0xff]  ;;  %v6996_v52 = vld [vmem:[%s9157_s1 + $0x128] sm:$0xff] }
  0x1a   : > { %596 = vmatpush.bf16.msra.mxu2 %v6979_v14  ;;  %v7032_v47 = vld [vmem:[%s9157_s1 + $0x1f8] sm:$0xff]  ;;  %v7015_v49 = vld [vmem:[%s9157_s1 + $0x170] sm:$0xff]  ;;  %v7014_v53 = vld [vmem:[%s9157_s1 + $0x168] sm:$0xff] }
  0x1b   : > { %615 = vmatpush.bf16.msra.mxu3 %v6987_v15  ;;  %v7023_v50 = vld [vmem:[%s9157_s1 + $0x1b0] sm:$0xff]  ;;  %v7022_v54 = vld [vmem:[%s9157_s1 + $0x1a8] sm:$0xff]  ;;  %v6995_v56 = vld [vmem:[%s9157_s1 + $0x120] sm:$0xff] }
  0x1c   : > { %559 = vmatpush.bf16.msra.mxu0 %v6962_v16  ;;  %v7031_v51 = vld [vmem:[%s9157_s1 + $0x1f0] sm:$0xff]  ;;  %v7030_v55 = vld [vmem:[%s9157_s1 + $0x1e8] sm:$0xff]  ;;  %v7013_v57 = vld [vmem:[%s9157_s1 + $0x160] sm:$0xff] }
  0x1d   : > { %578 = vmatpush.bf16.msra.mxu1 %v6970_v17  ;;  %v5168_v58 = vld [vmem:[%s7552_s19 + $0x28] sm:$0xf]  ;;  %v6956_v59 = vld [vmem:[%s7552_s19 + $0x38] sm:$0xf0]  ;;  %v6954_v60 = vld [vmem:[%s7552_s19 + $0x2c] sm:$0xf] }
  0x1e   : > { %597 = vmatpush.bf16.msra.mxu2 %v6978_v18  ;;  %v5170_v61 = vld [vmem:[%s7552_s19 + $0x3c] sm:$0xf0]  ;;  %v5176_v0 = vld [vmem:[%s7552_s19 + $0x30] sm:$0xf]  ;;  %v6957_v1 = vld [vmem:[%s7552_s19 + $0x40] sm:$0xf0]  ;;  %v5169_v12 = vor.u32 %v6956_v59, %v5168_v58 }
  0x1f   : > { %616 = vmatpush.bf16.msra.mxu3 %v6986_v19  ;;  %v7021_v62 = vld [vmem:[%s9157_s1 + $0x1a0] sm:$0xff]  ;;  %v6955_v2 = vld [vmem:[%s7552_s19 + $0x34] sm:$0xf]  ;;  %v5178_v3 = vld [vmem:[%s7552_s19 + $0x44] sm:$0xf0]  ;;  %v5173_v13 = vor.u32 %v6954_v60, %v5170_v61  ;;  %v5177_v15 = vor.u32 %v6957_v1, %v5176_v0 }
  0x20   : > { %560 = vmatpush.bf16.msra.mxu0 %v6961_v20  ;;  %v7029_v63 = vld [vmem:[%s9157_s1 + $0x1e0] sm:$0xff]  ;;  %v6994_v4 = vld [vmem:[%s9157_s1 + $0x118] sm:$0xff]  ;;  %v7001_v7 = vld [vmem:[%s7552_s19 + $0x10] sm:$0xf0]  ;;  %v5181_v16 = vor.u32 %v6955_v2, %v5178_v3 }
  0x21   : > { %579 = vmatpush.bf16.msra.mxu1 %v6969_v21  ;;  %v7012_v5 = vld [vmem:[%s9157_s1 + $0x158] sm:$0xff]  ;;  %v5348_v6 = vld [vmem:[%s7552_s19] sm:$0xf]  ;;  %v6999_v8 = vld [vmem:[%s7552_s19 + $0x4] sm:$0xf] }
  0x22   : > { %598 = vmatpush.bf16.msra.mxu2 %v6977_v22  ;;  %v5350_v9 = vld [vmem:[%s7552_s19 + $0x14] sm:$0xf0]  ;;  %v5356_v10 = vld [vmem:[%s7552_s19 + $0x8] sm:$0xf]  ;;  %v7002_v11 = vld [vmem:[%s7552_s19 + $0x18] sm:$0xf0]  ;;  %v5349_v20 = vor.u32 %v7001_v7, %v5348_v6 }
  0x23   : > { %617 = vmatpush.bf16.msra.mxu3 %v6985_v23  ;;  %v7020_v14 = vld [vmem:[%s9157_s1 + $0x198] sm:$0xff]  ;;  %v6993_v18 = vld [vmem:[%s9157_s1 + $0x110] sm:$0xff]  ;;  %v5368_v19 = vld [vmem:[%s7552_s19 + $0x28] sm:$0xf] }
  0x24   : > { %561 = vmatpush.bf16.msra.mxu0 %v6960_v24  ;;  %v7028_v17 = vld [vmem:[%s9157_s1 + $0x1d8] sm:$0xff]  ;;  %v7004_v22 = vld [vmem:[%s7552_s19 + $0x2c] sm:$0xf]  ;;  %v5370_v23 = vld [vmem:[%s7552_s19 + $0x3c] sm:$0xf0]  ;;  %v5353_v24 = vor.u32 %v6999_v8, %v5350_v9  ;;  %v806_v39 = vshrl.u32 %v5349_v20, 16 }
  0x25   : > { %580 = vmatpush.bf16.msra.mxu1 %v6968_v25  ;;  %v7006_v21 = vld [vmem:[%s7552_s19 + $0x38] sm:$0xf0]  ;;  %v5357_v25 = vor.u32 %v7002_v11, %v5356_v10  ;;  %v7019_v32 = vld [vmem:[%s9157_s1 + $0x190] sm:$0xff]  ;;  %v6992_v37 = vld [vmem:[%s9157_s1 + $0x108] sm:$0xff] }
  0x26   : > { %599 = vmatpush.bf16.msra.mxu2 %v6976_v26  ;;  %v7011_v26 = vld [vmem:[%s9157_s1 + $0x150] sm:$0xff]  ;;  %v820_v34 = vshll.u32 %v5353_v24, 16  ;;  %v7010_v38 = vld [vmem:[%s9157_s1 + $0x148] sm:$0xff]  ;;  %v7017_v59 = vld [vmem:[%s9157_s1 + $0x180] sm:$0xff] }
  0x27   : > { %618 = vmatpush.bf16.msra.mxu3 %v6984_v27  ;;  %v5376_v27 = vld [vmem:[%s7552_s19 + $0x30] sm:$0xf]  ;;  %v832_v36 = vshll.u32 %v5357_v25, 16  ;;  %v7025_v60 = vld [vmem:[%s9157_s1 + $0x1c0] sm:$0xff]  ;;  %v7721_v1 = vld [vmem:[%s7552_s19 + $0x58] sm:$0x11] }
  0x28   : > { %562 = vmatpush.bf16.msra.mxu0 %v6959_v28  ;;  %v7007_v28 = vld [vmem:[%s7552_s19 + $0x40] sm:$0xf0]  ;;  %v7027_v33 = vld [vmem:[%s9157_s1 + $0x1d0] sm:$0xff]  ;;  %v7066_v2 = vld [vmem:[%s9157_s1 + $0x2b8] sm:$0xff]  ;;  %v786_v8 = vunpack.c.l.b16 %v7721_v1 }
  0x29   : > { %581 = vmatpush.bf16.msra.mxu1 %v6967_v29  ;;  %v7666_v29 = vor.u32 %v7006_v21, %v5368_v19  ;;  %v7676_v35 = vor.u32 %v7007_v28, %v5376_v27  ;;  %v666_v58 = vld [vmem:[%s7552_s19 + $0x50] sm:$0x11]  ;;  %v7074_v3 = vld [vmem:[%s9157_s1 + $0x2f8] sm:$0xff]  ;;  %v7046_v19 = vld [vmem:[%s9157_s1 + $0x268] sm:$0xff] }
  0x2a   : > { %600 = vmatpush.bf16.msra.mxu2 %v6975_v30  ;;  %v808_v30 = vshll.u32 %v5349_v20, 16  ;;  %v785_v7 = vunpack.c.h.b16 %v666_v58  ;;  %v7039_v11 = vld [vmem:[%s9157_s1 + $0x230] sm:$0xff]  ;;  %v7064_v20 = vld [vmem:[%s9157_s1 + $0x2a8] sm:$0xff]  ;;  %v7045_v27 = vld [vmem:[%s9157_s1 + $0x260] sm:$0xff] }
  0x2b   : > { %619 = vmatpush.bf16.msra.mxu3 %v6983_v31  ;;  %563 = vmatmul.bf16.vlgmr.msra.gmra.mxu0 %v5149_v42  ;;  %v7668_v31 = vor.u32 %v7004_v22, %v5370_v23  ;;  %v818_v42 = vshrl.u32 %v5353_v24, 16  ;;  %v7072_v21 = vld [vmem:[%s9157_s1 + $0x2e8] sm:$0xff]  ;;  %v865_v23 = vshrl.u32 %v7666_v29, 16 }
  0x2c   : > { %631 = vmatpush.bf16.msrb.mxu0 %v6998_v40  ;;  %582 = vmatmul.bf16.vlgmr.msra.gmra.mxu1 %v5153_v43  ;;  %v810_v40 = vrot.slane %v808_v30, 1  ;;  %v881_v30 = vshrl.u32 %v7676_v35, 16 }
  0x2d   : > { %1155 = vmatpush.bf16.msrb.mxu1 %v7016_v41  ;;  %601 = vmatmul.bf16.vlgmr.msra.gmra.mxu2 %v5157_v44  ;;  %v813_v41 = vshll.u32 %v7666_v29, 16  ;;  %v825_v43 = vshll.u32 %v7668_v31, 16  ;;  %v7018_v44 = vld [vmem:[%s9157_s1 + $0x188] sm:$0xff]  ;;  %v873_v28 = vshrl.u32 %v7668_v31, 16  ;;  %v7063_v29 = vld [vmem:[%s9157_s1 + $0x2a0] sm:$0xff] }
  0x2e   : > { %620 = vmatmul.bf16.vlgmr.msra.gmra.mxu3 %v5161_v45  ;;  %1174 = vmatpush.bf16.msrb.mxu2 %v7024_v46  ;;  %v7026_v45 = vld [vmem:[%s9157_s1 + $0x1c8] sm:$0xff]  ;;  %v822_v46 = vrot.slane %v820_v34, 1 }
  0x2f   : > { %1193 = vmatpush.bf16.msrb.mxu3 %v7032_v47  ;;  %v830_v47 = vshrl.u32 %v5357_v25, 16  ;;  %v6958_v34 = vld [vmem:[%s7552_s19 + $0x48] sm:$0xf0] }
  0x30   : > { %632 = vmatpush.bf16.msrb.mxu0 %v6997_v48  ;;  %v834_v48 = vrot.slane %v832_v36, 1  ;;  %v823_v61 = vor.u32 %v822_v46, %v818_v42  ;;  %v7062_v46 = vld [vmem:[%s9157_s1 + $0x298] sm:$0xff] }
  0x31   : > { %1156 = vmatpush.bf16.msrb.mxu1 %v7015_v49  ;;  %v837_v49 = vshll.u32 %v7676_v35, 16 }
  0x32   : > { %1175 = vmatpush.bf16.msrb.mxu2 %v7023_v50  ;;  %v6991_v50 = vld [vmem:[%s9157_s1 + $0x100] sm:$0xff] }
  0x33   : > { %1194 = vmatpush.bf16.msrb.mxu3 %v7031_v51  ;;  %v7009_v51 = vld [vmem:[%s9157_s1 + $0x140] sm:$0xff]  ;;  %v7718_v0 = vrot.slane %v837_v49, 1 }
  0x34   : > { %633 = vmatpush.bf16.msrb.mxu0 %v6996_v52  ;;  %v5164_v52 = vld [vmem:[%s7552_s19 + $0x10] sm:$0xf] }
  0x35   : > { %1157 = vmatpush.bf16.msrb.mxu1 %v7014_v53  ;;  %v6953_v53 = vld [vmem:[%s7552_s19 + $0x20] sm:$0xf0]  ;;  %v883_v42 = vor.u32 %v881_v30, %v7718_v0  ;;  %v7082_v30 = vld [vmem:[%s9157_s1 + $0x338] sm:$0xff] }
  0x36   : > { %1176 = vmatpush.bf16.msrb.mxu2 %v7022_v54  ;;  %v7040_v54 = vld [vmem:[%s9157_s1 + $0x238] sm:$0xff] }
  0x37   : > { %1195 = vmatpush.bf16.msrb.mxu3 %v7030_v55  ;;  %v7048_v55 = vld [vmem:[%s9157_s1 + $0x278] sm:$0xff] }
  0x38   : > { %634 = vmatpush.bf16.msrb.mxu0 %v6995_v56  ;;  %v811_v56 = vor.u32 %v810_v40, %v806_v39  ;;  %v7044_v39 = vld [vmem:[%s9157_s1 + $0x258] sm:$0xff]  ;;  %v7000_v40 = vld [vmem:[%s7552_s19 + $0xc] sm:$0xf] }
  0x39   : > { %1158 = vmatpush.bf16.msrb.mxu1 %v7013_v57  ;;  %v7707_v57 = vrot.slane %v813_v41, 1 }
  0x3a   : > { %1177 = vmatpush.bf16.msrb.mxu2 %v7021_v62  ;;  %v7716_v62 = vrot.slane %v825_v43, 1  ;;  %v5358_v43 = vld [vmem:[%s7552_s19 + $0x1c] sm:$0xf0] }
  0x3b   : > { %1196 = vmatpush.bf16.msrb.mxu3 %v7029_v63  ;;  %568 = vmatmul.bf16.gmra.mxu0 %v5169_v12  ;;  %v835_v63 = vor.u32 %v834_v48, %v830_v47  ;;  %v816_v6 = vsel %vm804_vm0, %v811_v56, %v7707_v57  ;;  %v7047_v12 = vld [vmem:[%s9157_s1 + $0x270] sm:$0xff]  ;;  %v867_v31 = vor.u32 %v865_v23, %v7707_v57  ;;  %v7070_v47 = vld [vmem:[%s9157_s1 + $0x2d8] sm:$0xff]  ;;  %v7041_v23 = vld [vmem:[%s9157_s1 + $0x240] sm:$0xff] }
  0x3c   : > { %635 = vmatpush.bf16.msrb.mxu0 %v6994_v4  ;;  %587 = vmatmul.bf16.gmra.mxu1 %v5173_v13  ;;  %v5165_v4 = vor.u32 %v6953_v53, %v5164_v52  ;;  %v828_v9 = vsel %vm804_vm0, %v823_v61, %v7716_v62  ;;  %v7065_v13 = vld [vmem:[%s9157_s1 + $0x2b0] sm:$0xff]  ;;  %v875_v41 = vor.u32 %v873_v28, %v7716_v62  ;;  %v5378_v52 = vld [vmem:[%s7552_s19 + $0x44] sm:$0xf0]  ;;  %v7067_v28 = vld [vmem:[%s9157_s1 + $0x2c0] sm:$0xff] }
  0x3d   : > { %1159 = vmatpush.bf16.msrb.mxu1 %v7012_v5  ;;  %606 = vmatmul.bf16.gmra.mxu2 %v5177_v15  ;;  %v784_v5 = vunpack.c.l.b16 %v666_v58  ;;  %v840_v10 = vsel %vm804_vm0, %v835_v63, %v7718_v0  ;;  %v5361_v53 = vor.u32 %v7000_v40, %v5358_v43  ;;  %v7043_v57 = vld [vmem:[%s9157_s1 + $0x250] sm:$0xff]  ;;  %v5384_v58 = vld [vmem:[%s7552_s19 + $0x38] sm:$0xf]  ;;  %v7034_v62 = vld [vmem:[%s9157_s1 + $0x208] sm:$0xff] }
  0x3e   : > { %625 = vmatmul.bf16.gmra.mxu3 %v5181_v16  ;;  %1178 = vmatpush.bf16.msrb.mxu2 %v7020_v14  ;;  %v7073_v14 = vld [vmem:[%s9157_s1 + $0x2f0] sm:$0xff]  ;;  %v800_v16 = vpack.c.b16 %v785_v7, %v785_v7  ;;  %v7042_v63 = vld [vmem:[%s9157_s1 + $0x248] sm:$0xff]  ;;  %v5548_v7 = vld [vmem:[%s7552_s19] sm:$0xe] }
  0x3f   : > { %1197 = vmatpush.bf16.msrb.mxu3 %v7028_v17  ;;  %v799_v15 = vpack.c.b16 %v784_v5, %v784_v5  ;;  %v801_v17 = vpack.c.b16 %v786_v8, %v786_v8  ;;  %v7069_v61 = vld [vmem:[%s9157_s1 + $0x2d0] sm:$0xff] }
  0x40   : > { %636 = vmatpush.bf16.msrb.mxu0 %v6993_v18  ;;  %v7038_v18 = vld [vmem:[%s9157_s1 + $0x228] sm:$0xff]  ;;  %v877_v24 = vshll.u32 %v800_v16, 16  ;;  %v7051_v8 = vld [vmem:[%s7552_s19 + $0x10] sm:$0xf0] }
  0x41   : > { %1160 = vmatpush.bf16.msrb.mxu1 %v7011_v26  ;;  %v869_v22 = vshll.u32 %v799_v15, 16  ;;  %v885_v25 = vshll.u32 %v801_v17, 16  ;;  %v7037_v26 = vld [vmem:[%s9157_s1 + $0x220] sm:$0xff]  ;;  %v842_v15 = vshrl.u32 %v5361_v53, 16 }
  0x42   : > { %1179 = vmatpush.bf16.msrb.mxu2 %v7019_v32  ;;  %v7071_v32 = vld [vmem:[%s9157_s1 + $0x2e0] sm:$0xff] }
  0x43   : > { %1198 = vmatpush.bf16.msrb.mxu3 %v7027_v33  ;;  %v5184_v33 = vld [vmem:[%s7552_s19 + $0x38] sm:$0xf]  ;;  %v871_v36 = vrot.slane %v869_v22, 1  ;;  %v887_v35 = vrot.slane %v885_v25, 1  ;;  %v7033_v22 = vld [vmem:[%s9157_s1 + $0x200] sm:$0xff] }
  0x44   : > { %637 = vmatpush.bf16.msrb.mxu0 %v6992_v37  ;;  %v879_v37 = vrot.slane %v877_v24, 1  ;;  %v5185_v48 = vor.u32 %v6958_v34, %v5184_v33 }
  0x45   : > { %1161 = vmatpush.bf16.msrb.mxu1 %v7010_v38  ;;  %v7036_v38 = vld [vmem:[%s9157_s1 + $0x218] sm:$0xff]  ;;  %v872_v49 = vsel %vm804_vm0, %v867_v31, %v871_v36  ;;  %v888_v56 = vsel %vm804_vm0, %v883_v42, %v887_v35 }
  0x46   : > { %1180 = vmatpush.bf16.msrb.mxu2 %v7018_v44  ;;  %v5364_v44 = vld [vmem:[%s7552_s19 + $0x10] sm:$0xf]  ;;  %v7098_v31 = vld [vmem:[%s9157_s1 + $0x3b8] sm:$0xff] }
  0x47   : > { %1199 = vmatpush.bf16.msrb.mxu3 %v7026_v45  ;;  %v7003_v45 = vld [vmem:[%s7552_s19 + $0x20] sm:$0xf0] }
  0x48   : > { %638 = vmatpush.bf16.msrb.mxu0 %v6991_v50  ;;  %v7035_v50 = vld [vmem:[%s9157_s1 + $0x210] sm:$0xff] }
  0x49   : > { %1162 = vmatpush.bf16.msrb.mxu1 %v7009_v51  ;;  %v7005_v51 = vld [vmem:[%s7552_s19 + $0x34] sm:$0xf] }
  0x4a   : > { %1181 = vmatpush.bf16.msrb.mxu2 %v7017_v59  ;;  %v7008_v59 = vld [vmem:[%s7552_s19 + $0x48] sm:$0xf0]  ;;  %v7821_v0 = vor.u32 %v7005_v51, %v5378_v52  ;;  %v1274_v51 = vld [vmem:[%s7552_s19 + $0x50] sm:$0x11] }
  0x4b   : > { %1200 = vmatpush.bf16.msrb.mxu3 %v7025_v60  ;;  %639 = vmatmul.bf16.vlgmr.msrb.gmra.mxu0 %v5165_v4  ;;  %v7061_v60 = vld [vmem:[%s9157_s1 + $0x290] sm:$0xff]  ;;  %v844_v4 = vshll.u32 %v5361_v53, 16  ;;  %v7829_v5 = vor.u32 %v7008_v59, %v5384_v58  ;;  %v7096_v58 = vld [vmem:[%s9157_s1 + $0x3a8] sm:$0xff] }
  0x4c   : > { %1212 = vmatpush.bf16.msra.mxu0 %v7040_v54  ;;  %1163 = vmatmul.bf16.vlgmr.msrb.gmra.mxu1 %v816_v6  ;;  %v5365_v54 = vor.u32 %v7003_v45, %v5364_v44  ;;  %v849_v16 = vshll.u32 %v7821_v0, 16  ;;  %v787_v44 = vunpack.c.h.b16 %v7721_v1  ;;  %v7115_v1 = vld [vmem:[%s9157_s1 + $0x3f0] sm:$0xff]  ;;  %v7114_v59 = vld [vmem:[%s9157_s1 + $0x3e8] sm:$0xff] }
  0x4d   : > { %1231 = vmatpush.bf16.msra.mxu1 %v7048_v55  ;;  %1182 = vmatmul.bf16.vlgmr.msrb.gmra.mxu2 %v828_v9  ;;  %v880_v55 = vsel %vm804_vm0, %v875_v41, %v879_v37  ;;  %v5568_v9 = vld [vmem:[%s7552_s19 + $0x28] sm:$0xf]  ;;  %v7116_v37 = vld [vmem:[%s9157_s1 + $0x3f8] sm:$0xff]  ;;  %v668_v41 = vld [vmem:[%s7552_s19 + $0x60] sm:$0x1] }
  0x4e   : > { %1688 = vmatpush.bf16.msra.mxu2 %v7066_v2  ;;  %1201 = vmatmul.bf16.vlgmr.msrb.gmra.mxu3 %v840_v10  ;;  %v7060_v2 = vld [vmem:[%s9157_s1 + $0x288] sm:$0xff]  ;;  %v856_v6 = vshll.u32 %v5365_v54, 16  ;;  %v7056_v10 = vld [vmem:[%s7552_s19 + $0x38] sm:$0xf0]  ;;  %v854_v17 = vshrl.u32 %v5365_v54, 16  ;;  %v851_v33 = vrot.slane %v849_v16, 1  ;;  %v788_v45 = vunpack.c.l.b16 %v668_v41 }
  0x4f   : > { %1707 = vmatpush.bf16.msra.mxu3 %v7074_v3  ;;  %v7068_v3 = vld [vmem:[%s9157_s1 + $0x2c8] sm:$0xff]  ;;  %v5569_v24 = vor.u32 %v7056_v10, %v5568_v9  ;;  %v802_v52 = vpack.c.b16 %v787_v44, %v787_v44  ;;  %v7112_v16 = vld [vmem:[%s9157_s1 + $0x3d8] sm:$0xff] }
  0x50   : > { %1213 = vmatpush.bf16.msra.mxu0 %v7039_v11  ;;  %v7049_v11 = vld [vmem:[%s7552_s19 + $0x4] sm:$0xe]  ;;  %v803_v53 = vpack.c.b16 %v788_v45, %v788_v45  ;;  %v7080_v54 = vld [vmem:[%s9157_s1 + $0x328] sm:$0xff] }
  0x51   : > { %1232 = vmatpush.bf16.msra.mxu1 %v7047_v12  ;;  %v5550_v12 = vld [vmem:[%s7552_s19 + $0x14] sm:$0xf0]  ;;  %v7075_v45 = vld [vmem:[%s9157_s1 + $0x300] sm:$0xff] }
  0x52   : > { %1689 = vmatpush.bf16.msra.mxu2 %v7065_v13  ;;  %v7054_v13 = vld [vmem:[%s7552_s19 + $0x2c] sm:$0xf]  ;;  %v5553_v25 = vor.u32 %v7049_v11, %v5550_v12 }
  0x53   : > { %1708 = vmatpush.bf16.msra.mxu3 %v7073_v14  ;;  %v5570_v14 = vld [vmem:[%s7552_s19 + $0x3c] sm:$0xf0] }
  0x54   : > { %1214 = vmatpush.bf16.msra.mxu0 %v7038_v18  ;;  %v846_v18 = vrot.slane %v844_v4, 1 }
  0x55   : > { %1233 = vmatpush.bf16.msra.mxu1 %v7046_v19  ;;  %v858_v19 = vrot.slane %v856_v6, 1 }
  0x56   : > { %1690 = vmatpush.bf16.msra.mxu2 %v7064_v20  ;;  %v861_v20 = vshll.u32 %v7829_v5, 16 }
  0x57   : > { %1709 = vmatpush.bf16.msra.mxu3 %v7072_v21  ;;  %v5549_v21 = vor.u32 %v7051_v8, %v5548_v7  ;;  %v859_v34 = vor.u32 %v858_v19, %v854_v17 }
  0x58   : > { %1215 = vmatpush.bf16.msra.mxu0 %v7037_v26  ;;  %v5573_v26 = vor.u32 %v7054_v13, %v5570_v14  ;;  %v863_v36 = vrot.slane %v861_v20, 1  ;;  %v7078_v13 = vld [vmem:[%s9157_s1 + $0x318] sm:$0xff] }
  0x59   : > { %1234 = vmatpush.bf16.msra.mxu1 %v7045_v27  ;;  %v7059_v27 = vld [vmem:[%s9157_s1 + $0x280] sm:$0xff]  ;;  %v1413_v35 = vrot.slane %v5549_v21, 1  ;;  %v7086_v14 = vld [vmem:[%s9157_s1 + $0x358] sm:$0xff]  ;;  %v7077_v21 = vld [vmem:[%s9157_s1 + $0x310] sm:$0xff] }
  0x5a   : > { %1691 = vmatpush.bf16.msra.mxu2 %v7063_v29  ;;  %v7090_v29 = vld [vmem:[%s9157_s1 + $0x378] sm:$0xff]  ;;  %v7867_v40 = vrot.slane %v5573_v26, 1  ;;  %v864_v43 = vsel %vm804_vm0, %v859_v34, %v863_v36  ;;  %v7084_v26 = vld [vmem:[%s9157_s1 + $0x348] sm:$0xff] }
  0x5b   : > { %1710 = vmatpush.bf16.msra.mxu3 %v7071_v32  ;;  %644 = vmatmul.bf16.gmra.mxu0 %v5185_v48  ;;  %v847_v32 = vor.u32 %v846_v18, %v842_v15  ;;  %v7081_v48 = vld [vmem:[%s9157_s1 + $0x330] sm:$0xff]  ;;  %v7094_v15 = vld [vmem:[%s9157_s1 + $0x398] sm:$0xff]  ;;  %v7050_v34 = vld [vmem:[%s7552_s19 + $0xc] sm:$0xe] }
  0x5c   : > { %1216 = vmatpush.bf16.msra.mxu0 %v7036_v38  ;;  %1168 = vmatmul.bf16.gmra.mxu1 %v872_v49  ;;  %v7865_v38 = vrot.slane %v5569_v24, 1  ;;  %v7089_v49 = vld [vmem:[%s9157_s1 + $0x370] sm:$0xff] }
  0x5d   : > { %1235 = vmatpush.bf16.msra.mxu1 %v7044_v39  ;;  %1187 = vmatmul.bf16.gmra.mxu2 %v880_v55  ;;  %v1416_v39 = vrot.slane %v5553_v25, 1  ;;  %v852_v42 = vsel %vm804_vm0, %v847_v32, %v851_v33  ;;  %v7088_v55 = vld [vmem:[%s9157_s1 + $0x368] sm:$0xff]  ;;  %v7111_v24 = vld [vmem:[%s9157_s1 + $0x3d0] sm:$0xff] }
  0x5e   : > { %1692 = vmatpush.bf16.msra.mxu2 %v7062_v46  ;;  %1206 = vmatmul.bf16.gmra.mxu3 %v888_v56  ;;  %v1415_v46 = vsel %vm1412_vm1, %v1413_v35, %v7865_v38  ;;  %v1392_v56 = vunpack.c.l.b16 %v1274_v51  ;;  %v7076_v25 = vld [vmem:[%s9157_s1 + $0x308] sm:$0xff]  ;;  %v5564_v35 = vld [vmem:[%s7552_s19 + $0x10] sm:$0xe] }
  0x5f   : > { %1711 = vmatpush.bf16.msra.mxu3 %v7070_v47  ;;  %v1418_v47 = vsel %vm1412_vm1, %v1416_v39, %v7867_v40  ;;  %v7110_v32 = vld [vmem:[%s9157_s1 + $0x3c8] sm:$0xff]  ;;  %v5584_v39 = vld [vmem:[%s7552_s19 + $0x38] sm:$0xf] }
  0x60   : > { %1217 = vmatpush.bf16.msra.mxu0 %v7035_v50  ;;  %v7097_v50 = vld [vmem:[%s9157_s1 + $0x3b0] sm:$0xff]  ;;  %v1407_v4 = vpack.c.b16 %v1392_v56, %v1392_v56  ;;  %v7140_v56 = vld [vmem:[%s9157_s1 + $0x4b8] sm:$0xff] }
  0x61   : > { %1236 = vmatpush.bf16.msra.mxu1 %v7043_v57  ;;  %v1393_v57 = vunpack.c.h.b16 %v1274_v51  ;;  %v7132_v51 = vld [vmem:[%s9157_s1 + $0x478] sm:$0xff] }
  0x62   : > { %1693 = vmatpush.bf16.msra.mxu2 %v7061_v60  ;;  %v889_v60 = vshrl.u32 %v7821_v0, 16  ;;  %v7095_v0 = vld [vmem:[%s9157_s1 + $0x3a0] sm:$0xff]  ;;  %v1428_v11 = vrot.slane %v1407_v4, 1  ;;  %v7123_v4 = vld [vmem:[%s9157_s1 + $0x430] sm:$0xff] }
  0x63   : > { %1712 = vmatpush.bf16.msra.mxu3 %v7069_v61  ;;  %v893_v61 = vshll.u32 %v802_v52, 16  ;;  %v1408_v6 = vpack.c.b16 %v1393_v57, %v1393_v57  ;;  %v7148_v57 = vld [vmem:[%s9157_s1 + $0x4f8] sm:$0xff] }
  0x64   : > { %1218 = vmatpush.bf16.msra.mxu0 %v7034_v62  ;;  %v897_v62 = vshrl.u32 %v7829_v5, 16  ;;  %v7113_v5 = vld [vmem:[%s9157_s1 + $0x3e0] sm:$0xff]  ;;  %v891_v7 = vor.u32 %v889_v60, %v851_v33  ;;  %v1429_v19 = vsel %vm1412_vm1, %v7865_v38, %v1428_v11  ;;  %v5748_v60 = vld [vmem:[%s7552_s19 + $0x14] sm:$0xf]  ;;  %v7122_v11 = vld [vmem:[%s9157_s1 + $0x428] sm:$0xff] }
  0x65   : > { %1237 = vmatpush.bf16.msra.mxu1 %v7042_v63  ;;  %v901_v63 = vshll.u32 %v803_v53, 16  ;;  %v895_v8 = vrot.slane %v893_v61, 1  ;;  %v1430_v12 = vrot.slane %v1408_v6, 1  ;;  %v7057_v33 = vld [vmem:[%s7552_s19 + $0x40] sm:$0xf0]  ;;  %v7131_v6 = vld [vmem:[%s9157_s1 + $0x470] sm:$0xff] }
  0x66   : > { %1694 = vmatpush.bf16.msra.mxu2 %v7060_v2  ;;  %v7079_v2 = vld [vmem:[%s9157_s1 + $0x320] sm:$0xff]  ;;  %v899_v9 = vor.u32 %v897_v62, %v863_v36  ;;  %v7101_v61 = vld [vmem:[%s7552_s19 + $0x24] sm:$0xf0] }
  0x67   : > { %1713 = vmatpush.bf16.msra.mxu3 %v7068_v3  ;;  %v7087_v3 = vld [vmem:[%s9157_s1 + $0x360] sm:$0xff]  ;;  %v903_v10 = vrot.slane %v901_v63, 1  ;;  %v896_v17 = vsel %vm804_vm0, %v891_v7, %v895_v8  ;;  %v1431_v20 = vsel %vm1412_vm1, %v7867_v40, %v1430_v12  ;;  %v7058_v40 = vld [vmem:[%s7552_s19 + $0x48] sm:$0xf0]  ;;  %v7147_v7 = vld [vmem:[%s9157_s1 + $0x4f0] sm:$0xff] }
  0x68   : > { %1219 = vmatpush.bf16.msra.mxu0 %v7033_v22  ;;  %v7085_v22 = vld [vmem:[%s9157_s1 + $0x350] sm:$0xff]  ;;  %v5558_v36 = vld [vmem:[%s7552_s19 + $0x1c] sm:$0xf0]  ;;  %v7053_v38 = vld [vmem:[%s7552_s19 + $0x20] sm:$0xf0] }
  0x69   : > { %1238 = vmatpush.bf16.msra.mxu1 %v7041_v23  ;;  %v904_v18 = vsel %vm804_vm0, %v899_v9, %v903_v10  ;;  %v7093_v23 = vld [vmem:[%s9157_s1 + $0x390] sm:$0xff]  ;;  %v1276_v8 = vld [vmem:[%s7552_s19 + $0x60] sm:$0x1]  ;;  %v7130_v12 = vld [vmem:[%s9157_s1 + $0x468] sm:$0xff] }
  0x6a   : > { %1695 = vmatpush.bf16.msra.mxu2 %v7059_v27  ;;  %v5556_v27 = vld [vmem:[%s7552_s19 + $0x8] sm:$0xe] }
  0x6b   : > { %1714 = vmatpush.bf16.msra.mxu3 %v7067_v28  ;;  %1220 = vmatmul.bf16.vlgmr.msra.gmra.mxu0 %v852_v42  ;;  %v7052_v28 = vld [vmem:[%s7552_s19 + $0x18] sm:$0xf0] }
  0x6c   : > { %1726 = vmatpush.bf16.msrb.mxu0 %v7082_v30  ;;  %1239 = vmatmul.bf16.vlgmr.msra.gmra.mxu1 %v864_v43  ;;  %v5576_v30 = vld [vmem:[%s7552_s19 + $0x30] sm:$0xf]  ;;  %v5557_v41 = vor.u32 %v7052_v28, %v5556_v27  ;;  %v5561_v43 = vor.u32 %v7050_v34, %v5558_v36  ;;  %v7120_v28 = vld [vmem:[%s9157_s1 + $0x418] sm:$0xff] }
  0x6d   : > { %1745 = vmatpush.bf16.msrb.mxu1 %v7090_v29  ;;  %1696 = vmatmul.bf16.vlgmr.msra.gmra.mxu2 %v1415_v46  ;;  %v7092_v29 = vld [vmem:[%s9157_s1 + $0x388] sm:$0xff]  ;;  %v5577_v42 = vor.u32 %v7057_v33, %v5576_v30  ;;  %v7083_v46 = vld [vmem:[%s9157_s1 + $0x340] sm:$0xff]  ;;  %v7106_v27 = vld [vmem:[%s7552_s19 + $0x4c] sm:$0xf0] }
  0x6e   : > { %1764 = vmatpush.bf16.msrb.mxu2 %v7098_v31  ;;  %1715 = vmatmul.bf16.vlgmr.msra.gmra.mxu3 %v1418_v47  ;;  %v7055_v31 = vld [vmem:[%s7552_s19 + $0x34] sm:$0xf]  ;;  %v5565_v47 = vor.u32 %v7053_v38, %v5564_v35  ;;  %v1419_v52 = vrot.slane %v5557_v41, 1  ;;  %v7128_v30 = vld [vmem:[%s9157_s1 + $0x458] sm:$0xff]  ;;  %v7126_v41 = vld [vmem:[%s9157_s1 + $0x448] sm:$0xff] }
  0x6f   : > { %2179 = vmatpush.bf16.msrb.mxu3 %v7116_v37  ;;  %v5578_v37 = vld [vmem:[%s7552_s19 + $0x44] sm:$0xf0]  ;;  %v7988_v53 = vrot.slane %v5577_v42, 1  ;;  %v7127_v35 = vld [vmem:[%s9157_s1 + $0x450] sm:$0xff] }
  0x70   : > { %1727 = vmatpush.bf16.msrb.mxu0 %v7081_v48  ;;  %v5581_v44 = vor.u32 %v7055_v31, %v5578_v37  ;;  %v5585_v48 = vor.u32 %v7058_v40, %v5584_v39  ;;  %v7119_v37 = vld [vmem:[%s9157_s1 + $0x410] sm:$0xff]  ;;  %v7118_v40 = vld [vmem:[%s9157_s1 + $0x408] sm:$0xff] }
  0x71   : > { %1746 = vmatpush.bf16.msrb.mxu1 %v7089_v49  ;;  %v7091_v49 = vld [vmem:[%s9157_s1 + $0x380] sm:$0xff]  ;;  %v1421_v62 = vsel %vm1412_vm1, %v1419_v52, %v7988_v53  ;;  %v7135_v38 = vld [vmem:[%s9157_s1 + $0x490] sm:$0xff]  ;;  %v7134_v42 = vld [vmem:[%s9157_s1 + $0x488] sm:$0xff] }
  0x72   : > { %1765 = vmatpush.bf16.msrb.mxu2 %v7097_v50  ;;  %v7109_v50 = vld [vmem:[%s9157_s1 + $0x3c0] sm:$0xff]  ;;  %v7143_v39 = vld [vmem:[%s9157_s1 + $0x4d0] sm:$0xff]  ;;  %v7174_v52 = vld [vmem:[%s9157_s1 + $0x578] sm:$0xff] }
  0x73   : > { %2180 = vmatpush.bf16.msrb.mxu3 %v7115_v1  ;;  %v7124_v1 = vld [vmem:[%s9157_s1 + $0x438] sm:$0xff] }
  0x74   : > { %1728 = vmatpush.bf16.msrb.mxu0 %v7080_v54  ;;  %v1422_v54 = vrot.slane %v5561_v43, 1  ;;  %v7142_v43 = vld [vmem:[%s9157_s1 + $0x4c8] sm:$0xff] }
  0x75   : > { %1747 = vmatpush.bf16.msrb.mxu1 %v7088_v55  ;;  %v7990_v55 = vrot.slane %v5581_v44, 1  ;;  %v7117_v44 = vld [vmem:[%s9157_s1 + $0x400] sm:$0xff] }
  0x76   : > { %1766 = vmatpush.bf16.msrb.mxu2 %v7096_v58  ;;  %v1425_v58 = vrot.slane %v5565_v47, 1  ;;  %v7141_v47 = vld [vmem:[%s9157_s1 + $0x4c0] sm:$0xff] }
  0x77   : > { %2181 = vmatpush.bf16.msrb.mxu3 %v7114_v59  ;;  %v1426_v59 = vrot.slane %v5585_v48, 1  ;;  %v1424_v63 = vsel %vm1412_vm1, %v1422_v54, %v7990_v55  ;;  %v7099_v48 = vld [vmem:[%s7552_s19 + $0x18] sm:$0xf] }
  0x78   : > { %1729 = vmatpush.bf16.msrb.mxu0 %v7079_v2  ;;  %v5749_v2 = vor.u32 %v7101_v61, %v5748_v60  ;;  %v7182_v54 = vld [vmem:[%s9157_s1 + $0x5b8] sm:$0xff] }
  0x79   : > { %1748 = vmatpush.bf16.msrb.mxu1 %v7087_v3  ;;  %v1427_v3 = vsel %vm1412_vm1, %v1425_v58, %v1426_v59  ;;  %v7103_v58 = vld [vmem:[%s7552_s19 + $0x34] sm:$0xf0] }
  0x7a   : > { %1767 = vmatpush.bf16.msrb.mxu2 %v7095_v0  ;;  %v1275_v0 = vld [vmem:[%s7552_s19 + $0x58] sm:$0x11] }
  0x7b   : > { %2182 = vmatpush.bf16.msrb.mxu3 %v7113_v5  ;;  %1225 = vmatmul.bf16.gmra.mxu0 %v896_v17  ;;  %v7139_v5 = vld [vmem:[%s9157_s1 + $0x4b0] sm:$0xff]  ;;  %v1394_v9 = vunpack.c.l.b16 %v1275_v0  ;;  %v1395_v10 = vunpack.c.h.b16 %v1275_v0 }
  0x7c   : > { %1730 = vmatpush.bf16.msrb.mxu0 %v7078_v13  ;;  %1244 = vmatmul.bf16.gmra.mxu1 %v904_v18  ;;  %v1396_v13 = vunpack.c.l.b16 %v1276_v8  ;;  %v7121_v18 = vld [vmem:[%s9157_s1 + $0x420] sm:$0xff]  ;;  %v7181_v0 = vld [vmem:[%s9157_s1 + $0x5b0] sm:$0xff]  ;;  %v7172_v8 = vld [vmem:[%s9157_s1 + $0x568] sm:$0xff] }
  0x7d   : > { %1749 = vmatpush.bf16.msrb.mxu1 %v7086_v14  ;;  %1701 = vmatmul.bf16.gmra.mxu2 %v1429_v19  ;;  %v7138_v14 = vld [vmem:[%s9157_s1 + $0x4a8] sm:$0xff]  ;;  %v1410_v17 = vpack.c.b16 %v1395_v10, %v1395_v10  ;;  %v7129_v19 = vld [vmem:[%s9157_s1 + $0x460] sm:$0xff] }
  0x7e   : > { %1768 = vmatpush.bf16.msrb.mxu2 %v7094_v15  ;;  %1720 = vmatmul.bf16.gmra.mxu3 %v1431_v20  ;;  %v7146_v15 = vld [vmem:[%s9157_s1 + $0x4e8] sm:$0xff]  ;;  %v1411_v20 = vpack.c.b16 %v1396_v13, %v1396_v13 }
  0x7f   : > { %2183 = vmatpush.bf16.msrb.mxu3 %v7112_v16  ;;  %v1409_v16 = vpack.c.b16 %v1394_v9, %v1394_v9  ;;  %v7180_v9 = vld [vmem:[%s9157_s1 + $0x5a8] sm:$0xff] }
  0x80   : > { %1731 = vmatpush.bf16.msrb.mxu0 %v7077_v21  ;;  %v7137_v21 = vld [vmem:[%s9157_s1 + $0x4a0] sm:$0xff]  ;;  %v7188_v10 = vld [vmem:[%s9157_s1 + $0x5e8] sm:$0xff] }
  0x81   : > { %1750 = vmatpush.bf16.msrb.mxu1 %v7085_v22  ;;  %v7145_v22 = vld [vmem:[%s9157_s1 + $0x4e0] sm:$0xff] }
  0x82   : > { %1769 = vmatpush.bf16.msrb.mxu2 %v7093_v23  ;;  %v1432_v23 = vrot.slane %v1409_v16, 1  ;;  %v7163_v16 = vld [vmem:[%s9157_s1 + $0x520] sm:$0xff] }
  0x83   : > { %2184 = vmatpush.bf16.msrb.mxu3 %v7111_v24  ;;  %v1434_v24 = vrot.slane %v1410_v17, 1 }
  0x84   : > { %1732 = vmatpush.bf16.msrb.mxu0 %v7076_v25  ;;  %v5768_v25 = vld [vmem:[%s7552_s19 + $0x3c] sm:$0xf]  ;;  %v1433_v33 = vsel %vm1412_vm1, %v7988_v53, %v1432_v23  ;;  %v7100_v53 = vld [vmem:[%s7552_s19 + $0x20] sm:$0xf]  ;;  %v5770_v23 = vld [vmem:[%s7552_s19 + $0x50] sm:$0xf0] }
  0x85   : > { %1751 = vmatpush.bf16.msrb.mxu1 %v7084_v26  ;;  %v1436_v26 = vrot.slane %v1411_v20, 1  ;;  %v1435_v34 = vsel %vm1412_vm1, %v7990_v55, %v1434_v24  ;;  %v5769_v36 = vor.u32 %v7106_v27, %v5768_v25  ;;  %v7190_v55 = vld [vmem:[%s9157_s1 + $0x5f8] sm:$0xff]  ;;  %v7187_v20 = vld [vmem:[%s9157_s1 + $0x5e0] sm:$0xff] }
  0x86   : > { %1770 = vmatpush.bf16.msrb.mxu2 %v7092_v29  ;;  %v7136_v29 = vld [vmem:[%s9157_s1 + $0x498] sm:$0xff]  ;;  %v5776_v24 = vld [vmem:[%s7552_s19 + $0x44] sm:$0xf] }
  0x87   : > { %2185 = vmatpush.bf16.msrb.mxu3 %v7110_v32  ;;  %v7144_v32 = vld [vmem:[%s9157_s1 + $0x4d8] sm:$0xff]  ;;  %v1437_v31 = vsel %vm1412_vm1, %v1426_v59, %v1436_v26  ;;  %v7105_v26 = vld [vmem:[%s7552_s19 + $0x48] sm:$0xf] }
  0x88   : > { %1733 = vmatpush.bf16.msrb.mxu0 %v7075_v45  ;;  %v7125_v45 = vld [vmem:[%s9157_s1 + $0x440] sm:$0xff]  ;;  %v7107_v25 = vld [vmem:[%s7552_s19 + $0x54] sm:$0xf0]  ;;  %v5778_v27 = vld [vmem:[%s7552_s19 + $0x58] sm:$0xf0] }
  0x89   : > { %1752 = vmatpush.bf16.msrb.mxu1 %v7083_v46  ;;  %v7133_v46 = vld [vmem:[%s9157_s1 + $0x480] sm:$0xff] }
  0x8a   : > { %1771 = vmatpush.bf16.msrb.mxu2 %v7091_v49  ;;  %v5750_v49 = vld [vmem:[%s7552_s19 + $0x28] sm:$0xf0] }
  0x8b   : > { %2186 = vmatpush.bf16.msrb.mxu3 %v7109_v50  ;;  %1734 = vmatmul.bf16.vlgmr.msrb.gmra.mxu0 %v1421_v62  ;;  %v5756_v50 = vld [vmem:[%s7552_s19 + $0x1c] sm:$0xf]  ;;  %v5753_v59 = vor.u32 %v7099_v48, %v5750_v49  ;;  %v7156_v48 = vld [vmem:[%s7552_s19 + $0x4c] sm:$0xf0] }
  0x8c   : > { %2198 = vmatpush.bf16.msra.mxu0 %v7124_v1  ;;  %1753 = vmatmul.bf16.vlgmr.msrb.gmra.mxu1 %v1424_v63  ;;  %v7102_v1 = vld [vmem:[%s7552_s19 + $0x2c] sm:$0xf0] }
  0x8d   : > { %2217 = vmatpush.bf16.msra.mxu1 %v7132_v51  ;;  %1772 = vmatmul.bf16.vlgmr.msrb.gmra.mxu2 %v1427_v3  ;;  %v7166_v51 = vld [vmem:[%s9157_s1 + $0x538] sm:$0xff]  ;;  %v5757_v60 = vor.u32 %v7102_v1, %v5756_v50 }
  0x8e   : > { %2236 = vmatpush.bf16.msra.mxu2 %v7140_v56  ;;  %2187 = vmatmul.bf16.vlgmr.msrb.gmra.mxu3 %v5749_v2  ;;  %v5758_v56 = vld [vmem:[%s7552_s19 + $0x30] sm:$0xf0] }
  0x8f   : > { %2255 = vmatpush.bf16.msra.mxu3 %v7148_v57  ;;  %v5764_v57 = vld [vmem:[%s7552_s19 + $0x24] sm:$0xf]  ;;  %v5761_v63 = vor.u32 %v7100_v53, %v5758_v56  ;;  %v5781_v53 = vor.u32 %v7105_v26, %v5778_v27  ;;  %v7154_v56 = vld [vmem:[%s7552_s19 + $0x40] sm:$0xf] }
  0x90   : > { %2199 = vmatpush.bf16.msra.mxu0 %v7123_v4  ;;  %v5765_v2 = vor.u32 %v7103_v58, %v5764_v57  ;;  %v7165_v4 = vld [vmem:[%s9157_s1 + $0x530] sm:$0xff] }
  0x91   : > { %2218 = vmatpush.bf16.msra.mxu1 %v7131_v6  ;;  %v7173_v6 = vld [vmem:[%s9157_s1 + $0x570] sm:$0xff] }
  0x92   : > { %2237 = vmatpush.bf16.msra.mxu2 %v7139_v5  ;;  %v7189_v5 = vld [vmem:[%s9157_s1 + $0x5f0] sm:$0xff] }
  0x93   : > { %2256 = vmatpush.bf16.msra.mxu3 %v7147_v7  ;;  %v7164_v7 = vld [vmem:[%s9157_s1 + $0x528] sm:$0xff]  ;;  %v5970_v57 = vld [vmem:[%s7552_s19 + $0x50] sm:$0xf0] }
  0x94   : > { %2200 = vmatpush.bf16.msra.mxu0 %v7122_v11 }
  0x95   : > { %2219 = vmatpush.bf16.msra.mxu1 %v7130_v12 }
  0x96   : > { %2238 = vmatpush.bf16.msra.mxu2 %v7138_v14 }
  0x97   : > { %2257 = vmatpush.bf16.msra.mxu3 %v7146_v15 }
  0x98   : > { %2201 = vmatpush.bf16.msra.mxu0 %v7121_v18  ;;  %v7171_v18 = vld [vmem:[%s9157_s1 + $0x560] sm:$0xff] }
  0x99   : > { %2220 = vmatpush.bf16.msra.mxu1 %v7129_v19  ;;  %v7179_v19 = vld [vmem:[%s9157_s1 + $0x5a0] sm:$0xff] }
  0x9a   : > { %2239 = vmatpush.bf16.msra.mxu2 %v7137_v21 }
  0x9b   : > { %2258 = vmatpush.bf16.msra.mxu3 %v7145_v22  ;;  %1739 = vmatmul.bf16.gmra.mxu0 %v1433_v33  ;;  %v7104_v22 = vld [vmem:[%s7552_s19 + $0x40] sm:$0xf]  ;;  %v5948_v33 = vld [vmem:[%s7552_s19 + $0x14] sm:$0xf] }
  0x9c   : > { %2202 = vmatpush.bf16.msra.mxu0 %v7120_v28  ;;  %1758 = vmatmul.bf16.gmra.mxu1 %v1435_v34  ;;  %v5784_v28 = vld [vmem:[%s7552_s19 + $0x4c] sm:$0xf]  ;;  %v7151_v34 = vld [vmem:[%s7552_s19 + $0x24] sm:$0xf0] }
  0x9d   : > { %2221 = vmatpush.bf16.msra.mxu1 %v7128_v30  ;;  %1777 = vmatmul.bf16.gmra.mxu2 %v1437_v31  ;;  %v7108_v30 = vld [vmem:[%s7552_s19 + $0x5c] sm:$0xf0]  ;;  %v5950_v31 = vld [vmem:[%s7552_s19 + $0x28] sm:$0xf0]  ;;  %v8189_v49 = vor.u32 %v7151_v34, %v5948_v33 }
  0x9e   : > { %2240 = vmatpush.bf16.msra.mxu2 %v7136_v29  ;;  %2192 = vmatmul.bf16.gmra.mxu3 %v5769_v36  ;;  %v7162_v29 = vld [vmem:[%s9157_s1 + $0x518] sm:$0xff]  ;;  %v7159_v34 = vld [vmem:[%s9157_s1 + $0x500] sm:$0xff] }
  0x9f   : > { %2259 = vmatpush.bf16.msra.mxu3 %v7144_v32  ;;  %v7170_v32 = vld [vmem:[%s9157_s1 + $0x558] sm:$0xff] }
  0xa0   : > { %2203 = vmatpush.bf16.msra.mxu0 %v7119_v37  ;;  %v7149_v36 = vld [vmem:[%s7552_s19 + $0x18] sm:$0xf] }
  0xa1   : > { %2222 = vmatpush.bf16.msra.mxu1 %v7127_v35  ;;  %v7178_v37 = vld [vmem:[%s9157_s1 + $0x598] sm:$0xff]  ;;  %v8191_v50 = vor.u32 %v7149_v36, %v5950_v31  ;;  %v7167_v36 = vld [vmem:[%s9157_s1 + $0x540] sm:$0xff] }
  0xa2   : > { %2241 = vmatpush.bf16.msra.mxu2 %v7135_v38  ;;  %v5956_v35 = vld [vmem:[%s7552_s19 + $0x1c] sm:$0xf]  ;;  %v7152_v38 = vld [vmem:[%s7552_s19 + $0x2c] sm:$0xf0] }
  0xa3   : > { %2260 = vmatpush.bf16.msra.mxu3 %v7143_v39  ;;  %v7186_v39 = vld [vmem:[%s9157_s1 + $0x5d8] sm:$0xff]  ;;  %v8198_v58 = vor.u32 %v7152_v38, %v5956_v35 }
  0xa4   : > { %2204 = vmatpush.bf16.msra.mxu0 %v7118_v40  ;;  %v7150_v40 = vld [vmem:[%s7552_s19 + $0x20] sm:$0xf] }
  0xa5   : > { %2223 = vmatpush.bf16.msra.mxu1 %v7126_v41  ;;  %v5958_v41 = vld [vmem:[%s7552_s19 + $0x30] sm:$0xf0] }
  0xa6   : > { %2242 = vmatpush.bf16.msra.mxu2 %v7134_v42 }
  0xa7   : > { %2261 = vmatpush.bf16.msra.mxu3 %v7142_v43 }
  0xa8   : > { %2205 = vmatpush.bf16.msra.mxu0 %v7117_v44  ;;  %v564_v61 = vpop.f32.mrf.mxu0  ;;  %v5773_v44 = vor.u32 %v7104_v22, %v5770_v23  ;;  %v2449_v23 = vshrl.u32 %v8191_v50, 16 }
  0xa9   : > { %2224 = vmatpush.bf16.msra.mxu1 %v7125_v45  ;;  %v583_v62 = vpop.f32.mrf.mxu1  ;;  %v5777_v45 = vor.u32 %v7107_v25, %v5776_v24 }
  0xaa   : > { %2243 = vmatpush.bf16.msra.mxu2 %v7133_v46  ;;  %v584_v3 = vadd.f32 %v583_v62, %v564_v61  ;;  %v7161_v46 = vld [vmem:[%s9157_s1 + $0x510] sm:$0xff]  ;;  %v5976_v61 = vld [vmem:[%s7552_s19 + $0x44] sm:$0xf]  ;;  %v7157_v62 = vld [vmem:[%s7552_s19 + $0x54] sm:$0xf0] }
  0xab   : > { %2262 = vmatpush.bf16.msra.mxu3 %v7141_v47  ;;  %2206 = vmatmul.bf16.vlgmr.msra.gmra.mxu0 %v5753_v59  ;;  %v5968_v47 = vld [vmem:[%s7552_s19 + $0x3c] sm:$0xf] }
  0xac   : > { %2786 = vmatpush.bf16.msrb.mxu0 %v7166_v51  ;;  %2225 = vmatmul.bf16.vlgmr.msra.gmra.mxu1 %v5757_v60  ;;  %v7177_v60 = vld [vmem:[%s9157_s1 + $0x590] sm:$0xff] }
  0xad   : > { %2805 = vmatpush.bf16.msrb.mxu1 %v7174_v52  ;;  %2244 = vmatmul.bf16.vlgmr.msra.gmra.mxu2 %v5761_v63  ;;  %v8205_v63 = vor.u32 %v7150_v40, %v5958_v41  ;;  %v7183_v40 = vld [vmem:[%s9157_s1 + $0x5c0] sm:$0xff] }
  0xae   : > { %2824 = vmatpush.bf16.msrb.mxu2 %v7182_v54  ;;  %2263 = vmatmul.bf16.vlgmr.msra.gmra.mxu3 %v5765_v2  ;;  %v5785_v54 = vor.u32 %v7108_v30, %v5784_v28  ;;  %v2461_v30 = vshrl.u32 %v8198_v58, 16 }
  0xaf   : > { %2843 = vmatpush.bf16.msrb.mxu3 %v7190_v55  ;;  %v7169_v55 = vld [vmem:[%s9157_s1 + $0x550] sm:$0xff]  ;;  %v2473_v31 = vshrl.u32 %v8205_v63, 16 }
  0xb0   : > { %2787 = vmatpush.bf16.msrb.mxu0 %v7165_v4  ;;  %v602_v11 = vpop.f32.mrf.mxu2  ;;  %v566_v14 = vpop.f32.mrf.mxu0  ;;  %v8212_v4 = vor.u32 %v7156_v48, %v5968_v47 }
  0xb1   : > { %2806 = vmatpush.bf16.msrb.mxu1 %v7173_v6  ;;  %v621_v12 = vpop.f32.mrf.mxu3  ;;  %v603_v13 = vadd.f32 %v602_v11, %v584_v3  ;;  %v585_v15 = vpop.f32.mrf.mxu1  ;;  %v7185_v3 = vld [vmem:[%s9157_s1 + $0x5d0] sm:$0xff]  ;;  %v7155_v6 = vld [vmem:[%s7552_s19 + $0x48] sm:$0xf] }
  0xb2   : > { %2825 = vmatpush.bf16.msrb.mxu2 %v7181_v0  ;;  %v586_v17 = vadd.f32 %v585_v15, %v566_v14  ;;  %v5978_v0 = vld [vmem:[%s7552_s19 + $0x58] sm:$0xf0]  ;;  %v7160_v11 = vld [vmem:[%s9157_s1 + $0x508] sm:$0xff]  ;;  %v2475_v14 = vshll.u32 %v8205_v63, 16 }
  0xb3   : > { %2844 = vmatpush.bf16.msrb.mxu3 %v7189_v5  ;;  %v8154_v21 = vadd.f32 %v621_v12, %v603_v13  ;;  %v2439_v5 = vshll.u32 %v8189_v49, 16  ;;  %v7168_v12 = vld [vmem:[%s9157_s1 + $0x548] sm:$0xff]  ;;  %v8229_v13 = vor.u32 %v7155_v6, %v5978_v0  ;;  %v7197_v0 = vld [vmem:[%s9157_s1 + $0x630] sm:$0xff] }
  0xb4   : > { %2788 = vmatpush.bf16.msrb.mxu0 %v7164_v7  ;;  %v8217_v7 = vor.u32 %v7154_v56, %v5970_v57  ;;  %v7176_v15 = vld [vmem:[%s9157_s1 + $0x588] sm:$0xff] }
  0xb5   : > { %2807 = vmatpush.bf16.msrb.mxu1 %v7172_v8  ;;  %v2451_v8 = vshll.u32 %v8191_v50, 16  ;;  %v2441_v22 = vrot.slane %v2439_v5, 1  ;;  %v2480_v35 = vshll.u32 %v8229_v13, 16  ;;  %v7232_v50 = vld [vmem:[%s9157_s1 + $0x6f8] sm:$0xff]  ;;  %v7215_v5 = vld [vmem:[%s9157_s1 + $0x670] sm:$0xff] }
  0xb6   : > { %2826 = vmatpush.bf16.msrb.mxu2 %v7180_v9  ;;  %v8220_v9 = vor.u32 %v7157_v62, %v5976_v61  ;;  %v2456_v25 = vshll.u32 %v8217_v7, 16 }
  0xb7   : > { %2845 = vmatpush.bf16.msrb.mxu3 %v7188_v10  ;;  %v2463_v10 = vshll.u32 %v8198_v58, 16  ;;  %v2453_v24 = vrot.slane %v2451_v8, 1 }
  0xb8   : > { %2789 = vmatpush.bf16.msrb.mxu0 %v7163_v16  ;;  %v604_v42 = vpop.f32.mrf.mxu2  ;;  %v569_v51 = vpop.f32.mrf.mxu0  ;;  %v7184_v16 = vld [vmem:[%s9157_s1 + $0x5c8] sm:$0xff] }
  0xb9   : > { %2808 = vmatpush.bf16.msrb.mxu1 %v7171_v18  ;;  %v623_v43 = vpop.f32.mrf.mxu3  ;;  %v605_v1 = vadd.f32 %v604_v42, %v586_v17  ;;  %v588_v52 = vpop.f32.mrf.mxu1  ;;  %v2437_v17 = vshrl.u32 %v8189_v49, 16  ;;  %v2444_v18 = vshll.u32 %v8212_v4, 16  ;;  %v7224_v49 = vld [vmem:[%s9157_s1 + $0x6b8] sm:$0xff] }
  0xba   : > { %2827 = vmatpush.bf16.msrb.mxu2 %v7179_v19  ;;  %v589_v59 = vadd.f32 %v588_v52, %v569_v51  ;;  %v8278_v51 = vrot.slane %v2480_v35, 1  ;;  %v2298_v52 = vld [vmem:[%s7552_s19 + $0x64] sm:$0x11] }
  0xbb   : > { %2846 = vmatpush.bf16.msrb.mxu3 %v7187_v20  ;;  %v8207_v2 = vadd.f32 %v623_v43, %v605_v1  ;;  %2211 = vmatmul.bf16.gmra.mxu0 %v5773_v44  ;;  %v2442_v41 = vor.u32 %v2441_v22, %v2437_v17  ;;  %v8260_v42 = vrot.slane %v2444_v18, 1  ;;  %v2454_v43 = vor.u32 %v2453_v24, %v2449_v23  ;;  %v7214_v17 = vld [vmem:[%s9157_s1 + $0x668] sm:$0xff] }
  0xbc   : > { %2790 = vmatpush.bf16.msrb.mxu0 %v7162_v29  ;;  %2230 = vmatmul.bf16.gmra.mxu1 %v5777_v45  ;;  %v2465_v29 = vrot.slane %v2463_v10, 1  ;;  %v8262_v44 = vrot.slane %v2456_v25, 1  ;;  %v7198_v45 = vld [vmem:[%s9157_s1 + $0x638] sm:$0xff]  ;;  %v2416_v62 = vunpack.c.l.b16 %v2298_v52  ;;  %v2417_v63 = vunpack.c.h.b16 %v2298_v52  ;;  %v7230_v22 = vld [vmem:[%s9157_s1 + $0x6e8] sm:$0xff] }
  0xbd   : > { %2809 = vmatpush.bf16.msrb.mxu1 %v7170_v32  ;;  %2249 = vmatmul.bf16.gmra.mxu2 %v5781_v53  ;;  %v2468_v32 = vshll.u32 %v8220_v9, 16  ;;  %v2299_v53 = vld [vmem:[%s7552_s19 + $0x6c] sm:$0x11]  ;;  %v2447_v56 = vsel %vm804_vm0, %v2442_v41, %v8260_v42  ;;  %v2496_v25 = vshrl.u32 %v8212_v4, 16  ;;  %v7195_v4 = vld [vmem:[%s9157_s1 + $0x620] sm:$0xff] }
  0xbe   : > { %2828 = vmatpush.bf16.msrb.mxu2 %v7178_v37  ;;  %2268 = vmatmul.bf16.gmra.mxu3 %v5785_v54  ;;  %v2477_v37 = vrot.slane %v2475_v14, 1  ;;  %v2466_v47 = vor.u32 %v2465_v29, %v2461_v30  ;;  %v2459_v57 = vsel %vm804_vm0, %v2454_v43, %v8262_v44  ;;  %v2418_v8 = vunpack.c.l.b16 %v2299_v53 }
  0xbf   : > { %2847 = vmatpush.bf16.msrb.mxu3 %v7186_v39  ;;  %v7175_v39 = vld [vmem:[%s9157_s1 + $0x580] sm:$0xff]  ;;  %v8270_v48 = vrot.slane %v2468_v32, 1  ;;  %v2419_v10 = vunpack.c.h.b16 %v2299_v53  ;;  %v2431_v14 = vpack.c.b16 %v2416_v62, %v2416_v62  ;;  %v2498_v41 = vor.u32 %v2496_v25, %v8260_v42  ;;  %v7212_v42 = vld [vmem:[%s9157_s1 + $0x658] sm:$0xff]  ;;  %v6170_v25 = vld [vmem:[%s7552_s19 + $0x50] sm:$0xf0] }
  0xc0   : > { %2791 = vmatpush.bf16.msrb.mxu0 %v7161_v46  ;;  %v607_v19 = vpop.f32.mrf.mxu2  ;;  %v571_v27 = vpop.f32.mrf.mxu0  ;;  %v7216_v46 = vld [vmem:[%s9157_s1 + $0x678] sm:$0xff]  ;;  %v2478_v1 = vor.u32 %v2477_v37, %v2473_v31  ;;  %v2433_v18 = vpack.c.b16 %v2418_v8, %v2418_v8  ;;  %v2520_v31 = vshrl.u32 %v8229_v13, 16  ;;  %v7227_v8 = vld [vmem:[%s9157_s1 + $0x6d0] sm:$0xff] }
  0xc1   : > { %2810 = vmatpush.bf16.msrb.mxu1 %v7169_v55  ;;  %v626_v20 = vpop.f32.mrf.mxu3  ;;  %v608_v26 = vadd.f32 %v607_v19, %v589_v59  ;;  %v590_v28 = vpop.f32.mrf.mxu1  ;;  %v2471_v61 = vsel %vm804_vm0, %v2466_v47, %v8270_v48  ;;  %v2434_v19 = vpack.c.b16 %v2419_v10, %v2419_v10  ;;  %v2500_v29 = vshll.u32 %v2431_v14, 16 }
  0xc2   : > { %2829 = vmatpush.bf16.msrb.mxu2 %v7177_v60  ;;  %v591_v33 = vadd.f32 %v590_v28, %v571_v27  ;;  %v2483_v6 = vsel %vm804_vm0, %v2478_v1, %v8278_v51  ;;  %v7194_v1 = vld [vmem:[%s9157_s1 + $0x618] sm:$0xff] }
  0xc3   : > { %2848 = vmatpush.bf16.msrb.mxu3 %v7185_v3  ;;  %v8252_v38 = vadd.f32 %v626_v20, %v608_v26  ;;  %v7222_v20 = vld [vmem:[%s9157_s1 + $0x6a8] sm:$0xff]  ;;  %v2504_v26 = vshrl.u32 %v8217_v7, 16  ;;  %v7213_v7 = vld [vmem:[%s9157_s1 + $0x660] sm:$0xff]  ;;  %v2524_v37 = vshll.u32 %v2434_v19, 16  ;;  %v2502_v43 = vrot.slane %v2500_v29, 1 }
  0xc4   : > { %2792 = vmatpush.bf16.msrb.mxu0 %v7160_v11  ;;  %v7226_v19 = vld [vmem:[%s9157_s1 + $0x6c8] sm:$0xff] }
  0xc5   : > { %2811 = vmatpush.bf16.msrb.mxu1 %v7168_v12  ;;  %v7231_v12 = vld [vmem:[%s9157_s1 + $0x6f0] sm:$0xff]  ;;  %v2506_v13 = vor.u32 %v2504_v26, %v8262_v44  ;;  %v7220_v44 = vld [vmem:[%s9157_s1 + $0x698] sm:$0xff] }
  0xc6   : > { %2830 = vmatpush.bf16.msrb.mxu2 %v7176_v15  ;;  %v2432_v15 = vpack.c.b16 %v2417_v63, %v2417_v63  ;;  %v6156_v26 = vld [vmem:[%s7552_s19 + $0x1c] sm:$0xe] }
  0xc7   : > { %2849 = vmatpush.bf16.msrb.mxu3 %v7184_v16  ;;  %v7196_v16 = vld [vmem:[%s9157_s1 + $0x628] sm:$0xff] }
  0xc8   : > { %2793 = vmatpush.bf16.msrb.mxu0 %v7159_v34  ;;  %v609_v54 = vpop.f32.mrf.mxu2  ;;  %v640_v59 = vpop.f32.mrf.mxu0  ;;  %v2508_v32 = vshll.u32 %v2432_v15, 16  ;;  %v6148_v15 = vld [vmem:[%s7552_s19 + $0x14] sm:$0xe] }
  0xc9   : > { %2812 = vmatpush.bf16.msrb.mxu1 %v7167_v36  ;;  %v628_v55 = vpop.f32.mrf.mxu3  ;;  %v610_v58 = vadd.f32 %v609_v54, %v591_v33  ;;  %v1164_v60 = vpop.f32.mrf.mxu1  ;;  %v8289_v3 = vadd.f32 %v640_v59, %v8154_v21  ;;  %v7223_v21 = vld [vmem:[%s9157_s1 + $0x6b0] sm:$0xff]  ;;  %v2512_v33 = vshrl.u32 %v8220_v9, 16  ;;  %v2516_v36 = vshll.u32 %v2433_v18, 16  ;;  %v7229_v9 = vld [vmem:[%s9157_s1 + $0x6e0] sm:$0xff]  ;;  %v5984_v59 = vld [vmem:[%s7552_s19 + $0x4c] sm:$0xf] }
  0xca   : > { %2831 = vmatpush.bf16.msrb.mxu2 %v7175_v39  ;;  %v5964_v39 = vld [vmem:[%s7552_s19 + $0x24] sm:$0xf]  ;;  %v7218_v18 = vld [vmem:[%s9157_s1 + $0x688] sm:$0xff] }
  0xcb   : > { %2850 = vmatpush.bf16.msrb.mxu3 %v7183_v40  ;;  %v8299_v11 = vadd.f32 %v628_v55, %v610_v58  ;;  %2794 = vmatmul.bf16.vlgmr.msrb.gmra.mxu0 %v2447_v56  ;;  %v7153_v40 = vld [vmem:[%s7552_s19 + $0x34] sm:$0xf0]  ;;  %v2518_v47 = vrot.slane %v2516_v36, 1 }
  0xcc   : > { %2862 = vmatpush.bf16.msra.mxu0 %v7198_v45  ;;  %2813 = vmatmul.bf16.vlgmr.msrb.gmra.mxu1 %v2459_v57  ;;  %v2510_v45 = vrot.slane %v2508_v32, 1  ;;  %v2503_v57 = vsel %vm804_vm0, %v2498_v41, %v2502_v43  ;;  %v7191_v43 = vld [vmem:[%s9157_s1 + $0x600] sm:$0xff] }
  0xcd   : > { %3318 = vmatpush.bf16.msra.mxu1 %v7216_v46  ;;  %2832 = vmatmul.bf16.vlgmr.msrb.gmra.mxu2 %v2471_v61  ;;  %v2514_v46 = vor.u32 %v2512_v33, %v8270_v48  ;;  %v7228_v48 = vld [vmem:[%s9157_s1 + $0x6d8] sm:$0xff] }
  0xce   : > { %3337 = vmatpush.bf16.msra.mxu2 %v7224_v49  ;;  %2851 = vmatmul.bf16.vlgmr.msrb.gmra.mxu3 %v2483_v6  ;;  %v2522_v49 = vor.u32 %v2520_v31, %v8278_v51  ;;  %v8358_v51 = vor.u32 %v7153_v40, %v5964_v39  ;;  %v2511_v58 = vsel %vm804_vm0, %v2506_v13, %v2510_v45  ;;  %v7193_v6 = vld [vmem:[%s9157_s1 + $0x610] sm:$0xff]  ;;  %v7209_v13 = vld [vmem:[%s9157_s1 + $0x640] sm:$0xff] }
  0xcf   : > { %3356 = vmatpush.bf16.msra.mxu3 %v7232_v50  ;;  %v2526_v50 = vrot.slane %v2524_v37, 1  ;;  %v2519_v62 = vsel %vm804_vm0, %v2514_v46, %v2518_v47 }
  0xd0   : > { %2863 = vmatpush.bf16.msra.mxu0 %v7197_v0  ;;  %v1183_v23 = vpop.f32.mrf.mxu2  ;;  %v642_v28 = vpop.f32.mrf.mxu0  ;;  %v7211_v0 = vld [vmem:[%s9157_s1 + $0x650] sm:$0xff]  ;;  %v2487_v10 = vshll.u32 %v8358_v51, 16  ;;  %v2485_v33 = vshrl.u32 %v8358_v51, 16 }
  0xd1   : > { %3319 = vmatpush.bf16.msra.mxu1 %v7215_v5  ;;  %v1202_v24 = vpop.f32.mrf.mxu3  ;;  %v1184_v27 = vadd.f32 %v1183_v23, %v1164_v60  ;;  %v1166_v30 = vpop.f32.mrf.mxu1  ;;  %v8323_v34 = vadd.f32 %v642_v28, %v8207_v2  ;;  %v7221_v2 = vld [vmem:[%s9157_s1 + $0x6a0] sm:$0xff]  ;;  %v2527_v63 = vsel %vm804_vm0, %v2522_v49, %v2526_v50  ;;  %v6150_v23 = vld [vmem:[%s7552_s19 + $0x28] sm:$0xf0]  ;;  %v7240_v50 = vld [vmem:[%s9157_s1 + $0x738] sm:$0xff] }
  0xd2   : > { %3338 = vmatpush.bf16.msra.mxu2 %v7223_v21  ;;  %v7158_v60 = vld [vmem:[%s7552_s19 + $0x5c] sm:$0xf0]  ;;  %v7192_v21 = vld [vmem:[%s9157_s1 + $0x608] sm:$0xff]  ;;  %v6176_v28 = vld [vmem:[%s7552_s19 + $0x44] sm:$0xf] }
  0xd3   : > { %3357 = vmatpush.bf16.msra.mxu3 %v7231_v12  ;;  %v8332_v35 = vadd.f32 %v1202_v24, %v1184_v27  ;;  %v7210_v12 = vld [vmem:[%s9157_s1 + $0x648] sm:$0xff]  ;;  %v8390_v14 = vor.u32 %v7158_v60, %v5984_v59  ;;  %v7204_v24 = vld [vmem:[%s7552_s19 + $0x40] sm:$0xf]  ;;  %v7202_v27 = vld [vmem:[%s7552_s19 + $0x2c] sm:$0xf0] }
  0xd4   : > { %2864 = vmatpush.bf16.msra.mxu0 %v7196_v16  ;;  %v7201_v16 = vld [vmem:[%s7552_s19 + $0x24] sm:$0xf0]  ;;  %v6173_v40 = vor.u32 %v7204_v24, %v6170_v25  ;;  %v6157_v45 = vor.u32 %v7202_v27, %v6156_v26  ;;  %v7225_v49 = vld [vmem:[%s9157_s1 + $0x6c0] sm:$0xff] }
  0xd5   : > { %3320 = vmatpush.bf16.msra.mxu1 %v7214_v17  ;;  %v6168_v17 = vld [vmem:[%s7552_s19 + $0x3c] sm:$0xf]  ;;  %v6149_v36 = vor.u32 %v7201_v16, %v6148_v15  ;;  %v7239_v15 = vld [vmem:[%s9157_s1 + $0x730] sm:$0xff]  ;;  %v7238_v26 = vld [vmem:[%s9157_s1 + $0x728] sm:$0xff] }
  0xd6   : > { %3339 = vmatpush.bf16.msra.mxu2 %v7222_v20  ;;  %v7206_v20 = vld [vmem:[%s7552_s19 + $0x4c] sm:$0xf0]  ;;  %v7246_v27 = vld [vmem:[%s9157_s1 + $0x768] sm:$0xff] }
  0xd7   : > { %3358 = vmatpush.bf16.msra.mxu3 %v7230_v22  ;;  %v7199_v22 = vld [vmem:[%s7552_s19 + $0x18] sm:$0xe]  ;;  %v7247_v16 = vld [vmem:[%s9157_s1 + $0x770] sm:$0xff] }
  0xd8   : > { %2865 = vmatpush.bf16.msra.mxu0 %v7195_v4  ;;  %v1185_v52 = vpop.f32.mrf.mxu2  ;;  %v645_v55 = vpop.f32.mrf.mxu0  ;;  %v2489_v4 = vrot.slane %v2487_v10, 1  ;;  %v6153_v39 = vor.u32 %v7199_v22, %v6150_v23 }
  0xd9   : > { %3321 = vmatpush.bf16.msra.mxu1 %v7213_v7  ;;  %v1204_v53 = vpop.f32.mrf.mxu3  ;;  %v1186_v54 = vadd.f32 %v1185_v52, %v1166_v30  ;;  %v1169_v56 = vpop.f32.mrf.mxu1  ;;  %v8365_v61 = vadd.f32 %v645_v55, %v8252_v38  ;;  %v7219_v38 = vld [vmem:[%s9157_s1 + $0x690] sm:$0xff]  ;;  %v7207_v30 = vld [vmem:[%s7552_s19 + $0x54] sm:$0xf0]  ;;  %v2492_v7 = vshll.u32 %v8390_v14, 16  ;;  %v8445_v55 = vrot.slane %v6173_v40, 1  ;;  %v7245_v40 = vld [vmem:[%s9157_s1 + $0x760] sm:$0xff] }
  0xda   : > { %3340 = vmatpush.bf16.msra.mxu2 %v7221_v2  ;;  %v6177_v46 = vor.u32 %v7207_v30, %v6176_v28  ;;  %v7266_v52 = vld [vmem:[%s9157_s1 + $0x7b8] sm:$0xff] }
  0xdb   : > { %3359 = vmatpush.bf16.msra.mxu3 %v7229_v9  ;;  %v8375_v5 = vadd.f32 %v1204_v53, %v1186_v54  ;;  %2799 = vmatmul.bf16.gmra.mxu0 %v2503_v57  ;;  %v6169_v9 = vor.u32 %v7206_v20, %v6168_v17  ;;  %v7274_v53 = vld [vmem:[%s9157_s1 + $0x7f8] sm:$0xff]  ;;  %v3046_v54 = vrot.slane %v6153_v39, 1  ;;  %v2905_v17 = vld [vmem:[%s7552_s19 + $0x64] sm:$0x11]  ;;  %v8475_v20 = vld [vmem:[%s7552_s19 + $0x6c] sm:$0x11] }
  0xdc   : > { %2866 = vmatpush.bf16.msra.mxu0 %v7194_v1  ;;  %2818 = vmatmul.bf16.gmra.mxu1 %v2511_v58  ;;  %v7248_v1 = vld [vmem:[%s9157_s1 + $0x778] sm:$0xff]  ;;  %v8447_v57 = vrot.slane %v6177_v46, 1  ;;  %v2300_v58 = vld [vmem:[%s7552_s19 + $0x74] sm:$0x1]  ;;  %v3023_v24 = vunpack.c.l.b16 %v2905_v17  ;;  %v3024_v28 = vunpack.c.h.b16 %v2905_v17  ;;  %v3025_v30 = vunpack.c.l.b16 %v8475_v20  ;;  %v7237_v39 = vld [vmem:[%s9157_s1 + $0x720] sm:$0xff] }
  0xdd   : > { %3322 = vmatpush.bf16.msra.mxu1 %v7212_v42  ;;  %2837 = vmatmul.bf16.gmra.mxu2 %v2519_v62  ;;  %v2490_v42 = vor.u32 %v2489_v4, %v2485_v33  ;;  %v8437_v51 = vrot.slane %v6169_v9, 1  ;;  %v6164_v17 = vld [vmem:[%s7552_s19 + $0x24] sm:$0xe] }
  0xde   : > { %3341 = vmatpush.bf16.msra.mxu2 %v7220_v44  ;;  %2856 = vmatmul.bf16.gmra.mxu3 %v2527_v63  ;;  %v8435_v44 = vrot.slane %v2492_v7, 1 }
  0xdf   : > { %3360 = vmatpush.bf16.msra.mxu3 %v7228_v48  ;;  %v3043_v48 = vrot.slane %v6149_v36, 1 }
  0xe0   : > { %2867 = vmatpush.bf16.msra.mxu0 %v7193_v6  ;;  %v1188_v29 = vpop.f32.mrf.mxu2  ;;  %v647_v37 = vpop.f32.mrf.mxu0 }
  0xe1   : > { %3323 = vmatpush.bf16.msra.mxu1 %v7211_v0  ;;  %v1207_v32 = vpop.f32.mrf.mxu3  ;;  %v1189_v31 = vadd.f32 %v1188_v29, %v1169_v56  ;;  %v1171_v2 = vpop.f32.mrf.mxu1  ;;  %v8413_v41 = vadd.f32 %v647_v37, %v8299_v11  ;;  %v7217_v11 = vld [vmem:[%s9157_s1 + $0x680] sm:$0xff]  ;;  %v3049_v56 = vrot.slane %v6157_v45, 1  ;;  %v2495_v0 = vsel %vm804_vm0, %v2490_v42, %v8435_v44  ;;  %v7272_v29 = vld [vmem:[%s9157_s1 + $0x7e8] sm:$0xff] }
  0xe2   : > { %3342 = vmatpush.bf16.msra.mxu2 %v7219_v38  ;;  %v3045_v38 = vsel %vm1412_vm1, %v3043_v48, %v8437_v51  ;;  %v7236_v48 = vld [vmem:[%s9157_s1 + $0x718] sm:$0xff] }
  0xe3   : > { %3361 = vmatpush.bf16.msra.mxu3 %v7227_v8  ;;  %v8421_v47 = vadd.f32 %v1207_v32, %v1189_v31  ;;  %v2420_v8 = vunpack.c.l.b16 %v2300_v58  ;;  %v2528_v31 = vshrl.u32 %v8390_v14, 16  ;;  %v7263_v14 = vld [vmem:[%s9157_s1 + $0x7a0] sm:$0xff] }
  0xe4   : > { %2868 = vmatpush.bf16.msra.mxu0 %v7192_v21  ;;  %v3048_v21 = vsel %vm1412_vm1, %v3046_v54, %v8445_v55 }
  0xe5   : > { %3324 = vmatpush.bf16.msra.mxu1 %v7210_v12  ;;  %v3051_v12 = vsel %vm1412_vm1, %v3049_v56, %v8447_v57  ;;  %v2435_v23 = vpack.c.b16 %v2420_v8, %v2420_v8  ;;  %v2530_v46 = vor.u32 %v2528_v31, %v8435_v44  ;;  %v7262_v44 = vld [vmem:[%s9157_s1 + $0x798] sm:$0xff]  ;;  %v7234_v8 = vld [vmem:[%s9157_s1 + $0x708] sm:$0xff]  ;;  %v7233_v31 = vld [vmem:[%s9157_s1 + $0x700] sm:$0xff] }
  0xe6   : > { %3343 = vmatpush.bf16.msra.mxu2 %v7218_v18 }
  0xe7   : > { %3362 = vmatpush.bf16.msra.mxu3 %v7226_v19  ;;  %v7273_v19 = vld [vmem:[%s9157_s1 + $0x7f0] sm:$0xff]  ;;  %v2532_v37 = vshll.u32 %v2435_v23, 16  ;;  %v7208_v23 = vld [vmem:[%s7552_s19 + $0x5c] sm:$0xf0] }
  0xe8   : > { %2869 = vmatpush.bf16.msra.mxu0 %v7191_v43  ;;  %v1190_v59 = vpop.f32.mrf.mxu2  ;;  %v1221_v63 = vpop.f32.mrf.mxu0  ;;  %v3039_v43 = vpack.c.b16 %v3024_v28, %v3024_v28 }
  0xe9   : > { %3325 = vmatpush.bf16.msra.mxu1 %v7209_v13  ;;  %v1209_v60 = vpop.f32.mrf.mxu3  ;;  %v1191_v62 = vadd.f32 %v1190_v59, %v1171_v2  ;;  %v1240_v6 = vpop.f32.mrf.mxu1  ;;  %v1222_v10 = vadd.f32 %v1221_v63, %v8332_v35  ;;  %v7265_v35 = vld [vmem:[%s9157_s1 + $0x7b0] sm:$0xff]  ;;  %v3038_v2 = vpack.c.b16 %v3023_v24, %v3023_v24  ;;  %v3040_v13 = vpack.c.b16 %v3025_v30, %v3025_v30  ;;  %v7260_v24 = vld [vmem:[%s9157_s1 + $0x788] sm:$0xff] }
  0xea   : > { %3344 = vmatpush.bf16.msra.mxu2 %v7217_v11  ;;  %v2534_v11 = vrot.slane %v2532_v37, 1  ;;  %v7241_v37 = vld [vmem:[%s9157_s1 + $0x740] sm:$0xff] }
  0xeb   : > { %3363 = vmatpush.bf16.msra.mxu3 %v7225_v49  ;;  %v8466_v18 = vadd.f32 %v1209_v60, %v1191_v62  ;;  %v1241_v22 = vadd.f32 %v1240_v6, %v1222_v10  ;;  %2870 = vmatmul.bf16.vlgmr.msra.gmra.mxu0 %v2495_v0  ;;  %v3058_v49 = vrot.slane %v3038_v2, 1  ;;  %v3062_v42 = vrot.slane %v3040_v13, 1  ;;  %v7242_v10 = vld [vmem:[%s9157_s1 + $0x748] sm:$0xff]  ;;  %v7259_v2 = vld [vmem:[%s9157_s1 + $0x780] sm:$0xff] }
  0xec   : > { %3375 = vmatpush.bf16.msrb.mxu0 %v7240_v50  ;;  %3326 = vmatmul.bf16.vlgmr.msra.gmra.mxu1 %v3045_v38  ;;  %v2535_v60 = vsel %vm804_vm0, %v2530_v46, %v2534_v11  ;;  %v7235_v38 = vld [vmem:[%s9157_s1 + $0x710] sm:$0xff] }
  0xed   : > { %3394 = vmatpush.bf16.msrb.mxu1 %v7248_v1  ;;  %3345 = vmatmul.bf16.vlgmr.msra.gmra.mxu2 %v3048_v21  ;;  %v8478_v25 = vadd.f32 %v1241_v22, %v8289_v3  ;;  %v7264_v3 = vld [vmem:[%s9157_s1 + $0x7a8] sm:$0xff]  ;;  %v3060_v1 = vrot.slane %v3039_v43, 1  ;;  %v3059_v62 = vsel %vm1412_vm1, %v8437_v51, %v3058_v49  ;;  %v3063_v0 = vsel %vm1412_vm1, %v8447_v57, %v3062_v42  ;;  %v7261_v51 = vld [vmem:[%s9157_s1 + $0x790] sm:$0xff]  ;;  %v7200_v21 = vld [vmem:[%s7552_s19 + $0x20] sm:$0xe] }
  0xee   : > { %3809 = vmatpush.bf16.msrb.mxu2 %v7266_v52  ;;  %3364 = vmatmul.bf16.vlgmr.msra.gmra.mxu3 %v3051_v12  ;;  %v7244_v52 = vld [vmem:[%s9157_s1 + $0x758] sm:$0xff]  ;;  %v6158_v12 = vld [vmem:[%s7552_s19 + $0x30] sm:$0xf0]  ;;  %v6184_v22 = vld [vmem:[%s7552_s19 + $0x4c] sm:$0xf] }
  0xef   : > { %3828 = vmatpush.bf16.msrb.mxu3 %v7274_v53  ;;  %v3061_v6 = vsel %vm1412_vm1, %v8445_v55, %v3060_v1  ;;  %v7269_v55 = vld [vmem:[%s9157_s1 + $0x7d0] sm:$0xff]  ;;  %v6161_v30 = vor.u32 %v7200_v21, %v6158_v12  ;;  %v6350_v49 = vld [vmem:[%s7552_s19 + $0x3c] sm:$0xf0]  ;;  %v7298_v1 = vld [vmem:[%s9157_s1 + $0x8b8] sm:$0xff] }
  0xf0   : > { %3376 = vmatpush.bf16.msrb.mxu0 %v7239_v15  ;;  %v1697_v32 = vpop.f32.mrf.mxu2  ;;  %v1223_v7 = vpop.f32.mrf.mxu0  ;;  %v7205_v15 = vld [vmem:[%s7552_s19 + $0x48] sm:$0xf]  ;;  %v7316_v42 = vld [vmem:[%s9157_s1 + $0x8f8] sm:$0xff] }
  0xf1   : > { %3395 = vmatpush.bf16.msrb.mxu1 %v7247_v16  ;;  %v1716_v33 = vpop.f32.mrf.mxu3  ;;  %v1242_v36 = vpop.f32.mrf.mxu1  ;;  %v1224_v9 = vadd.f32 %v1223_v7, %v8375_v5  ;;  %v7271_v5 = vld [vmem:[%s9157_s1 + $0x7e0] sm:$0xff]  ;;  %v6178_v16 = vld [vmem:[%s7552_s19 + $0x58] sm:$0xf0]  ;;  %v6185_v7 = vor.u32 %v7208_v23, %v6184_v22  ;;  %v3052_v43 = vrot.slane %v6161_v30, 1 }
  0xf2   : > { %3810 = vmatpush.bf16.msrb.mxu2 %v7265_v35  ;;  %v8493_v4 = vadd.f32 %v1716_v33, %v1697_v32 }
  0xf3   : > { %3829 = vmatpush.bf16.msrb.mxu3 %v7273_v19  ;;  %v1243_v45 = vadd.f32 %v1242_v36, %v1224_v9  ;;  %v7203_v19 = vld [vmem:[%s7552_s19 + $0x34] sm:$0xf0]  ;;  %v6348_v9 = vld [vmem:[%s7552_s19 + $0x28] sm:$0xf]  ;;  %v8596_v11 = vrot.slane %v6185_v7, 1 }
  0xf4   : > { %3377 = vmatpush.bf16.msrb.mxu0 %v7238_v26  ;;  %v7268_v26 = vld [vmem:[%s9157_s1 + $0x7c8] sm:$0xff]  ;;  %v6165_v33 = vor.u32 %v7203_v19, %v6164_v17  ;;  %v7254_v7 = vld [vmem:[%s7552_s19 + $0x54] sm:$0xf] }
  0xf5   : > { %3396 = vmatpush.bf16.msrb.mxu1 %v7246_v27  ;;  %v8511_v50 = vadd.f32 %v1243_v45, %v8323_v34  ;;  %v7270_v34 = vld [vmem:[%s9157_s1 + $0x7d8] sm:$0xff] }
  0xf6   : > { %3811 = vmatpush.bf16.msrb.mxu2 %v7264_v3  ;;  %v7290_v45 = vld [vmem:[%s9157_s1 + $0x878] sm:$0xff]  ;;  %v3055_v46 = vrot.slane %v6165_v33, 1  ;;  %v7256_v33 = vld [vmem:[%s7552_s19 + $0x60] sm:$0xf0] }
  0xf7   : > { %3830 = vmatpush.bf16.msrb.mxu3 %v7272_v29 }
  0xf8   : > { %3378 = vmatpush.bf16.msrb.mxu0 %v7237_v39  ;;  %v1699_v53 = vpop.f32.mrf.mxu2  ;;  %v1226_v58 = vpop.f32.mrf.mxu0  ;;  %v7251_v39 = vld [vmem:[%s7552_s19 + $0x38] sm:$0xf0] }
  0xf9   : > { %3397 = vmatpush.bf16.msrb.mxu1 %v7245_v40  ;;  %v1718_v54 = vpop.f32.mrf.mxu3  ;;  %v1245_v59 = vpop.f32.mrf.mxu1  ;;  %v1227_v63 = vadd.f32 %v1226_v58, %v8421_v47  ;;  %v7243_v47 = vld [vmem:[%s9157_s1 + $0x750] sm:$0xff] }
  0xfa   : > { %3812 = vmatpush.bf16.msrb.mxu2 %v7263_v14  ;;  %v8525_v56 = vadd.f32 %v1718_v54, %v1699_v53  ;;  %v7249_v14 = vld [vmem:[%s7552_s19 + $0x2c] sm:$0xf] }
  0xfb   : > { %3831 = vmatpush.bf16.msrb.mxu3 %v7271_v5  ;;  %v1246_v57 = vadd.f32 %v1245_v59, %v1227_v63  ;;  %2875 = vmatmul.bf16.gmra.mxu0 %v2535_v60  ;;  %v7282_v5 = vld [vmem:[%s9157_s1 + $0x838] sm:$0xff]  ;;  %v6353_v53 = vor.u32 %v7249_v14, %v6350_v49 }
  0xfc   : > { %3379 = vmatpush.bf16.msrb.mxu0 %v7236_v48  ;;  %3331 = vmatmul.bf16.gmra.mxu1 %v3059_v62  ;;  %v2907_v62 = vld [vmem:[%s7552_s19 + $0x74] sm:$0x1] }
  0xfd   : > { %3398 = vmatpush.bf16.msrb.mxu1 %v7244_v52  ;;  %3350 = vmatmul.bf16.gmra.mxu2 %v3061_v6  ;;  %v8559_v35 = vadd.f32 %v1246_v57, %v8365_v61  ;;  %v6181_v61 = vor.u32 %v7205_v15, %v6178_v16  ;;  %v7281_v6 = vld [vmem:[%s9157_s1 + $0x830] sm:$0xff]  ;;  %v7280_v57 = vld [vmem:[%s9157_s1 + $0x828] sm:$0xff] }
  0xfe   : > { %3813 = vmatpush.bf16.msrb.mxu2 %v7262_v44  ;;  %3369 = vmatmul.bf16.gmra.mxu3 %v3063_v0  ;;  %v7289_v0 = vld [vmem:[%s9157_s1 + $0x870] sm:$0xff] }
  0xff   : > { %3832 = vmatpush.bf16.msrb.mxu3 %v7270_v34  ;;  %v8587_v13 = vrot.slane %v6181_v61, 1  ;;  %v6349_v34 = vor.u32 %v7251_v39, %v6348_v9  ;;  %v7301_v9 = vld [vmem:[%s7552_s19 + $0x38] sm:$0xf0] }
 0x100   : > { %3380 = vmatpush.bf16.msrb.mxu0 %v7235_v38  ;;  %v1702_v27 = vpop.f32.mrf.mxu2  ;;  %v1228_v29 = vpop.f32.mrf.mxu0  ;;  %v7297_v38 = vld [vmem:[%s9157_s1 + $0x8b0] sm:$0xff] }
 0x101   : > { %3399 = vmatpush.bf16.msrb.mxu1 %v7243_v47  ;;  %v1721_v28 = vpop.f32.mrf.mxu3  ;;  %v1247_v32 = vpop.f32.mrf.mxu1  ;;  %v1229_v36 = vadd.f32 %v1228_v29, %v8466_v18  ;;  %v7267_v18 = vld [vmem:[%s9157_s1 + $0x7c0] sm:$0xff]  ;;  %v3054_v60 = vsel %vm1412_vm1, %v3052_v43, %v8587_v13  ;;  %v7315_v47 = vld [vmem:[%s9157_s1 + $0x8f0] sm:$0xff] }
 0x102   : > { %3814 = vmatpush.bf16.msrb.mxu2 %v7261_v51  ;;  %v8570_v3 = vadd.f32 %v1721_v28, %v1702_v27  ;;  %v7313_v28 = vld [vmem:[%s9157_s1 + $0x8e0] sm:$0xff] }
 0x103   : > { %3833 = vmatpush.bf16.msrb.mxu3 %v7269_v55  ;;  %v1248_v40 = vadd.f32 %v1247_v32, %v1229_v36  ;;  %v3027_v55 = vunpack.c.l.b16 %v2907_v62  ;;  %v6368_v32 = vld [vmem:[%s7552_s19 + $0x50] sm:$0xf]  ;;  %v7278_v36 = vld [vmem:[%s9157_s1 + $0x818] sm:$0xff] }
 0x104   : > { %3381 = vmatpush.bf16.msrb.mxu0 %v7234_v8  ;;  %v7288_v8 = vld [vmem:[%s9157_s1 + $0x868] sm:$0xff]  ;;  %v6369_v43 = vor.u32 %v7256_v33, %v6368_v32  ;;  %v8755_v33 = vld [vmem:[%s7552_s19 + $0x78] sm:$0x11] }
 0x105   : > { %3400 = vmatpush.bf16.msrb.mxu1 %v7242_v10  ;;  %v8606_v48 = vadd.f32 %v1248_v40, %v8413_v41  ;;  %v3057_v41 = vsel %vm1412_vm1, %v3055_v46, %v8596_v11  ;;  %v7296_v10 = vld [vmem:[%s9157_s1 + $0x8a8] sm:$0xff]  ;;  %v3042_v16 = vpack.c.b16 %v3027_v55, %v3027_v55 }
 0x106   : > { %3815 = vmatpush.bf16.msrb.mxu2 %v7260_v24  ;;  %v7279_v24 = vld [vmem:[%s9157_s1 + $0x820] sm:$0xff] }
 0x107   : > { %3834 = vmatpush.bf16.msrb.mxu3 %v7268_v26  ;;  %v7287_v26 = vld [vmem:[%s9157_s1 + $0x860] sm:$0xff]  ;;  %v3066_v29 = vrot.slane %v3042_v16, 1 }
 0x108   : > { %3382 = vmatpush.bf16.msrb.mxu0 %v7233_v31  ;;  %v1704_v52 = vpop.f32.mrf.mxu2  ;;  %v1735_v58 = vpop.f32.mrf.mxu0  ;;  %v7286_v31 = vld [vmem:[%s9157_s1 + $0x858] sm:$0xff]  ;;  %v7309_v16 = vld [vmem:[%s9157_s1 + $0x8c0] sm:$0xff] }
 0x109   : > { %3401 = vmatpush.bf16.msrb.mxu1 %v7241_v37  ;;  %v1723_v44 = vpop.f32.mrf.mxu3  ;;  %v1754_v59 = vpop.f32.mrf.mxu1  ;;  %v1736_v63 = vadd.f32 %v1735_v58, %v8493_v4  ;;  %v3026_v4 = vunpack.c.h.b16 %v8475_v20  ;;  %v7314_v20 = vld [vmem:[%s9157_s1 + $0x8e8] sm:$0xff]  ;;  %v7294_v37 = vld [vmem:[%s9157_s1 + $0x898] sm:$0xff]  ;;  %v3067_v49 = vsel %vm1412_vm1, %v8596_v11, %v3066_v29  ;;  %v7306_v58 = vld [vmem:[%s7552_s19 + $0x60] sm:$0xf0] }
 0x10a   : > { %3816 = vmatpush.bf16.msrb.mxu2 %v7259_v2  ;;  %v8608_v54 = vadd.f32 %v1723_v44, %v1704_v52  ;;  %v7312_v2 = vld [vmem:[%s9157_s1 + $0x8d8] sm:$0xff]  ;;  %v7277_v52 = vld [vmem:[%s9157_s1 + $0x810] sm:$0xff] }
 0x10b   : > { %3835 = vmatpush.bf16.msrb.mxu3 %v7267_v18  ;;  %v1755_v51 = vadd.f32 %v1754_v59, %v1736_v63  ;;  %3383 = vmatmul.bf16.vlgmr.msrb.gmra.mxu0 %v3054_v60  ;;  %v3041_v15 = vpack.c.b16 %v3026_v4, %v3026_v4  ;;  %v6548_v18 = vld [vmem:[%s7552_s19 + $0x28] sm:$0xf]  ;;  %v7285_v44 = vld [vmem:[%s9157_s1 + $0x850] sm:$0xff] }
 0x10c   : > { %3847 = vmatpush.bf16.msra.mxu0 %v7282_v5  ;;  %3402 = vmatmul.bf16.vlgmr.msrb.gmra.mxu1 %v3057_v41  ;;  %v7284_v60 = vld [vmem:[%s9157_s1 + $0x848] sm:$0xff] }
 0x10d   : > { %3866 = vmatpush.bf16.msra.mxu1 %v7290_v45  ;;  %3817 = vmatmul.bf16.vlgmr.msrb.gmra.mxu2 %v6349_v34  ;;  %v3064_v61 = vrot.slane %v3041_v15, 1  ;;  %v6549_v34 = vor.u32 %v7301_v9, %v6548_v18  ;;  %v7292_v63 = vld [vmem:[%s9157_s1 + $0x888] sm:$0xff] }
 0x10e   : > { %3885 = vmatpush.bf16.msra.mxu2 %v7298_v1  ;;  %3836 = vmatmul.bf16.vlgmr.msrb.gmra.mxu3 %v6353_v53  ;;  %v6568_v53 = vld [vmem:[%s7552_s19 + $0x50] sm:$0xf] }
 0x10f   : > { %4416 = vmatpush.bf16.msra.mxu3 %v7316_v42  ;;  %v3065_v46 = vsel %vm1412_vm1, %v8587_v13, %v3064_v61  ;;  %v7293_v13 = vld [vmem:[%s9157_s1 + $0x890] sm:$0xff]  ;;  %v8707_v41 = vor.u32 %v7306_v58, %v6568_v53  ;;  %v4069_v62 = vshll.u32 %v6549_v34, 16  ;;  %v7253_v61 = vld [vmem:[%s7552_s19 + $0x48] sm:$0xf0] }
 0x110   : > { %3848 = vmatpush.bf16.msra.mxu0 %v7281_v6  ;;  %v1773_v21 = vpop.f32.mrf.mxu2  ;;  %v1737_v19 = vpop.f32.mrf.mxu0  ;;  %v7310_v6 = vld [vmem:[%s9157_s1 + $0x8c8] sm:$0xff] }
 0x111   : > { %3867 = vmatpush.bf16.msra.mxu1 %v7289_v0  ;;  %v8641_v12 = vpop.f32.mrf.mxu3  ;;  %v1774_v17 = vadd.f32 %v1773_v21, %v1755_v51  ;;  %v1756_v22 = vpop.f32.mrf.mxu1  ;;  %v1738_v23 = vadd.f32 %v1737_v19, %v8525_v56  ;;  %v7295_v56 = vld [vmem:[%s9157_s1 + $0x8a0] sm:$0xff]  ;;  %v4071_v21 = vrot.slane %v4069_v62, 1 }
 0x112   : > { %3886 = vmatpush.bf16.msra.mxu2 %v7297_v38  ;;  %v7252_v19 = vld [vmem:[%s7552_s19 + $0x40] sm:$0xf0] }
 0x113   : > { %4417 = vmatpush.bf16.msra.mxu3 %v7315_v47  ;;  %v8651_v27 = vadd.f32 %v1774_v17, %v8478_v25  ;;  %v1757_v30 = vadd.f32 %v1756_v22, %v1738_v23  ;;  %v6370_v25 = vld [vmem:[%s7552_s19 + $0x64] sm:$0xf0]  ;;  %v6356_v17 = vld [vmem:[%s7552_s19 + $0x30] sm:$0xf]  ;;  %v7250_v23 = vld [vmem:[%s7552_s19 + $0x34] sm:$0xf] }
 0x114   : > { %3849 = vmatpush.bf16.msra.mxu0 %v7280_v57  ;;  %v6373_v1 = vor.u32 %v7254_v7, %v6370_v25  ;;  %v7275_v57 = vld [vmem:[%s9157_s1 + $0x800] sm:$0xff] }
 0x115   : > { %3868 = vmatpush.bf16.msra.mxu1 %v7288_v8  ;;  %v7283_v8 = vld [vmem:[%s9157_s1 + $0x840] sm:$0xff] }
 0x116   : > { %3887 = vmatpush.bf16.msra.mxu2 %v7296_v10  ;;  %v7291_v10 = vld [vmem:[%s9157_s1 + $0x880] sm:$0xff] }
 0x117   : > { %4418 = vmatpush.bf16.msra.mxu3 %v7314_v20  ;;  %v4067_v20 = vshrl.u32 %v6549_v34, 16  ;;  %v7329_v62 = vld [vmem:[%s9157_s1 + $0x960] sm:$0xff] }
 0x118   : > { %3850 = vmatpush.bf16.msra.mxu0 %v7279_v24  ;;  %v1775_v39 = vpop.f32.mrf.mxu2  ;;  %v1740_v5 = vpop.f32.mrf.mxu0  ;;  %v7324_v24 = vld [vmem:[%s9157_s1 + $0x938] sm:$0xff] }
 0x119   : > { %3869 = vmatpush.bf16.msra.mxu1 %v7287_v26  ;;  %v8677_v40 = vpop.f32.mrf.mxu3  ;;  %v1776_v14 = vadd.f32 %v1775_v39, %v1757_v30  ;;  %v1759_v45 = vpop.f32.mrf.mxu1  ;;  %v1741_v42 = vadd.f32 %v1740_v5, %v8570_v3  ;;  %v7311_v3 = vld [vmem:[%s9157_s1 + $0x8d0] sm:$0xff]  ;;  %v6358_v26 = vld [vmem:[%s7552_s19 + $0x44] sm:$0xf0]  ;;  %v6364_v30 = vld [vmem:[%s7552_s19 + $0x38] sm:$0xf]  ;;  %v4072_v29 = vor.u32 %v4071_v21, %v4067_v20 }
 0x11a   : > { %3888 = vmatpush.bf16.msra.mxu2 %v7295_v56  ;;  %v7340_v56 = vld [vmem:[%s9157_s1 + $0x9b8] sm:$0xff]  ;;  %v6365_v9 = vor.u32 %v7253_v61, %v6364_v30  ;;  %v7331_v5 = vld [vmem:[%s9157_s1 + $0x970] sm:$0xff]  ;;  %v7303_v61 = vld [vmem:[%s7552_s19 + $0x48] sm:$0xf0] }
 0x11b   : > { %4419 = vmatpush.bf16.msra.mxu3 %v7313_v28  ;;  %v8694_v11 = vadd.f32 %v1776_v14, %v8511_v50  ;;  %v1760_v59 = vadd.f32 %v1759_v45, %v1741_v42  ;;  %3388 = vmatmul.bf16.gmra.mxu0 %v3065_v46  ;;  %v7276_v50 = vld [vmem:[%s9157_s1 + $0x808] sm:$0xff]  ;;  %v7348_v28 = vld [vmem:[%s9157_s1 + $0x9f8] sm:$0xff]  ;;  %v7323_v14 = vld [vmem:[%s9157_s1 + $0x930] sm:$0xff]  ;;  %v4046_v45 = vunpack.c.l.b16 %v8755_v33 }
 0x11c   : > { %3851 = vmatpush.bf16.msra.mxu0 %v7278_v36  ;;  %3407 = vmatmul.bf16.gmra.mxu1 %v3067_v49  ;;  %v6357_v36 = vor.u32 %v7252_v19, %v6356_v17  ;;  %v7347_v49 = vld [vmem:[%s9157_s1 + $0x9f0] sm:$0xff]  ;;  %v7330_v42 = vld [vmem:[%s9157_s1 + $0x968] sm:$0xff]  ;;  %v7320_v21 = vld [vmem:[%s9157_s1 + $0x918] sm:$0xff] }
 0x11d   : > { %3870 = vmatpush.bf16.msra.mxu1 %v7286_v31  ;;  %3822 = vmatmul.bf16.gmra.mxu2 %v6369_v43  ;;  %v6361_v31 = vor.u32 %v7250_v23, %v6358_v26  ;;  %v7258_v20 = vld [vmem:[%s7552_s19 + $0x70] sm:$0xf0]  ;;  %v7328_v17 = vld [vmem:[%s9157_s1 + $0x958] sm:$0xff]  ;;  %v6556_v19 = vld [vmem:[%s7552_s19 + $0x30] sm:$0xf] }
 0x11e   : > { %3889 = vmatpush.bf16.msra.mxu2 %v7294_v37  ;;  %3841 = vmatmul.bf16.gmra.mxu3 %v6373_v1  ;;  %v7300_v26 = vld [vmem:[%s7552_s19 + $0x34] sm:$0xf]  ;;  %v6564_v30 = vld [vmem:[%s7552_s19 + $0x38] sm:$0xf] }
 0x11f   : > { %4420 = vmatpush.bf16.msra.mxu3 %v7312_v2 }
 0x120   : > { %3852 = vmatpush.bf16.msra.mxu0 %v7277_v52  ;;  %v1778_v0 = vpop.f32.mrf.mxu2  ;;  %v1742_v51 = vpop.f32.mrf.mxu0  ;;  %v4061_v52 = vpack.c.b16 %v4046_v45, %v4046_v45  ;;  %v6576_v45 = vld [vmem:[%s7552_s19 + $0x58] sm:$0xf] }
 0x121   : > { %3871 = vmatpush.bf16.msra.mxu1 %v7285_v44  ;;  %v8715_v38 = vpop.f32.mrf.mxu3  ;;  %v1779_v47 = vadd.f32 %v1778_v0, %v1760_v59  ;;  %v1761_v4 = vpop.f32.mrf.mxu1  ;;  %v1743_v55 = vadd.f32 %v1742_v51, %v8608_v54  ;;  %v4074_v54 = vshll.u32 %v8707_v41, 16  ;;  %v7338_v44 = vld [vmem:[%s9157_s1 + $0x9a8] sm:$0xff]  ;;  %v6376_v51 = vld [vmem:[%s7552_s19 + $0x58] sm:$0xf] }
 0x122   : > { %3890 = vmatpush.bf16.msra.mxu2 %v7293_v13  ;;  %v7346_v13 = vld [vmem:[%s9157_s1 + $0x9e8] sm:$0xff]  ;;  %v4130_v0 = vshll.u32 %v4061_v52, 16  ;;  %v7305_v52 = vld [vmem:[%s7552_s19 + $0x5c] sm:$0xf] }
 0x123   : > { %4421 = vmatpush.bf16.msra.mxu3 %v7311_v3  ;;  %v8729_v15 = vadd.f32 %v1779_v47, %v8559_v35  ;;  %v1762_v22 = vadd.f32 %v1761_v4, %v1743_v55  ;;  %v7332_v35 = vld [vmem:[%s9157_s1 + $0x978] sm:$0xff]  ;;  %v8752_v32 = vrot.slane %v4074_v54, 1  ;;  %v7257_v4 = vld [vmem:[%s7552_s19 + $0x68] sm:$0xf0]  ;;  %v6550_v54 = vld [vmem:[%s7552_s19 + $0x3c] sm:$0xf0] }
 0x124   : > { %3853 = vmatpush.bf16.msra.mxu0 %v7276_v50  ;;  %v7321_v50 = vld [vmem:[%s9157_s1 + $0x920] sm:$0xff]  ;;  %v7255_v55 = vld [vmem:[%s7552_s19 + $0x5c] sm:$0xf] }
 0x125   : > { %3872 = vmatpush.bf16.msra.mxu1 %v7284_v60  ;;  %v4077_v43 = vsel %vm804_vm0, %v4072_v29, %v8752_v32 }
 0x126   : > { %3891 = vmatpush.bf16.msra.mxu2 %v7292_v63  ;;  %v7337_v63 = vld [vmem:[%s9157_s1 + $0x9a0] sm:$0xff] }
 0x127   : > { %4422 = vmatpush.bf16.msra.mxu3 %v7310_v6  ;;  %v7345_v6 = vld [vmem:[%s9157_s1 + $0x9e0] sm:$0xff] }
 0x128   : > { %3854 = vmatpush.bf16.msra.mxu0 %v7275_v57  ;;  %v1780_v7 = vpop.f32.mrf.mxu2  ;;  %v2207_v2 = vpop.f32.mrf.mxu0  ;;  %v6378_v57 = vld [vmem:[%s7552_s19 + $0x6c] sm:$0xf0] }
 0x129   : > { %3873 = vmatpush.bf16.msra.mxu1 %v7283_v8  ;;  %v8757_v25 = vpop.f32.mrf.mxu3  ;;  %v1781_v37 = vadd.f32 %v1780_v7, %v1762_v22  ;;  %v2226_v18 = vpop.f32.mrf.mxu1  ;;  %v2208_v39 = vadd.f32 %v2207_v2, %v8641_v12  ;;  %v7339_v12 = vld [vmem:[%s9157_s1 + $0x9b0] sm:$0xff]  ;;  %v7302_v22 = vld [vmem:[%s7552_s19 + $0x40] sm:$0xf0]  ;;  %v6377_v7 = vor.u32 %v7257_v4, %v6376_v51  ;;  %v7334_v4 = vld [vmem:[%s9157_s1 + $0x988] sm:$0xff] }
 0x12a   : > { %3892 = vmatpush.bf16.msra.mxu2 %v7291_v10  ;;  %v6384_v10 = vld [vmem:[%s7552_s19 + $0x60] sm:$0xf]  ;;  %v7304_v2 = vld [vmem:[%s7552_s19 + $0x54] sm:$0xf] }
 0x12b   : > { %4423 = vmatpush.bf16.msra.mxu3 %v7309_v16  ;;  %v8770_v46 = vadd.f32 %v1781_v37, %v8606_v48  ;;  %v2227_v1 = vadd.f32 %v2226_v18, %v2208_v39  ;;  %3855 = vmatmul.bf16.vlgmr.msra.gmra.mxu0 %v6357_v36  ;;  %v7322_v48 = vld [vmem:[%s9157_s1 + $0x928] sm:$0xff]  ;;  %v6381_v36 = vor.u32 %v7255_v55, %v6378_v57  ;;  %v7327_v37 = vld [vmem:[%s9157_s1 + $0x950] sm:$0xff] }
 0x12c   : > { %4435 = vmatpush.bf16.msrb.mxu0 %v7324_v24  ;;  %3874 = vmatmul.bf16.vlgmr.msra.gmra.mxu1 %v6361_v31  ;;  %v4132_v24 = vrot.slane %v4130_v0, 1  ;;  %v7319_v31 = vld [vmem:[%s9157_s1 + $0x910] sm:$0xff]  ;;  %v8843_v18 = vor.u32 %v7302_v22, %v6556_v19  ;;  %v7318_v0 = vld [vmem:[%s9157_s1 + $0x908] sm:$0xff] }
 0x12d   : > { %4454 = vmatpush.bf16.msrb.mxu1 %v7332_v35  ;;  %3893 = vmatmul.bf16.vlgmr.msra.gmra.mxu2 %v6365_v9  ;;  %v7336_v35 = vld [vmem:[%s9157_s1 + $0x998] sm:$0xff]  ;;  %v7342_v55 = vld [vmem:[%s9157_s1 + $0x9c8] sm:$0xff] }
 0x12e   : > { %4473 = vmatpush.bf16.msrb.mxu2 %v7340_v56  ;;  %4424 = vmatmul.bf16.vlgmr.msra.gmra.mxu3 %v4077_v43  ;;  %v7344_v56 = vld [vmem:[%s9157_s1 + $0x9d8] sm:$0xff] }
 0x12f   : > { %4492 = vmatpush.bf16.msrb.mxu3 %v7348_v28 }
 0x130   : > { %4436 = vmatpush.bf16.msrb.mxu0 %v7323_v14  ;;  %v2245_v34 = vpop.f32.mrf.mxu2  ;;  %v2209_v58 = vpop.f32.mrf.mxu0  ;;  %v6385_v14 = vor.u32 %v7258_v20, %v6384_v10 }
 0x131   : > { %4455 = vmatpush.bf16.msrb.mxu1 %v7331_v5  ;;  %v2264_v3 = vpop.f32.mrf.mxu3  ;;  %v2246_v53 = vadd.f32 %v2245_v34, %v2227_v1  ;;  %v2228_v59 = vpop.f32.mrf.mxu1  ;;  %v2210_v60 = vadd.f32 %v2209_v58, %v8677_v40  ;;  %v4126_v40 = vshrl.u32 %v8707_v41, 16  ;;  %v7299_v41 = vld [vmem:[%s7552_s19 + $0x2c] sm:$0xf]  ;;  %v6570_v5 = vld [vmem:[%s7552_s19 + $0x64] sm:$0xf0] }
 0x132   : > { %4474 = vmatpush.bf16.msrb.mxu2 %v7339_v12  ;;  %v8832_v28 = vor.u32 %v7299_v41, %v6550_v54  ;;  %v7307_v12 = vld [vmem:[%s7552_s19 + $0x68] sm:$0xf0]  ;;  %v7308_v58 = vld [vmem:[%s7552_s19 + $0x70] sm:$0xf0]  ;;  %v4091_v41 = vshrl.u32 %v8843_v18, 16 }
 0x133   : > { %4493 = vmatpush.bf16.msrb.mxu3 %v7347_v49  ;;  %v2265_v47 = vadd.f32 %v2264_v3, %v2246_v53  ;;  %v2229_v8 = vadd.f32 %v2228_v59, %v2210_v60  ;;  %v4128_v23 = vor.u32 %v4126_v40, %v8752_v32  ;;  %v7343_v3 = vld [vmem:[%s9157_s1 + $0x9d0] sm:$0xff]  ;;  %v6584_v53 = vld [vmem:[%s7552_s19 + $0x60] sm:$0xf]  ;;  %v8867_v60 = vor.u32 %v7307_v12, %v6576_v45  ;;  %v7382_v45 = vld [vmem:[%s9157_s1 + $0xab8] sm:$0xff] }
 0x134   : > { %4437 = vmatpush.bf16.msrb.mxu0 %v7322_v48  ;;  %v8882_v51 = vor.u32 %v7308_v58, %v6584_v53  ;;  %v4079_v57 = vshrl.u32 %v8832_v28, 16  ;;  %v7390_v12 = vld [vmem:[%s9157_s1 + $0xaf8] sm:$0xff] }
 0x135   : > { %4456 = vmatpush.bf16.msrb.mxu1 %v7330_v42  ;;  %v8816_v16 = vadd.f32 %v2265_v47, %v8651_v27  ;;  %v6558_v27 = vld [vmem:[%s7552_s19 + $0x44] sm:$0xf0]  ;;  %v4133_v48 = vsel %vm804_vm0, %v4128_v23, %v4132_v24  ;;  %v7335_v42 = vld [vmem:[%s9157_s1 + $0x990] sm:$0xff] }
 0x136   : > { %4475 = vmatpush.bf16.msrb.mxu2 %v7338_v44  ;;  %v8848_v49 = vor.u32 %v7300_v26, %v6558_v27  ;;  %v6578_v44 = vld [vmem:[%s7552_s19 + $0x6c] sm:$0xf0]  ;;  %v7326_v47 = vld [vmem:[%s9157_s1 + $0x948] sm:$0xff] }
 0x137   : > { %4494 = vmatpush.bf16.msrb.mxu3 %v7346_v13  ;;  %v8857_v13 = vor.u32 %v7303_v61, %v6564_v30 }
 0x138   : > { %4438 = vmatpush.bf16.msrb.mxu0 %v7321_v50  ;;  %v2247_v29 = vpop.f32.mrf.mxu2  ;;  %v2212_v39 = vpop.f32.mrf.mxu0  ;;  %v8865_v50 = vor.u32 %v7304_v2, %v6570_v5  ;;  %v4105_v40 = vshll.u32 %v8848_v49, 16  ;;  %v4103_v24 = vshrl.u32 %v8848_v49, 16 }
 0x139   : > { %4457 = vmatpush.bf16.msrb.mxu1 %v7329_v62  ;;  %v2266_v32 = vpop.f32.mrf.mxu3  ;;  %v2248_v9 = vadd.f32 %v2247_v29, %v2229_v8  ;;  %v2231_v43 = vpop.f32.mrf.mxu1  ;;  %v2213_v1 = vadd.f32 %v2212_v39, %v8715_v38  ;;  %v4081_v38 = vshll.u32 %v8832_v28, 16  ;;  %v4093_v62 = vshll.u32 %v8843_v18, 16  ;;  %v7325_v28 = vld [vmem:[%s9157_s1 + $0x940] sm:$0xff]  ;;  %v7366_v18 = vld [vmem:[%s9157_s1 + $0xa38] sm:$0xff] }
 0x13a   : > { %4476 = vmatpush.bf16.msrb.mxu2 %v7337_v63  ;;  %v4115_v30 = vshrl.u32 %v8857_v13, 16  ;;  %v4122_v29 = vshll.u32 %v8882_v51, 16 }
 0x13b   : > { %4495 = vmatpush.bf16.msrb.mxu3 %v7345_v6  ;;  %v2267_v34 = vadd.f32 %v2266_v32, %v2248_v9  ;;  %v2232_v59 = vadd.f32 %v2231_v43, %v2213_v1  ;;  %3860 = vmatmul.bf16.gmra.mxu0 %v6377_v7  ;;  %v8873_v6 = vor.u32 %v7305_v52, %v6578_v44  ;;  %v4083_v8 = vrot.slane %v4081_v38, 1  ;;  %v7341_v7 = vld [vmem:[%s9157_s1 + $0x9c0] sm:$0xff]  ;;  %v7374_v9 = vld [vmem:[%s9157_s1 + $0xa78] sm:$0xff] }
 0x13c   : > { %4439 = vmatpush.bf16.msrb.mxu0 %v7320_v21  ;;  %3879 = vmatmul.bf16.gmra.mxu1 %v6381_v36  ;;  %v4086_v21 = vshll.u32 %v8865_v50, 16  ;;  %v4095_v54 = vrot.slane %v4093_v62, 1  ;;  %v8933_v1 = vrot.slane %v4122_v29, 1 }
 0x13d   : > { %4458 = vmatpush.bf16.msrb.mxu1 %v7328_v17  ;;  %v8871_v63 = vadd.f32 %v2267_v34, %v8694_v11  ;;  %3898 = vmatmul.bf16.gmra.mxu2 %v6385_v14  ;;  %v4117_v11 = vshll.u32 %v8857_v13, 16  ;;  %v4098_v17 = vshll.u32 %v8867_v60, 16  ;;  %v4110_v26 = vshll.u32 %v8873_v6, 16 }
 0x13e   : > { %4477 = vmatpush.bf16.msrb.mxu2 %v7336_v35  ;;  %4429 = vmatmul.bf16.gmra.mxu3 %v4133_v48  ;;  %v4107_v35 = vrot.slane %v4105_v40, 1  ;;  %v4096_v43 = vor.u32 %v4095_v54, %v4091_v41  ;;  %v3929_v48 = vld [vmem:[%s7552_s19 + $0x80] sm:$0x11]  ;;  %v4047_v13 = vunpack.c.h.b16 %v8755_v33  ;;  %v7365_v33 = vld [vmem:[%s9157_s1 + $0xa30] sm:$0xff]  ;;  %v7372_v41 = vld [vmem:[%s9157_s1 + $0xa68] sm:$0xff] }
 0x13f   : > { %4496 = vmatpush.bf16.msrb.mxu3 %v7344_v56  ;;  %v7317_v56 = vld [vmem:[%s9157_s1 + $0x900] sm:$0xff]  ;;  %v4119_v61 = vrot.slane %v4117_v11, 1  ;;  %v8914_v2 = vrot.slane %v4098_v17, 1  ;;  %v8925_v5 = vrot.slane %v4110_v26, 1 }
 0x140   : > { %4440 = vmatpush.bf16.msrb.mxu0 %v7319_v31  ;;  %v2250_v10 = vpop.f32.mrf.mxu2  ;;  %v2214_v22 = vpop.f32.mrf.mxu0  ;;  %v4084_v31 = vor.u32 %v4083_v8, %v4079_v57  ;;  %v4108_v14 = vor.u32 %v4107_v35, %v4103_v24  ;;  %v7389_v57 = vld [vmem:[%s9157_s1 + $0xaf0] sm:$0xff]  ;;  %v4062_v8 = vpack.c.b16 %v4047_v13, %v4047_v13  ;;  %v4134_v24 = vshrl.u32 %v8865_v50, 16  ;;  %v7371_v50 = vld [vmem:[%s9157_s1 + $0xa60] sm:$0xff] }
 0x141   : > { %4459 = vmatpush.bf16.msrb.mxu1 %v7327_v37  ;;  %v2269_v20 = vpop.f32.mrf.mxu3  ;;  %v2251_v19 = vadd.f32 %v2250_v10, %v2232_v59  ;;  %v2233_v23 = vpop.f32.mrf.mxu1  ;;  %v2215_v27 = vadd.f32 %v2214_v22, %v8757_v25  ;;  %v7333_v25 = vld [vmem:[%s9157_s1 + $0x980] sm:$0xff]  ;;  %v8912_v37 = vrot.slane %v4086_v21, 1  ;;  %v4120_v49 = vor.u32 %v4119_v61, %v4115_v30  ;;  %v7364_v21 = vld [vmem:[%s9157_s1 + $0xa28] sm:$0xff] }
 0x142   : > { %4478 = vmatpush.bf16.msrb.mxu2 %v7335_v42  ;;  %v4101_v53 = vsel %vm804_vm0, %v4096_v43, %v8914_v2  ;;  %v4113_v58 = vsel %vm804_vm0, %v4108_v14, %v8925_v5  ;;  %v4048_v59 = vunpack.c.l.b16 %v3929_v48  ;;  %v4138_v35 = vshll.u32 %v4062_v8, 16  ;;  %v7349_v8 = vld [vmem:[%s7552_s19 + $0x2c] sm:$0xe] }
 0x143   : > { %4497 = vmatpush.bf16.msrb.mxu3 %v7343_v3  ;;  %v2270_v32 = vadd.f32 %v2269_v20, %v2251_v19  ;;  %v2234_v36 = vadd.f32 %v2233_v23, %v2215_v27  ;;  %v4089_v44 = vsel %vm804_vm0, %v4084_v31, %v8912_v37  ;;  %v4125_v40 = vsel %vm804_vm0, %v4120_v49, %v8933_v1  ;;  %v7388_v19 = vld [vmem:[%s9157_s1 + $0xae8] sm:$0xff] }
 0x144   : > { %4441 = vmatpush.bf16.msrb.mxu0 %v7318_v0  ;;  %v7373_v0 = vld [vmem:[%s9157_s1 + $0xa70] sm:$0xff]  ;;  %v4063_v20 = vpack.c.b16 %v4048_v59, %v4048_v59  ;;  %v4150_v61 = vshrl.u32 %v8873_v6, 16  ;;  %v7387_v6 = vld [vmem:[%s9157_s1 + $0xae0] sm:$0xff] }
 0x145   : > { %4460 = vmatpush.bf16.msrb.mxu1 %v7326_v47  ;;  %v8923_v39 = vadd.f32 %v2270_v32, %v8729_v15  ;;  %v3930_v15 = vld [vmem:[%s7552_s19 + $0x88] sm:$0x1]  ;;  %v4049_v47 = vunpack.c.h.b16 %v3929_v48  ;;  %v7363_v32 = vld [vmem:[%s9157_s1 + $0xa20] sm:$0xff]  ;;  %v7362_v48 = vld [vmem:[%s9157_s1 + $0xa18] sm:$0xff] }
 0x146   : > { %4479 = vmatpush.bf16.msrb.mxu2 %v7334_v4  ;;  %v4050_v11 = vunpack.c.l.b16 %v3930_v15  ;;  %v4146_v30 = vshll.u32 %v4063_v20, 16  ;;  %v7369_v59 = vld [vmem:[%s9157_s1 + $0xa50] sm:$0xff]  ;;  %v6750_v20 = vld [vmem:[%s7552_s19 + $0x3c] sm:$0xf0] }
 0x147   : > { %4498 = vmatpush.bf16.msrb.mxu3 %v7342_v55  ;;  %v7381_v55 = vld [vmem:[%s9157_s1 + $0xab0] sm:$0xff]  ;;  %v4064_v54 = vpack.c.b16 %v4049_v47, %v4049_v47  ;;  %v7351_v47 = vld [vmem:[%s7552_s19 + $0x38] sm:$0xf0] }
 0x148   : > { %4442 = vmatpush.bf16.msrb.mxu0 %v7317_v56  ;;  %v2252_v42 = vpop.f32.mrf.mxu2  ;;  %v2795_v3 = vpop.f32.mrf.mxu0  ;;  %v4065_v17 = vpack.c.b16 %v4050_v11, %v4050_v11  ;;  %v4148_v14 = vrot.slane %v4146_v30, 1  ;;  %v6768_v11 = vld [vmem:[%s7552_s19 + $0x50] sm:$0xf] }
 0x149   : > { %4461 = vmatpush.bf16.msrb.mxu1 %v7325_v28  ;;  %v2271_v52 = vpop.f32.mrf.mxu3  ;;  %v2253_v34 = vadd.f32 %v2252_v42, %v2234_v36  ;;  %v2814_v38 = vpop.f32.mrf.mxu1  ;;  %v4142_v28 = vshrl.u32 %v8867_v60, 16  ;;  %v7379_v60 = vld [vmem:[%s9157_s1 + $0xaa0] sm:$0xff] }
 0x14a   : > { %4480 = vmatpush.bf16.msrb.mxu2 %v7333_v25  ;;  %v2815_v62 = vadd.f32 %v2814_v38, %v2795_v3  ;;  %v4154_v25 = vshll.u32 %v4064_v54, 16  ;;  %v4162_v36 = vshll.u32 %v4065_v17, 16  ;;  %v7361_v3 = vld [vmem:[%s9157_s1 + $0xa10] sm:$0xff]  ;;  %v7384_v54 = vld [vmem:[%s9157_s1 + $0xac8] sm:$0xff] }
 0x14b   : > { %4499 = vmatpush.bf16.msrb.mxu3 %v7341_v7  ;;  %v2272_v4 = vadd.f32 %v2271_v52, %v2253_v34  ;;  %4443 = vmatmul.bf16.vlgmr.msrb.gmra.mxu0 %v4089_v44  ;;  %v4158_v7 = vshrl.u32 %v8882_v51, 16  ;;  %v4144_v43 = vor.u32 %v4142_v28, %v8914_v2  ;;  %v4152_v51 = vor.u32 %v4150_v61, %v8925_v5  ;;  %v7378_v2 = vld [vmem:[%s9157_s1 + $0xa98] sm:$0xff]  ;;  %v6770_v17 = vld [vmem:[%s7552_s19 + $0x64] sm:$0xf0] }
 0x14c   : > { %4948 = vmatpush.bf16.msra.mxu0 %v7366_v18  ;;  %4462 = vmatmul.bf16.vlgmr.msrb.gmra.mxu1 %v4101_v53  ;;  %v4136_v18 = vor.u32 %v4134_v24, %v8912_v37  ;;  %v4164_v49 = vrot.slane %v4162_v36, 1  ;;  %v7370_v37 = vld [vmem:[%s9157_s1 + $0xa58] sm:$0xff]  ;;  %v7350_v24 = vld [vmem:[%s7552_s19 + $0x34] sm:$0xe] }
 0x14d   : > { %4967 = vmatpush.bf16.msra.mxu1 %v7374_v9  ;;  %v8959_v10 = vadd.f32 %v2272_v4, %v8770_v46  ;;  %4481 = vmatmul.bf16.vlgmr.msrb.gmra.mxu2 %v4113_v58  ;;  %v7380_v46 = vld [vmem:[%s9157_s1 + $0xaa8] sm:$0xff]  ;;  %v4140_v9 = vrot.slane %v4138_v35, 1  ;;  %v7386_v5 = vld [vmem:[%s9157_s1 + $0xad8] sm:$0xff]  ;;  %v4149_v34 = vsel %vm804_vm0, %v4144_v43, %v4148_v14  ;;  %v7356_v4 = vld [vmem:[%s7552_s19 + $0x60] sm:$0xf0] }
 0x14e   : > { %4986 = vmatpush.bf16.msra.mxu2 %v7382_v45  ;;  %4500 = vmatmul.bf16.vlgmr.msrb.gmra.mxu3 %v4125_v40  ;;  %v4156_v45 = vrot.slane %v4154_v25, 1  ;;  %v7385_v40 = vld [vmem:[%s9157_s1 + $0xad0] sm:$0xff]  ;;  %v6758_v35 = vld [vmem:[%s7552_s19 + $0x44] sm:$0xf0]  ;;  %v6769_v61 = vor.u32 %v7356_v4, %v6768_v11  ;;  %v4536_v4 = vld [vmem:[%s7552_s19 + $0x80] sm:$0x11] }
 0x14f   : > { %5005 = vmatpush.bf16.msra.mxu3 %v7390_v12  ;;  %v4160_v12 = vor.u32 %v4158_v7, %v8933_v1  ;;  %v4141_v13 = vsel %vm804_vm0, %v4136_v18, %v4140_v9  ;;  %v7359_v18 = vld [vmem:[%s9157_s1 + $0xa00] sm:$0xff]  ;;  %v6761_v43 = vor.u32 %v7350_v24, %v6758_v35 }
 0x150   : > { %4949 = vmatpush.bf16.msra.mxu0 %v7365_v33  ;;  %v2833_v22 = vpop.f32.mrf.mxu2  ;;  %v2797_v27 = vpop.f32.mrf.mxu0  ;;  %v4157_v53 = vsel %vm804_vm0, %v4152_v51, %v4156_v45  ;;  %v7367_v9 = vld [vmem:[%s9157_s1 + $0xa40] sm:$0xff] }
 0x151   : > { %4968 = vmatpush.bf16.msra.mxu1 %v7373_v0  ;;  %v2852_v23 = vpop.f32.mrf.mxu3  ;;  %v2834_v26 = vadd.f32 %v2833_v22, %v2815_v62  ;;  %v2816_v56 = vpop.f32.mrf.mxu1  ;;  %v4165_v58 = vsel %vm804_vm0, %v4160_v12, %v4164_v49  ;;  %v7377_v62 = vld [vmem:[%s9157_s1 + $0xa90] sm:$0xff]  ;;  %v6748_v0 = vld [vmem:[%s7552_s19 + $0x28] sm:$0xe]  ;;  %v6776_v22 = vld [vmem:[%s7552_s19 + $0x58] sm:$0xf] }
 0x152   : > { %4987 = vmatpush.bf16.msra.mxu2 %v7381_v55  ;;  %v2817_v29 = vadd.f32 %v2816_v56, %v2797_v27  ;;  %v7360_v55 = vld [vmem:[%s9157_s1 + $0xa08] sm:$0xff]  ;;  %v6778_v27 = vld [vmem:[%s7552_s19 + $0x6c] sm:$0xf0]  ;;  %v6749_v30 = vor.u32 %v7351_v47, %v6748_v0  ;;  %v7375_v45 = vld [vmem:[%s9157_s1 + $0xa80] sm:$0xff] }
 0x153   : > { %5006 = vmatpush.bf16.msra.mxu3 %v7389_v57  ;;  %v8983_v31 = vadd.f32 %v2852_v23, %v2834_v26  ;;  %v7368_v57 = vld [vmem:[%s9157_s1 + $0xa48] sm:$0xff]  ;;  %v7355_v26 = vld [vmem:[%s7552_s19 + $0x5c] sm:$0xf]  ;;  %v7383_v12 = vld [vmem:[%s9157_s1 + $0xac0] sm:$0xff] }
 0x154   : > { %4950 = vmatpush.bf16.msra.mxu0 %v7364_v21  ;;  %v7354_v21 = vld [vmem:[%s7552_s19 + $0x54] sm:$0xf]  ;;  %v7357_v23 = vld [vmem:[%s7552_s19 + $0x68] sm:$0xf0]  ;;  %v6781_v14 = vor.u32 %v7355_v26, %v6778_v27  ;;  %v7398_v49 = vld [vmem:[%s9157_s1 + $0xb38] sm:$0xff] }
 0x155   : > { %4969 = vmatpush.bf16.msra.mxu1 %v7372_v41  ;;  %v7376_v41 = vld [vmem:[%s9157_s1 + $0xa88] sm:$0xff]  ;;  %v6773_v7 = vor.u32 %v7354_v21, %v6770_v17  ;;  %v7397_v0 = vld [vmem:[%s9157_s1 + $0xb30] sm:$0xff]  ;;  %v4535_v47 = vld [vmem:[%s7552_s19 + $0x78] sm:$0x11]  ;;  %v4656_v21 = vunpack.c.h.b16 %v4536_v4 }
 0x156   : > { %4988 = vmatpush.bf16.msra.mxu2 %v7380_v46  ;;  %v6756_v46 = vld [vmem:[%s7552_s19 + $0x30] sm:$0xe]  ;;  %v7395_v24 = vld [vmem:[%s9157_s1 + $0xb20] sm:$0xff] }
 0x157   : > { %5007 = vmatpush.bf16.msra.mxu3 %v7388_v19  ;;  %v7352_v19 = vld [vmem:[%s7552_s19 + $0x40] sm:$0xf0]  ;;  %v4671_v26 = vpack.c.b16 %v4656_v21, %v4656_v21 }
 0x158   : > { %4951 = vmatpush.bf16.msra.mxu0 %v7363_v32  ;;  %v2835_v1 = vpop.f32.mrf.mxu2  ;;  %v2800_v52 = vpop.f32.mrf.mxu0  ;;  %v6757_v36 = vor.u32 %v7352_v19, %v6756_v46 }
 0x159   : > { %4970 = vmatpush.bf16.msra.mxu1 %v7371_v50  ;;  %v2854_v15 = vpop.f32.mrf.mxu3  ;;  %v2836_v42 = vadd.f32 %v2835_v1, %v2817_v29  ;;  %v2819_v44 = vpop.f32.mrf.mxu1  ;;  %v6753_v29 = vor.u32 %v7349_v8, %v6750_v20  ;;  %v7396_v8 = vld [vmem:[%s9157_s1 + $0xb28] sm:$0xff]  ;;  %v4655_v20 = vunpack.c.l.b16 %v4536_v4 }
 0x15a   : > { %4989 = vmatpush.bf16.msra.mxu2 %v7379_v60  ;;  %v2820_v38 = vadd.f32 %v2819_v44, %v2800_v52  ;;  %v6777_v60 = vor.u32 %v7357_v23, %v6776_v22  ;;  %v4679_v1 = vrot.slane %v6757_v36, 1  ;;  %v9076_v52 = vrot.slane %v6781_v14, 1  ;;  %v4537_v14 = vld [vmem:[%s7552_s19 + $0x88] sm:$0x1] }
 0x15b   : > { %5008 = vmatpush.bf16.msra.mxu3 %v7387_v6  ;;  %v9023_v33 = vadd.f32 %v2854_v15, %v2836_v42  ;;  %4448 = vmatmul.bf16.gmra.mxu0 %v4141_v13  ;;  %v4682_v42 = vrot.slane %v6761_v43, 1  ;;  %v4670_v35 = vpack.c.b16 %v4655_v20, %v4655_v20  ;;  %v7393_v43 = vld [vmem:[%s9157_s1 + $0xb10] sm:$0xff] }
 0x15c   : > { %4952 = vmatpush.bf16.msra.mxu0 %v7362_v48  ;;  %4467 = vmatmul.bf16.gmra.mxu1 %v4149_v34  ;;  %v4673_v48 = vrot.slane %v6749_v30, 1  ;;  %v9074_v15 = vrot.slane %v6777_v60, 1 }
 0x15d   : > { %4971 = vmatpush.bf16.msra.mxu1 %v7370_v37  ;;  %4486 = vmatmul.bf16.gmra.mxu2 %v4157_v53  ;;  %v9070_v37 = vrot.slane %v6769_v61, 1  ;;  %v4692_v61 = vrot.slane %v4670_v35, 1 }
 0x15e   : > { %4990 = vmatpush.bf16.msra.mxu2 %v7378_v2  ;;  %4505 = vmatmul.bf16.gmra.mxu3 %v4165_v58  ;;  %v4676_v2 = vrot.slane %v6753_v29, 1  ;;  %v7394_v29 = vld [vmem:[%s9157_s1 + $0xb18] sm:$0xff] }
 0x15f   : > { %5009 = vmatpush.bf16.msra.mxu3 %v7386_v5  ;;  %v9072_v5 = vrot.slane %v6773_v7, 1  ;;  %v4675_v53 = vsel %vm1412_vm1, %v4673_v48, %v9070_v37  ;;  %v4657_v48 = vunpack.c.l.b16 %v4537_v14 }
 0x160   : > { %4953 = vmatpush.bf16.msra.mxu0 %v7361_v3  ;;  %v2838_v56 = vpop.f32.mrf.mxu2  ;;  %v2802_v50 = vpop.f32.mrf.mxu0 }
 0x161   : > { %4972 = vmatpush.bf16.msra.mxu1 %v7369_v59  ;;  %v2857_v28 = vpop.f32.mrf.mxu3  ;;  %v2839_v32 = vadd.f32 %v2838_v56, %v2820_v38  ;;  %v2821_v25 = vpop.f32.mrf.mxu1  ;;  %v4678_v58 = vsel %vm1412_vm1, %v4676_v2, %v9072_v5  ;;  %v6784_v2 = vld [vmem:[%s7552_s19 + $0x60] sm:$0xf] }
 0x162   : > { %4991 = vmatpush.bf16.msra.mxu2 %v7377_v62  ;;  %v2822_v6 = vadd.f32 %v2821_v25, %v2802_v50  ;;  %v4681_v62 = vsel %vm1412_vm1, %v4679_v1, %v9074_v15 }
 0x163   : > { %5010 = vmatpush.bf16.msra.mxu3 %v7385_v40  ;;  %v9059_v51 = vadd.f32 %v2857_v28, %v2839_v32  ;;  %v4684_v40 = vsel %vm1412_vm1, %v4682_v42, %v9076_v52 }
 0x164   : > { %4954 = vmatpush.bf16.msra.mxu0 %v7360_v55 }
 0x165   : > { %4973 = vmatpush.bf16.msra.mxu1 %v7368_v57  ;;  %v4654_v57 = vunpack.c.h.b16 %v4535_v47 }
 0x166   : > { %4992 = vmatpush.bf16.msra.mxu2 %v7376_v41 }
 0x167   : > { %5011 = vmatpush.bf16.msra.mxu3 %v7384_v54  ;;  %v4669_v22 = vpack.c.b16 %v4654_v57, %v4654_v57 }
 0x168   : > { %4955 = vmatpush.bf16.msra.mxu0 %v7359_v18  ;;  %v2840_v44 = vpop.f32.mrf.mxu2  ;;  %v2871_v3 = vpop.f32.mrf.mxu0  ;;  %v4693_v18 = vsel %vm1412_vm1, %v9074_v15, %v4692_v61 }
 0x169   : > { %4974 = vmatpush.bf16.msra.mxu1 %v7367_v9  ;;  %v2859_v13 = vpop.f32.mrf.mxu3  ;;  %v2841_v34 = vadd.f32 %v2840_v44, %v2822_v6  ;;  %v3327_v38 = vpop.f32.mrf.mxu1  ;;  %v2872_v59 = vadd.f32 %v2871_v3, %v8983_v31  ;;  %v4653_v31 = vunpack.c.l.b16 %v4535_v47  ;;  %v4690_v30 = vrot.slane %v4669_v22, 1 }
 0x16a   : > { %4993 = vmatpush.bf16.msra.mxu2 %v7375_v45 }
 0x16b   : > { %5012 = vmatpush.bf16.msra.mxu3 %v7383_v12  ;;  %v9091_v11 = vadd.f32 %v2859_v13, %v2841_v34  ;;  %v9095_v55 = vadd.f32 %v2872_v59, %v8816_v16  ;;  %4956 = vmatmul.bf16.vlgmr.msra.gmra.mxu0 %v4675_v53  ;;  %v4668_v19 = vpack.c.b16 %v4653_v31, %v4653_v31 }
 0x16c   : > { %5024 = vmatpush.bf16.msrb.mxu0 %v7398_v49  ;;  %4975 = vmatmul.bf16.vlgmr.msra.gmra.mxu1 %v4678_v58  ;;  %v4691_v60 = vsel %vm1412_vm1, %v9072_v5, %v4690_v30  ;;  %v7358_v5 = vld [vmem:[%s7552_s19 + $0x70] sm:$0xf0]  ;;  %v4672_v34 = vpack.c.b16 %v4657_v48, %v4657_v48 }
 0x16d   : > { %7410 = vmatpush.bf16.msrb.mxu1 %v7398_v49  ;;  %4994 = vmatmul.bf16.vlgmr.msra.gmra.mxu2 %v4681_v62  ;;  %v4688_v28 = vrot.slane %v4668_v19, 1  ;;  %v6764_v49 = vld [vmem:[%s7552_s19 + $0x38] sm:$0xe]  ;;  %v6785_v13 = vor.u32 %v7358_v5, %v6784_v2 }
 0x16e   : > { %5013 = vmatmul.bf16.vlgmr.msra.gmra.mxu3 %v4684_v40  ;;  %v4696_v40 = vrot.slane %v4672_v34, 1 }
 0x16f   : > { %v4686_v62 = vrot.slane %v6785_v13, 1 }
 0x170   : > { %5025 = vmatpush.bf16.msrb.mxu0 %v7397_v0  ;;  %v3346_v41 = vpop.f32.mrf.mxu2  ;;  %v2873_v46 = vpop.f32.mrf.mxu0 }
 0x171   : > { %7411 = vmatpush.bf16.msrb.mxu1 %v7397_v0  ;;  %v3365_v54 = vpop.f32.mrf.mxu3  ;;  %v3347_v17 = vadd.f32 %v3346_v41, %v3327_v38  ;;  %v3329_v16 = vpop.f32.mrf.mxu1  ;;  %v2874_v23 = vadd.f32 %v2873_v46, %v9023_v33  ;;  %v4694_v33 = vrot.slane %v4671_v26, 1  ;;  %v7391_v38 = vld [vmem:[%s9157_s1 + $0xb00] sm:$0xff] }
 0x173   : > { %v9104_v27 = vadd.f32 %v3365_v54, %v3347_v17  ;;  %v9107_v56 = vadd.f32 %v2874_v23, %v8871_v63  ;;  %v4689_v63 = vsel %vm1412_vm1, %v9070_v37, %v4688_v28  ;;  %v4695_v9 = vsel %vm1412_vm1, %v9076_v52, %v4694_v33  ;;  %v7353_v37 = vld [vmem:[%s7552_s19 + $0x48] sm:$0xf0] }
 0x174   : > { %5026 = vmatpush.bf16.msrb.mxu0 %v7396_v8  ;;  %v6765_v44 = vor.u32 %v7353_v37, %v6764_v49 }
 0x175   : > { %7412 = vmatpush.bf16.msrb.mxu1 %v7396_v8  ;;  %v4697_v8 = vsel %vm1412_vm1, %v4686_v62, %v4696_v40 }
 0x176   : > { %v4685_v59 = vrot.slane %v6765_v44, 1 }
 0x178   : > { %5027 = vmatpush.bf16.msrb.mxu0 %v7395_v24  ;;  %v3348_v32 = vpop.f32.mrf.mxu2  ;;  %v2876_v7 = vpop.f32.mrf.mxu0 }
 0x179   : > { %7413 = vmatpush.bf16.msrb.mxu1 %v7395_v24  ;;  %v3367_v50 = vpop.f32.mrf.mxu3  ;;  %v3349_v25 = vadd.f32 %v3348_v32, %v3329_v16  ;;  %v3332_v36 = vpop.f32.mrf.mxu1  ;;  %v2877_v6 = vadd.f32 %v2876_v7, %v9059_v51  ;;  %v7392_v51 = vld [vmem:[%s9157_s1 + $0xb08] sm:$0xff] }
 0x17b   : > { %v3368_v45 = vadd.f32 %v3367_v50, %v3349_v25  ;;  %v2887_v12 = vadd.f32 %v2877_v6, %v8923_v39  ;;  %4961 = vmatmul.bf16.gmra.mxu0 %v4689_v63 }
 0x17c   : > { %5028 = vmatpush.bf16.msrb.mxu0 %v7394_v29  ;;  %4980 = vmatmul.bf16.gmra.mxu1 %v4691_v60 }
 0x17d   : > { %7414 = vmatpush.bf16.msrb.mxu1 %v7394_v29  ;;  %4999 = vmatmul.bf16.gmra.mxu2 %v4693_v18 }
 0x17e   : > { %5018 = vmatmul.bf16.gmra.mxu3 %v4695_v9 }
 0x180   : > { %5029 = vmatpush.bf16.msrb.mxu0 %v7393_v43  ;;  %v3351_v1 = vpop.f32.mrf.mxu2  ;;  %v2878_v52 = vpop.f32.mrf.mxu0 }
 0x181   : > { %7415 = vmatpush.bf16.msrb.mxu1 %v7393_v43  ;;  %v3370_v15 = vpop.f32.mrf.mxu3  ;;  %v3352_v42 = vadd.f32 %v3351_v1, %v3332_v36  ;;  %v3334_v39 = vpop.f32.mrf.mxu1  ;;  %v2879_v3 = vadd.f32 %v2878_v52, %v9091_v11  ;;  %v4687_v11 = vsel %vm1412_vm1, %v4685_v59, %v4686_v62 }
 0x183   : > { %v3371_v53 = vadd.f32 %v3370_v15, %v3352_v42  ;;  %v2888_v58 = vadd.f32 %v2879_v3, %v8959_v10 }
 0x184   : > { %5030 = vmatpush.bf16.msrb.mxu0 %v7392_v51 }
 0x185   : > { %7416 = vmatpush.bf16.msrb.mxu1 %v7392_v51 }
 0x188   : > { %5031 = vmatpush.bf16.msrb.mxu0 %v7391_v38  ;;  %v3353_v0 = vpop.f32.mrf.mxu2  ;;  %v3384_v31 = vpop.f32.mrf.mxu0 }
 0x189   : > { %7417 = vmatpush.bf16.msrb.mxu1 %v7391_v38  ;;  %v3372_v47 = vpop.f32.mrf.mxu3  ;;  %v3354_v4 = vadd.f32 %v3353_v0, %v3334_v39  ;;  %v3403_v57 = vpop.f32.mrf.mxu1  ;;  %v3385_v20 = vadd.f32 %v3384_v31, %v9104_v27 }
 0x18b   : > { %v3373_v21 = vadd.f32 %v3372_v47, %v3354_v4  ;;  %v3404_v41 = vadd.f32 %v3403_v57, %v3385_v20  ;;  %5032 = vmatmul.bf16.vlgmr.msrb.gmra.mxu0 %v4687_v11 }
 0x18c   : > { %5037 = vmatmul.bf16.vlgmr.msrb.gmra.mxu1 %v4697_v8 }
 0x18d   : > { %v3417_v10 = vadd.f32 %v3404_v41, %v9095_v55 }
 0x190   : > { %v3818_v54 = vpop.f32.mrf.mxu2  ;;  %v3386_v16 = vpop.f32.mrf.mxu0 }
 0x191   : > { %v3837_v17 = vpop.f32.mrf.mxu3  ;;  %v3405_v19 = vpop.f32.mrf.mxu1  ;;  %v3387_v22 = vadd.f32 %v3386_v16, %v3368_v45 }
 0x192   : > { %v3838_v46 = vadd.f32 %v3837_v17, %v3818_v54 }
 0x193   : > { %v3406_v23 = vadd.f32 %v3405_v19, %v3387_v22 }
 0x195   : > { %v3418_v24 = vadd.f32 %v3406_v23, %v9107_v56 }
 0x198   : > { %v3820_v35 = vpop.f32.mrf.mxu2  ;;  %v3389_v30 = vpop.f32.mrf.mxu0 }
 0x199   : > { %v3839_v26 = vpop.f32.mrf.mxu3  ;;  %v3408_v27 = vpop.f32.mrf.mxu1  ;;  %v3390_v61 = vadd.f32 %v3389_v30, %v3371_v53 }
 0x19a   : > { %v3840_v28 = vadd.f32 %v3839_v26, %v3820_v35 }
 0x19b   : > { %v3409_v33 = vadd.f32 %v3408_v27, %v3390_v61 }
 0x19d   : > { %v3419_v29 = vadd.f32 %v3409_v33, %v2887_v12 }
 0x1a0   : > { %v3823_v32 = vpop.f32.mrf.mxu2  ;;  %v3391_v25 = vpop.f32.mrf.mxu0 }
 0x1a1   : > { %v3842_v50 = vpop.f32.mrf.mxu3  ;;  %v3410_v7 = vpop.f32.mrf.mxu1  ;;  %v3392_v36 = vadd.f32 %v3391_v25, %v3373_v21 }
 0x1a2   : > { %v3843_v55 = vadd.f32 %v3842_v50, %v3823_v32 }
 0x1a3   : > { %v3411_v63 = vadd.f32 %v3410_v7, %v3392_v36 }
 0x1a5   : > { %v3420_v60 = vadd.f32 %v3411_v63, %v2888_v58 }
 0x1a8   : > { %v3825_v6 = vpop.f32.mrf.mxu2  ;;  %v3856_v56 = vpop.f32.mrf.mxu0 }
 0x1a9   : > { %v3844_v18 = vpop.f32.mrf.mxu3  ;;  %v3875_v43 = vpop.f32.mrf.mxu1  ;;  %v3857_v14 = vadd.f32 %v3856_v56, %v3838_v46 }
 0x1aa   : > { %v3845_v9 = vadd.f32 %v3844_v18, %v3825_v6 }
 0x1ab   : > { %v3876_v45 = vadd.f32 %v3875_v43, %v3857_v14 }
 0x1b0   : > { %v3894_v51 = vpop.f32.mrf.mxu2  ;;  %v3858_v37 = vpop.f32.mrf.mxu0 }
 0x1b1   : > { %v4425_v49 = vpop.f32.mrf.mxu3  ;;  %v3895_v48 = vadd.f32 %v3894_v51, %v3876_v45  ;;  %v3877_v12 = vpop.f32.mrf.mxu1  ;;  %v3859_v2 = vadd.f32 %v3858_v37, %v3840_v28 }
 0x1b3   : > { %v3908_v5 = vadd.f32 %v3895_v48, %v3417_v10  ;;  %v3878_v1 = vadd.f32 %v3877_v12, %v3859_v2 }
 0x1b8   : > { %v3896_v15 = vpop.f32.mrf.mxu2  ;;  %v3861_v39 = vpop.f32.mrf.mxu0 }
 0x1b9   : > { %v4427_v42 = vpop.f32.mrf.mxu3  ;;  %v3897_v52 = vadd.f32 %v3896_v15, %v3878_v1  ;;  %v3880_v44 = vpop.f32.mrf.mxu1  ;;  %v3862_v13 = vadd.f32 %v3861_v39, %v3843_v55 }
 0x1bb   : > { %v3909_v34 = vadd.f32 %v3897_v52, %v3418_v24  ;;  %v3881_v3 = vadd.f32 %v3880_v44, %v3862_v13 }
 0x1c0   : > { %v3899_v38 = vpop.f32.mrf.mxu2  ;;  %v3863_v59 = vpop.f32.mrf.mxu0 }
 0x1c1   : > { %v4430_v53 = vpop.f32.mrf.mxu3  ;;  %v3900_v58 = vadd.f32 %v3899_v38, %v3881_v3  ;;  %v3882_v62 = vpop.f32.mrf.mxu1  ;;  %v3864_v40 = vadd.f32 %v3863_v59, %v3845_v9 }
 0x1c3   : > { %v3910_v0 = vadd.f32 %v3900_v58, %v3419_v29  ;;  %v3883_v47 = vadd.f32 %v3882_v62, %v3864_v40 }
 0x1c8   : > { %v3901_v4 = vpop.f32.mrf.mxu2  ;;  %v4444_v11 = vpop.f32.mrf.mxu0 }
 0x1c9   : > { %v4432_v31 = vpop.f32.mrf.mxu3  ;;  %v3902_v57 = vadd.f32 %v3901_v4, %v3883_v47  ;;  %v4463_v8 = vpop.f32.mrf.mxu1  ;;  %v4445_v20 = vadd.f32 %v4444_v11, %v4425_v49 }
 0x1cb   : > { %v9143_v21 = vadd.f32 %v3902_v57, %v3420_v60  ;;  %v4464_v41 = vadd.f32 %v4463_v8, %v4445_v20 }
 0x1d0   : > { %v4482_v10 = vpop.f32.mrf.mxu2  ;;  %v4446_v46 = vpop.f32.mrf.mxu0 }
 0x1d1   : > { %v4501_v54 = vpop.f32.mrf.mxu3  ;;  %v4483_v17 = vadd.f32 %v4482_v10, %v4464_v41  ;;  %v4465_v16 = vpop.f32.mrf.mxu1  ;;  %v4447_v22 = vadd.f32 %v4446_v46, %v4427_v42 }
 0x1d3   : > { %v4502_v19 = vadd.f32 %v4501_v54, %v4483_v17  ;;  %v4466_v24 = vadd.f32 %v4465_v16, %v4447_v22 }
 0x1d5   : > { %v4515_v23 = vadd.f32 %v4502_v19, %v3908_v5 }
 0x1d8   : > { %v4484_v35 = vpop.f32.mrf.mxu2  ;;  %v4449_v30 = vpop.f32.mrf.mxu0 }
 0x1d9   : > { %v4503_v26 = vpop.f32.mrf.mxu3  ;;  %v4485_v28 = vadd.f32 %v4484_v35, %v4466_v24  ;;  %v4468_v27 = vpop.f32.mrf.mxu1  ;;  %v4450_v33 = vadd.f32 %v4449_v30, %v4430_v53 }
 0x1db   : > { %v4504_v61 = vadd.f32 %v4503_v26, %v4485_v28  ;;  %v4469_v32 = vadd.f32 %v4468_v27, %v4450_v33 }
 0x1dd   : > { %v4516_v29 = vadd.f32 %v4504_v61, %v3909_v34 }
 0x1e0   : > { %v4487_v50 = vpop.f32.mrf.mxu2  ;;  %v4451_v7 = vpop.f32.mrf.mxu0 }
 0x1e1   : > { %v4506_v55 = vpop.f32.mrf.mxu3  ;;  %v4488_v25 = vadd.f32 %v4487_v50, %v4469_v32  ;;  %v4470_v36 = vpop.f32.mrf.mxu1  ;;  %v4452_v52 = vadd.f32 %v4451_v7, %v4432_v31  ;;  %v7427_v31 = vld [vmem:[%s9158_s2] ss:$0 sm:$0xff] }
 0x1e3   : > { %v4507_v63 = vadd.f32 %v4506_v55, %v4488_v25  ;;  %v4471_v34 = vadd.f32 %v4470_v36, %v4452_v52 }
 0x1e5   : > { %v4517_v60 = vadd.f32 %v4507_v63, %v3910_v0 }
 0x1e8   : > { %v4489_v6 = vpop.f32.mrf.mxu2  ;;  %v4957_v9 = vpop.f32.mrf.mxu0 }
 0x1e9   : > { %v4508_v18 = vpop.f32.mrf.mxu3  ;;  %v4976_v56 = vpop.f32.mrf.mxu1  ;;  %v4490_v58 = vadd.f32 %v4489_v6, %v4471_v34 }
 0x1ea   : > { %v4977_v15 = vadd.f32 %v4976_v56, %v4957_v9 }
 0x1eb   : > { %v4509_v8 = vadd.f32 %v4508_v18, %v4490_v58 }
 0x1ed   : > { %v4518_v46 = vadd.f32 %v4509_v8, %v9143_v21 }
 0x1f0   : > { %v4995_v43 = vpop.f32.mrf.mxu2  ;;  %v4959_v45 = vpop.f32.mrf.mxu0 }
 0x1f1   : > { %v5014_v14 = vpop.f32.mrf.mxu3  ;;  %v4978_v51 = vpop.f32.mrf.mxu1  ;;  %v4996_v39 = vadd.f32 %v4995_v43, %v4977_v15 }
 0x1f2   : > { %v4979_v40 = vadd.f32 %v4978_v51, %v4959_v45 }
 0x1f3   : > { %v5015_v3 = vadd.f32 %v5014_v14, %v4996_v39 }
 0x1f8   : > { %v4997_v49 = vpop.f32.mrf.mxu2  ;;  %v4962_v48 = vpop.f32.mrf.mxu0 }
 0x1f9   : > { %v4981_v37 = vpop.f32.mrf.mxu1  ;;  %v5016_v12 = vpop.f32.mrf.mxu3  ;;  %v4998_v57 = vadd.f32 %v4997_v49, %v4979_v40 }
 0x1fa   : > { %v4982_v42 = vadd.f32 %v4981_v37, %v4962_v48 }
 0x1fb   : > { %v5017_v54 = vadd.f32 %v5016_v12, %v4998_v57 }
 0x200   : > { %v5000_v2 = vpop.f32.mrf.mxu2  ;;  %v4964_v5 = vpop.f32.mrf.mxu0 }
 0x201   : > { %v4983_v1 = vpop.f32.mrf.mxu1  ;;  %v5001_v44 = vadd.f32 %v5000_v2, %v4982_v42  ;;  %v5019_v13 = vpop.f32.mrf.mxu3 }
 0x202   : > { %v4984_v0 = vadd.f32 %v4983_v1, %v4964_v5 }
 0x203   : > { %v5020_v38 = vadd.f32 %v5019_v13, %v5001_v44 }
 0x208   : > { %v5002_v53 = vpop.f32.mrf.mxu2  ;;  %v5033_v59 = vpop.f32.mrf.mxu0 }
 0x209   : > { %v5038_v62 = vpop.f32.mrf.mxu1  ;;  %v5034_v47 = vadd.f32 %v5033_v59, %v5015_v3  ;;  %v5003_v11 = vadd.f32 %v5002_v53, %v4984_v0  ;;  %v5021_v10 = vpop.f32.mrf.mxu3 }
 0x20a   : > { %v5039_v4 = vadd.f32 %v5038_v62, %v5020_v38 }
 0x20b   : > { %v5047_v20 = vadd.f32 %v5034_v47, %v4515_v23  ;;  %v5022_v17 = vadd.f32 %v5021_v10, %v5003_v11 }
 0x20c   : > { %v5049_v41 = vadd.f32 %v5039_v4, %v4517_v60 }
 0x20d   : > { %v5063_v22 = vadd.f32 %v7427_v31, %v5047_v20 }
 0x20e   : > { %v5065_v24 = vadd.f32 %v7427_v31, %v5049_v41 }
 0x20f   : > { %v5067_v23 = vmul.f32 0.1, %v5063_v22 }
 0x210   : > { %v5035_v16 = vpop.f32.mrf.mxu0  ;;  %v5069_v27 = vmul.f32 0.1, %v5065_v24 }
 0x211   : > { %v5040_v19 = vpop.f32.mrf.mxu1  ;;  %v5036_v35 = vadd.f32 %v5035_v16, %v5017_v54  ;;  %v5071_v55 = vmax.f32 %v5063_v22, %v5067_v23 }
 0x212   : > { %v5041_v26 = vadd.f32 %v5040_v19, %v5022_v17  ;;  %v5073_v25 = vmax.f32 %v5065_v24, %v5069_v27 }
 0x213   : > { %v5048_v28 = vadd.f32 %v5036_v35, %v4516_v29 }
 0x214   : > { %v5050_v30 = vadd.f32 %v5041_v26, %v4518_v46 }
 0x215   : > { %v5064_v61 = vadd.f32 %v7427_v31, %v5048_v28 }
 0x216   : > { %v5066_v33 = vadd.f32 %v7427_v31, %v5050_v30 }
 0x217   : > { %v5068_v32 = vmul.f32 0.1, %v5064_v61 }
 0x218   : > { %v5070_v50 = vmul.f32 0.1, %v5066_v33 }
 0x219   : > { %v5072_v7 = vmax.f32 %v5064_v61, %v5068_v32 }
 0x21a   : > { %v5074_v36 = vmax.f32 %v5066_v33, %v5070_v50 }
 0x21b   : > { %v7402_v21 = vpack.c.bf16 %v5072_v7, %v5071_v55 }
 0x21c   : > { %v7407_v63 = vpack.c.bf16 %v5074_v36, %v5073_v25 }
 0x21d   : > { %7403 = vst [vmem:[%s170_s20] sm:$0xff] %v7402_v21  }
 0x21e   : > { %7409 = vst [vmem:[%s170_s20 + $0x8] sm:$0xff] %v7407_v63  }
 0x21f PF: > { %s13_s12 = sadd.s32 1, %s7434_s12  }
 0x220   : > { %p10_p4 = scmp.ge.s32.totalorder %s13_s12, 4  }
 0x222   :  { %12 = sbr.rel (!%p10_p4) target bundleno = 1 (0x1), region = 62 }

</bundles_post_ra>
